<compile_context>
chip_gen: v6e
topology: v6e:2x2x1
jax: 0.10.0
libtpu: 0.0.40
codegen_flags: <defaults>
</compile_context>

<pallas_src>
import jax
import jax.numpy as jnp
from jax.experimental import pallas as pl
from jax.experimental.pallas import tpu as pltpu

NUM_BLOCKS = 6
NUM_MASK_CHANNELS = 5
DEC_OUT = NUM_MASK_CHANNELS + 1          # num_mask_channels + 1
BN_EPS = 1e-5                            # nn.BatchNorm3d default
LRELU_SLOPE = 0.2                        # nn.LeakyReLU(0.2)


def _round_up(x, m):
    return ((x + m - 1) // m) * m


# ----------------------------- channel config ------------------------------
def get_channels(which_net, base_multiplier):
    channel_multipliers = {
        'Generator': [8, 8, 8, 8, 8, 8, 8, 4, 2, 1],
        'Discriminator': [1, 2, 4, 8, 8, 8, 8, 8, 8],
    }
    return [int(m * base_multiplier) for m in channel_multipliers[which_net]]


def discriminator_w2_channels():
    ch = get_channels('Discriminator', 32)[:NUM_BLOCKS + 1]
    for i in range(NUM_BLOCKS):
        ch[i] = int(ch[i] * 2)
    return ch                            # [64, 128, 256, 512, 512, 512, 256]


# ------------------------------ kernel helpers ------------------------------
def _bn_train(v):
    # BatchNorm3d training mode, affine at init (gamma=1, beta=0), biased variance,
    # spatial dims are 1x1x1 so stats are over the M*B rows.
    mu = jnp.mean(v, axis=0, keepdims=True)
    var = jnp.mean((v - mu) ** 2, axis=0, keepdims=True)
    return (v - mu) * jax.lax.rsqrt(var + BN_EPS)


def _lrelu(v):
    return jnp.where(v >= 0, v, LRELU_SLOPE * v)


def make_fused_kernel(block_meta, *, B, M, inv_s):
    """One kernel: masked-mean accumulation over S tiles + all 6 blocks at the end."""

    def kernel(y_ref, m_ref, bias_ref, *rest):
        w_refs = rest[:-2]               # flat list: per block [w1t, w2t, (wsct), wdt]
        dec_ref = rest[-2]               # [M*B, NUM_BLOCKS*DEC_OUT] lane-packed output
        acc_ref = rest[-1]               # [B, M, C0] f32 accumulator (VMEM scratch)

        s = pl.program_id(0)

        @pl.when(s == 0)
        def _init():
            acc_ref[...] = jnp.zeros_like(acc_ref)

        # Masked spatial sum for this S tile:
        #   mask tile [B, M, TS] (bf16) @ y tile [B, TS, C0] (bf16) -> [B, M, C0] f32
        acc_ref[...] += jax.lax.dot_general(
            m_ref[...], y_ref[...],
            dimension_numbers=(((2,), (1,)), ((0,), (0,))),
            preferred_element_type=jnp.float32)

        @pl.when(s == pl.num_programs(0) - 1)
        def _finalize():
            a = acc_ref[...] * inv_s                                  # (B, M, C0)
            # torch row ordering of content_masked_attention: row = m * B + b
            x = jnp.concatenate([a[:, m, :] for m in range(M)], axis=0)  # (M*B, C0)

            wi = 0
            for i, meta in enumerate(block_meta):
                w1t = w_refs[wi][...]; wi += 1                        # (cin, cmid) bf16
                w2t = w_refs[wi][...]; wi += 1                        # (cmid, cout) bf16
                wsct = None
                if meta['has_sc']:
                    wsct = w_refs[wi][...]; wi += 1                   # (cin, cout) bf16
                wdt = w_refs[wi][...]; wi += 1                        # (cout, DEC_OUT) bf16

                b1 = bias_ref[:, meta['b1_off']:meta['b1_off'] + meta['cmid']]
                b2 = bias_ref[:, meta['b2_off']:meta['b2_off'] + meta['cout']]
                bd = bias_ref[:, meta['bd_off']:meta['bd_off'] + DEC_OUT]

                h = x
                t = _lrelu(_bn_train(x))                              # norm1 + activ
                t = jnp.dot(t.astype(jnp.bfloat16), w1t,
                            preferred_element_type=jnp.float32) + b1  # conv1 (1x1x1)
                t = _lrelu(_bn_train(t))                              # norm2 + activ
                t = jnp.dot(t.astype(jnp.bfloat16), w2t,
                            preferred_element_type=jnp.float32) + b2  # conv2 (1x1x1)
                if wsct is not None:                                  # learned shortcut
                    h = jnp.dot(h.astype(jnp.bfloat16), wsct,
                                preferred_element_type=jnp.float32)
                x = t + h                                             # residual add
                # fused to_decision: 1x1x1 conv -> DEC_OUT channels, lane-packed
                dec = jnp.dot(x.astype(jnp.bfloat16), wdt,
                              preferred_element_type=jnp.float32) + bd
                dec_ref[:, i * DEC_OUT:(i + 1) * DEC_OUT] = dec

    return kernel


# ------------------------ parameter setup (plain JAX glue) ------------------
def _spectral_normalize(w, n_iters=50):
    # Deterministic stand-in for torch.nn.utils.spectral_norm: converged power
    # iteration instead of torch's single, randomly-seeded iteration per call.
    w2d = w.reshape(w.shape[0], -1)
    u = jnp.full((w2d.shape[0],), 1.0, jnp.float32)
    u = u / jnp.linalg.norm(u)
    v = None
    for _ in range(n_iters):
        v = w2d.T @ u
        v = v / (jnp.linalg.norm(v) + 1e-12)
        u = w2d @ v
        u = u / (jnp.linalg.norm(u) + 1e-12)
    sigma = u @ (w2d @ v)
    return w / sigma


def init_params(key):
    ch = discriminator_w2_channels()
    meta = []
    weights = []          # flat bf16 weight list in kernel order
    bias_parts = []       # (lane offset, f32 vector) into the packed bias slab
    off = 0

    def rnd(k, shape, scale=0.05):
        return scale * jax.random.normal(k, shape, jnp.float32)

    def alloc_bias(vec):
        nonlocal off
        start = off
        bias_parts.append((start, vec))
        off += _round_up(max(vec.shape[0], 1), 128)   # lane-tile aligned segments
        return start

    for i in range(NUM_BLOCKS):
        cin, cout = ch[i], ch[i + 1]
        cmid = min(cin, cout)
        key, *ks = jax.random.split(key, 8)
        w1 = _spectral_normalize(rnd(ks[0], (cmid, cin)))       # conv1 weight [out,in]
        b1 = rnd(ks[1], (cmid,))
        w2 = _spectral_normalize(rnd(ks[2], (cout, cmid)))      # conv2 weight
        b2 = rnd(ks[3], (cout,))
        has_sc = cin != cout                                    # learned_sc (only_content)
        wsc = _spectral_normalize(rnd(ks[4], (cout, cin))) if has_sc else None
        wd = _spectral_normalize(rnd(ks[5], (DEC_OUT, cout)))   # to_decision weight
        bd = rnd(ks[6], (DEC_OUT,))

        weights.append(w1.T.astype(jnp.bfloat16))
        weights.append(w2.T.astype(jnp.bfloat16))
        if has_sc:
            weights.append(wsc.T.astype(jnp.bfloat16))
        weights.append(wd.T.astype(jnp.bfloat16))

        meta.append({
            'cin': cin, 'cmid': cmid, 'cout': cout, 'has_sc': has_sc,
            'b1_off': alloc_bias(b1),
            'b2_off': alloc_bias(b2),
            'bd_off': alloc_bias(bd),
        })

    total = max(off, 128)
    bias = jnp.zeros((1, total), jnp.float32)
    for start, vec in bias_parts:
        bias = bias.at[0, start:start + vec.shape[0]].set(vec)

    return {'meta': meta, 'weights': weights, 'bias': bias}


# ------------------------------- forward ------------------------------------
def nearest_resize_3d(x, size):
    # F.interpolate(..., mode='nearest') on a NCDHW tensor (glue, pure gather).
    _, _, Di, Hi, Wi = x.shape
    Do, Ho, Wo = size
    di = (jnp.arange(Do) * Di) // Do
    hi = (jnp.arange(Ho) * Hi) // Ho
    wi = (jnp.arange(Wo) * Wi) // Wo
    return x[:, :, di][:, :, :, hi][:, :, :, :, wi]


def discriminator_w2_forward(images, masks, params, for_real=True, epoch=0):
    # TODO(synk): for_real=False path (straight-through Bernoulli / one-hot mask)
    # is stochastic and not implemented; only the deterministic for_real=True path runs.
    assert for_real, "only the for_real=True path is implemented"
    B, C0 = images.shape[:2]
    D, H, W = images.shape[2:]
    M = masks.shape[1]
    S = D * H * W

    mask = nearest_resize_3d(masks, (D, H, W))                         # [B, M, D, H, W]

    # Channels-last slabs so the masked mean is an MXU-canonical contraction over S.
    y_r = jnp.transpose(images.reshape(B, C0, S), (0, 2, 1)).astype(jnp.bfloat16)  # [B,S,C0]
    m_r = mask.reshape(B, M, S).astype(jnp.bfloat16)                               # [B,M,S]

    # Tile S (reduction grid axis). Zero padding contributes nothing to the sum.
    TS = min(2048, _round_up(S, 128))
    S_pad = _round_up(S, TS)
    if S_pad != S:
        y_r = jnp.pad(y_r, ((0, 0), (0, S_pad - S), (0, 0)))
        m_r = jnp.pad(m_r, ((0, 0), (0, 0), (0, S_pad - S)))
    num_s_tiles = S_pad // TS

    meta = params['meta']
    weights = params['weights']
    bias = params['bias']
    n_rows = M * B

    kernel = make_fused_kernel(meta, B=B, M=M, inv_s=1.0 / S)

    in_specs = (
        [pl.BlockSpec((B, TS, C0), lambda s: (0, s, 0)),          # y S-tile
         pl.BlockSpec((B, M, TS), lambda s: (0, 0, s)),           # mask S-tile
         pl.BlockSpec(bias.shape, lambda s: (0, 0))]              # packed biases (resident)
        + [pl.BlockSpec(w.shape, lambda s: (0, 0)) for w in weights]  # weights (resident)
    )
    out_spec = pl.BlockSpec((n_rows, NUM_BLOCKS * DEC_OUT), lambda s: (0, 0))

    dec_packed = pl.pallas_call(
        kernel,
        out_shape=jax.ShapeDtypeStruct((n_rows, NUM_BLOCKS * DEC_OUT), jnp.float32),
        grid_spec=pltpu.PrefetchScalarGridSpec(
            num_scalar_prefetch=0,
            grid=(num_s_tiles,),
            in_specs=in_specs,
            out_specs=out_spec,
            scratch_shapes=[pltpu.VMEM((B, M, C0), jnp.float32)],
        ),
        compiler_params=pltpu.CompilerParams(
            dimension_semantics=("arbitrary",)),
    )(y_r, m_r, bias, *weights)

    # torch output shape of each 1x1x1 decision conv: [M*B, 6, 1, 1, 1]
    return [dec_packed[:, i * DEC_OUT:(i + 1) * DEC_OUT].reshape(n_rows, DEC_OUT, 1, 1, 1)
            for i in range(NUM_BLOCKS)]


# --------------------------------- main --------------------------------------
if __name__ == "__main__":
    key = jax.random.PRNGKey(0)
    k_img, k_mask, k_par = jax.random.split(key, 3)
    ch = discriminator_w2_channels()

    B, D, H, W = 2, 4, 8, 8
    images = jax.random.normal(k_img, (B, ch[0], D, H, W), jnp.float32)
    mask_logits = jax.random.normal(
        k_mask, (B, NUM_MASK_CHANNELS, D // 2, H // 2, W // 2), jnp.float32)
    masks = jax.nn.softmax(mask_logits, axis=1)                 # soft segmentation masks

    params = init_params(k_par)
    outs = discriminator_w2_forward(images, masks, params, for_real=True, epoch=0)
    outs = [jax.block_until_ready(o) for o in outs]

    assert len(outs) == NUM_BLOCKS
    assert all(o.shape == (NUM_MASK_CHANNELS * B, DEC_OUT, 1, 1, 1) for o in outs)
    assert all(bool(jnp.all(jnp.isfinite(o))) for o in outs)
    print("KERNEL_OK")
</pallas_src>

<mosaic_0001>
module attributes {stable_mosaic.version = 11 : i64} {
  func.func @kernel(%arg0: i32, %arg1: memref<2x256x64xbf16, #tpu.memory_space<vmem>>, %arg2: memref<2x5x256xbf16, #tpu.memory_space<vmem>>, %arg3: memref<1x4736xf32, #tpu.memory_space<vmem>>, %arg4: memref<64x64xbf16, #tpu.memory_space<vmem>>, %arg5: memref<64x128xbf16, #tpu.memory_space<vmem>>, %arg6: memref<64x128xbf16, #tpu.memory_space<vmem>>, %arg7: memref<128x6xbf16, #tpu.memory_space<vmem>>, %arg8: memref<128x128xbf16, #tpu.memory_space<vmem>>, %arg9: memref<128x256xbf16, #tpu.memory_space<vmem>>, %arg10: memref<128x256xbf16, #tpu.memory_space<vmem>>, %arg11: memref<256x6xbf16, #tpu.memory_space<vmem>>, %arg12: memref<256x256xbf16, #tpu.memory_space<vmem>>, %arg13: memref<256x512xbf16, #tpu.memory_space<vmem>>, %arg14: memref<256x512xbf16, #tpu.memory_space<vmem>>, %arg15: memref<512x6xbf16, #tpu.memory_space<vmem>>, %arg16: memref<512x512xbf16, #tpu.memory_space<vmem>>, %arg17: memref<512x512xbf16, #tpu.memory_space<vmem>>, %arg18: memref<512x6xbf16, #tpu.memory_space<vmem>>, %arg19: memref<512x512xbf16, #tpu.memory_space<vmem>>, %arg20: memref<512x512xbf16, #tpu.memory_space<vmem>>, %arg21: memref<512x6xbf16, #tpu.memory_space<vmem>>, %arg22: memref<512x256xbf16, #tpu.memory_space<vmem>>, %arg23: memref<256x256xbf16, #tpu.memory_space<vmem>>, %arg24: memref<512x256xbf16, #tpu.memory_space<vmem>>, %arg25: memref<256x6xbf16, #tpu.memory_space<vmem>>, %arg26: memref<10x36xf32, #tpu.memory_space<vmem>>, %arg27: memref<2x5x64xf32, #tpu.memory_space<vmem>>) attributes {dimension_semantics = [#tpu.dimension_semantics<arbitrary>], iteration_bounds = array<i64: 1>, scalar_prefetch = 0 : i64, scratch_operands = 1 : i64, tpu.core_type = #tpu.core_type<tc>, window_params = [{transform_indices = @transform_0, window_bounds = array<i64: 2, 256, 64>}, {transform_indices = @transform_1, window_bounds = array<i64: 2, 5, 256>}, {pipeline_mode = #tpu.pipeline_mode<synchronous>, transform_indices = @transform_2, window_bounds = array<i64: 1, 4736>}, {pipeline_mode = #tpu.pipeline_mode<synchronous>, transform_indices = @transform_3, window_bounds = array<i64: 64, 64>}, {pipeline_mode = #tpu.pipeline_mode<synchronous>, transform_indices = @transform_4, window_bounds = array<i64: 64, 128>}, {pipeline_mode = #tpu.pipeline_mode<synchronous>, transform_indices = @transform_5, window_bounds = array<i64: 64, 128>}, {pipeline_mode = #tpu.pipeline_mode<synchronous>, transform_indices = @transform_6, window_bounds = array<i64: 128, 6>}, {pipeline_mode = #tpu.pipeline_mode<synchronous>, transform_indices = @transform_7, window_bounds = array<i64: 128, 128>}, {pipeline_mode = #tpu.pipeline_mode<synchronous>, transform_indices = @transform_8, window_bounds = array<i64: 128, 256>}, {pipeline_mode = #tpu.pipeline_mode<synchronous>, transform_indices = @transform_9, window_bounds = array<i64: 128, 256>}, {pipeline_mode = #tpu.pipeline_mode<synchronous>, transform_indices = @transform_10, window_bounds = array<i64: 256, 6>}, {pipeline_mode = #tpu.pipeline_mode<synchronous>, transform_indices = @transform_11, window_bounds = array<i64: 256, 256>}, {pipeline_mode = #tpu.pipeline_mode<synchronous>, transform_indices = @transform_12, window_bounds = array<i64: 256, 512>}, {pipeline_mode = #tpu.pipeline_mode<synchronous>, transform_indices = @transform_13, window_bounds = array<i64: 256, 512>}, {pipeline_mode = #tpu.pipeline_mode<synchronous>, transform_indices = @transform_14, window_bounds = array<i64: 512, 6>}, {pipeline_mode = #tpu.pipeline_mode<synchronous>, transform_indices = @transform_15, window_bounds = array<i64: 512, 512>}, {pipeline_mode = #tpu.pipeline_mode<synchronous>, transform_indices = @transform_16, window_bounds = array<i64: 512, 512>}, {pipeline_mode = #tpu.pipeline_mode<synchronous>, transform_indices = @transform_17, window_bounds = array<i64: 512, 6>}, {pipeline_mode = #tpu.pipeline_mode<synchronous>, transform_indices = @transform_18, window_bounds = array<i64: 512, 512>}, {pipeline_mode = #tpu.pipeline_mode<synchronous>, transform_indices = @transform_19, window_bounds = array<i64: 512, 512>}, {pipeline_mode = #tpu.pipeline_mode<synchronous>, transform_indices = @transform_20, window_bounds = array<i64: 512, 6>}, {pipeline_mode = #tpu.pipeline_mode<synchronous>, transform_indices = @transform_21, window_bounds = array<i64: 512, 256>}, {pipeline_mode = #tpu.pipeline_mode<synchronous>, transform_indices = @transform_22, window_bounds = array<i64: 256, 256>}, {pipeline_mode = #tpu.pipeline_mode<synchronous>, transform_indices = @transform_23, window_bounds = array<i64: 512, 256>}, {pipeline_mode = #tpu.pipeline_mode<synchronous>, transform_indices = @transform_24, window_bounds = array<i64: 256, 6>}, {pipeline_mode = #tpu.pipeline_mode<synchronous>, transform_indices = @transform_25, window_bounds = array<i64: 10, 36>}]} {
    %c0_i32 = arith.constant 0 : i32
    %0 = arith.cmpi eq, %arg0, %c0_i32 : i32
    %1 = arith.extui %0 : i1 to i32
    %c0_i32_0 = arith.constant 0 : i32
    %2 = arith.cmpi ne, %1, %c0_i32_0 : i32
    scf.if %2 {
      %cst_14 = arith.constant 0.000000e+00 : f32
      %12 = vector.broadcast %cst_14 : f32 to vector<2x5x64xf32>
      %c0_15 = arith.constant 0 : index
      %c0_16 = arith.constant 0 : index
      %c0_17 = arith.constant 0 : index
      %13 = vector.load %arg27[%c0_15, %c0_16, %c0_17] : memref<2x5x64xf32, #tpu.memory_space<vmem>>, vector<2x5x64xf32>
      tpu.vector_store %arg27[%c0_15, %c0_16, %c0_17], %12 {strides = array<i32>} : memref<2x5x64xf32, #tpu.memory_space<vmem>>, vector<2x5x64xf32>,
    } else {
    }
    %c0 = arith.constant 0 : index
    %c0_1 = arith.constant 0 : index
    %c0_2 = arith.constant 0 : index
    %3 = vector.load %arg27[%c0, %c0_1, %c0_2] : memref<2x5x64xf32, #tpu.memory_space<vmem>>, vector<2x5x64xf32>
    %c0_3 = arith.constant 0 : index
    %c0_4 = arith.constant 0 : index
    %c0_5 = arith.constant 0 : index
    %4 = vector.load %arg2[%c0_3, %c0_4, %c0_5] : memref<2x5x256xbf16, #tpu.memory_space<vmem>>, vector<2x5x256xbf16>
    %c0_6 = arith.constant 0 : index
    %c0_7 = arith.constant 0 : index
    %c0_8 = arith.constant 0 : index
    %5 = vector.load %arg1[%c0_6, %c0_7, %c0_8] : memref<2x256x64xbf16, #tpu.memory_space<vmem>>, vector<2x256x64xbf16>
    %cst = arith.constant dense<0.000000e+00> : vector<2x5x64xf32>
    %6 = tpu.matmul %4, %5, %cst {dimension_numbers = #tpu.dot_dimension_numbers<[2], [1], [1], [2], [0, 0, 0, 1, 1, 2], [0], [0]>} : vector<2x5x256xbf16>, vector<2x256x64xbf16>, vector<2x5x64xf32> -> vector<2x5x64xf32>
    %7 = arith.addf %3, %6 : vector<2x5x64xf32>
    %c0_9 = arith.constant 0 : index
    %c0_10 = arith.constant 0 : index
    %c0_11 = arith.constant 0 : index
    %8 = vector.load %arg27[%c0_9, %c0_10, %c0_11] : memref<2x5x64xf32, #tpu.memory_space<vmem>>, vector<2x5x64xf32>
    tpu.vector_store %arg27[%c0_9, %c0_10, %c0_11], %7 {strides = array<i32>} : memref<2x5x64xf32, #tpu.memory_space<vmem>>, vector<2x5x64xf32>,
    %c0_i32_12 = arith.constant 0 : i32
    %9 = arith.cmpi eq, %arg0, %c0_i32_12 : i32
    %10 = arith.extui %9 : i1 to i32
    %c0_i32_13 = arith.constant 0 : i32
    %11 = arith.cmpi ne, %10, %c0_i32_13 : i32
    scf.if %11 {
      %c0_14 = arith.constant 0 : index
      %c0_15 = arith.constant 0 : index
      %c0_16 = arith.constant 0 : index
      %12 = vector.load %arg27[%c0_14, %c0_15, %c0_16] : memref<2x5x64xf32, #tpu.memory_space<vmem>>, vector<2x5x64xf32>
      %cst_17 = arith.constant 3.906250e-03 : f32
      %13 = vector.broadcast %cst_17 : f32 to vector<2x5x64xf32>
      %14 = arith.mulf %12, %13 : vector<2x5x64xf32>
      %15 = vector.extract_strided_slice %14 {offsets = [0, 0, 0], sizes = [2, 1, 64], strides = [1, 1, 1]} : vector<2x5x64xf32> to vector<2x1x64xf32>
      %16 = vector.shape_cast %15 : vector<2x1x64xf32> to vector<2x64xf32>
      %17 = vector.extract_strided_slice %14 {offsets = [0, 1, 0], sizes = [2, 1, 64], strides = [1, 1, 1]} : vector<2x5x64xf32> to vector<2x1x64xf32>
      %18 = vector.shape_cast %17 : vector<2x1x64xf32> to vector<2x64xf32>
      %19 = vector.extract_strided_slice %14 {offsets = [0, 2, 0], sizes = [2, 1, 64], strides = [1, 1, 1]} : vector<2x5x64xf32> to vector<2x1x64xf32>
      %20 = vector.shape_cast %19 : vector<2x1x64xf32> to vector<2x64xf32>
      %21 = vector.extract_strided_slice %14 {offsets = [0, 3, 0], sizes = [2, 1, 64], strides = [1, 1, 1]} : vector<2x5x64xf32> to vector<2x1x64xf32>
      %22 = vector.shape_cast %21 : vector<2x1x64xf32> to vector<2x64xf32>
      %23 = vector.extract_strided_slice %14 {offsets = [0, 4, 0], sizes = [2, 1, 64], strides = [1, 1, 1]} : vector<2x5x64xf32> to vector<2x1x64xf32>
      %24 = vector.shape_cast %23 : vector<2x1x64xf32> to vector<2x64xf32>
      %25 = tpu.concatenate %16, %18, %20, %22, %24 in 0 : vector<2x64xf32>, vector<2x64xf32>, vector<2x64xf32>, vector<2x64xf32>, vector<2x64xf32> -> vector<10x64xf32>
      %c0_18 = arith.constant 0 : index
      %c0_19 = arith.constant 0 : index
      %26 = vector.load %arg4[%c0_18, %c0_19] : memref<64x64xbf16, #tpu.memory_space<vmem>>, vector<64x64xbf16>
      %c0_20 = arith.constant 0 : index
      %c0_21 = arith.constant 0 : index
      %27 = vector.load %arg5[%c0_20, %c0_21] : memref<64x128xbf16, #tpu.memory_space<vmem>>, vector<64x128xbf16>
      %c0_22 = arith.constant 0 : index
      %c0_23 = arith.constant 0 : index
      %28 = vector.load %arg6[%c0_22, %c0_23] : memref<64x128xbf16, #tpu.memory_space<vmem>>, vector<64x128xbf16>
      %c0_24 = arith.constant 0 : index
      %c0_25 = arith.constant 0 : index
      %29 = vector.load %arg7[%c0_24, %c0_25] : memref<128x6xbf16, #tpu.memory_space<vmem>>, vector<128x6xbf16>
      %c0_26 = arith.constant 0 : index
      %c0_27 = arith.constant 0 : index
      %30 = vector.load %arg3[%c0_26, %c0_27] : memref<1x4736xf32, #tpu.memory_space<vmem>>, vector<1x64xf32>
      %c0_28 = arith.constant 0 : index
      %c128 = arith.constant 128 : index
      %31 = vector.load %arg3[%c0_28, %c128] : memref<1x4736xf32, #tpu.memory_space<vmem>>, vector<1x128xf32>
      %c0_29 = arith.constant 0 : index
      %c256 = arith.constant 256 : index
      %32 = vector.load %arg3[%c0_29, %c256] : memref<1x4736xf32, #tpu.memory_space<vmem>>, vector<1x6xf32>
      %cst_30 = arith.constant dense<0.000000e+00> : vector<64xf32>
      %33 = vector.multi_reduction <add>, %25, %cst_30 [0] : vector<10x64xf32> to vector<64xf32>
      %34 = vector.shape_cast %33 : vector<64xf32> to vector<1x64xf32>
      %cst_31 = arith.constant 1.000000e+01 : f32
      %35 = vector.broadcast %cst_31 : f32 to vector<1x64xf32>
      %36 = arith.divf %34, %35 : vector<1x64xf32>
      %37 = vector.broadcast %36 : vector<1x64xf32> to vector<10x64xf32>
      %38 = arith.subf %25, %37 : vector<10x64xf32>
      %39 = arith.mulf %38, %38 : vector<10x64xf32>
      %cst_32 = arith.constant dense<0.000000e+00> : vector<64xf32>
      %40 = vector.multi_reduction <add>, %39, %cst_32 [0] : vector<10x64xf32> to vector<64xf32>
      %41 = vector.shape_cast %40 : vector<64xf32> to vector<1x64xf32>
      %cst_33 = arith.constant 1.000000e+01 : f32
      %42 = vector.broadcast %cst_33 : f32 to vector<1x64xf32>
      %43 = arith.divf %41, %42 : vector<1x64xf32>
      %44 = vector.broadcast %36 : vector<1x64xf32> to vector<10x64xf32>
      %45 = arith.subf %25, %44 : vector<10x64xf32>
      %cst_34 = arith.constant 9.99999974E-6 : f32
      %46 = vector.broadcast %cst_34 : f32 to vector<1x64xf32>
      %47 = arith.addf %43, %46 : vector<1x64xf32>
      %48 = math.rsqrt %47 : vector<1x64xf32>
      %49 = vector.broadcast %48 : vector<1x64xf32> to vector<10x64xf32>
      %50 = arith.mulf %45, %49 : vector<10x64xf32>
      %cst_35 = arith.constant 0.000000e+00 : f32
      %51 = vector.broadcast %cst_35 : f32 to vector<10x64xf32>
      %52 = arith.cmpf oge, %50, %51 : vector<10x64xf32>
      %cst_36 = arith.constant 2.000000e-01 : f32
      %53 = vector.broadcast %cst_36 : f32 to vector<10x64xf32>
      %54 = arith.mulf %53, %50 : vector<10x64xf32>
      %55 = arith.select %52, %50, %54 : vector<10x64xi1>, vector<10x64xf32>
      %56 = arith.truncf %55 : vector<10x64xf32> to vector<10x64xbf16>
      %cst_37 = arith.constant dense<0.000000e+00> : vector<10x64xf32>
      %57 = tpu.matmul %56, %26, %cst_37 {dimension_numbers = #tpu.dot_dimension_numbers<[1], [0], [0], [1], [0, 0, 1, 1], [], []>} : vector<10x64xbf16>, vector<64x64xbf16>, vector<10x64xf32> -> vector<10x64xf32>
      %58 = vector.broadcast %30 : vector<1x64xf32> to vector<10x64xf32>
      %59 = arith.addf %57, %58 : vector<10x64xf32>
      %cst_38 = arith.constant dense<0.000000e+00> : vector<64xf32>
      %60 = vector.multi_reduction <add>, %59, %cst_38 [0] : vector<10x64xf32> to vector<64xf32>
      %61 = vector.shape_cast %60 : vector<64xf32> to vector<1x64xf32>
      %cst_39 = arith.constant 1.000000e+01 : f32
      %62 = vector.broadcast %cst_39 : f32 to vector<1x64xf32>
      %63 = arith.divf %61, %62 : vector<1x64xf32>
      %64 = vector.broadcast %63 : vector<1x64xf32> to vector<10x64xf32>
      %65 = arith.subf %59, %64 : vector<10x64xf32>
      %66 = arith.mulf %65, %65 : vector<10x64xf32>
      %cst_40 = arith.constant dense<0.000000e+00> : vector<64xf32>
      %67 = vector.multi_reduction <add>, %66, %cst_40 [0] : vector<10x64xf32> to vector<64xf32>
      %68 = vector.shape_cast %67 : vector<64xf32> to vector<1x64xf32>
      %cst_41 = arith.constant 1.000000e+01 : f32
      %69 = vector.broadcast %cst_41 : f32 to vector<1x64xf32>
      %70 = arith.divf %68, %69 : vector<1x64xf32>
      %71 = vector.broadcast %63 : vector<1x64xf32> to vector<10x64xf32>
      %72 = arith.subf %59, %71 : vector<10x64xf32>
      %cst_42 = arith.constant 9.99999974E-6 : f32
      %73 = vector.broadcast %cst_42 : f32 to vector<1x64xf32>
      %74 = arith.addf %70, %73 : vector<1x64xf32>
      %75 = math.rsqrt %74 : vector<1x64xf32>
      %76 = vector.broadcast %75 : vector<1x64xf32> to vector<10x64xf32>
      %77 = arith.mulf %72, %76 : vector<10x64xf32>
      %cst_43 = arith.constant 0.000000e+00 : f32
      %78 = vector.broadcast %cst_43 : f32 to vector<10x64xf32>
      %79 = arith.cmpf oge, %77, %78 : vector<10x64xf32>
      %cst_44 = arith.constant 2.000000e-01 : f32
      %80 = vector.broadcast %cst_44 : f32 to vector<10x64xf32>
      %81 = arith.mulf %80, %77 : vector<10x64xf32>
      %82 = arith.select %79, %77, %81 : vector<10x64xi1>, vector<10x64xf32>
      %83 = arith.truncf %82 : vector<10x64xf32> to vector<10x64xbf16>
      %cst_45 = arith.constant dense<0.000000e+00> : vector<10x128xf32>
      %84 = tpu.matmul %83, %27, %cst_45 {dimension_numbers = #tpu.dot_dimension_numbers<[1], [0], [0], [1], [0, 0, 1, 1], [], []>} : vector<10x64xbf16>, vector<64x128xbf16>, vector<10x128xf32> -> vector<10x128xf32>
      %85 = vector.broadcast %31 : vector<1x128xf32> to vector<10x128xf32>
      %86 = arith.addf %84, %85 : vector<10x128xf32>
      %87 = arith.truncf %25 : vector<10x64xf32> to vector<10x64xbf16>
      %cst_46 = arith.constant dense<0.000000e+00> : vector<10x128xf32>
      %88 = tpu.matmul %87, %28, %cst_46 {dimension_numbers = #tpu.dot_dimension_numbers<[1], [0], [0], [1], [0, 0, 1, 1], [], []>} : vector<10x64xbf16>, vector<64x128xbf16>, vector<10x128xf32> -> vector<10x128xf32>
      %89 = arith.addf %86, %88 : vector<10x128xf32>
      %90 = arith.truncf %89 : vector<10x128xf32> to vector<10x128xbf16>
      %cst_47 = arith.constant dense<0.000000e+00> : vector<10x6xf32>
      %91 = tpu.matmul %90, %29, %cst_47 {dimension_numbers = #tpu.dot_dimension_numbers<[1], [0], [0], [1], [0, 0, 1, 1], [], []>} : vector<10x128xbf16>, vector<128x6xbf16>, vector<10x6xf32> -> vector<10x6xf32>
      %92 = vector.broadcast %32 : vector<1x6xf32> to vector<10x6xf32>
      %93 = arith.addf %91, %92 : vector<10x6xf32>
      %c0_48 = arith.constant 0 : index
      %c0_49 = arith.constant 0 : index
      %94 = vector.load %arg26[%c0_48, %c0_49] : memref<10x36xf32, #tpu.memory_space<vmem>>, vector<10x6xf32>
      tpu.vector_store %arg26[%c0_48, %c0_49], %93 {strides = array<i32>} : memref<10x36xf32, #tpu.memory_space<vmem>>, vector<10x6xf32>,
      %c0_50 = arith.constant 0 : index
      %c0_51 = arith.constant 0 : index
      %95 = vector.load %arg8[%c0_50, %c0_51] : memref<128x128xbf16, #tpu.memory_space<vmem>>, vector<128x128xbf16>
      %c0_52 = arith.constant 0 : index
      %c0_53 = arith.constant 0 : index
      %96 = vector.load %arg9[%c0_52, %c0_53] : memref<128x256xbf16, #tpu.memory_space<vmem>>, vector<128x256xbf16>
      %c0_54 = arith.constant 0 : index
      %c0_55 = arith.constant 0 : index
      %97 = vector.load %arg10[%c0_54, %c0_55] : memref<128x256xbf16, #tpu.memory_space<vmem>>, vector<128x256xbf16>
      %c0_56 = arith.constant 0 : index
      %c0_57 = arith.constant 0 : index
      %98 = vector.load %arg11[%c0_56, %c0_57] : memref<256x6xbf16, #tpu.memory_space<vmem>>, vector<256x6xbf16>
      %c0_58 = arith.constant 0 : index
      %c384 = arith.constant 384 : index
      %99 = vector.load %arg3[%c0_58, %c384] : memref<1x4736xf32, #tpu.memory_space<vmem>>, vector<1x128xf32>
      %c0_59 = arith.constant 0 : index
      %c512 = arith.constant 512 : index
      %100 = vector.load %arg3[%c0_59, %c512] : memref<1x4736xf32, #tpu.memory_space<vmem>>, vector<1x256xf32>
      %c0_60 = arith.constant 0 : index
      %c768 = arith.constant 768 : index
      %101 = vector.load %arg3[%c0_60, %c768] : memref<1x4736xf32, #tpu.memory_space<vmem>>, vector<1x6xf32>
      %cst_61 = arith.constant dense<0.000000e+00> : vector<128xf32>
      %102 = vector.multi_reduction <add>, %89, %cst_61 [0] : vector<10x128xf32> to vector<128xf32>
      %103 = vector.shape_cast %102 : vector<128xf32> to vector<1x128xf32>
      %cst_62 = arith.constant 1.000000e+01 : f32
      %104 = vector.broadcast %cst_62 : f32 to vector<1x128xf32>
      %105 = arith.divf %103, %104 : vector<1x128xf32>
      %106 = vector.broadcast %105 : vector<1x128xf32> to vector<10x128xf32>
      %107 = arith.subf %89, %106 : vector<10x128xf32>
      %108 = arith.mulf %107, %107 : vector<10x128xf32>
      %cst_63 = arith.constant dense<0.000000e+00> : vector<128xf32>
      %109 = vector.multi_reduction <add>, %108, %cst_63 [0] : vector<10x128xf32> to vector<128xf32>
      %110 = vector.shape_cast %109 : vector<128xf32> to vector<1x128xf32>
      %cst_64 = arith.constant 1.000000e+01 : f32
      %111 = vector.broadcast %cst_64 : f32 to vector<1x128xf32>
      %112 = arith.divf %110, %111 : vector<1x128xf32>
      %113 = vector.broadcast %105 : vector<1x128xf32> to vector<10x128xf32>
      %114 = arith.subf %89, %113 : vector<10x128xf32>
      %cst_65 = arith.constant 9.99999974E-6 : f32
      %115 = vector.broadcast %cst_65 : f32 to vector<1x128xf32>
      %116 = arith.addf %112, %115 : vector<1x128xf32>
      %117 = math.rsqrt %116 : vector<1x128xf32>
      %118 = vector.broadcast %117 : vector<1x128xf32> to vector<10x128xf32>
      %119 = arith.mulf %114, %118 : vector<10x128xf32>
      %cst_66 = arith.constant 0.000000e+00 : f32
      %120 = vector.broadcast %cst_66 : f32 to vector<10x128xf32>
      %121 = arith.cmpf oge, %119, %120 : vector<10x128xf32>
      %cst_67 = arith.constant 2.000000e-01 : f32
      %122 = vector.broadcast %cst_67 : f32 to vector<10x128xf32>
      %123 = arith.mulf %122, %119 : vector<10x128xf32>
      %124 = arith.select %121, %119, %123 : vector<10x128xi1>, vector<10x128xf32>
      %125 = arith.truncf %124 : vector<10x128xf32> to vector<10x128xbf16>
      %cst_68 = arith.constant dense<0.000000e+00> : vector<10x128xf32>
      %126 = tpu.matmul %125, %95, %cst_68 {dimension_numbers = #tpu.dot_dimension_numbers<[1], [0], [0], [1], [0, 0, 1, 1], [], []>} : vector<10x128xbf16>, vector<128x128xbf16>, vector<10x128xf32> -> vector<10x128xf32>
      %127 = vector.broadcast %99 : vector<1x128xf32> to vector<10x128xf32>
      %128 = arith.addf %126, %127 : vector<10x128xf32>
      %cst_69 = arith.constant dense<0.000000e+00> : vector<128xf32>
      %129 = vector.multi_reduction <add>, %128, %cst_69 [0] : vector<10x128xf32> to vector<128xf32>
      %130 = vector.shape_cast %129 : vector<128xf32> to vector<1x128xf32>
      %cst_70 = arith.constant 1.000000e+01 : f32
      %131 = vector.broadcast %cst_70 : f32 to vector<1x128xf32>
      %132 = arith.divf %130, %131 : vector<1x128xf32>
      %133 = vector.broadcast %132 : vector<1x128xf32> to vector<10x128xf32>
      %134 = arith.subf %128, %133 : vector<10x128xf32>
      %135 = arith.mulf %134, %134 : vector<10x128xf32>
      %cst_71 = arith.constant dense<0.000000e+00> : vector<128xf32>
      %136 = vector.multi_reduction <add>, %135, %cst_71 [0] : vector<10x128xf32> to vector<128xf32>
      %137 = vector.shape_cast %136 : vector<128xf32> to vector<1x128xf32>
      %cst_72 = arith.constant 1.000000e+01 : f32
      %138 = vector.broadcast %cst_72 : f32 to vector<1x128xf32>
      %139 = arith.divf %137, %138 : vector<1x128xf32>
      %140 = vector.broadcast %132 : vector<1x128xf32> to vector<10x128xf32>
      %141 = arith.subf %128, %140 : vector<10x128xf32>
      %cst_73 = arith.constant 9.99999974E-6 : f32
      %142 = vector.broadcast %cst_73 : f32 to vector<1x128xf32>
      %143 = arith.addf %139, %142 : vector<1x128xf32>
      %144 = math.rsqrt %143 : vector<1x128xf32>
      %145 = vector.broadcast %144 : vector<1x128xf32> to vector<10x128xf32>
      %146 = arith.mulf %141, %145 : vector<10x128xf32>
      %cst_74 = arith.constant 0.000000e+00 : f32
      %147 = vector.broadcast %cst_74 : f32 to vector<10x128xf32>
      %148 = arith.cmpf oge, %146, %147 : vector<10x128xf32>
      %cst_75 = arith.constant 2.000000e-01 : f32
      %149 = vector.broadcast %cst_75 : f32 to vector<10x128xf32>
      %150 = arith.mulf %149, %146 : vector<10x128xf32>
      %151 = arith.select %148, %146, %150 : vector<10x128xi1>, vector<10x128xf32>
      %152 = arith.truncf %151 : vector<10x128xf32> to vector<10x128xbf16>
      %cst_76 = arith.constant dense<0.000000e+00> : vector<10x256xf32>
      %153 = tpu.matmul %152, %96, %cst_76 {dimension_numbers = #tpu.dot_dimension_numbers<[1], [0], [0], [1], [0, 0, 1, 1], [], []>} : vector<10x128xbf16>, vector<128x256xbf16>, vector<10x256xf32> -> vector<10x256xf32>
      %154 = vector.broadcast %100 : vector<1x256xf32> to vector<10x256xf32>
      %155 = arith.addf %153, %154 : vector<10x256xf32>
      %156 = arith.truncf %89 : vector<10x128xf32> to vector<10x128xbf16>
      %cst_77 = arith.constant dense<0.000000e+00> : vector<10x256xf32>
      %157 = tpu.matmul %156, %97, %cst_77 {dimension_numbers = #tpu.dot_dimension_numbers<[1], [0], [0], [1], [0, 0, 1, 1], [], []>} : vector<10x128xbf16>, vector<128x256xbf16>, vector<10x256xf32> -> vector<10x256xf32>
      %158 = arith.addf %155, %157 : vector<10x256xf32>
      %159 = arith.truncf %158 : vector<10x256xf32> to vector<10x256xbf16>
      %cst_78 = arith.constant dense<0.000000e+00> : vector<10x6xf32>
      %160 = tpu.matmul %159, %98, %cst_78 {dimension_numbers = #tpu.dot_dimension_numbers<[1], [0], [0], [1], [0, 0, 1, 1], [], []>} : vector<10x256xbf16>, vector<256x6xbf16>, vector<10x6xf32> -> vector<10x6xf32>
      %161 = vector.broadcast %101 : vector<1x6xf32> to vector<10x6xf32>
      %162 = arith.addf %160, %161 : vector<10x6xf32>
      %c0_79 = arith.constant 0 : index
      %c6 = arith.constant 6 : index
      %163 = vector.load %arg26[%c0_79, %c6] : memref<10x36xf32, #tpu.memory_space<vmem>>, vector<10x6xf32>
      tpu.vector_store %arg26[%c0_79, %c6], %162 {strides = array<i32>} : memref<10x36xf32, #tpu.memory_space<vmem>>, vector<10x6xf32>,
      %c0_80 = arith.constant 0 : index
      %c0_81 = arith.constant 0 : index
      %164 = vector.load %arg12[%c0_80, %c0_81] : memref<256x256xbf16, #tpu.memory_space<vmem>>, vector<256x256xbf16>
      %c0_82 = arith.constant 0 : index
      %c0_83 = arith.constant 0 : index
      %165 = vector.load %arg13[%c0_82, %c0_83] : memref<256x512xbf16, #tpu.memory_space<vmem>>, vector<256x512xbf16>
      %c0_84 = arith.constant 0 : index
      %c0_85 = arith.constant 0 : index
      %166 = vector.load %arg14[%c0_84, %c0_85] : memref<256x512xbf16, #tpu.memory_space<vmem>>, vector<256x512xbf16>
      %c0_86 = arith.constant 0 : index
      %c0_87 = arith.constant 0 : index
      %167 = vector.load %arg15[%c0_86, %c0_87] : memref<512x6xbf16, #tpu.memory_space<vmem>>, vector<512x6xbf16>
      %c0_88 = arith.constant 0 : index
      %c896 = arith.constant 896 : index
      %168 = vector.load %arg3[%c0_88, %c896] : memref<1x4736xf32, #tpu.memory_space<vmem>>, vector<1x256xf32>
      %c0_89 = arith.constant 0 : index
      %c1152 = arith.constant 1152 : index
      %169 = vector.load %arg3[%c0_89, %c1152] : memref<1x4736xf32, #tpu.memory_space<vmem>>, vector<1x512xf32>
      %c0_90 = arith.constant 0 : index
      %c1664 = arith.constant 1664 : index
      %170 = vector.load %arg3[%c0_90, %c1664] : memref<1x4736xf32, #tpu.memory_space<vmem>>, vector<1x6xf32>
      %cst_91 = arith.constant dense<0.000000e+00> : vector<256xf32>
      %171 = vector.multi_reduction <add>, %158, %cst_91 [0] : vector<10x256xf32> to vector<256xf32>
      %172 = vector.shape_cast %171 : vector<256xf32> to vector<1x256xf32>
      %cst_92 = arith.constant 1.000000e+01 : f32
      %173 = vector.broadcast %cst_92 : f32 to vector<1x256xf32>
      %174 = arith.divf %172, %173 : vector<1x256xf32>
      %175 = vector.broadcast %174 : vector<1x256xf32> to vector<10x256xf32>
      %176 = arith.subf %158, %175 : vector<10x256xf32>
      %177 = arith.mulf %176, %176 : vector<10x256xf32>
      %cst_93 = arith.constant dense<0.000000e+00> : vector<256xf32>
      %178 = vector.multi_reduction <add>, %177, %cst_93 [0] : vector<10x256xf32> to vector<256xf32>
      %179 = vector.shape_cast %178 : vector<256xf32> to vector<1x256xf32>
      %cst_94 = arith.constant 1.000000e+01 : f32
      %180 = vector.broadcast %cst_94 : f32 to vector<1x256xf32>
      %181 = arith.divf %179, %180 : vector<1x256xf32>
      %182 = vector.broadcast %174 : vector<1x256xf32> to vector<10x256xf32>
      %183 = arith.subf %158, %182 : vector<10x256xf32>
      %cst_95 = arith.constant 9.99999974E-6 : f32
      %184 = vector.broadcast %cst_95 : f32 to vector<1x256xf32>
      %185 = arith.addf %181, %184 : vector<1x256xf32>
      %186 = math.rsqrt %185 : vector<1x256xf32>
      %187 = vector.broadcast %186 : vector<1x256xf32> to vector<10x256xf32>
      %188 = arith.mulf %183, %187 : vector<10x256xf32>
      %cst_96 = arith.constant 0.000000e+00 : f32
      %189 = vector.broadcast %cst_96 : f32 to vector<10x256xf32>
      %190 = arith.cmpf oge, %188, %189 : vector<10x256xf32>
      %cst_97 = arith.constant 2.000000e-01 : f32
      %191 = vector.broadcast %cst_97 : f32 to vector<10x256xf32>
      %192 = arith.mulf %191, %188 : vector<10x256xf32>
      %193 = arith.select %190, %188, %192 : vector<10x256xi1>, vector<10x256xf32>
      %194 = arith.truncf %193 : vector<10x256xf32> to vector<10x256xbf16>
      %cst_98 = arith.constant dense<0.000000e+00> : vector<10x256xf32>
      %195 = tpu.matmul %194, %164, %cst_98 {dimension_numbers = #tpu.dot_dimension_numbers<[1], [0], [0], [1], [0, 0, 1, 1], [], []>} : vector<10x256xbf16>, vector<256x256xbf16>, vector<10x256xf32> -> vector<10x256xf32>
      %196 = vector.broadcast %168 : vector<1x256xf32> to vector<10x256xf32>
      %197 = arith.addf %195, %196 : vector<10x256xf32>
      %cst_99 = arith.constant dense<0.000000e+00> : vector<256xf32>
      %198 = vector.multi_reduction <add>, %197, %cst_99 [0] : vector<10x256xf32> to vector<256xf32>
      %199 = vector.shape_cast %198 : vector<256xf32> to vector<1x256xf32>
      %cst_100 = arith.constant 1.000000e+01 : f32
      %200 = vector.broadcast %cst_100 : f32 to vector<1x256xf32>
      %201 = arith.divf %199, %200 : vector<1x256xf32>
      %202 = vector.broadcast %201 : vector<1x256xf32> to vector<10x256xf32>
      %203 = arith.subf %197, %202 : vector<10x256xf32>
      %204 = arith.mulf %203, %203 : vector<10x256xf32>
      %cst_101 = arith.constant dense<0.000000e+00> : vector<256xf32>
      %205 = vector.multi_reduction <add>, %204, %cst_101 [0] : vector<10x256xf32> to vector<256xf32>
      %206 = vector.shape_cast %205 : vector<256xf32> to vector<1x256xf32>
      %cst_102 = arith.constant 1.000000e+01 : f32
      %207 = vector.broadcast %cst_102 : f32 to vector<1x256xf32>
      %208 = arith.divf %206, %207 : vector<1x256xf32>
      %209 = vector.broadcast %201 : vector<1x256xf32> to vector<10x256xf32>
      %210 = arith.subf %197, %209 : vector<10x256xf32>
      %cst_103 = arith.constant 9.99999974E-6 : f32
      %211 = vector.broadcast %cst_103 : f32 to vector<1x256xf32>
      %212 = arith.addf %208, %211 : vector<1x256xf32>
      %213 = math.rsqrt %212 : vector<1x256xf32>
      %214 = vector.broadcast %213 : vector<1x256xf32> to vector<10x256xf32>
      %215 = arith.mulf %210, %214 : vector<10x256xf32>
      %cst_104 = arith.constant 0.000000e+00 : f32
      %216 = vector.broadcast %cst_104 : f32 to vector<10x256xf32>
      %217 = arith.cmpf oge, %215, %216 : vector<10x256xf32>
      %cst_105 = arith.constant 2.000000e-01 : f32
      %218 = vector.broadcast %cst_105 : f32 to vector<10x256xf32>
      %219 = arith.mulf %218, %215 : vector<10x256xf32>
      %220 = arith.select %217, %215, %219 : vector<10x256xi1>, vector<10x256xf32>
      %221 = arith.truncf %220 : vector<10x256xf32> to vector<10x256xbf16>
      %cst_106 = arith.constant dense<0.000000e+00> : vector<10x512xf32>
      %222 = tpu.matmul %221, %165, %cst_106 {dimension_numbers = #tpu.dot_dimension_numbers<[1], [0], [0], [1], [0, 0, 1, 1], [], []>} : vector<10x256xbf16>, vector<256x512xbf16>, vector<10x512xf32> -> vector<10x512xf32>
      %223 = vector.broadcast %169 : vector<1x512xf32> to vector<10x512xf32>
      %224 = arith.addf %222, %223 : vector<10x512xf32>
      %225 = arith.truncf %158 : vector<10x256xf32> to vector<10x256xbf16>
      %cst_107 = arith.constant dense<0.000000e+00> : vector<10x512xf32>
      %226 = tpu.matmul %225, %166, %cst_107 {dimension_numbers = #tpu.dot_dimension_numbers<[1], [0], [0], [1], [0, 0, 1, 1], [], []>} : vector<10x256xbf16>, vector<256x512xbf16>, vector<10x512xf32> -> vector<10x512xf32>
      %227 = arith.addf %224, %226 : vector<10x512xf32>
      %228 = arith.truncf %227 : vector<10x512xf32> to vector<10x512xbf16>
      %cst_108 = arith.constant dense<0.000000e+00> : vector<10x6xf32>
      %229 = tpu.matmul %228, %167, %cst_108 {dimension_numbers = #tpu.dot_dimension_numbers<[1], [0], [0], [1], [0, 0, 1, 1], [], []>} : vector<10x512xbf16>, vector<512x6xbf16>, vector<10x6xf32> -> vector<10x6xf32>
      %230 = vector.broadcast %170 : vector<1x6xf32> to vector<10x6xf32>
      %231 = arith.addf %229, %230 : vector<10x6xf32>
      %c0_109 = arith.constant 0 : index
      %c12 = arith.constant 12 : index
      %232 = vector.load %arg26[%c0_109, %c12] : memref<10x36xf32, #tpu.memory_space<vmem>>, vector<10x6xf32>
      tpu.vector_store %arg26[%c0_109, %c12], %231 {strides = array<i32>} : memref<10x36xf32, #tpu.memory_space<vmem>>, vector<10x6xf32>,
      %c0_110 = arith.constant 0 : index
      %c0_111 = arith.constant 0 : index
      %233 = vector.load %arg16[%c0_110, %c0_111] : memref<512x512xbf16, #tpu.memory_space<vmem>>, vector<512x512xbf16>
      %c0_112 = arith.constant 0 : index
      %c0_113 = arith.constant 0 : index
      %234 = vector.load %arg17[%c0_112, %c0_113] : memref<512x512xbf16, #tpu.memory_space<vmem>>, vector<512x512xbf16>
      %c0_114 = arith.constant 0 : index
      %c0_115 = arith.constant 0 : index
      %235 = vector.load %arg18[%c0_114, %c0_115] : memref<512x6xbf16, #tpu.memory_space<vmem>>, vector<512x6xbf16>
      %c0_116 = arith.constant 0 : index
      %c1792 = arith.constant 1792 : index
      %236 = vector.load %arg3[%c0_116, %c1792] : memref<1x4736xf32, #tpu.memory_space<vmem>>, vector<1x512xf32>
      %c0_117 = arith.constant 0 : index
      %c2304 = arith.constant 2304 : index
      %237 = vector.load %arg3[%c0_117, %c2304] : memref<1x4736xf32, #tpu.memory_space<vmem>>, vector<1x512xf32>
      %c0_118 = arith.constant 0 : index
      %c2816 = arith.constant 2816 : index
      %238 = vector.load %arg3[%c0_118, %c2816] : memref<1x4736xf32, #tpu.memory_space<vmem>>, vector<1x6xf32>
      %cst_119 = arith.constant dense<0.000000e+00> : vector<512xf32>
      %239 = vector.multi_reduction <add>, %227, %cst_119 [0] : vector<10x512xf32> to vector<512xf32>
      %240 = vector.shape_cast %239 : vector<512xf32> to vector<1x512xf32>
      %cst_120 = arith.constant 1.000000e+01 : f32
      %241 = vector.broadcast %cst_120 : f32 to vector<1x512xf32>
      %242 = arith.divf %240, %241 : vector<1x512xf32>
      %243 = vector.broadcast %242 : vector<1x512xf32> to vector<10x512xf32>
      %244 = arith.subf %227, %243 : vector<10x512xf32>
      %245 = arith.mulf %244, %244 : vector<10x512xf32>
      %cst_121 = arith.constant dense<0.000000e+00> : vector<512xf32>
      %246 = vector.multi_reduction <add>, %245, %cst_121 [0] : vector<10x512xf32> to vector<512xf32>
      %247 = vector.shape_cast %246 : vector<512xf32> to vector<1x512xf32>
      %cst_122 = arith.constant 1.000000e+01 : f32
      %248 = vector.broadcast %cst_122 : f32 to vector<1x512xf32>
      %249 = arith.divf %247, %248 : vector<1x512xf32>
      %250 = vector.broadcast %242 : vector<1x512xf32> to vector<10x512xf32>
      %251 = arith.subf %227, %250 : vector<10x512xf32>
      %cst_123 = arith.constant 9.99999974E-6 : f32
      %252 = vector.broadcast %cst_123 : f32 to vector<1x512xf32>
      %253 = arith.addf %249, %252 : vector<1x512xf32>
      %254 = math.rsqrt %253 : vector<1x512xf32>
      %255 = vector.broadcast %254 : vector<1x512xf32> to vector<10x512xf32>
      %256 = arith.mulf %251, %255 : vector<10x512xf32>
      %cst_124 = arith.constant 0.000000e+00 : f32
      %257 = vector.broadcast %cst_124 : f32 to vector<10x512xf32>
      %258 = arith.cmpf oge, %256, %257 : vector<10x512xf32>
      %cst_125 = arith.constant 2.000000e-01 : f32
      %259 = vector.broadcast %cst_125 : f32 to vector<10x512xf32>
      %260 = arith.mulf %259, %256 : vector<10x512xf32>
      %261 = arith.select %258, %256, %260 : vector<10x512xi1>, vector<10x512xf32>
      %262 = arith.truncf %261 : vector<10x512xf32> to vector<10x512xbf16>
      %cst_126 = arith.constant dense<0.000000e+00> : vector<10x512xf32>
      %263 = tpu.matmul %262, %233, %cst_126 {dimension_numbers = #tpu.dot_dimension_numbers<[1], [0], [0], [1], [0, 0, 1, 1], [], []>} : vector<10x512xbf16>, vector<512x512xbf16>, vector<10x512xf32> -> vector<10x512xf32>
      %264 = vector.broadcast %236 : vector<1x512xf32> to vector<10x512xf32>
      %265 = arith.addf %263, %264 : vector<10x512xf32>
      %cst_127 = arith.constant dense<0.000000e+00> : vector<512xf32>
      %266 = vector.multi_reduction <add>, %265, %cst_127 [0] : vector<10x512xf32> to vector<512xf32>
      %267 = vector.shape_cast %266 : vector<512xf32> to vector<1x512xf32>
      %cst_128 = arith.constant 1.000000e+01 : f32
      %268 = vector.broadcast %cst_128 : f32 to vector<1x512xf32>
      %269 = arith.divf %267, %268 : vector<1x512xf32>
      %270 = vector.broadcast %269 : vector<1x512xf32> to vector<10x512xf32>
      %271 = arith.subf %265, %270 : vector<10x512xf32>
      %272 = arith.mulf %271, %271 : vector<10x512xf32>
      %cst_129 = arith.constant dense<0.000000e+00> : vector<512xf32>
      %273 = vector.multi_reduction <add>, %272, %cst_129 [0] : vector<10x512xf32> to vector<512xf32>
      %274 = vector.shape_cast %273 : vector<512xf32> to vector<1x512xf32>
      %cst_130 = arith.constant 1.000000e+01 : f32
      %275 = vector.broadcast %cst_130 : f32 to vector<1x512xf32>
      %276 = arith.divf %274, %275 : vector<1x512xf32>
      %277 = vector.broadcast %269 : vector<1x512xf32> to vector<10x512xf32>
      %278 = arith.subf %265, %277 : vector<10x512xf32>
      %cst_131 = arith.constant 9.99999974E-6 : f32
      %279 = vector.broadcast %cst_131 : f32 to vector<1x512xf32>
      %280 = arith.addf %276, %279 : vector<1x512xf32>
      %281 = math.rsqrt %280 : vector<1x512xf32>
      %282 = vector.broadcast %281 : vector<1x512xf32> to vector<10x512xf32>
      %283 = arith.mulf %278, %282 : vector<10x512xf32>
      %cst_132 = arith.constant 0.000000e+00 : f32
      %284 = vector.broadcast %cst_132 : f32 to vector<10x512xf32>
      %285 = arith.cmpf oge, %283, %284 : vector<10x512xf32>
      %cst_133 = arith.constant 2.000000e-01 : f32
      %286 = vector.broadcast %cst_133 : f32 to vector<10x512xf32>
      %287 = arith.mulf %286, %283 : vector<10x512xf32>
      %288 = arith.select %285, %283, %287 : vector<10x512xi1>, vector<10x512xf32>
      %289 = arith.truncf %288 : vector<10x512xf32> to vector<10x512xbf16>
      %cst_134 = arith.constant dense<0.000000e+00> : vector<10x512xf32>
      %290 = tpu.matmul %289, %234, %cst_134 {dimension_numbers = #tpu.dot_dimension_numbers<[1], [0], [0], [1], [0, 0, 1, 1], [], []>} : vector<10x512xbf16>, vector<512x512xbf16>, vector<10x512xf32> -> vector<10x512xf32>
      %291 = vector.broadcast %237 : vector<1x512xf32> to vector<10x512xf32>
      %292 = arith.addf %290, %291 : vector<10x512xf32>
      %293 = arith.addf %292, %227 : vector<10x512xf32>
      %294 = arith.truncf %293 : vector<10x512xf32> to vector<10x512xbf16>
      %cst_135 = arith.constant dense<0.000000e+00> : vector<10x6xf32>
      %295 = tpu.matmul %294, %235, %cst_135 {dimension_numbers = #tpu.dot_dimension_numbers<[1], [0], [0], [1], [0, 0, 1, 1], [], []>} : vector<10x512xbf16>, vector<512x6xbf16>, vector<10x6xf32> -> vector<10x6xf32>
      %296 = vector.broadcast %238 : vector<1x6xf32> to vector<10x6xf32>
      %297 = arith.addf %295, %296 : vector<10x6xf32>
      %c0_136 = arith.constant 0 : index
      %c18 = arith.constant 18 : index
      %298 = vector.load %arg26[%c0_136, %c18] : memref<10x36xf32, #tpu.memory_space<vmem>>, vector<10x6xf32>
      tpu.vector_store %arg26[%c0_136, %c18], %297 {strides = array<i32>} : memref<10x36xf32, #tpu.memory_space<vmem>>, vector<10x6xf32>,
      %c0_137 = arith.constant 0 : index
      %c0_138 = arith.constant 0 : index
      %299 = vector.load %arg19[%c0_137, %c0_138] : memref<512x512xbf16, #tpu.memory_space<vmem>>, vector<512x512xbf16>
      %c0_139 = arith.constant 0 : index
      %c0_140 = arith.constant 0 : index
      %300 = vector.load %arg20[%c0_139, %c0_140] : memref<512x512xbf16, #tpu.memory_space<vmem>>, vector<512x512xbf16>
      %c0_141 = arith.constant 0 : index
      %c0_142 = arith.constant 0 : index
      %301 = vector.load %arg21[%c0_141, %c0_142] : memref<512x6xbf16, #tpu.memory_space<vmem>>, vector<512x6xbf16>
      %c0_143 = arith.constant 0 : index
      %c2944 = arith.constant 2944 : index
      %302 = vector.load %arg3[%c0_143, %c2944] : memref<1x4736xf32, #tpu.memory_space<vmem>>, vector<1x512xf32>
      %c0_144 = arith.constant 0 : index
      %c3456 = arith.constant 3456 : index
      %303 = vector.load %arg3[%c0_144, %c3456] : memref<1x4736xf32, #tpu.memory_space<vmem>>, vector<1x512xf32>
      %c0_145 = arith.constant 0 : index
      %c3968 = arith.constant 3968 : index
      %304 = vector.load %arg3[%c0_145, %c3968] : memref<1x4736xf32, #tpu.memory_space<vmem>>, vector<1x6xf32>
      %cst_146 = arith.constant dense<0.000000e+00> : vector<512xf32>
      %305 = vector.multi_reduction <add>, %293, %cst_146 [0] : vector<10x512xf32> to vector<512xf32>
      %306 = vector.shape_cast %305 : vector<512xf32> to vector<1x512xf32>
      %cst_147 = arith.constant 1.000000e+01 : f32
      %307 = vector.broadcast %cst_147 : f32 to vector<1x512xf32>
      %308 = arith.divf %306, %307 : vector<1x512xf32>
      %309 = vector.broadcast %308 : vector<1x512xf32> to vector<10x512xf32>
      %310 = arith.subf %293, %309 : vector<10x512xf32>
      %311 = arith.mulf %310, %310 : vector<10x512xf32>
      %cst_148 = arith.constant dense<0.000000e+00> : vector<512xf32>
      %312 = vector.multi_reduction <add>, %311, %cst_148 [0] : vector<10x512xf32> to vector<512xf32>
      %313 = vector.shape_cast %312 : vector<512xf32> to vector<1x512xf32>
      %cst_149 = arith.constant 1.000000e+01 : f32
      %314 = vector.broadcast %cst_149 : f32 to vector<1x512xf32>
      %315 = arith.divf %313, %314 : vector<1x512xf32>
      %316 = vector.broadcast %308 : vector<1x512xf32> to vector<10x512xf32>
      %317 = arith.subf %293, %316 : vector<10x512xf32>
      %cst_150 = arith.constant 9.99999974E-6 : f32
      %318 = vector.broadcast %cst_150 : f32 to vector<1x512xf32>
      %319 = arith.addf %315, %318 : vector<1x512xf32>
      %320 = math.rsqrt %319 : vector<1x512xf32>
      %321 = vector.broadcast %320 : vector<1x512xf32> to vector<10x512xf32>
      %322 = arith.mulf %317, %321 : vector<10x512xf32>
      %cst_151 = arith.constant 0.000000e+00 : f32
      %323 = vector.broadcast %cst_151 : f32 to vector<10x512xf32>
      %324 = arith.cmpf oge, %322, %323 : vector<10x512xf32>
      %cst_152 = arith.constant 2.000000e-01 : f32
      %325 = vector.broadcast %cst_152 : f32 to vector<10x512xf32>
      %326 = arith.mulf %325, %322 : vector<10x512xf32>
      %327 = arith.select %324, %322, %326 : vector<10x512xi1>, vector<10x512xf32>
      %328 = arith.truncf %327 : vector<10x512xf32> to vector<10x512xbf16>
      %cst_153 = arith.constant dense<0.000000e+00> : vector<10x512xf32>
      %329 = tpu.matmul %328, %299, %cst_153 {dimension_numbers = #tpu.dot_dimension_numbers<[1], [0], [0], [1], [0, 0, 1, 1], [], []>} : vector<10x512xbf16>, vector<512x512xbf16>, vector<10x512xf32> -> vector<10x512xf32>
      %330 = vector.broadcast %302 : vector<1x512xf32> to vector<10x512xf32>
      %331 = arith.addf %329, %330 : vector<10x512xf32>
      %cst_154 = arith.constant dense<0.000000e+00> : vector<512xf32>
      %332 = vector.multi_reduction <add>, %331, %cst_154 [0] : vector<10x512xf32> to vector<512xf32>
      %333 = vector.shape_cast %332 : vector<512xf32> to vector<1x512xf32>
      %cst_155 = arith.constant 1.000000e+01 : f32
      %334 = vector.broadcast %cst_155 : f32 to vector<1x512xf32>
      %335 = arith.divf %333, %334 : vector<1x512xf32>
      %336 = vector.broadcast %335 : vector<1x512xf32> to vector<10x512xf32>
      %337 = arith.subf %331, %336 : vector<10x512xf32>
      %338 = arith.mulf %337, %337 : vector<10x512xf32>
      %cst_156 = arith.constant dense<0.000000e+00> : vector<512xf32>
      %339 = vector.multi_reduction <add>, %338, %cst_156 [0] : vector<10x512xf32> to vector<512xf32>
      %340 = vector.shape_cast %339 : vector<512xf32> to vector<1x512xf32>
      %cst_157 = arith.constant 1.000000e+01 : f32
      %341 = vector.broadcast %cst_157 : f32 to vector<1x512xf32>
      %342 = arith.divf %340, %341 : vector<1x512xf32>
      %343 = vector.broadcast %335 : vector<1x512xf32> to vector<10x512xf32>
      %344 = arith.subf %331, %343 : vector<10x512xf32>
      %cst_158 = arith.constant 9.99999974E-6 : f32
      %345 = vector.broadcast %cst_158 : f32 to vector<1x512xf32>
      %346 = arith.addf %342, %345 : vector<1x512xf32>
      %347 = math.rsqrt %346 : vector<1x512xf32>
      %348 = vector.broadcast %347 : vector<1x512xf32> to vector<10x512xf32>
      %349 = arith.mulf %344, %348 : vector<10x512xf32>
      %cst_159 = arith.constant 0.000000e+00 : f32
      %350 = vector.broadcast %cst_159 : f32 to vector<10x512xf32>
      %351 = arith.cmpf oge, %349, %350 : vector<10x512xf32>
      %cst_160 = arith.constant 2.000000e-01 : f32
      %352 = vector.broadcast %cst_160 : f32 to vector<10x512xf32>
      %353 = arith.mulf %352, %349 : vector<10x512xf32>
      %354 = arith.select %351, %349, %353 : vector<10x512xi1>, vector<10x512xf32>
      %355 = arith.truncf %354 : vector<10x512xf32> to vector<10x512xbf16>
      %cst_161 = arith.constant dense<0.000000e+00> : vector<10x512xf32>
      %356 = tpu.matmul %355, %300, %cst_161 {dimension_numbers = #tpu.dot_dimension_numbers<[1], [0], [0], [1], [0, 0, 1, 1], [], []>} : vector<10x512xbf16>, vector<512x512xbf16>, vector<10x512xf32> -> vector<10x512xf32>
      %357 = vector.broadcast %303 : vector<1x512xf32> to vector<10x512xf32>
      %358 = arith.addf %356, %357 : vector<10x512xf32>
      %359 = arith.addf %358, %293 : vector<10x512xf32>
      %360 = arith.truncf %359 : vector<10x512xf32> to vector<10x512xbf16>
      %cst_162 = arith.constant dense<0.000000e+00> : vector<10x6xf32>
      %361 = tpu.matmul %360, %301, %cst_162 {dimension_numbers = #tpu.dot_dimension_numbers<[1], [0], [0], [1], [0, 0, 1, 1], [], []>} : vector<10x512xbf16>, vector<512x6xbf16>, vector<10x6xf32> -> vector<10x6xf32>
      %362 = vector.broadcast %304 : vector<1x6xf32> to vector<10x6xf32>
      %363 = arith.addf %361, %362 : vector<10x6xf32>
      %c0_163 = arith.constant 0 : index
      %c24 = arith.constant 24 : index
      %364 = vector.load %arg26[%c0_163, %c24] : memref<10x36xf32, #tpu.memory_space<vmem>>, vector<10x6xf32>
      tpu.vector_store %arg26[%c0_163, %c24], %363 {strides = array<i32>} : memref<10x36xf32, #tpu.memory_space<vmem>>, vector<10x6xf32>,
      %c0_164 = arith.constant 0 : index
      %c0_165 = arith.constant 0 : index
      %365 = vector.load %arg22[%c0_164, %c0_165] : memref<512x256xbf16, #tpu.memory_space<vmem>>, vector<512x256xbf16>
      %c0_166 = arith.constant 0 : index
      %c0_167 = arith.constant 0 : index
      %366 = vector.load %arg23[%c0_166, %c0_167] : memref<256x256xbf16, #tpu.memory_space<vmem>>, vector<256x256xbf16>
      %c0_168 = arith.constant 0 : index
      %c0_169 = arith.constant 0 : index
      %367 = vector.load %arg24[%c0_168, %c0_169] : memref<512x256xbf16, #tpu.memory_space<vmem>>, vector<512x256xbf16>
      %c0_170 = arith.constant 0 : index
      %c0_171 = arith.constant 0 : index
      %368 = vector.load %arg25[%c0_170, %c0_171] : memref<256x6xbf16, #tpu.memory_space<vmem>>, vector<256x6xbf16>
      %c0_172 = arith.constant 0 : index
      %c4096 = arith.constant 4096 : index
      %369 = vector.load %arg3[%c0_172, %c4096] : memref<1x4736xf32, #tpu.memory_space<vmem>>, vector<1x256xf32>
      %c0_173 = arith.constant 0 : index
      %c4352 = arith.constant 4352 : index
      %370 = vector.load %arg3[%c0_173, %c4352] : memref<1x4736xf32, #tpu.memory_space<vmem>>, vector<1x256xf32>
      %c0_174 = arith.constant 0 : index
      %c4608 = arith.constant 4608 : index
      %371 = vector.load %arg3[%c0_174, %c4608] : memref<1x4736xf32, #tpu.memory_space<vmem>>, vector<1x6xf32>
      %cst_175 = arith.constant dense<0.000000e+00> : vector<512xf32>
      %372 = vector.multi_reduction <add>, %359, %cst_175 [0] : vector<10x512xf32> to vector<512xf32>
      %373 = vector.shape_cast %372 : vector<512xf32> to vector<1x512xf32>
      %cst_176 = arith.constant 1.000000e+01 : f32
      %374 = vector.broadcast %cst_176 : f32 to vector<1x512xf32>
      %375 = arith.divf %373, %374 : vector<1x512xf32>
      %376 = vector.broadcast %375 : vector<1x512xf32> to vector<10x512xf32>
      %377 = arith.subf %359, %376 : vector<10x512xf32>
      %378 = arith.mulf %377, %377 : vector<10x512xf32>
      %cst_177 = arith.constant dense<0.000000e+00> : vector<512xf32>
      %379 = vector.multi_reduction <add>, %378, %cst_177 [0] : vector<10x512xf32> to vector<512xf32>
      %380 = vector.shape_cast %379 : vector<512xf32> to vector<1x512xf32>
      %cst_178 = arith.constant 1.000000e+01 : f32
      %381 = vector.broadcast %cst_178 : f32 to vector<1x512xf32>
      %382 = arith.divf %380, %381 : vector<1x512xf32>
      %383 = vector.broadcast %375 : vector<1x512xf32> to vector<10x512xf32>
      %384 = arith.subf %359, %383 : vector<10x512xf32>
      %cst_179 = arith.constant 9.99999974E-6 : f32
      %385 = vector.broadcast %cst_179 : f32 to vector<1x512xf32>
      %386 = arith.addf %382, %385 : vector<1x512xf32>
      %387 = math.rsqrt %386 : vector<1x512xf32>
      %388 = vector.broadcast %387 : vector<1x512xf32> to vector<10x512xf32>
      %389 = arith.mulf %384, %388 : vector<10x512xf32>
      %cst_180 = arith.constant 0.000000e+00 : f32
      %390 = vector.broadcast %cst_180 : f32 to vector<10x512xf32>
      %391 = arith.cmpf oge, %389, %390 : vector<10x512xf32>
      %cst_181 = arith.constant 2.000000e-01 : f32
      %392 = vector.broadcast %cst_181 : f32 to vector<10x512xf32>
      %393 = arith.mulf %392, %389 : vector<10x512xf32>
      %394 = arith.select %391, %389, %393 : vector<10x512xi1>, vector<10x512xf32>
      %395 = arith.truncf %394 : vector<10x512xf32> to vector<10x512xbf16>
      %cst_182 = arith.constant dense<0.000000e+00> : vector<10x256xf32>
      %396 = tpu.matmul %395, %365, %cst_182 {dimension_numbers = #tpu.dot_dimension_numbers<[1], [0], [0], [1], [0, 0, 1, 1], [], []>} : vector<10x512xbf16>, vector<512x256xbf16>, vector<10x256xf32> -> vector<10x256xf32>
      %397 = vector.broadcast %369 : vector<1x256xf32> to vector<10x256xf32>
      %398 = arith.addf %396, %397 : vector<10x256xf32>
      %cst_183 = arith.constant dense<0.000000e+00> : vector<256xf32>
      %399 = vector.multi_reduction <add>, %398, %cst_183 [0] : vector<10x256xf32> to vector<256xf32>
      %400 = vector.shape_cast %399 : vector<256xf32> to vector<1x256xf32>
      %cst_184 = arith.constant 1.000000e+01 : f32
      %401 = vector.broadcast %cst_184 : f32 to vector<1x256xf32>
      %402 = arith.divf %400, %401 : vector<1x256xf32>
      %403 = vector.broadcast %402 : vector<1x256xf32> to vector<10x256xf32>
      %404 = arith.subf %398, %403 : vector<10x256xf32>
      %405 = arith.mulf %404, %404 : vector<10x256xf32>
      %cst_185 = arith.constant dense<0.000000e+00> : vector<256xf32>
      %406 = vector.multi_reduction <add>, %405, %cst_185 [0] : vector<10x256xf32> to vector<256xf32>
      %407 = vector.shape_cast %406 : vector<256xf32> to vector<1x256xf32>
      %cst_186 = arith.constant 1.000000e+01 : f32
      %408 = vector.broadcast %cst_186 : f32 to vector<1x256xf32>
      %409 = arith.divf %407, %408 : vector<1x256xf32>
      %410 = vector.broadcast %402 : vector<1x256xf32> to vector<10x256xf32>
      %411 = arith.subf %398, %410 : vector<10x256xf32>
      %cst_187 = arith.constant 9.99999974E-6 : f32
      %412 = vector.broadcast %cst_187 : f32 to vector<1x256xf32>
      %413 = arith.addf %409, %412 : vector<1x256xf32>
      %414 = math.rsqrt %413 : vector<1x256xf32>
      %415 = vector.broadcast %414 : vector<1x256xf32> to vector<10x256xf32>
      %416 = arith.mulf %411, %415 : vector<10x256xf32>
      %cst_188 = arith.constant 0.000000e+00 : f32
      %417 = vector.broadcast %cst_188 : f32 to vector<10x256xf32>
      %418 = arith.cmpf oge, %416, %417 : vector<10x256xf32>
      %cst_189 = arith.constant 2.000000e-01 : f32
      %419 = vector.broadcast %cst_189 : f32 to vector<10x256xf32>
      %420 = arith.mulf %419, %416 : vector<10x256xf32>
      %421 = arith.select %418, %416, %420 : vector<10x256xi1>, vector<10x256xf32>
      %422 = arith.truncf %421 : vector<10x256xf32> to vector<10x256xbf16>
      %cst_190 = arith.constant dense<0.000000e+00> : vector<10x256xf32>
      %423 = tpu.matmul %422, %366, %cst_190 {dimension_numbers = #tpu.dot_dimension_numbers<[1], [0], [0], [1], [0, 0, 1, 1], [], []>} : vector<10x256xbf16>, vector<256x256xbf16>, vector<10x256xf32> -> vector<10x256xf32>
      %424 = vector.broadcast %370 : vector<1x256xf32> to vector<10x256xf32>
      %425 = arith.addf %423, %424 : vector<10x256xf32>
      %426 = arith.truncf %359 : vector<10x512xf32> to vector<10x512xbf16>
      %cst_191 = arith.constant dense<0.000000e+00> : vector<10x256xf32>
      %427 = tpu.matmul %426, %367, %cst_191 {dimension_numbers = #tpu.dot_dimension_numbers<[1], [0], [0], [1], [0, 0, 1, 1], [], []>} : vector<10x512xbf16>, vector<512x256xbf16>, vector<10x256xf32> -> vector<10x256xf32>
      %428 = arith.addf %425, %427 : vector<10x256xf32>
      %429 = arith.truncf %428 : vector<10x256xf32> to vector<10x256xbf16>
      %cst_192 = arith.constant dense<0.000000e+00> : vector<10x6xf32>
      %430 = tpu.matmul %429, %368, %cst_192 {dimension_numbers = #tpu.dot_dimension_numbers<[1], [0], [0], [1], [0, 0, 1, 1], [], []>} : vector<10x256xbf16>, vector<256x6xbf16>, vector<10x6xf32> -> vector<10x6xf32>
      %431 = vector.broadcast %371 : vector<1x6xf32> to vector<10x6xf32>
      %432 = arith.addf %430, %431 : vector<10x6xf32>
      %c0_193 = arith.constant 0 : index
      %c30 = arith.constant 30 : index
      %433 = vector.load %arg26[%c0_193, %c30] : memref<10x36xf32, #tpu.memory_space<vmem>>, vector<10x6xf32>
      tpu.vector_store %arg26[%c0_193, %c30], %432 {strides = array<i32>} : memref<10x36xf32, #tpu.memory_space<vmem>>, vector<10x6xf32>,
    } else {
    }
    return
  }
  func.func @transform_0(%arg0: i32) -> (i32, i32, i32) {
    %c0_i32 = arith.constant 0 : i32
    %c0_i32_0 = arith.constant 0 : i32
    %c0_i32_1 = arith.constant 0 : i32
    return %c0_i32, %arg0, %c0_i32_0 : i32, i32, i32
  }
  func.func @transform_1(%arg0: i32) -> (i32, i32, i32) {
    %c0_i32 = arith.constant 0 : i32
    %c0_i32_0 = arith.constant 0 : i32
    %c0_i32_1 = arith.constant 0 : i32
    return %c0_i32, %c0_i32_0, %arg0 : i32, i32, i32
  }
  func.func @transform_2(%arg0: i32) -> (i32, i32) {
    %c0_i32 = arith.constant 0 : i32
    %c0_i32_0 = arith.constant 0 : i32
    %c0_i32_1 = arith.constant 0 : i32
    return %c0_i32, %c0_i32_0 : i32, i32
  }
  func.func @transform_3(%arg0: i32) -> (i32, i32) {
    %c0_i32 = arith.constant 0 : i32
    %c0_i32_0 = arith.constant 0 : i32
    %c0_i32_1 = arith.constant 0 : i32
    return %c0_i32, %c0_i32_0 : i32, i32
  }
  func.func @transform_4(%arg0: i32) -> (i32, i32) {
    %c0_i32 = arith.constant 0 : i32
    %c0_i32_0 = arith.constant 0 : i32
    %c0_i32_1 = arith.constant 0 : i32
    return %c0_i32, %c0_i32_0 : i32, i32
  }
  func.func @transform_5(%arg0: i32) -> (i32, i32) {
    %c0_i32 = arith.constant 0 : i32
    %c0_i32_0 = arith.constant 0 : i32
    %c0_i32_1 = arith.constant 0 : i32
    return %c0_i32, %c0_i32_0 : i32, i32
  }
  func.func @transform_6(%arg0: i32) -> (i32, i32) {
    %c0_i32 = arith.constant 0 : i32
    %c0_i32_0 = arith.constant 0 : i32
    %c0_i32_1 = arith.constant 0 : i32
    return %c0_i32, %c0_i32_0 : i32, i32
  }
  func.func @transform_7(%arg0: i32) -> (i32, i32) {
    %c0_i32 = arith.constant 0 : i32
    %c0_i32_0 = arith.constant 0 : i32
    %c0_i32_1 = arith.constant 0 : i32
    return %c0_i32, %c0_i32_0 : i32, i32
  }
  func.func @transform_8(%arg0: i32) -> (i32, i32) {
    %c0_i32 = arith.constant 0 : i32
    %c0_i32_0 = arith.constant 0 : i32
    %c0_i32_1 = arith.constant 0 : i32
    return %c0_i32, %c0_i32_0 : i32, i32
  }
  func.func @transform_9(%arg0: i32) -> (i32, i32) {
    %c0_i32 = arith.constant 0 : i32
    %c0_i32_0 = arith.constant 0 : i32
    %c0_i32_1 = arith.constant 0 : i32
    return %c0_i32, %c0_i32_0 : i32, i32
  }
  func.func @transform_10(%arg0: i32) -> (i32, i32) {
    %c0_i32 = arith.constant 0 : i32
    %c0_i32_0 = arith.constant 0 : i32
    %c0_i32_1 = arith.constant 0 : i32
    return %c0_i32, %c0_i32_0 : i32, i32
  }
  func.func @transform_11(%arg0: i32) -> (i32, i32) {
    %c0_i32 = arith.constant 0 : i32
    %c0_i32_0 = arith.constant 0 : i32
    %c0_i32_1 = arith.constant 0 : i32
    return %c0_i32, %c0_i32_0 : i32, i32
  }
  func.func @transform_12(%arg0: i32) -> (i32, i32) {
    %c0_i32 = arith.constant 0 : i32
    %c0_i32_0 = arith.constant 0 : i32
    %c0_i32_1 = arith.constant 0 : i32
    return %c0_i32, %c0_i32_0 : i32, i32
  }
  func.func @transform_13(%arg0: i32) -> (i32, i32) {
    %c0_i32 = arith.constant 0 : i32
    %c0_i32_0 = arith.constant 0 : i32
    %c0_i32_1 = arith.constant 0 : i32
    return %c0_i32, %c0_i32_0 : i32, i32
  }
  func.func @transform_14(%arg0: i32) -> (i32, i32) {
    %c0_i32 = arith.constant 0 : i32
    %c0_i32_0 = arith.constant 0 : i32
    %c0_i32_1 = arith.constant 0 : i32
    return %c0_i32, %c0_i32_0 : i32, i32
  }
  func.func @transform_15(%arg0: i32) -> (i32, i32) {
    %c0_i32 = arith.constant 0 : i32
    %c0_i32_0 = arith.constant 0 : i32
    %c0_i32_1 = arith.constant 0 : i32
    return %c0_i32, %c0_i32_0 : i32, i32
  }
  func.func @transform_16(%arg0: i32) -> (i32, i32) {
    %c0_i32 = arith.constant 0 : i32
    %c0_i32_0 = arith.constant 0 : i32
    %c0_i32_1 = arith.constant 0 : i32
    return %c0_i32, %c0_i32_0 : i32, i32
  }
  func.func @transform_17(%arg0: i32) -> (i32, i32) {
    %c0_i32 = arith.constant 0 : i32
    %c0_i32_0 = arith.constant 0 : i32
    %c0_i32_1 = arith.constant 0 : i32
    return %c0_i32, %c0_i32_0 : i32, i32
  }
  func.func @transform_18(%arg0: i32) -> (i32, i32) {
    %c0_i32 = arith.constant 0 : i32
    %c0_i32_0 = arith.constant 0 : i32
    %c0_i32_1 = arith.constant 0 : i32
    return %c0_i32, %c0_i32_0 : i32, i32
  }
  func.func @transform_19(%arg0: i32) -> (i32, i32) {
    %c0_i32 = arith.constant 0 : i32
    %c0_i32_0 = arith.constant 0 : i32
    %c0_i32_1 = arith.constant 0 : i32
    return %c0_i32, %c0_i32_0 : i32, i32
  }
  func.func @transform_20(%arg0: i32) -> (i32, i32) {
    %c0_i32 = arith.constant 0 : i32
    %c0_i32_0 = arith.constant 0 : i32
    %c0_i32_1 = arith.constant 0 : i32
    return %c0_i32, %c0_i32_0 : i32, i32
  }
  func.func @transform_21(%arg0: i32) -> (i32, i32) {
    %c0_i32 = arith.constant 0 : i32
    %c0_i32_0 = arith.constant 0 : i32
    %c0_i32_1 = arith.constant 0 : i32
    return %c0_i32, %c0_i32_0 : i32, i32
  }
  func.func @transform_22(%arg0: i32) -> (i32, i32) {
    %c0_i32 = arith.constant 0 : i32
    %c0_i32_0 = arith.constant 0 : i32
    %c0_i32_1 = arith.constant 0 : i32
    return %c0_i32, %c0_i32_0 : i32, i32
  }
  func.func @transform_23(%arg0: i32) -> (i32, i32) {
    %c0_i32 = arith.constant 0 : i32
    %c0_i32_0 = arith.constant 0 : i32
    %c0_i32_1 = arith.constant 0 : i32
    return %c0_i32, %c0_i32_0 : i32, i32
  }
  func.func @transform_24(%arg0: i32) -> (i32, i32) {
    %c0_i32 = arith.constant 0 : i32
    %c0_i32_0 = arith.constant 0 : i32
    %c0_i32_1 = arith.constant 0 : i32
    return %c0_i32, %c0_i32_0 : i32, i32
  }
  func.func @transform_25(%arg0: i32) -> (i32, i32) {
    %c0_i32 = arith.constant 0 : i32
    %c0_i32_0 = arith.constant 0 : i32
    %c0_i32_1 = arith.constant 0 : i32
    return %c0_i32, %c0_i32_0 : i32, i32
  }
}

</mosaic_0001>

<bundles_post_ra>
// kernel: tpu_custom_call.1
= control target key start
LH: loop header
LB: loop body
LE: loop exit
PB: predicated region body
PF: predicated region fallthrough
CT: control target
= control target key end

     0   :  { %s15406_s0 = inlined_call_operand.vmem [shape: bf16[2,256,64], index: 0, kind: input, shape index: {}]   ;;  %s15407_s1 = inlined_call_operand.vmem [shape: bf16[2,5,256], index: 1, kind: input, shape index: {}]   ;;  %s15408_s2 = inlined_call_operand.vmem [shape: f32[1,4736], index: 2, kind: input, shape index: {}]   ;;  %s15409_s3 = inlined_call_operand.hbm [shape: bf16[64,64], index: 3, kind: input, shape index: {}]   ;;  %s15410_s4 = inlined_call_operand.hbm [shape: bf16[64,128], index: 4, kind: input, shape index: {}]   ;;  %s15411_s5 = inlined_call_operand.hbm [shape: bf16[64,128], index: 5, kind: input, shape index: {}]   ;;  %s15412_s6 = inlined_call_operand.vmem [shape: bf16[128,6], index: 6, kind: input, shape index: {}]   ;;  %s15413_s7 = inlined_call_operand.hbm [shape: bf16[128,128], index: 7, kind: input, shape index: {}]   ;;  %s15414_s8 = inlined_call_operand.hbm [shape: bf16[128,256], index: 8, kind: input, shape index: {}]   ;;  %s15415_s9 = inlined_call_operand.hbm [shape: bf16[128,256], index: 9, kind: input, shape index: {}]   ;;  %s15416_s10 = inlined_call_operand.vmem [shape: bf16[256,6], index: 10, kind: input, shape index: {}]   ;;  %s15417_s11 = inlined_call_operand.hbm [shape: bf16[256,256], index: 11, kind: input, shape index: {}]   ;;  %s15418_s12 = inlined_call_operand.vmem [shape: bf16[256,512], index: 12, kind: input, shape index: {}]   ;;  %s15419_s13 = inlined_call_operand.hbm [shape: bf16[256,512], index: 13, kind: input, shape index: {}]   ;;  %s15420_s14 = inlined_call_operand.vmem [shape: bf16[512,6], index: 14, kind: input, shape index: {}]   ;;  %s15421_s15 = inlined_call_operand.vmem [shape: bf16[512,512], index: 15, kind: input, shape index: {}]   ;;  %s15422_s16 = inlined_call_operand.hbm [shape: bf16[512,512], index: 16, kind: input, shape index: {}]   ;;  %s15423_s17 = inlined_call_operand.vmem [shape: bf16[512,6], index: 17, kind: input, shape index: {}]   ;;  %s15424_s18 = inlined_call_operand.hbm [shape: bf16[512,512], index: 18, kind: input, shape index: {}]   ;;  %s15425_s19 = inlined_call_operand.hbm [shape: bf16[512,512], index: 19, kind: input, shape index: {}]   ;;  %s15426_s20 = inlined_call_operand.vmem [shape: bf16[512,6], index: 20, kind: input, shape index: {}]   ;;  %s15427_s21 = inlined_call_operand.hbm [shape: bf16[512,256], index: 21, kind: input, shape index: {}]   ;;  %s15428_s22 = inlined_call_operand.hbm [shape: bf16[256,256], index: 22, kind: input, shape index: {}]   ;;  %s15429_s23 = inlined_call_operand.hbm [shape: bf16[512,256], index: 23, kind: input, shape index: {}]   ;;  %s15430_s24 = inlined_call_operand.vmem [shape: bf16[256,6], index: 24, kind: input, shape index: {}]   ;;  %s15431_s25 = inlined_call_operand.hbm [shape: f32[10,36], index: 25, kind: output, shape index: {}]  }
   0x1   :  { %15440 = sst [smem:[#allocation36_spill]] %s15406_s0 }
   0x2   :  { %15441 = sst [smem:[#allocation37_spill]] %s15407_s1 }
   0x3   :  { %15442 = sst [smem:[#allocation38_spill]] %s15408_s2 }
   0x4   :  { %15443 = sst [smem:[#allocation39_spill]] %s15409_s3 }
   0x5   :  { %15444 = sst [smem:[#allocation40_spill]] %s15410_s4 }
   0x6   :  { %15445 = sst [smem:[#allocation41_spill]] %s15411_s5 }
   0x7   :  { %15446 = sst [smem:[#allocation42_spill]] %s15412_s6 }
   0x8   :  { %15447 = sst [smem:[#allocation43_spill]] %s15413_s7 }
   0x9   :  { %15448 = sst [smem:[#allocation44_spill]] %s15414_s8 }
   0xa   :  { %15449 = sst [smem:[#allocation45_spill]] %s15415_s9 }
   0xb   :  { %30 = vsyncpa [#allocation4], 0 }
   0xc   :  { %31 = vsyncpa [#allocation7], 0 }
   0xd   :  { %32 = vsyncpa [#allocation10], 0 }
   0xe   :  { %33 = vsyncpa [#allocation13], 0 }
   0xf   :  { %34 = vsyncpa [#allocation16], 0 }
  0x10   :  { %35 = vsyncpa [#allocation19], 0 }
  0x11   :  { %36 = vsyncpa [#allocation22], 0 }
  0x12   :  { %37 = vsyncpa [#allocation25], 0 }
  0x13   :  { %38 = vsyncpa [#allocation5], 0  ;;  %s13504_s29 = smov [#allocation6]   ;;  %s13505_s6 = smov [#allocation9]  }
  0x14   :  { %s62_s2 = sshll.u32 %s13504_s29, 4  ;;  %s88_s30 = sshll.u32 %s13505_s6, 4  ;;  %s63_s2 = int_to_ptr.vmem [resolvable:$true] %s62_s2  ;;  %s89_s30 = int_to_ptr.vmem [resolvable:$true] %s88_s30 }
  0x15   :  { %s13194_s7 = scalar_lea.vmem %s63_s2, 512  ;;  %p13199_p1 = scmp.lt.s32.totalorder %s63_s2, %s63_s2 }
  0x16   :  { %p13195_p0 = scmp.ne.s32.totalorder %s63_s2, %s13194_s7  ;;  %p13200_p2 = scmp.lt.s32.totalorder %s13194_s7, %s13194_s7 }
  0x18   :  { %p13201_p3 = por %p13200_p2, %p13199_p1 }
  0x1a   :  { %p13202_p4 = pnand %p13201_p3, %p13195_p0 }
  0x1c   :  { %13205 = shalt.err (!%p13202_p4)
}
  0x1d   :  { %s15436_s3 = smov 64   ;;  %s13507_s26 = smov 4  }
  0x1e   :  { %s15450_s27 = sld [smem:[#allocation40_spill]]  ;;  %s13214_s4 = scalar_lea.vmem %s89_s30, 1024 }
  0x1f   :  { %p13215_p5 = scmp.ne.s32.totalorder %s89_s30, %s13214_s4  ;;  %p13219_p6 = scmp.lt.s32.totalorder %s89_s30, %s89_s30 }
  0x20   :  { %p13220_p7 = scmp.lt.s32.totalorder %s13214_s4, %s13214_s4 }
  0x22   :  { %p13221_p8 = por %p13220_p7, %p13219_p6 }
  0x24   :  { %68 = dma.hbm_to_vmem [thread:$0]  %s15450_s27, 512, %s63_s2, [#allocation7], %s15436_s3, %s15436_s3, %s13507_s26  }
  0x25   :  { %p13222_p9 = pnand %p13221_p8, %p13215_p5 }
  0x27   :  { %13225 = shalt.err (!%p13222_p9)
}
  0x28   :  { %s15451_s5 = sld [smem:[#allocation43_spill]]  ;;  %s13508_s0 = smov [#allocation12]  }
  0x29   :  { %s112_s29 = sshll.u32 %s13508_s0, 4  ;;  %s13509_s6 = smov [#allocation15]   ;;  %s113_s29 = int_to_ptr.vmem [resolvable:$true] %s112_s29 }
  0x2a   :  { %s140_s7 = sshll.u32 %s13509_s6, 4  ;;  %s13234_s2 = scalar_lea.vmem %s113_s29, 2048  ;;  %s141_s7 = int_to_ptr.vmem [resolvable:$true] %s140_s7 }
  0x2b   :  { %p13235_p10 = scmp.ne.s32.totalorder %s113_s29, %s13234_s2  ;;  %p13239_p11 = scmp.lt.s32.totalorder %s113_s29, %s113_s29 }
  0x2c   :  { %p13240_p12 = scmp.lt.s32.totalorder %s13234_s2, %s13234_s2 }
  0x2e   :  { %94 = dma.hbm_to_vmem [thread:$0]  %s15451_s5, 1024, %s89_s30, [#allocation10], %s15436_s3, %s15436_s3, %s13507_s26  }
  0x2f   :  { %p13241_p13 = por %p13240_p12, %p13239_p11 }
  0x31   :  { %p13242_p0 = pnand %p13241_p13, %p13235_p10 }
  0x33   :  { %13245 = shalt.err (!%p13242_p0)
}
  0x34   :  { %s13510_s1 = smov 128   ;;  %s13511_s8 = smov 8  }
  0x35   :  { %s15452_s4 = sld [smem:[#allocation45_spill]]  ;;  %s13254_s28 = scalar_lea.vmem %s141_s7, 8192 }
  0x36   :  { %p13255_p1 = scmp.ne.s32.totalorder %s141_s7, %s13254_s28  ;;  %p13259_p2 = scmp.lt.s32.totalorder %s141_s7, %s141_s7 }
  0x37   :  { %p13260_p3 = scmp.lt.s32.totalorder %s13254_s28, %s13254_s28 }
  0x39   :  { %p13261_p4 = por %p13260_p3, %p13259_p2 }
  0x3b   :  { %118 = dma.hbm_to_vmem [thread:$0]  %s15452_s4, 2048, %s113_s29, [#allocation13], %s13510_s1, %s13510_s1, %s13511_s8  }
  0x3c   :  { %p13262_p5 = pnand %p13261_p4, %p13255_p1 }
  0x3e   :  { %13265 = shalt.err (!%p13262_p5)
}
  0x3f   :  { %s15438_s9 = smov 256   ;;  %s13513_s5 = smov 16  }
  0x40   :  { %146 = dma.hbm_to_vmem [thread:$0]  %s15419_s13, 8192, %s141_s7, [#allocation16], %s15438_s9, %s15438_s9, %s13513_s5  }
  0x41   :  { %s13514_s2 = smov [#allocation18]   ;;  %s13515_s27 = smov [#allocation21]  }
  0x42   :  { %s170_s3 = sshll.u32 %s13514_s2, 4  ;;  %s196_s29 = sshll.u32 %s13515_s27, 4  ;;  %s171_s3 = int_to_ptr.vmem [resolvable:$true] %s170_s3  ;;  %s197_s29 = int_to_ptr.vmem [resolvable:$true] %s196_s29 }
  0x43   :  { %s13274_s30 = scalar_lea.vmem %s171_s3, 16384  ;;  %p13279_p7 = scmp.lt.s32.totalorder %s171_s3, %s171_s3 }
  0x44   :  { %p13275_p6 = scmp.ne.s32.totalorder %s171_s3, %s13274_s30  ;;  %p13280_p8 = scmp.lt.s32.totalorder %s13274_s30, %s13274_s30 }
  0x46   :  { %p13281_p9 = por %p13280_p8, %p13279_p7 }
  0x48   :  { %p13282_p10 = pnand %p13281_p9, %p13275_p6 }
  0x4a   :  { %13285 = shalt.err (!%p13282_p10)
}
  0x4b   :  { %176 = dma.hbm_to_vmem [thread:$0]  %s15424_s18, 16384, %s171_s3, [#allocation19], %s15438_s9, %s15438_s9, %s13513_s5  }
  0x4c   :  { %s13294_s13 = scalar_lea.vmem %s197_s29, 8192  ;;  %p13299_p12 = scmp.lt.s32.totalorder %s197_s29, %s197_s29 }
  0x4d   :  { %p13295_p11 = scmp.ne.s32.totalorder %s197_s29, %s13294_s13  ;;  %p13300_p13 = scmp.lt.s32.totalorder %s13294_s13, %s13294_s13 }
  0x4f   :  { %p13301_p0 = por %p13300_p13, %p13299_p12 }
  0x51   :  { %p13302_p1 = pnand %p13301_p0, %p13295_p11 }
  0x53   :  { %13305 = shalt.err (!%p13302_p1)
}
  0x54   :  { %202 = dma.hbm_to_vmem [thread:$0]  %s15427_s21, 8192, %s197_s29, [#allocation22], %s13510_s1, %s13510_s1, %s13511_s8  }
  0x55   :  { %s13516_s6 = smov [#allocation3]   ;;  %s13517_s27 = smov [#allocation8]  }
  0x56   :  { %s50_s2 = sshll.u32 %s13516_s6, 4  ;;  %s74_s30 = sshll.u32 %s13517_s27, 4  ;;  %s51_s2 = int_to_ptr.vmem [resolvable:$true] %s50_s2  ;;  %s75_s30 = int_to_ptr.vmem [resolvable:$true] %s74_s30 }
  0x57   :  { %s13314_s18 = scalar_lea.vmem %s51_s2, 512  ;;  %p13319_p3 = scmp.lt.s32.totalorder %s51_s2, %s51_s2 }
  0x58   :  { %p13315_p2 = scmp.ne.s32.totalorder %s51_s2, %s13314_s18  ;;  %p13320_p4 = scmp.lt.s32.totalorder %s13314_s18, %s13314_s18 }
  0x5a   :  { %p13321_p5 = por %p13320_p4, %p13319_p3 }
  0x5c   :  { %p13322_p6 = pnand %p13321_p5, %p13315_p2 }
  0x5e   :  { %13325 = shalt.err (!%p13322_p6)
}
  0x5f   :  { %s15453_s3 = smov 64   ;;  %s15454_s13 = sld [smem:[#allocation39_spill]] }
  0x60   :  { %s13334_s21 = scalar_lea.vmem %s75_s30, 512  ;;  %p13339_p8 = scmp.lt.s32.totalorder %s75_s30, %s75_s30 }
  0x61   :  { %p13335_p7 = scmp.ne.s32.totalorder %s75_s30, %s13334_s21  ;;  %p13340_p9 = scmp.lt.s32.totalorder %s13334_s21, %s13334_s21 }
  0x63   :  { %p13341_p10 = por %p13340_p9, %p13339_p8 }
  0x65   :  { %56 = dma.hbm_to_vmem [thread:$0]  %s15454_s13, 512, %s51_s2, [#allocation4], %s15453_s3, %s15453_s3, %s13507_s26  }
  0x66   :  { %p13342_p11 = pnand %p13341_p10, %p13335_p7 }
  0x68   :  { %13345 = shalt.err (!%p13342_p11)
}
  0x69   :  { %s15455_s0 = sld [smem:[#allocation41_spill]]  ;;  %s13518_s6 = smov [#allocation11]  }
  0x6a   :  { %s100_s27 = sshll.u32 %s13518_s6, 4  ;;  %s13519_s18 = smov [#allocation14]   ;;  %s101_s27 = int_to_ptr.vmem [resolvable:$true] %s100_s27 }
  0x6b   :  { %s126_s9 = sshll.u32 %s13519_s18, 4  ;;  %s13354_s2 = scalar_lea.vmem %s101_s27, 2048  ;;  %s127_s9 = int_to_ptr.vmem [resolvable:$true] %s126_s9 }
  0x6c   :  { %p13355_p12 = scmp.ne.s32.totalorder %s101_s27, %s13354_s2  ;;  %p13359_p13 = scmp.lt.s32.totalorder %s101_s27, %s101_s27 }
  0x6d   :  { %p13360_p0 = scmp.lt.s32.totalorder %s13354_s2, %s13354_s2 }
  0x6f   :  { %80 = dma.hbm_to_vmem [thread:$0]  %s15455_s0, 512, %s75_s30, [#allocation7], %s15453_s3, %s15453_s3, %s13507_s26  }
  0x70   :  { %p13361_p1 = por %p13360_p0, %p13359_p13 }
  0x72   :  { %p13362_p2 = pnand %p13361_p1, %p13355_p12 }
  0x74   :  { %13365 = shalt.err (!%p13362_p2)
}
  0x75   :  { %s15456_s13 = sld [smem:[#allocation44_spill]]  ;;  %s13374_s26 = scalar_lea.vmem %s127_s9, 4096 }
  0x76   :  { %p13375_p3 = scmp.ne.s32.totalorder %s127_s9, %s13374_s26  ;;  %p13379_p4 = scmp.lt.s32.totalorder %s127_s9, %s127_s9 }
  0x77   :  { %p13380_p5 = scmp.lt.s32.totalorder %s13374_s26, %s13374_s26 }
  0x79   :  { %p13381_p6 = por %p13380_p5, %p13379_p4 }
  0x7b   :  { %106 = dma.hbm_to_vmem [thread:$0]  %s15456_s13, 2048, %s101_s27, [#allocation10], %s13510_s1, %s13510_s1, %s13511_s8  }
  0x7c   :  { %p13382_p7 = pnand %p13381_p6, %p13375_p3 }
  0x7e   :  { %13385 = shalt.err (!%p13382_p7)
}
  0x7f   :  { %132 = dma.hbm_to_vmem [thread:$0]  %s15417_s11, 4096, %s127_s9, [#allocation13], %s13510_s1, %s13510_s1, %s13511_s8  }
  0x80   :  { %s13520_s21 = smov [#allocation17]   ;;  %s13521_s7 = smov [#allocation20]  }
  0x81   :  { %s156_s29 = sshll.u32 %s13520_s21, 4  ;;  %s182_s0 = sshll.u32 %s13521_s7, 4  ;;  %s157_s29 = int_to_ptr.vmem [resolvable:$true] %s156_s29  ;;  %s183_s0 = int_to_ptr.vmem [resolvable:$true] %s182_s0 }
  0x82   :  { %s13394_s6 = scalar_lea.vmem %s157_s29, 16384  ;;  %p13399_p9 = scmp.lt.s32.totalorder %s157_s29, %s157_s29 }
  0x83   :  { %p13395_p8 = scmp.ne.s32.totalorder %s157_s29, %s13394_s6  ;;  %p13400_p10 = scmp.lt.s32.totalorder %s13394_s6, %s13394_s6 }
  0x85   :  { %p13401_p11 = por %p13400_p10, %p13399_p9 }
  0x87   :  { %p13402_p12 = pnand %p13401_p11, %p13395_p8 }
  0x89   :  { %13405 = shalt.err (!%p13402_p12)
}
  0x8a   :  { %s15457_s27 = smov 256   ;;  %s13414_s11 = scalar_lea.vmem %s183_s0, 16384 }
  0x8b   :  { %162 = dma.hbm_to_vmem [thread:$0]  %s15422_s16, 16384, %s157_s29, [#allocation16], %s15457_s27, %s15457_s27, %s13513_s5  }
  0x8c   :  { %p13415_p13 = scmp.ne.s32.totalorder %s183_s0, %s13414_s11  ;;  %p13419_p0 = scmp.lt.s32.totalorder %s183_s0, %s183_s0 }
  0x8d   :  { %p13420_p1 = scmp.lt.s32.totalorder %s13414_s11, %s13414_s11 }
  0x8f   :  { %p13421_p2 = por %p13420_p1, %p13419_p0 }
  0x91   :  { %p13422_p3 = pnand %p13421_p2, %p13415_p13 }
  0x93   :  { %13425 = shalt.err (!%p13422_p3)
}
  0x94   :  { %188 = dma.hbm_to_vmem [thread:$0]  %s15425_s19, 16384, %s183_s0, [#allocation19], %s15457_s27, %s15457_s27, %s13513_s5  }
  0x95   :  { %s13522_s28 = smov [#allocation23]   ;;  %s13523_s26 = smov [#allocation24]  }
  0x96   :  { %s208_s13 = sshll.u32 %s13522_s28, 4  ;;  %s220_s30 = sshll.u32 %s13523_s26, 4  ;;  %s209_s13 = int_to_ptr.vmem [resolvable:$true] %s208_s13  ;;  %s221_s30 = int_to_ptr.vmem [resolvable:$true] %s220_s30 }
  0x97   :  { %s13434_s16 = scalar_lea.vmem %s209_s13, 4096  ;;  %p13439_p5 = scmp.lt.s32.totalorder %s209_s13, %s209_s13 }
  0x98   :  { %p13435_p4 = scmp.ne.s32.totalorder %s209_s13, %s13434_s16  ;;  %p13440_p6 = scmp.lt.s32.totalorder %s13434_s16, %s13434_s16 }
  0x9a   :  { %p13441_p7 = por %p13440_p6, %p13439_p5 }
  0x9c   :  { %p13442_p8 = pnand %p13441_p7, %p13435_p4 }
  0x9e   :  { %13445 = shalt.err (!%p13442_p8)
}
  0x9f   :  { %214 = dma.hbm_to_vmem [thread:$0]  %s15428_s22, 4096, %s209_s13, [#allocation22], %s13510_s1, %s13510_s1, %s13511_s8  }
  0xa0   :  { %s13454_s19 = scalar_lea.vmem %s221_s30, 8192  ;;  %p13459_p10 = scmp.lt.s32.totalorder %s221_s30, %s221_s30 }
  0xa1   :  { %p13455_p9 = scmp.ne.s32.totalorder %s221_s30, %s13454_s19  ;;  %p13460_p11 = scmp.lt.s32.totalorder %s13454_s19, %s13454_s19 }
  0xa3   :  { %p13461_p12 = por %p13460_p11, %p13459_p10 }
  0xa5   :  { %p13462_p13 = pnand %p13461_p12, %p13455_p9 }
  0xa7   :  { %13465 = shalt.err (!%p13462_p13)
}
  0xa8   :  { %226 = dma.hbm_to_vmem [thread:$0]  %s15429_s23, 8192, %s221_s30, [#allocation25], %s13510_s1, %s13510_s1, %s13511_s8  }
  0xa9   :  { %13486 = dma.done.wait [#allocation4], 512  }
  0xaa   :  { %13487 = vsyncadd [#allocation4], 4294966784 }
  0xab   :  { %13488 = dma.done.wait [#allocation7], 1024  }
  0xac   :  { %13489 = vsyncadd [#allocation7], 4294966272 }
  0xad   :  { %13490 = dma.done.wait [#allocation10], 3072  }
  0xae   :  { %13491 = vsyncadd [#allocation10], 4294964224 }
  0xaf   :  { %13492 = dma.done.wait [#allocation13], 6144  }
  0xb0   :  { %13493 = vsyncadd [#allocation13], 4294961152 }
  0xb1   :  { %13494 = dma.done.wait [#allocation16], 24576  }
  0xb2   :  { %13495 = vsyncadd [#allocation16], 4294942720 }
  0xb3   :  { %13496 = dma.done.wait [#allocation19], 32768  }
  0xb4   :  { %13497 = vsyncadd [#allocation19], 4294934528 }
  0xb5   :  { %13498 = dma.done.wait [#allocation22], 12288  }
  0xb6   :  { %13499 = vsyncadd [#allocation22], 4294955008 }
  0xb7   :  { %13500 = dma.done.wait [#allocation25], 8192  }
  0xb8   :  { %13501 = vsyncadd [#allocation25], 4294959104  ;;  %s15458_s0 = sld [smem:[#allocation36_spill]]  ;;  %vm276_vm0 = vcmask 520192   ;;  %v13524_v38 = vmov 0.0   ;;  %v11674_v39 = vld [vmem:[#allocation3 + $0x18] sm:$0xff]  }
  0xb9   :  { %s15459_s2 = sld [smem:[#allocation37_spill]]  ;;  %277 = vst.msk [vmem:[#allocation2] sm:$0x1f] %vm276_vm0, %v13524_v38  ;;  %278 = vst.msk [vmem:[#allocation2 + $0x8] sm:$0x1f] %vm276_vm0, %v13524_v38  ;;  %v11675_v40 = vld [vmem:[#allocation3 + $0x10] sm:$0xff]  }
  0xba   :  { %vm13525_vm1 = vmmov 0   ;;  %v11676_v41 = vld [vmem:[#allocation3 + $0x8] sm:$0xff]   ;;  %v11677_v42 = vld [vmem:[#allocation3] sm:$0xff]   ;;  %vm648_vm2 = vcmask 1041409   ;;  %vm653_vm3 = vcmask 1043459   ;;  %vm658_vm4 = vcmask 1045509  }
  0xbb   :  { %vm670_vm5 = vcmask 1041408   ;;  %vm663_vm6 = vcmask 1047559   ;;  %vm672_vm7 = vcmask 1043456   ;;  %vm674_vm8 = vcmask 1045504   ;;  %s15460_s28 = sld [smem:[#allocation38_spill]]  ;;  %s13528_s29 = smov 12  }
  0xbc   :  { %vm719_vm9 = vcmask 523264   ;;  %vm721_vm10 = vcmask 517120   ;;  %s15461_s30 = sld [smem:[#allocation42_spill]]  ;;  %s13530_s3 = smov 24  }
  0xbd   :  { %s13531_s27 = smov 30   ;;  %s13532_s18 = smov [#allocation26]  }
  0xbe   :  { %v11638_v0 = vld [vmem:[%s15458_s0 + $0x78] sm:$0xff]   ;;  %v11642_v4 = vld [vmem:[%s15458_s0 + $0x70] sm:$0xff]   ;;  %v11646_v8 = vld [vmem:[%s15458_s0 + $0x68] sm:$0xff]  }
  0xbf   :  { %v11639_v1 = vld [vmem:[%s15458_s0 + $0xf8] sm:$0xff]   ;;  %11280 = vmatprep.subr.bf16.mxu0 %v11638_v0  ;;  %v11643_v5 = vld [vmem:[%s15458_s0 + $0xf0] sm:$0xff]   ;;  %v11647_v9 = vld [vmem:[%s15458_s0 + $0xe8] sm:$0xff]  }
  0xc0   :  { %v11640_v2 = vld [vmem:[%s15458_s0 + $0x38] sm:$0xff]   ;;  %11302 = vmatprep.subr.bf16.mxu1 %v11639_v1  ;;  %v11644_v6 = vld [vmem:[%s15458_s0 + $0x30] sm:$0xff]   ;;  %v11648_v10 = vld [vmem:[%s15458_s0 + $0x28] sm:$0xff]  }
  0xc1   :  { %v11641_v3 = vld [vmem:[%s15458_s0 + $0xb8] sm:$0xff]   ;;  %11281 = vmatpush3.bf16.msra.mxu0 %v11640_v2  ;;  %v11645_v7 = vld [vmem:[%s15458_s0 + $0xb0] sm:$0xff]   ;;  %v11649_v11 = vld [vmem:[%s15458_s0 + $0xa8] sm:$0xff]  }
  0xc2   :  { %11303 = vmatpush3.bf16.msra.mxu1 %v11641_v3  ;;  %11282 = vmatprep.subr.bf16.mxu0 %v11642_v4  ;;  %v11650_v12 = vld [vmem:[%s15458_s0 + $0x60] sm:$0xff]   ;;  %v11654_v16 = vld [vmem:[%s15458_s0 + $0x58] sm:$0xff]   ;;  %v11658_v20 = vld [vmem:[%s15458_s0 + $0x50] sm:$0xff]  }
  0xc3   :  { %11304 = vmatprep.subr.bf16.mxu1 %v11643_v5  ;;  %v11651_v13 = vld [vmem:[%s15458_s0 + $0xe0] sm:$0xff]   ;;  %v11655_v17 = vld [vmem:[%s15458_s0 + $0xd8] sm:$0xff]   ;;  %v11659_v21 = vld [vmem:[%s15458_s0 + $0xd0] sm:$0xff]  }
  0xc4   :  { %v11652_v14 = vld [vmem:[%s15458_s0 + $0x20] sm:$0xff]   ;;  %v11656_v18 = vld [vmem:[%s15458_s0 + $0x18] sm:$0xff]   ;;  %v11660_v22 = vld [vmem:[%s15458_s0 + $0x10] sm:$0xff]  }
  0xc5   :  { %11283 = vmatpush3.bf16.msra.mxu0 %v11644_v6  ;;  %v11653_v15 = vld [vmem:[%s15458_s0 + $0xa0] sm:$0xff]   ;;  %v11657_v19 = vld [vmem:[%s15458_s0 + $0x98] sm:$0xff]   ;;  %v11661_v23 = vld [vmem:[%s15458_s0 + $0x90] sm:$0xff]  }
  0xc6   :  { %11305 = vmatpush3.bf16.msra.mxu1 %v11645_v7  ;;  %11284 = vmatprep.subr.bf16.mxu0 %v11646_v8  ;;  %v11662_v24 = vld [vmem:[%s15458_s0 + $0x48] sm:$0xff]   ;;  %v11666_v28 = vld [vmem:[%s15458_s0 + $0x40] sm:$0xff]  }
  0xc7   :  { %11306 = vmatprep.subr.bf16.mxu1 %v11647_v9  ;;  %v11663_v25 = vld [vmem:[%s15458_s0 + $0xc8] sm:$0xff]   ;;  %v11667_v29 = vld [vmem:[%s15458_s0 + $0xc0] sm:$0xff]  }
  0xc8   :  { %v11664_v26 = vld [vmem:[%s15458_s0 + $0x8] sm:$0xff]   ;;  %v11668_v30 = vld [vmem:[%s15458_s0] sm:$0xff]  }
  0xc9   :  { %11285 = vmatpush3.bf16.msra.mxu0 %v11648_v10  ;;  %v11665_v27 = vld [vmem:[%s15458_s0 + $0x88] sm:$0xff]   ;;  %v11669_v31 = vld [vmem:[%s15458_s0 + $0x80] sm:$0xff]  }
  0xca   :  { %11307 = vmatpush3.bf16.msra.mxu1 %v11649_v11  ;;  %11286 = vmatprep.subr.bf16.mxu0 %v11650_v12  ;;  %v281_v32 = vld [vmem:[%s15459_s2] sm:$0x77]  ;;  %v282_v33 = vld [vmem:[%s15459_s2 + $0x8] sm:$0x77] }
  0xcb   :  { %11308 = vmatprep.subr.bf16.mxu1 %v11651_v13  ;;  %v10212_v34 = vcombine.low %v281_v32, %v281_v32  ;;  %v10213_v35 = vcombine.high %v281_v32, %v281_v32  ;;  %v10230_v36 = vcombine.low %v282_v33, %v282_v33  ;;  %v10231_v37 = vcombine.high %v282_v33, %v282_v33  ;;  %v279_v45 = vld [vmem:[#allocation2] sm:$0x1f]  ;;  %v280_v46 = vld [vmem:[#allocation2 + $0x8] sm:$0x1f] }
  0xcd   :  { %11287 = vmatpush3.bf16.msra.mxu0 %v11652_v14  ;;  %482 = vmatprep.mubr.bf16.mxu0 %v10213_v35 }
  0xce   :  { %11309 = vmatpush3.bf16.msra.mxu1 %v11653_v15  ;;  %11288 = vmatprep.subr.bf16.mxu0 %v11654_v16 }
  0xcf   :  { %11310 = vmatprep.subr.bf16.mxu1 %v11655_v17  ;;  %625 = vmatprep.mubr.bf16.mxu1 %v10231_v37 }
  0xd1   :  { %11289 = vmatpush3.bf16.msra.mxu0 %v11656_v18 }
  0xd2   :  { %11311 = vmatpush3.bf16.msra.mxu1 %v11657_v19  ;;  %11290 = vmatprep.subr.bf16.mxu0 %v11658_v20 }
  0xd3   :  { %11312 = vmatprep.subr.bf16.mxu1 %v11659_v21 }
  0xd5   :  { %11291 = vmatpush3.bf16.msra.mxu0 %v11660_v22 }
  0xd6   :  { %11313 = vmatpush3.bf16.msra.mxu1 %v11661_v23  ;;  %11292 = vmatprep.subr.bf16.mxu0 %v11662_v24 }
  0xd7   :  { %11314 = vmatprep.subr.bf16.mxu1 %v11663_v25 }
  0xd9   :  { %11293 = vmatpush3.bf16.msra.mxu0 %v11664_v26 }
  0xda   :  { %11315 = vmatpush3.bf16.msra.mxu1 %v11665_v27  ;;  %11294 = vmatprep.subr.bf16.mxu0 %v11666_v28 }
  0xdb   :  { %11316 = vmatprep.subr.bf16.mxu1 %v11667_v29 }
  0xdd   :  { %11295 = vmatpush3.bf16.msra.mxu0 %v11668_v30 }
  0xde   :  { %11317 = vmatpush3.bf16.msra.mxu1 %v11669_v31  ;;  %11533 = vmatprep.subr.bf16.mxu0 %v13524_v38 }
  0xdf   :  { %11545 = vmatprep.subr.bf16.mxu1 %v13524_v38 }
  0xe0   :  { %483 = vmatmul.mubr.bf16.vlgmr.msra.gmra.mxu0 %v10212_v34 }
  0xe1   :  { %626 = vmatmul.mubr.bf16.vlgmr.msra.gmra.mxu1 %v10230_v36  ;;  %11541 = vmatprep.mubr.msk.bf16.mxu0 %vm13525_vm1, %v13524_v38 }
  0xe2   :  { %11553 = vmatprep.mubr.msk.bf16.mxu1 %vm13525_vm1, %v13524_v38  ;;  %11534 = vmatpush3.bf16.msra.mxu0 %v11674_v39 }
  0xe3   :  { %11535 = vmatprep.subr.bf16.mxu0 %v13524_v38 }
  0xe6   :  { %11536 = vmatpush3.bf16.msra.mxu0 %v11675_v40 }
  0xe7   :  { %11537 = vmatprep.subr.bf16.mxu0 %v13524_v38 }
  0xea   :  { %11538 = vmatpush3.bf16.msra.mxu0 %v11676_v41 }
  0xeb   :  { %11539 = vmatprep.subr.bf16.mxu0 %v13524_v38 }
  0xee   :  { %11540 = vmatpush3.bf16.msra.mxu0 %v11677_v42 }
  0xef   :  { %11557 = vmatprep.subr.bf16.mxu0 %v13524_v38 }
 0x1a0   :  { %v11296_v43 = vpop.f32.mrf.mxu0 }
 0x1a1   :  { %v11318_v44 = vpop.f32.mrf.mxu1 }
 0x1a2   :  { %v11297_v47 = vpop.f32.mrf.mxu0 }
 0x1a3   :  { %v11319_v48 = vpop.f32.mrf.mxu1  ;;  %v11298_v49 = vadd.f32 %v11297_v47, %v11296_v43 }
 0x1a4   :  { %v11320_v50 = vadd.f32 %v11319_v48, %v11318_v44  ;;  %v11299_v51 = vpop.f32.mrf.mxu0 }
 0x1a5   :  { %v11321_v52 = vpop.f32.mrf.mxu1  ;;  %v633_v53 = vadd.f32 %v11298_v49, %v279_v45  ;;  %v11680_v51 = vld [vmem:[#allocation8 + $0x8] sm:$0xff]  }
 0x1a6   :  { %v634_v54 = vadd.f32 %v11320_v50, %v280_v46  ;;  %v11300_v55 = vpop.f32.mrf.mxu0  ;;  %v11678_v46 = vld [vmem:[#allocation8 + $0x18] sm:$0xff]   ;;  %v11679_v50 = vld [vmem:[#allocation8 + $0x10] sm:$0xff]   ;;  %v11681_v52 = vld [vmem:[#allocation8] sm:$0xff]  }
 0x1a7   :  { %v11322_v56 = vpop.f32.mrf.mxu1  ;;  %636 = vst.msk [vmem:[#allocation2] sm:$0x1f] %vm276_vm0, %v633_v53  ;;  %v11682_v53 = vld [vmem:[#allocation6 + $0x18] sm:$0xff]   ;;  %v11684_v55 = vld [vmem:[#allocation6 + $0x8] sm:$0xff]  }
 0x1a8   :  { %637 = vst.msk [vmem:[#allocation2 + $0x8] sm:$0x1f] %vm276_vm0, %v634_v54  ;;  %11546 = vmatpush3.bf16.msra.mxu1 %v11682_v53  ;;  %v11683_v54 = vld [vmem:[#allocation6 + $0x10] sm:$0xff]   ;;  %v11685_v56 = vld [vmem:[#allocation6] sm:$0xff]  }
 0x1a9   :  { %11547 = vmatprep.subr.bf16.mxu1 %v13524_v38  ;;  %v11701_v53 = vld [vmem:[#allocation9] sm:$0xff]  }
 0x1ac   :  { %11548 = vmatpush3.bf16.msra.mxu1 %v11683_v54  ;;  %v11704_v54 = vld [vmem:[#allocation12 + $0x74] ss:$8 sps:$4 sm:$0xff]  }
 0x1ad   :  { %11549 = vmatprep.subr.bf16.mxu1 %v13524_v38 }
 0x1ae   :  { %v641_v57 = vld [vmem:[#allocation2] sm:$0x1f] }
 0x1af   :  { %v642_v58 = vld [vmem:[#allocation2 + $0x8] sm:$0x1f]  ;;  %v643_v59 = vmul.f32 0.00390625, %v641_v57  ;;  %v10248_v57 = vld [vmem:[%s15460_s28] ss:$0 sm:$0xff] }
 0x1b0   :  { %v644_v60 = vmul.f32 0.00390625, %v642_v58  ;;  %11550 = vmatpush3.bf16.msra.mxu1 %v11684_v55  ;;  %v10254_v55 = vld [vmem:[%s15460_s28 + $0x1] ss:$0 sm:$0xff] }
 0x1b1   :  { %v651_v62 = vrot.slane %v643_v59, 7  ;;  %v656_v0 = vrot.slane %v643_v59, 6  ;;  %v661_v2 = vrot.slane %v643_v59, 5  ;;  %v666_v4 = vrot.slane %v643_v59, 4  ;;  %11551 = vmatprep.subr.bf16.mxu1 %v13524_v38 }
 0x1b2   :  { %v647_v61 = vrot.slane %v644_v60, 7  ;;  %v652_v63 = vrot.slane %v644_v60, 6  ;;  %v657_v1 = vrot.slane %v644_v60, 5  ;;  %v662_v3 = vrot.slane %v644_v60, 4 }
 0x1b3   :  { %v667_v7 = vrot.slane %v644_v60, 3 }
 0x1b4   :  { %v649_v5 = vsel %vm648_vm2, %v647_v61, %v643_v59  ;;  %v654_v6 = vsel %vm653_vm3, %v652_v63, %v651_v62  ;;  %v659_v8 = vsel %vm658_vm4, %v657_v1, %v656_v0  ;;  %v664_v10 = vsel %vm663_vm6, %v662_v3, %v661_v2  ;;  %11552 = vmatpush3.bf16.msra.mxu1 %v11685_v56 }
 0x1b5   :  { %v671_v9 = vsel %vm670_vm5, %v649_v5, %v654_v6  ;;  %v668_v11 = vsel %vm648_vm2, %v667_v7, %v666_v4  ;;  %11569 = vmatprep.subr.bf16.mxu1 %v13524_v38  ;;  %vm1109_vm2 = vcmask 41984  }
 0x1b6   :  { %v673_v12 = vsel %vm672_vm7, %v671_v9, %v659_v8  ;;  %v722_v15 = vsel %vm721_vm10, %v668_v11, 0.0 }
 0x1b7   :  { %v675_v13 = vsel %vm674_vm8, %v673_v12, %v664_v10 }
 0x1b8   :  { %v720_v14 = vsel %vm719_vm9, %v675_v13, 0.0  ;;  %v940_v16 = vpack.c.bf16 %v668_v11, %v675_v13 }
 0x1b9   :  { %v723_v17 = vadd.f32 %v722_v15, %v720_v14 }
 0x1bb   :  { %v724_v18 = vrot.slane %v723_v17, 4 }
 0x1bd   :  { %v725_v19 = vadd.f32 %v724_v18, %v723_v17 }
 0x1bf   :  { %v726_v20 = vrot.slane %v725_v19, 2 }
 0x1c1   :  { %v727_v21 = vadd.f32 %v726_v20, %v725_v19 }
 0x1c3   :  { %v728_v22 = vrot.slane %v727_v21, 1 }
 0x1c5   :  { %v729_v23 = vadd.f32 %v728_v22, %v727_v21 }
 0x1c7   :  { %v731_v24 = vmul.f32 0.1, %v729_v23 }
 0x1c9   :  { %v732_v25 = vsub.f32 %v675_v13, %v731_v24  ;;  %v733_v26 = vsub.f32 %v668_v11, %v731_v24 }
 0x1cb   :  { %v734_v27 = vmul.f32 %v732_v25, %v732_v25  ;;  %v735_v28 = vmul.f32 %v733_v26, %v733_v26 }
 0x1cd   :  { %v736_v29 = vsel %vm719_vm9, %v734_v27, 0.0  ;;  %v737_v30 = vsel %vm721_vm10, %v735_v28, 0.0 }
 0x1ce   :  { %v738_v31 = vadd.f32 %v737_v30, %v736_v29 }
 0x1d0   :  { %v739_v32 = vrot.slane %v738_v31, 4 }
 0x1d2   :  { %v740_v33 = vadd.f32 %v739_v32, %v738_v31 }
 0x1d4   :  { %v741_v34 = vrot.slane %v740_v33, 2 }
 0x1d6   :  { %v742_v35 = vadd.f32 %v741_v34, %v740_v33 }
 0x1d8   :  { %v743_v36 = vrot.slane %v742_v35, 1 }
 0x1da   :  { %v744_v37 = vadd.f32 %v743_v36, %v742_v35  ;;  %v11686_v36 = vld [vmem:[%s15461_s30 + $0x38] sm:$0xff]  }
 0x1dc   :  { %v745_v39 = vmul.f32 0.1, %v744_v37 }
 0x1de   :  { %v746_v40 = vadd.f32 1e-05, %v745_v39  ;;  %v11687_v39 = vld [vmem:[%s15461_s30 + $0x30] sm:$0xff]  }
 0x1e0   :  { %13126 = vrsqrt.f32 %v746_v40  ;;  %v11688_v40 = vld [vmem:[%s15461_s30 + $0x28] sm:$0xff]  }
 0x1ed   :  { %v13127_v41 = vpop.eup %13126 }
 0x1ee   :  { %v748_v42 = vmul.f32 %v13127_v41, %v732_v25  ;;  %v749_v43 = vmul.f32 %v13127_v41, %v733_v26  ;;  %v11689_v41 = vld [vmem:[%s15461_s30 + $0x20] sm:$0xff]  }
 0x1f0   :  { %vm750_vm11 = vcmp.ge.f32.partialorder %v748_v42, 0.0  ;;  %vm751_vm12 = vcmp.ge.f32.partialorder %v749_v43, 0.0  ;;  %v752_v44 = vmul.f32 0.2, %v748_v42  ;;  %v753_v45 = vmul.f32 0.2, %v749_v43 }
 0x1f2   :  { %v754_v47 = vsel %vm750_vm11, %v748_v42, %v752_v44  ;;  %v755_v48 = vsel %vm751_vm12, %v749_v43, %v753_v45  ;;  %v11690_v42 = vld [vmem:[%s15461_s30 + $0x18] sm:$0xff]   ;;  %v11691_v43 = vld [vmem:[%s15461_s30 + $0x10] sm:$0xff]   ;;  %v11692_v44 = vld [vmem:[%s15461_s30 + $0x8] sm:$0xff]   ;;  %vm1771_vm12 = vcmask 91184  }
 0x1f3   :  { %v756_v49 = vpack.c.bf16 %v755_v48, %v754_v47  ;;  %v11693_v45 = vld [vmem:[%s15461_s30] sm:$0xff]   ;;  %v11696_v48 = vld [vmem:[#allocation9 + $0x28] sm:$0xff]  }
 0x1f4   :  { %v11695_v47 = vld [vmem:[#allocation9 + $0x30] sm:$0xff]  }
 0x1f5   :  { %11542 = vmatmul.mubr.msk.bf16.vlgmr.msra.gmra.mxu0 %vm719_vm9, %v756_v49  ;;  %v11697_v49 = vld [vmem:[#allocation9 + $0x20] sm:$0xff]  }
 0x1f6   :  { %11558 = vmatpush3.bf16.msra.mxu0 %v11678_v46  ;;  %11565 = vmatprep.mubr.msk.bf16.mxu0 %vm13525_vm1, %v13524_v38  ;;  %v11694_v46 = vld [vmem:[#allocation9 + $0x38] sm:$0xff]  }
 0x1f7   :  { %11559 = vmatprep.subr.bf16.mxu0 %v13524_v38 }
 0x1fa   :  { %11560 = vmatpush3.bf16.msra.mxu0 %v11679_v50  ;;  %v11698_v50 = vld [vmem:[#allocation9 + $0x18] sm:$0xff]  }
 0x1fb   :  { %11561 = vmatprep.subr.bf16.mxu0 %v13524_v38 }
 0x1fe   :  { %11562 = vmatpush3.bf16.msra.mxu0 %v11680_v51  ;;  %v11699_v51 = vld [vmem:[#allocation9 + $0x10] sm:$0xff]  }
 0x1ff   :  { %11563 = vmatprep.subr.bf16.mxu0 %v13524_v38 }
 0x202   :  { %11564 = vmatpush3.bf16.msra.mxu0 %v11681_v52  ;;  %v11700_v52 = vld [vmem:[#allocation9 + $0x8] sm:$0xff]  }
 0x203   :  { %11589 = vmatprep.subr.bf16.mxu0 %v13524_v38 }
 0x205   :  { %11566 = vmatmul.mubr.msk.bf16.vlgmr.msra.gmra.mxu0 %vm719_vm9, %v940_v16 }
 0x206   :  { %11605 = vmatprep.mubr.msk.bf16.mxu0 %vm13525_vm1, %v13524_v38  ;;  %11590 = vmatpush3.bf16.msra.mxu0 %v11694_v46  ;;  %v11725_v46 = vld [vmem:[#allocation12 + $0x4] ss:$8 sps:$4 sm:$0xff]  }
 0x207   :  { %11591 = vmatprep.subr.bf16.mxu0 %v13524_v38 }
 0x20a   :  { %11592 = vmatpush3.bf16.msra.mxu0 %v11695_v47  ;;  %v11723_v47 = vld [vmem:[#allocation12] ss:$8 sps:$4 sm:$0xff]  }
 0x20b   :  { %11593 = vmatprep.subr.bf16.mxu0 %v13524_v38 }
 0x20e   :  { %11594 = vmatpush3.bf16.msra.mxu0 %v11696_v48  ;;  %v11728_v48 = vld [vmem:[#allocation11 + $0x74] ss:$8 sps:$4 sm:$0xff]  }
 0x20f   :  { %11595 = vmatprep.subr.bf16.mxu0 %v13524_v38 }
 0x212   :  { %11596 = vmatpush3.bf16.msra.mxu0 %v11697_v49  ;;  %v11726_v49 = vld [vmem:[#allocation11 + $0x70] ss:$8 sps:$4 sm:$0xff]  }
 0x213   :  { %11597 = vmatprep.subr.bf16.mxu0 %v13524_v38 }
 0x216   :  { %11598 = vmatpush3.bf16.msra.mxu0 %v11698_v50  ;;  %v11731_v50 = vld [vmem:[#allocation11 + $0x64] ss:$8 sps:$4 sm:$0xff]  }
 0x217   :  { %11599 = vmatprep.subr.bf16.mxu0 %v13524_v38 }
 0x21a   :  { %11600 = vmatpush3.bf16.msra.mxu0 %v11699_v51  ;;  %v11729_v51 = vld [vmem:[#allocation11 + $0x60] ss:$8 sps:$4 sm:$0xff]  }
 0x21b   :  { %11601 = vmatprep.subr.bf16.mxu0 %v13524_v38 }
 0x21e   :  { %11602 = vmatpush3.bf16.msra.mxu0 %v11700_v52  ;;  %v11734_v52 = vld [vmem:[#allocation11 + $0x54] ss:$8 sps:$4 sm:$0xff]  }
 0x21f   :  { %11603 = vmatprep.subr.bf16.mxu0 %v13524_v38 }
 0x222   :  { %11604 = vmatpush3.bf16.msra.mxu0 %v11701_v53  ;;  %v11732_v53 = vld [vmem:[#allocation11 + $0x50] ss:$8 sps:$4 sm:$0xff]  }
 0x223   :  { %1569 = vmatprep.subr.bf16.mxu0 %v11704_v54  ;;  %v11737_v54 = vld [vmem:[#allocation11 + $0x44] ss:$8 sps:$4 sm:$0xff]  }
 0x2b5   :  { %v824_v58 = vpop.f32.mrf.mxu0 }
 0x2b6   :  { %v825_v60 = vadd.f32 %v10248_v57, %v824_v58 }
 0x2b7   :  { %v11543_v59 = vpop.f32.mrf.mxu0 }
 0x2b8   :  { %v831_v0 = vsel %vm719_vm9, %v825_v60, 0.0 }
 0x2b9   :  { %v827_v61 = vpop.f32.mrf.mxu0 }
 0x2ba   :  { %v828_v62 = vadd.f32 %v10248_v57, %v827_v61 }
 0x2bb   :  { %v11544_v63 = vpop.f32.mrf.mxu0 }
 0x2bc   :  { %v832_v1 = vsel %vm721_vm10, %v828_v62, 0.0 }
 0x2bd   :  { %v833_v2 = vadd.f32 %v832_v1, %v831_v0 }
 0x2bf   :  { %v834_v3 = vrot.slane %v833_v2, 4 }
 0x2c1   :  { %v835_v4 = vadd.f32 %v834_v3, %v833_v2  ;;  %v13526_v3 = vmov 0  }
 0x2c3   :  { %v836_v5 = vrot.slane %v835_v4, 2 }
 0x2c5   :  { %v837_v6 = vadd.f32 %v836_v5, %v835_v4  ;;  %v13896_v7 = vpop.f32.mrf.mxu0 }
 0x2c7   :  { %v838_v8 = vrot.slane %v837_v6, 1  ;;  %v11567_v9 = vpop.f32.mrf.mxu0 }
 0x2c9   :  { %v839_v10 = vadd.f32 %v838_v8, %v837_v6  ;;  %v13898_v11 = vpop.f32.mrf.mxu0 }
 0x2cb   :  { %v840_v12 = vmul.f32 0.1, %v839_v10  ;;  %v11568_v13 = vpop.f32.mrf.mxu0 }
 0x2cd   :  { %v841_v14 = vsub.f32 %v825_v60, %v840_v12  ;;  %v842_v15 = vsub.f32 %v828_v62, %v840_v12 }
 0x2cf   :  { %v843_v16 = vmul.f32 %v841_v14, %v841_v14  ;;  %v844_v17 = vmul.f32 %v842_v15, %v842_v15 }
 0x2d1   :  { %v845_v18 = vsel %vm719_vm9, %v843_v16, 0.0  ;;  %v846_v19 = vsel %vm721_vm10, %v844_v17, 0.0  ;;  %vm1769_vm10 = vcmask 97328  }
 0x2d2   :  { %v847_v20 = vadd.f32 %v846_v19, %v845_v18 }
 0x2d4   :  { %v848_v21 = vrot.slane %v847_v20, 4 }
 0x2d6   :  { %v849_v22 = vadd.f32 %v848_v21, %v847_v20 }
 0x2d8   :  { %v850_v23 = vrot.slane %v849_v22, 2 }
 0x2da   :  { %v851_v24 = vadd.f32 %v850_v23, %v849_v22 }
 0x2dc   :  { %v852_v25 = vrot.slane %v851_v24, 1 }
 0x2de   :  { %v853_v26 = vadd.f32 %v852_v25, %v851_v24 }
 0x2e0   :  { %v854_v27 = vmul.f32 0.1, %v853_v26 }
 0x2e2   :  { %v855_v28 = vadd.f32 1e-05, %v854_v27 }
 0x2e4   :  { %13128 = vrsqrt.f32 %v855_v28 }
 0x2f1   :  { %v13129_v29 = vpop.eup %13128 }
 0x2f2   :  { %v857_v30 = vmul.f32 %v13129_v29, %v841_v14  ;;  %v858_v31 = vmul.f32 %v13129_v29, %v842_v15  ;;  %v11702_v29 = vld [vmem:[#allocation12 + $0x70] ss:$8 sps:$4 sm:$0xff]  }
 0x2f4   :  { %vm859_vm13 = vcmp.ge.f32.partialorder %v857_v30, 0.0  ;;  %vm860_vm14 = vcmp.ge.f32.partialorder %v858_v31, 0.0  ;;  %v861_v32 = vmul.f32 0.2, %v857_v30  ;;  %v862_v33 = vmul.f32 0.2, %v858_v31 }
 0x2f6   :  { %v863_v34 = vsel %vm859_vm13, %v857_v30, %v861_v32  ;;  %v864_v35 = vsel %vm860_vm14, %v858_v31, %v862_v33  ;;  %v11707_v33 = vld [vmem:[#allocation12 + $0x64] ss:$8 sps:$4 sm:$0xff]  }
 0x2f7   :  { %v865_v37 = vpack.c.bf16 %v864_v35, %v863_v34  ;;  %v11705_v34 = vld [vmem:[#allocation12 + $0x60] ss:$8 sps:$4 sm:$0xff]   ;;  %v11710_v35 = vld [vmem:[#allocation12 + $0x54] ss:$8 sps:$4 sm:$0xff]  }
 0x2f9   :  { %11554 = vmatmul.mubr.msk.bf16.vlgmr.msra.gmra.mxu1 %vm719_vm9, %v865_v37  ;;  %v11713_v37 = vld [vmem:[#allocation12 + $0x44] ss:$8 sps:$4 sm:$0xff]  }
 0x2fa   :  { %11570 = vmatpush3.bf16.msra.mxu1 %v11686_v36  ;;  %11585 = vmatprep.mubr.msk.bf16.mxu1 %vm13525_vm1, %v13524_v38  ;;  %v11708_v36 = vld [vmem:[#allocation12 + $0x50] ss:$8 sps:$4 sm:$0xff]   ;;  %vm1107_vm1 = vcmask 48128  }
 0x2fb   :  { %11571 = vmatprep.subr.bf16.mxu1 %v13524_v38 }
 0x2fe   :  { %11572 = vmatpush3.bf16.msra.mxu1 %v11687_v39  ;;  %v11711_v39 = vld [vmem:[#allocation12 + $0x40] ss:$8 sps:$4 sm:$0xff]  }
 0x2ff   :  { %11573 = vmatprep.subr.bf16.mxu1 %v13524_v38 }
 0x302   :  { %11574 = vmatpush3.bf16.msra.mxu1 %v11688_v40  ;;  %v11716_v40 = vld [vmem:[#allocation12 + $0x34] ss:$8 sps:$4 sm:$0xff]  }
 0x303   :  { %11575 = vmatprep.subr.bf16.mxu1 %v13524_v38 }
 0x306   :  { %11576 = vmatpush3.bf16.msra.mxu1 %v11689_v41  ;;  %v11714_v41 = vld [vmem:[#allocation12 + $0x30] ss:$8 sps:$4 sm:$0xff]  }
 0x307   :  { %11577 = vmatprep.subr.bf16.mxu1 %v13524_v38 }
 0x30a   :  { %11578 = vmatpush3.bf16.msra.mxu1 %v11690_v42  ;;  %v11719_v42 = vld [vmem:[#allocation12 + $0x24] ss:$8 sps:$4 sm:$0xff]  }
 0x30b   :  { %11579 = vmatprep.subr.bf16.mxu1 %v13524_v38 }
 0x30e   :  { %11580 = vmatpush3.bf16.msra.mxu1 %v11691_v43  ;;  %v11717_v43 = vld [vmem:[#allocation12 + $0x20] ss:$8 sps:$4 sm:$0xff]  }
 0x30f   :  { %11581 = vmatprep.subr.bf16.mxu1 %v13524_v38 }
 0x312   :  { %11582 = vmatpush3.bf16.msra.mxu1 %v11692_v44  ;;  %v11722_v44 = vld [vmem:[#allocation12 + $0x14] ss:$8 sps:$4 sm:$0xff]  }
 0x313   :  { %11583 = vmatprep.subr.bf16.mxu1 %v13524_v38 }
 0x316   :  { %11584 = vmatpush3.bf16.msra.mxu1 %v11693_v45  ;;  %v11720_v45 = vld [vmem:[#allocation12 + $0x10] ss:$8 sps:$4 sm:$0xff]  }
 0x317   :  { %1446 = vmatprep.subr.bf16.mxu1 %v11728_v48  ;;  %v11753_v48 = vld [vmem:[%s15416_s10 + $0x30] sm:$0xff]  }
 0x3b9   :  { %v933_v56 = vpop.f32.mrf.mxu1 }
 0x3ba   :  { %v934_v58 = vadd.f32 %v10254_v55, %v933_v56  ;;  %v11740_v56 = vld [vmem:[#allocation11 + $0x34] ss:$8 sps:$4 sm:$0xff]  }
 0x3bb   :  { %v11555_v57 = vpop.f32.mrf.mxu1 }
 0x3bc   :  { %v1009_v62 = vadd.f32 %v13896_v7, %v934_v58  ;;  %v11738_v57 = vld [vmem:[#allocation11 + $0x30] ss:$8 sps:$4 sm:$0xff]   ;;  %v11743_v58 = vld [vmem:[#allocation11 + $0x24] ss:$8 sps:$4 sm:$0xff]  }
 0x3bd   :  { %v936_v59 = vpop.f32.mrf.mxu1 }
 0x3be   :  { %v937_v60 = vadd.f32 %v10254_v55, %v936_v59  ;;  %v11735_v55 = vld [vmem:[#allocation11 + $0x40] ss:$8 sps:$4 sm:$0xff]  }
 0x3bf   :  { %v11556_v61 = vpop.f32.mrf.mxu1  ;;  %v11741_v59 = vld [vmem:[#allocation11 + $0x20] ss:$8 sps:$4 sm:$0xff]  }
 0x3c0   :  { %v1010_v63 = vadd.f32 %v13898_v11, %v937_v60  ;;  %v11746_v60 = vld [vmem:[#allocation11 + $0x14] ss:$8 sps:$4 sm:$0xff]   ;;  %v11744_v61 = vld [vmem:[#allocation11 + $0x10] ss:$8 sps:$4 sm:$0xff]  }
 0x3c2   :  { %v13948_v0 = vpack.c.bf16 %v1010_v63, %v1009_v62  ;;  %v1194_v38 = vsel %vm670_vm5, %v1010_v63, 0.0 }
 0x3c3   :  { %v1195_v1 = vadd.f32 %v1194_v38, %v1009_v62  ;;  %v11750_v38 = vld [vmem:[%s15416_s10 + $0x78] sm:$0xff]  }
 0x3c4   :  { %11586 = vmatmul.mubr.bf16.vlgmr.msra.gmra.mxu1 %v13948_v0 }
 0x3c5   :  { %v1196_v2 = vrot.slane %v1195_v1, 4  ;;  %1478 = vmatprep.mubr.bf16.mxu1 %v13526_v3  ;;  %1447 = vmatpush1.bf16.msra.mxu1 %v11726_v49  ;;  %v11754_v49 = vld [vmem:[%s15416_s10 + $0x68] sm:$0xff]  }
 0x3c6   :  { %1448 = vmatprep.subr.bf16.mxu1 %v11731_v50  ;;  %v11755_v50 = vld [vmem:[%s15416_s10 + $0x28] sm:$0xff]  }
 0x3c7   :  { %v1197_v4 = vadd.f32 %v1196_v2, %v1195_v1 }
 0x3c9   :  { %v1198_v5 = vrot.slane %v1197_v4, 2  ;;  %1449 = vmatpush1.bf16.msra.mxu1 %v11729_v51  ;;  %v11756_v51 = vld [vmem:[%s15416_s10 + $0x60] sm:$0xff]  }
 0x3ca   :  { %1450 = vmatprep.subr.bf16.mxu1 %v11734_v52  ;;  %v11757_v52 = vld [vmem:[%s15416_s10 + $0x20] sm:$0xff]  }
 0x3cb   :  { %v1199_v6 = vadd.f32 %v1198_v5, %v1197_v4 }
 0x3cd   :  { %v1200_v8 = vrot.slane %v1199_v6, 1  ;;  %1451 = vmatpush1.bf16.msra.mxu1 %v11732_v53  ;;  %v11758_v53 = vld [vmem:[%s15416_s10 + $0x58] sm:$0xff]  }
 0x3ce   :  { %1452 = vmatprep.subr.bf16.mxu1 %v11737_v54  ;;  %v11759_v54 = vld [vmem:[%s15416_s10 + $0x18] sm:$0xff]  }
 0x3cf   :  { %v1201_v9 = vadd.f32 %v1200_v8, %v1199_v6 }
 0x3d1   :  { %v1202_v10 = vmul.f32 0.1, %v1201_v9  ;;  %1453 = vmatpush1.bf16.msra.mxu1 %v11735_v55  ;;  %v11760_v55 = vld [vmem:[%s15416_s10 + $0x50] sm:$0xff]  }
 0x3d2   :  { %1454 = vmatprep.subr.bf16.mxu1 %v11740_v56  ;;  %v11761_v56 = vld [vmem:[%s15416_s10 + $0x10] sm:$0xff]  }
 0x3d3   :  { %v1203_v12 = vsub.f32 %v1009_v62, %v1202_v10  ;;  %v1204_v7 = vsub.f32 %v1010_v63, %v1202_v10  ;;  %v11747_v62 = vld [vmem:[#allocation11] ss:$8 sps:$4 sm:$0xff]   ;;  %v11749_v63 = vld [vmem:[#allocation11 + $0x4] ss:$8 sps:$4 sm:$0xff]   ;;  %v10274_v10 = vld [vmem:[%s15460_s28 + $0x3] ss:$0 sm:$0xff] }
 0x3d5   :  { %v1205_v13 = vmul.f32 %v1203_v12, %v1203_v12  ;;  %v1206_v11 = vmul.f32 %v1204_v7, %v1204_v7  ;;  %1455 = vmatpush1.bf16.msra.mxu1 %v11738_v57  ;;  %v11762_v57 = vld [vmem:[%s15416_s10 + $0x48] sm:$0xff]  }
 0x3d6   :  { %1456 = vmatprep.subr.bf16.mxu1 %v11743_v58  ;;  %v11763_v58 = vld [vmem:[%s15416_s10 + $0x8] sm:$0xff]  }
 0x3d7   :  { %v1207_v14 = vsel %vm670_vm5, %v1206_v11, 0.0 }
 0x3d8   :  { %v1208_v15 = vadd.f32 %v1207_v14, %v1205_v13 }
 0x3d9   :  { %1457 = vmatpush1.bf16.msra.mxu1 %v11741_v59  ;;  %v11766_v59 = vld [vmem:[#allocation14 + $0x74] ss:$8 sps:$4 sm:$0xff]  }
 0x3da   :  { %v1209_v16 = vrot.slane %v1208_v15, 4  ;;  %1458 = vmatprep.subr.bf16.mxu1 %v11746_v60  ;;  %v11764_v60 = vld [vmem:[#allocation14 + $0x70] ss:$8 sps:$4 sm:$0xff]  }
 0x3dc   :  { %v1210_v17 = vadd.f32 %v1209_v16, %v1208_v15 }
 0x3dd   :  { %1459 = vmatpush1.bf16.msra.mxu1 %v11744_v61  ;;  %v11767_v61 = vld [vmem:[%s15416_s10 + $0x40] sm:$0xff]  }
 0x3de   :  { %v1211_v18 = vrot.slane %v1210_v17, 2  ;;  %1460 = vmatprep.subr.bf16.mxu1 %v11749_v63  ;;  %v11771_v63 = vld [vmem:[#allocation14 + $0x64] ss:$8 sps:$4 sm:$0xff]  }
 0x3e0   :  { %v1212_v19 = vadd.f32 %v1211_v18, %v1210_v17 }
 0x3e1   :  { %1461 = vmatpush1.bf16.msra.mxu1 %v11747_v62  ;;  %v11768_v62 = vld [vmem:[%s15416_s10] sm:$0xff]  }
 0x3e2   :  { %v1213_v20 = vrot.slane %v1212_v19, 1  ;;  %11357 = vmatprep.subr.bf16.mxu1 %v11750_v38  ;;  %v11774_v38 = vld [vmem:[#allocation14 + $0x54] ss:$8 sps:$4 sm:$0xff]  }
 0x3e4   :  { %v1214_v21 = vadd.f32 %v1213_v20, %v1212_v19 }
 0x3e6   :  { %v1215_v22 = vmul.f32 0.1, %v1214_v21 }
 0x3e8   :  { %v1216_v23 = vadd.f32 1e-05, %v1215_v22 }
 0x3ea   :  { %13130 = vrsqrt.f32 %v1216_v23 }
 0x3f7   :  { %v13131_v24 = vpop.eup %13130 }
 0x3f8   :  { %v1219_v25 = vmul.f32 %v13131_v24, %v1204_v7  ;;  %v1218_v26 = vmul.f32 %v13131_v24, %v1203_v12 }
 0x3fa   :  { %vm1220_vm15 = vcmp.ge.f32.partialorder %v1218_v26, 0.0  ;;  %vm1221_vm0 = vcmp.ge.f32.partialorder %v1219_v25, 0.0  ;;  %v1222_v27 = vmul.f32 0.2, %v1218_v26  ;;  %v1223_v28 = vmul.f32 0.2, %v1219_v25 }
 0x3fc   :  { %v1224_v30 = vsel %vm1220_vm15, %v1218_v26, %v1222_v27  ;;  %v1225_v31 = vsel %vm1221_vm0, %v1219_v25, %v1223_v28 }
 0x3fd   :  { %v1226_v32 = vpack.c.bf16 %v1225_v31, %v1224_v30 }
 0x3ff   :  { %11606 = vmatmul.mubr.bf16.vlgmr.msra.gmra.mxu0 %v1226_v32 }
 0x400   :  { %1570 = vmatpush1.bf16.msra.mxu0 %v11702_v29  ;;  %1601 = vmatprep.mubr.bf16.mxu0 %v13526_v3 }
 0x401   :  { %1571 = vmatprep.subr.bf16.mxu0 %v11707_v33 }
 0x404   :  { %1572 = vmatpush1.bf16.msra.mxu0 %v11705_v34 }
 0x405   :  { %1573 = vmatprep.subr.bf16.mxu0 %v11710_v35 }
 0x408   :  { %1574 = vmatpush1.bf16.msra.mxu0 %v11708_v36 }
 0x409   :  { %1575 = vmatprep.subr.bf16.mxu0 %v11713_v37 }
 0x40c   :  { %1576 = vmatpush1.bf16.msra.mxu0 %v11711_v39 }
 0x40d   :  { %1577 = vmatprep.subr.bf16.mxu0 %v11716_v40 }
 0x410   :  { %1578 = vmatpush1.bf16.msra.mxu0 %v11714_v41 }
 0x411   :  { %1579 = vmatprep.subr.bf16.mxu0 %v11719_v42 }
 0x414   :  { %1580 = vmatpush1.bf16.msra.mxu0 %v11717_v43 }
 0x415   :  { %1581 = vmatprep.subr.bf16.mxu0 %v11722_v44 }
 0x418   :  { %1582 = vmatpush1.bf16.msra.mxu0 %v11720_v45  ;;  %v11751_v45 = vld [vmem:[%s15416_s10 + $0x38] sm:$0xff]  }
 0x419   :  { %1583 = vmatprep.subr.bf16.mxu0 %v11725_v46 }
 0x41c   :  { %1584 = vmatpush1.bf16.msra.mxu0 %v11723_v47  ;;  %v11752_v47 = vld [vmem:[%s15416_s10 + $0x70] sm:$0xff]   ;;  %s10193_s10 = sshll.u32 %s13532_s18, 4  ;;  %s10194_s10 = int_to_ptr.vmem [resolvable:$true] %s10193_s10 }
 0x41d   :  { %2237 = vmatprep.subr.bf16.mxu0 %v11766_v59  ;;  %p13471_p1 = scmp.lt.s32.totalorder %s10194_s10, %s10194_s10 }
 0x41f   :  { %1602 = vmatmul.mubr.bf16.vlgmr.msra.gmra.mxu0 %v13948_v0  ;;  %v10265_v0 = vld [vmem:[%s15460_s28 + $0x2] ss:$0 sm:$0xff] }
 0x420   :  { %2238 = vmatpush1.bf16.msra.mxu0 %v11764_v60 }
 0x421   :  { %2239 = vmatprep.subr.bf16.mxu0 %v11771_v63 }
 0x484   :  { %v1100_v1 = vpop.f32.mrf.mxu1 }
 0x485   :  { %v1101_v2 = vadd.f32 %v10265_v0, %v1100_v1  ;;  %v11772_v1 = vld [vmem:[#allocation14 + $0x50] ss:$8 sps:$4 sm:$0xff]  }
 0x486   :  { %v11587_v3 = vpop.f32.mrf.mxu1 }
 0x487   :  { %1108 = vst.msk [vmem:[#allocation26] sm:$0xff] %vm1107_vm1, %v1101_v2  ;;  %v11777_v2 = vld [vmem:[#allocation14 + $0x44] ss:$8 sps:$4 sm:$0xff]   ;;  %v11775_v3 = vld [vmem:[#allocation14 + $0x40] ss:$8 sps:$4 sm:$0xff]  }
 0x488   :  { %v1103_v4 = vpop.f32.mrf.mxu1 }
 0x489   :  { %v1104_v5 = vadd.f32 %v10265_v0, %v1103_v4  ;;  %v11769_v0 = vld [vmem:[#allocation14 + $0x60] ss:$8 sps:$4 sm:$0xff]   ;;  %v11780_v4 = vld [vmem:[#allocation14 + $0x34] ss:$8 sps:$4 sm:$0xff]  }
 0x48a   :  { %v11588_v6 = vpop.f32.mrf.mxu1  ;;  %2240 = vmatpush1.bf16.msra.mxu0 %v11769_v0 }
 0x48b   :  { %1110 = vst.msk [vmem:[#allocation26 + $0x8] sm:$0x3] %vm1109_vm2, %v1104_v5  ;;  %2241 = vmatprep.subr.bf16.mxu0 %v11774_v38  ;;  %v11778_v5 = vld [vmem:[#allocation14 + $0x30] ss:$8 sps:$4 sm:$0xff]   ;;  %v11783_v6 = vld [vmem:[#allocation14 + $0x24] ss:$8 sps:$4 sm:$0xff]  }
 0x48e   :  { %2242 = vmatpush1.bf16.msra.mxu0 %v11772_v1 }
 0x48f   :  { %2243 = vmatprep.subr.bf16.mxu0 %v11777_v2 }
 0x492   :  { %2244 = vmatpush1.bf16.msra.mxu0 %v11775_v3 }
 0x493   :  { %2245 = vmatprep.subr.bf16.mxu0 %v11780_v4 }
 0x496   :  { %2246 = vmatpush1.bf16.msra.mxu0 %v11778_v5 }
 0x497   :  { %2247 = vmatprep.subr.bf16.mxu0 %v11783_v6 }
 0x4bf   :  { %v1315_v8 = vpop.f32.mrf.mxu0 }
 0x4c0   :  { %v1316_v13 = vadd.f32 %v10274_v10, %v1315_v8  ;;  %v11781_v8 = vld [vmem:[#allocation14 + $0x20] ss:$8 sps:$4 sm:$0xff]  }
 0x4c1   :  { %v11607_v9 = vpop.f32.mrf.mxu0  ;;  %2248 = vmatpush1.bf16.msra.mxu0 %v11781_v8 }
 0x4c2   :  { %v11786_v9 = vld [vmem:[#allocation14 + $0x14] ss:$8 sps:$4 sm:$0xff]  }
 0x4c3   :  { %v1318_v12 = vpop.f32.mrf.mxu0  ;;  %2249 = vmatprep.subr.bf16.mxu0 %v11786_v9 }
 0x4c4   :  { %v1319_v7 = vadd.f32 %v10274_v10, %v1318_v12  ;;  %v11784_v10 = vld [vmem:[#allocation14 + $0x10] ss:$8 sps:$4 sm:$0xff]   ;;  %v11789_v12 = vld [vmem:[#allocation14 + $0x4] ss:$8 sps:$4 sm:$0xff]  }
 0x4c5   :  { %v11608_v11 = vpop.f32.mrf.mxu0  ;;  %2250 = vmatpush1.bf16.msra.mxu0 %v11784_v10 }
 0x4c6   :  { %v1322_v14 = vsel %vm670_vm5, %v1319_v7, 0.0  ;;  %2251 = vmatprep.subr.bf16.mxu0 %v11789_v12  ;;  %v11790_v11 = vld [vmem:[#allocation14 + $0xf0] ss:$8 sps:$4 sm:$0xff]  }
 0x4c7   :  { %v1323_v15 = vadd.f32 %v1322_v14, %v1316_v13  ;;  %v11795_v14 = vld [vmem:[#allocation14 + $0xe4] ss:$8 sps:$4 sm:$0xff]  }
 0x4c9   :  { %v1324_v16 = vrot.slane %v1323_v15, 4 }
 0x4cb   :  { %v1325_v17 = vadd.f32 %v1324_v16, %v1323_v15  ;;  %v11793_v15 = vld [vmem:[#allocation14 + $0xe0] ss:$8 sps:$4 sm:$0xff]   ;;  %v11798_v16 = vld [vmem:[#allocation14 + $0xd4] ss:$8 sps:$4 sm:$0xff]  }
 0x4cd   :  { %v1326_v18 = vrot.slane %v1325_v17, 2 }
 0x4cf   :  { %v1327_v19 = vadd.f32 %v1326_v18, %v1325_v17  ;;  %v11796_v17 = vld [vmem:[#allocation14 + $0xd0] ss:$8 sps:$4 sm:$0xff]   ;;  %v11801_v18 = vld [vmem:[#allocation14 + $0xc4] ss:$8 sps:$4 sm:$0xff]  }
 0x4d1   :  { %v1328_v20 = vrot.slane %v1327_v19, 1 }
 0x4d3   :  { %v1329_v21 = vadd.f32 %v1328_v20, %v1327_v19  ;;  %v11799_v19 = vld [vmem:[#allocation14 + $0xc0] ss:$8 sps:$4 sm:$0xff]   ;;  %v11804_v20 = vld [vmem:[#allocation14 + $0xb4] ss:$8 sps:$4 sm:$0xff]  }
 0x4d5   :  { %v1330_v22 = vmul.f32 0.1, %v1329_v21  ;;  %v11802_v21 = vld [vmem:[#allocation14 + $0xb0] ss:$8 sps:$4 sm:$0xff]  }
 0x4d7   :  { %v1331_v23 = vsub.f32 %v1316_v13, %v1330_v22  ;;  %v1332_v24 = vsub.f32 %v1319_v7, %v1330_v22  ;;  %v11787_v7 = vld [vmem:[#allocation14] ss:$8 sps:$4 sm:$0xff]   ;;  %v11792_v13 = vld [vmem:[#allocation14 + $0xf4] ss:$8 sps:$4 sm:$0xff]   ;;  %v11807_v22 = vld [vmem:[#allocation14 + $0xa4] ss:$8 sps:$4 sm:$0xff]  }
 0x4d8   :  { %2252 = vmatpush1.bf16.msra.mxu0 %v11787_v7 }
 0x4d9   :  { %v1333_v25 = vmul.f32 %v1331_v23, %v1331_v23  ;;  %v1334_v26 = vmul.f32 %v1332_v24, %v1332_v24  ;;  %2253 = vmatprep.subr.bf16.mxu0 %v11792_v13 }
 0x4db   :  { %v1335_v27 = vsel %vm670_vm5, %v1334_v26, 0.0  ;;  %v11813_v26 = vld [vmem:[#allocation14 + $0x84] ss:$8 sps:$4 sm:$0xff]  }
 0x4dc   :  { %v1336_v28 = vadd.f32 %v1335_v27, %v1333_v25  ;;  %2254 = vmatpush2.bf16.msra.mxu0 %v11790_v11  ;;  %v11810_v25 = vld [vmem:[#allocation14 + $0x94] ss:$8 sps:$4 sm:$0xff]   ;;  %v11811_v27 = vld [vmem:[#allocation14 + $0x80] ss:$8 sps:$4 sm:$0xff]  }
 0x4dd   :  { %2255 = vmatprep.subr.bf16.mxu0 %v11795_v14 }
 0x4de   :  { %v1337_v29 = vrot.slane %v1336_v28, 4 }
 0x4e0   :  { %v1338_v30 = vadd.f32 %v1337_v29, %v1336_v28  ;;  %2256 = vmatpush2.bf16.msra.mxu0 %v11793_v15  ;;  %v1356_v28 = vlaneseq }
 0x4e1   :  { %2257 = vmatprep.subr.bf16.mxu0 %v11798_v16 }
 0x4e2   :  { %v1339_v31 = vrot.slane %v1338_v30, 2  ;;  %v14010_v29 = vshrl.u32 %v1356_v28, 7 }
 0x4e4   :  { %v1340_v32 = vadd.f32 %v1339_v31, %v1338_v30  ;;  %2258 = vmatpush2.bf16.msra.mxu0 %v11796_v17  ;;  %v1603_v30 = vpop.f32.mrf.mxu0  ;;  %v14013_v31 = vsub.s32 0, %v14010_v29 }
 0x4e5   :  { %2259 = vmatprep.subr.bf16.mxu0 %v11801_v18 }
 0x4e6   :  { %v1341_v33 = vrot.slane %v1340_v32, 1 }
 0x4e8   :  { %v1342_v34 = vadd.f32 %v1341_v33, %v1340_v32  ;;  %2260 = vmatpush2.bf16.msra.mxu0 %v11799_v19  ;;  %v1192_v32 = vld [vmem:[%s15460_s28 + $0x4] sm:$0x3]  ;;  %v14019_v33 = vsub.s32 1, %v14010_v29 }
 0x4e9   :  { %2261 = vmatprep.subr.bf16.mxu0 %v11804_v20 }
 0x4ea   :  { %v1343_v35 = vmul.f32 0.1, %v1342_v34  ;;  %v1605_v34 = vpop.f32.mrf.mxu0 }
 0x4ec   :  { %v1344_v36 = vadd.f32 1e-05, %v1343_v35  ;;  %2262 = vmatpush2.bf16.msra.mxu0 %v11802_v21  ;;  %v1359_v35 = vrot.slane %v1192_v32, %v14013_v31 }
 0x4ed   :  { %2263 = vmatprep.subr.bf16.mxu0 %v11807_v22 }
 0x4ee   :  { %13132 = vrsqrt.f32 %v1344_v36 }
 0x4fb   :  { %v13133_v37 = vpop.eup %13132 }
 0x4fc   :  { %v1346_v39 = vmul.f32 %v13133_v37, %v1331_v23  ;;  %v1347_v40 = vmul.f32 %v13133_v37, %v1332_v24  ;;  %v11805_v23 = vld [vmem:[#allocation14 + $0xa0] ss:$8 sps:$4 sm:$0xff]   ;;  %v11808_v24 = vld [vmem:[#allocation14 + $0x90] ss:$8 sps:$4 sm:$0xff]   ;;  %v1363_v37 = vrot.slane %v1192_v32, %v14019_v33 }
 0x4fd   :  { %2264 = vmatpush2.bf16.msra.mxu0 %v11805_v23 }
 0x4fe   :  { %vm1349_vm3 = vcmp.ge.f32.partialorder %v1347_v40, 0.0  ;;  %v1351_v41 = vmul.f32 0.2, %v1347_v40  ;;  %vm1348_vm4 = vcmp.ge.f32.partialorder %v1346_v39, 0.0  ;;  %v1350_v42 = vmul.f32 0.2, %v1346_v39  ;;  %2265 = vmatprep.subr.bf16.mxu0 %v11810_v25 }
 0x500   :  { %v1352_v43 = vsel %vm1348_vm4, %v1346_v39, %v1350_v42  ;;  %v1353_v44 = vsel %vm1349_vm3, %v1347_v40, %v1351_v41  ;;  %v1607_v40 = vpop.f32.mrf.mxu0 }
 0x501   :  { %v1354_v46 = vpack.c.bf16 %v1353_v44, %v1352_v43  ;;  %2266 = vmatpush2.bf16.msra.mxu0 %v11808_v24 }
 0x502   :  { %2267 = vmatprep.subr.bf16.mxu0 %v11813_v26 }
 0x503   :  { %1479 = vmatmul.mubr.bf16.vlgmr.msra.gmra.mxu1 %v1354_v46 }
 0x504   :  { %11358 = vmatpush3.bf16.msra.mxu1 %v11751_v45 }
 0x505   :  { %11359 = vmatprep.subr.bf16.mxu1 %v11752_v47  ;;  %2268 = vmatpush2.bf16.msra.mxu0 %v11811_v27 }
 0x508   :  { %11360 = vmatpush3.bf16.msra.mxu1 %v11753_v48  ;;  %v1609_v48 = vpop.f32.mrf.mxu0 }
 0x509   :  { %11361 = vmatprep.subr.bf16.mxu1 %v11754_v49 }
 0x50c   :  { %11362 = vmatpush3.bf16.msra.mxu1 %v11755_v50 }
 0x50d   :  { %11363 = vmatprep.subr.bf16.mxu1 %v11756_v51 }
 0x510   :  { %11364 = vmatpush3.bf16.msra.mxu1 %v11757_v52 }
 0x511   :  { %11365 = vmatprep.subr.bf16.mxu1 %v11758_v53 }
 0x514   :  { %11366 = vmatpush3.bf16.msra.mxu1 %v11759_v54 }
 0x515   :  { %11367 = vmatprep.subr.bf16.mxu1 %v11760_v55 }
 0x518   :  { %11368 = vmatpush3.bf16.msra.mxu1 %v11761_v56 }
 0x519   :  { %11369 = vmatprep.subr.bf16.mxu1 %v11762_v57 }
 0x51c   :  { %11370 = vmatpush3.bf16.msra.mxu1 %v11763_v58 }
 0x51d   :  { %11371 = vmatprep.subr.bf16.mxu1 %v11767_v61 }
 0x520   :  { %11372 = vmatpush3.bf16.msra.mxu1 %v11768_v62 }
 0x5c3   :  { %v1480_v36 = vpop.f32.mrf.mxu1 }
 0x5c4   :  { %v1481_v41 = vadd.f32 %v1480_v36, %v1359_v35 }
 0x5c5   :  { %v1482_v39 = vpop.f32.mrf.mxu1 }
 0x5c6   :  { %v1483_v43 = vadd.f32 %v1482_v39, %v1363_v37  ;;  %v1612_v49 = vadd.f32 %v1603_v30, %v1481_v41 }
 0x5c7   :  { %v1484_v42 = vpop.f32.mrf.mxu1 }
 0x5c8   :  { %v1485_v44 = vadd.f32 %v1484_v42, %v1359_v35  ;;  %v1613_v50 = vadd.f32 %v1605_v34, %v1483_v43 }
 0x5c9   :  { %v1486_v45 = vpop.f32.mrf.mxu1 }
 0x5ca   :  { %v1614_v46 = vadd.f32 %v1607_v40, %v1485_v44  ;;  %v1487_v47 = vadd.f32 %v1486_v45, %v1363_v37 }
 0x5cc   :  { %v2000_v51 = vsel %vm670_vm5, %v1614_v46, 0.0  ;;  %v1615_v52 = vadd.f32 %v1609_v48, %v1487_v47  ;;  %v14027_v56 = vpack.c.bf16 %v1614_v46, %v1612_v49 }
 0x5cd   :  { %v2001_v53 = vadd.f32 %v2000_v51, %v1612_v49 }
 0x5ce   :  { %v2008_v54 = vsel %vm670_vm5, %v1615_v52, 0.0  ;;  %v14025_v55 = vpack.c.bf16 %v1615_v52, %v1613_v50 }
 0x5cf   :  { %v2002_v57 = vrot.slane %v2001_v53, 4  ;;  %v2009_v58 = vadd.f32 %v2008_v54, %v1613_v50 }
 0x5d0   :  { %1752 = vmatprep.mubr.bf16.mxu1 %v14025_v55 }
 0x5d1   :  { %v2003_v59 = vadd.f32 %v2002_v57, %v2001_v53  ;;  %v2010_v60 = vrot.slane %v2009_v58, 4  ;;  %1753 = vmatmul.mubr.bf16.vlgmr.msra.gmra.mxu1 %v14027_v56  ;;  %v11816_v57 = vld [vmem:[%s15418_s12 + $0xe4] ss:$16 sps:$4 sm:$0xff]  }
 0x5d2   :  { %2687 = vmatprep.subr.bf16.mxu1 %v11816_v57  ;;  %v11901_v57 = vld [vmem:[%s15418_s12 + $0x128] ss:$16 sps:$4 sm:$0xff]  }
 0x5d3   :  { %v2004_v61 = vrot.slane %v2003_v59, 2  ;;  %v2011_v62 = vadd.f32 %v2010_v60, %v2009_v58  ;;  %v11819_v58 = vld [vmem:[%s15418_s12 + $0xec] ss:$16 sps:$4 sm:$0xff]   ;;  %v11817_v60 = vld [vmem:[%s15418_s12 + $0xe8] ss:$16 sps:$4 sm:$0xff]  }
 0x5d4   :  { %2730 = vmatprep.subr.bf16.mxu0 %v11819_v58  ;;  %v11904_v58 = vld [vmem:[%s15418_s12 + $0x100] ss:$16 sps:$4 sm:$0xff]  }
 0x5d5   :  { %v2005_v63 = vadd.f32 %v2004_v61, %v2003_v59  ;;  %v2012_v0 = vrot.slane %v2011_v62, 2  ;;  %v11814_v59 = vld [vmem:[%s15418_s12 + $0xe0] ss:$16 sps:$4 sm:$0xff]   ;;  %v11822_v61 = vld [vmem:[%s15418_s12 + $0xc4] ss:$16 sps:$4 sm:$0xff]  }
 0x5d6   :  { %2688 = vmatpush1.bf16.msra.mxu1 %v11814_v59  ;;  %v11906_v59 = vld [vmem:[%s15418_s12 + $0x104] ss:$16 sps:$4 sm:$0xff]  }
 0x5d7   :  { %v2006_v38 = vrot.slane %v2005_v63, 1  ;;  %v2013_v1 = vadd.f32 %v2012_v0, %v2011_v62  ;;  %v11825_v62 = vld [vmem:[%s15418_s12 + $0xcc] ss:$16 sps:$4 sm:$0xff]   ;;  %v11823_v0 = vld [vmem:[%s15418_s12 + $0xc8] ss:$16 sps:$4 sm:$0xff]   ;;  %2689 = vmatprep.subr.bf16.mxu1 %v11822_v61 }
 0x5d8   :  { %v11909_v61 = vld [vmem:[%s15418_s12 + $0x10c] ss:$16 sps:$4 sm:$0xff]  }
 0x5d9   :  { %v2007_v2 = vadd.f32 %v2006_v38, %v2005_v63  ;;  %v2014_v3 = vrot.slane %v2013_v1, 1  ;;  %v11820_v63 = vld [vmem:[%s15418_s12 + $0xc0] ss:$16 sps:$4 sm:$0xff]   ;;  %v11828_v38 = vld [vmem:[%s15418_s12 + $0xa4] ss:$16 sps:$4 sm:$0xff]  }
 0x5da   :  { %2690 = vmatpush1.bf16.msra.mxu1 %v11820_v63  ;;  %v11912_v63 = vld [vmem:[#allocation15 + $0xe4] ss:$16 sps:$4 sm:$0xff]  }
 0x5db   :  { %v2016_v4 = vmul.f32 0.1, %v2007_v2  ;;  %v2015_v5 = vadd.f32 %v2014_v3, %v2013_v1  ;;  %v11831_v1 = vld [vmem:[%s15418_s12 + $0xac] ss:$16 sps:$4 sm:$0xff]   ;;  %v11826_v2 = vld [vmem:[%s15418_s12 + $0xa0] ss:$16 sps:$4 sm:$0xff]   ;;  %2691 = vmatprep.subr.bf16.mxu1 %v11828_v38 }
 0x5dc   :  { %v11829_v3 = vld [vmem:[%s15418_s12 + $0xa8] ss:$16 sps:$4 sm:$0xff]   ;;  %v10315_v38 = vld [vmem:[%s15460_s28 + $0x6] ss:$0 sm:$0xff] }
 0x5dd   :  { %v2018_v6 = vsub.f32 %v1612_v49, %v2016_v4  ;;  %v2020_v8 = vsub.f32 %v1614_v46, %v2016_v4  ;;  %v2017_v9 = vmul.f32 0.1, %v2015_v5  ;;  %v11834_v4 = vld [vmem:[%s15418_s12 + $0x84] ss:$16 sps:$4 sm:$0xff]   ;;  %v11837_v5 = vld [vmem:[%s15418_s12 + $0x8c] ss:$16 sps:$4 sm:$0xff]  }
 0x5de   :  { %2692 = vmatpush1.bf16.msra.mxu1 %v11826_v2 }
 0x5df   :  { %v2022_v10 = vmul.f32 %v2018_v6, %v2018_v6  ;;  %v2024_v12 = vmul.f32 %v2020_v8, %v2020_v8  ;;  %v2019_v7 = vsub.f32 %v1613_v50, %v2017_v9  ;;  %v2021_v13 = vsub.f32 %v1615_v52, %v2017_v9  ;;  %2693 = vmatprep.subr.bf16.mxu1 %v11834_v4  ;;  %v11840_v9 = vld [vmem:[%s15418_s12 + $0x64] ss:$16 sps:$4 sm:$0xff]  }
 0x5e1   :  { %v2026_v11 = vsel %vm670_vm5, %v2024_v12, 0.0  ;;  %v2023_v14 = vmul.f32 %v2019_v7, %v2019_v7  ;;  %v2025_v15 = vmul.f32 %v2021_v13, %v2021_v13  ;;  %v11838_v12 = vld [vmem:[%s15418_s12 + $0x60] ss:$16 sps:$4 sm:$0xff]  }
 0x5e2   :  { %v2027_v16 = vadd.f32 %v2026_v11, %v2022_v10  ;;  %v11843_v10 = vld [vmem:[%s15418_s12 + $0x6c] ss:$16 sps:$4 sm:$0xff]  }
 0x5e3   :  { %v2034_v17 = vsel %vm670_vm5, %v2025_v15, 0.0  ;;  %v11849_v11 = vld [vmem:[%s15418_s12 + $0x4c] ss:$16 sps:$4 sm:$0xff]   ;;  %v11847_v15 = vld [vmem:[%s15418_s12 + $0x48] ss:$16 sps:$4 sm:$0xff]  }
 0x5e4   :  { %v2028_v18 = vrot.slane %v2027_v16, 4  ;;  %v2035_v19 = vadd.f32 %v2034_v17, %v2023_v14  ;;  %v11844_v14 = vld [vmem:[%s15418_s12 + $0x40] ss:$16 sps:$4 sm:$0xff]   ;;  %v11855_v17 = vld [vmem:[%s15418_s12 + $0x2c] ss:$16 sps:$4 sm:$0xff]  }
 0x5e6   :  { %v2029_v20 = vadd.f32 %v2028_v18, %v2027_v16  ;;  %v2036_v21 = vrot.slane %v2035_v19, 4  ;;  %v11852_v16 = vld [vmem:[%s15418_s12 + $0x24] ss:$16 sps:$4 sm:$0xff]   ;;  %v11850_v18 = vld [vmem:[%s15418_s12 + $0x20] ss:$16 sps:$4 sm:$0xff]  }
 0x5e8   :  { %v2030_v22 = vrot.slane %v2029_v20, 2  ;;  %v2037_v23 = vadd.f32 %v2036_v21, %v2035_v19  ;;  %v11853_v19 = vld [vmem:[%s15418_s12 + $0x28] ss:$16 sps:$4 sm:$0xff]   ;;  %v11861_v21 = vld [vmem:[%s15418_s12 + $0xc] ss:$16 sps:$4 sm:$0xff]  }
 0x5ea   :  { %v2031_v24 = vadd.f32 %v2030_v22, %v2029_v20  ;;  %v2038_v25 = vrot.slane %v2037_v23, 2  ;;  %v11858_v20 = vld [vmem:[%s15418_s12 + $0x4] ss:$16 sps:$4 sm:$0xff]   ;;  %v11856_v22 = vld [vmem:[%s15418_s12] ss:$16 sps:$4 sm:$0xff]  }
 0x5ec   :  { %v2032_v26 = vrot.slane %v2031_v24, 1  ;;  %v2039_v27 = vadd.f32 %v2038_v25, %v2037_v23  ;;  %v11859_v23 = vld [vmem:[%s15418_s12 + $0x8] ss:$16 sps:$4 sm:$0xff]   ;;  %v11867_v25 = vld [vmem:[%s15418_s12 + $0x1ec] ss:$16 sps:$4 sm:$0xff]  }
 0x5ee   :  { %v2033_v28 = vadd.f32 %v2032_v26, %v2031_v24  ;;  %v2040_v30 = vrot.slane %v2039_v27, 1  ;;  %v11864_v24 = vld [vmem:[%s15418_s12 + $0x1e4] ss:$16 sps:$4 sm:$0xff]   ;;  %v11862_v26 = vld [vmem:[%s15418_s12 + $0x1e0] ss:$16 sps:$4 sm:$0xff]  }
 0x5f0   :  { %v2042_v32 = vmul.f32 0.1, %v2033_v28  ;;  %v2041_v34 = vadd.f32 %v2040_v30, %v2039_v27  ;;  %v11865_v27 = vld [vmem:[%s15418_s12 + $0x1e8] ss:$16 sps:$4 sm:$0xff]   ;;  %v11870_v28 = vld [vmem:[%s15418_s12 + $0x1c4] ss:$16 sps:$4 sm:$0xff]  }
 0x5f1   :  { %v11873_v30 = vld [vmem:[%s15418_s12 + $0x1cc] ss:$16 sps:$4 sm:$0xff]  }
 0x5f2   :  { %v2044_v35 = vadd.f32 1e-05, %v2042_v32  ;;  %v2043_v36 = vmul.f32 0.1, %v2041_v34  ;;  %v11868_v32 = vld [vmem:[%s15418_s12 + $0x1c0] ss:$16 sps:$4 sm:$0xff]  }
 0x5f3   :  { %v11871_v34 = vld [vmem:[%s15418_s12 + $0x1c8] ss:$16 sps:$4 sm:$0xff]  }
 0x5f4   :  { %13134 = vrsqrt.f32 %v2044_v35  ;;  %v2045_v37 = vadd.f32 1e-05, %v2043_v36  ;;  %v11876_v35 = vld [vmem:[%s15418_s12 + $0x1a4] ss:$16 sps:$4 sm:$0xff]   ;;  %v11879_v36 = vld [vmem:[%s15418_s12 + $0x1ac] ss:$16 sps:$4 sm:$0xff]  }
 0x5f6   :  { %13136 = vrsqrt.f32 %v2045_v37  ;;  %v11874_v37 = vld [vmem:[%s15418_s12 + $0x1a0] ss:$16 sps:$4 sm:$0xff]  }
 0x601   :  { %v13135_v39 = vpop.eup %13134 }
 0x602   :  { %v2050_v40 = vmul.f32 %v13135_v39, %v2020_v8  ;;  %v2048_v41 = vmul.f32 %v13135_v39, %v2018_v6  ;;  %v11832_v6 = vld [vmem:[%s15418_s12 + $0x80] ss:$16 sps:$4 sm:$0xff]   ;;  %v11835_v8 = vld [vmem:[%s15418_s12 + $0x88] ss:$16 sps:$4 sm:$0xff]  }
 0x603   :  { %v13137_v42 = vpop.eup %13136  ;;  %2694 = vmatpush1.bf16.msra.mxu1 %v11832_v6  ;;  %v11877_v39 = vld [vmem:[%s15418_s12 + $0x1a8] ss:$16 sps:$4 sm:$0xff]  }
 0x604   :  { %v2051_v43 = vmul.f32 %v13137_v42, %v2021_v13  ;;  %v2049_v44 = vmul.f32 %v13137_v42, %v2019_v7  ;;  %vm2052_vm6 = vcmp.ge.f32.partialorder %v2048_v41, 0.0  ;;  %vm2054_vm7 = vcmp.ge.f32.partialorder %v2050_v40, 0.0  ;;  %v11841_v7 = vld [vmem:[%s15418_s12 + $0x68] ss:$16 sps:$4 sm:$0xff]   ;;  %2695 = vmatprep.subr.bf16.mxu1 %v11840_v9  ;;  %v11846_v13 = vld [vmem:[%s15418_s12 + $0x44] ss:$16 sps:$4 sm:$0xff]  }
 0x605   :  { %v2056_v45 = vmul.f32 0.2, %v2048_v41  ;;  %v2058_v46 = vmul.f32 0.2, %v2050_v40  ;;  %v11880_v42 = vld [vmem:[%s15418_s12 + $0x180] ss:$16 sps:$4 sm:$0xff]  }
 0x606   :  { %vm2053_vm8 = vcmp.ge.f32.partialorder %v2049_v44, 0.0  ;;  %vm2055_vm9 = vcmp.ge.f32.partialorder %v2051_v43, 0.0  ;;  %v2057_v47 = vmul.f32 0.2, %v2049_v44  ;;  %v2059_v48 = vmul.f32 0.2, %v2051_v43 }
 0x607   :  { %v2060_v49 = vsel %vm2052_vm6, %v2048_v41, %v2056_v45  ;;  %v2062_v50 = vsel %vm2054_vm7, %v2050_v40, %v2058_v46  ;;  %2696 = vmatpush1.bf16.msra.mxu1 %v11838_v12  ;;  %v11882_v40 = vld [vmem:[%s15418_s12 + $0x184] ss:$16 sps:$4 sm:$0xff]   ;;  %v11885_v41 = vld [vmem:[%s15418_s12 + $0x18c] ss:$16 sps:$4 sm:$0xff]   ;;  %v11886_v46 = vld [vmem:[%s15418_s12 + $0x160] ss:$16 sps:$4 sm:$0xff]  }
 0x608   :  { %v2061_v51 = vsel %vm2053_vm8, %v2049_v44, %v2057_v47  ;;  %v2063_v52 = vsel %vm2055_vm9, %v2051_v43, %v2059_v48  ;;  %v2064_v54 = vpack.c.bf16 %v2062_v50, %v2060_v49  ;;  %2697 = vmatprep.subr.bf16.mxu1 %v11846_v13  ;;  %v11883_v43 = vld [vmem:[%s15418_s12 + $0x188] ss:$16 sps:$4 sm:$0xff]   ;;  %v11888_v44 = vld [vmem:[%s15418_s12 + $0x164] ss:$16 sps:$4 sm:$0xff]   ;;  %v11891_v45 = vld [vmem:[%s15418_s12 + $0x16c] ss:$16 sps:$4 sm:$0xff]  }
 0x609   :  { %v2065_v53 = vpack.c.bf16 %v2063_v52, %v2061_v51  ;;  %v11889_v47 = vld [vmem:[%s15418_s12 + $0x168] ss:$16 sps:$4 sm:$0xff]   ;;  %v11894_v48 = vld [vmem:[%s15418_s12 + $0x144] ss:$16 sps:$4 sm:$0xff]   ;;  %v11897_v49 = vld [vmem:[%s15418_s12 + $0x14c] ss:$16 sps:$4 sm:$0xff]  }
 0x60a   :  { %v11892_v50 = vld [vmem:[%s15418_s12 + $0x140] ss:$16 sps:$4 sm:$0xff]   ;;  %v11895_v51 = vld [vmem:[%s15418_s12 + $0x148] ss:$16 sps:$4 sm:$0xff]   ;;  %v11900_v52 = vld [vmem:[%s15418_s12 + $0x124] ss:$16 sps:$4 sm:$0xff]  }
 0x60b   :  { %2269 = vmatprep.mubr.bf16.mxu0 %v2065_v53  ;;  %2698 = vmatpush1.bf16.msra.mxu1 %v11844_v14  ;;  %v11903_v53 = vld [vmem:[%s15418_s12 + $0x12c] ss:$16 sps:$4 sm:$0xff]   ;;  %v1997_v9 = vld [vmem:[%s15460_s28 + $0x7] sm:$0x3]  ;;  %vm3479_vm9 = vcmask 146528  }
 0x60c   :  { %2270 = vmatmul.mubr.bf16.vlgmr.msra.gmra.mxu0 %v2064_v54  ;;  %2699 = vmatprep.subr.bf16.mxu1 %v11852_v16  ;;  %v11898_v54 = vld [vmem:[%s15418_s12 + $0x120] ss:$16 sps:$4 sm:$0xff]   ;;  %v2070_v12 = vrot.slane %v1997_v9, %v14013_v31  ;;  %v2074_v13 = vrot.slane %v1997_v9, %v14019_v33 }
 0x60d   :  { %2731 = vmatpush1.bf16.msra.mxu0 %v11817_v60  ;;  %v11907_v60 = vld [vmem:[%s15418_s12 + $0x108] ss:$16 sps:$4 sm:$0xff]   ;;  %s13527_s12 = smov 6  }
 0x60e   :  { %2732 = vmatprep.subr.bf16.mxu0 %v11825_v62 }
 0x60f   :  { %2700 = vmatpush1.bf16.msra.mxu1 %v11850_v18 }
 0x610   :  { %2701 = vmatprep.subr.bf16.mxu1 %v11858_v20 }
 0x611   :  { %2733 = vmatpush1.bf16.msra.mxu0 %v11823_v0 }
 0x612   :  { %2734 = vmatprep.subr.bf16.mxu0 %v11831_v1  ;;  %v11915_v1 = vld [vmem:[#allocation15 + $0xec] ss:$16 sps:$4 sm:$0xff]  }
 0x613   :  { %2702 = vmatpush1.bf16.msra.mxu1 %v11856_v22 }
 0x614   :  { %2703 = vmatprep.subr.bf16.mxu1 %v11864_v24 }
 0x615   :  { %2735 = vmatpush1.bf16.msra.mxu0 %v11829_v3 }
 0x616   :  { %2736 = vmatprep.subr.bf16.mxu0 %v11837_v5 }
 0x617   :  { %2704 = vmatpush2.bf16.msra.mxu1 %v11862_v26 }
 0x618   :  { %2705 = vmatprep.subr.bf16.mxu1 %v11870_v28 }
 0x619   :  { %2737 = vmatpush1.bf16.msra.mxu0 %v11835_v8 }
 0x61a   :  { %2738 = vmatprep.subr.bf16.mxu0 %v11843_v10 }
 0x61b   :  { %2706 = vmatpush2.bf16.msra.mxu1 %v11868_v32 }
 0x61c   :  { %2707 = vmatprep.subr.bf16.mxu1 %v11876_v35 }
 0x61d   :  { %2739 = vmatpush1.bf16.msra.mxu0 %v11841_v7 }
 0x61e   :  { %2740 = vmatprep.subr.bf16.mxu0 %v11849_v11 }
 0x61f   :  { %2708 = vmatpush2.bf16.msra.mxu1 %v11874_v37 }
 0x620   :  { %2709 = vmatprep.subr.bf16.mxu1 %v11882_v40 }
 0x621   :  { %2741 = vmatpush1.bf16.msra.mxu0 %v11847_v15 }
 0x622   :  { %2742 = vmatprep.subr.bf16.mxu0 %v11855_v17 }
 0x623   :  { %2710 = vmatpush2.bf16.msra.mxu1 %v11880_v42 }
 0x624   :  { %2711 = vmatprep.subr.bf16.mxu1 %v11888_v44 }
 0x625   :  { %2743 = vmatpush1.bf16.msra.mxu0 %v11853_v19 }
 0x626   :  { %2744 = vmatprep.subr.bf16.mxu0 %v11861_v21 }
 0x627   :  { %2712 = vmatpush2.bf16.msra.mxu1 %v11886_v46 }
 0x628   :  { %2713 = vmatprep.subr.bf16.mxu1 %v11894_v48 }
 0x629   :  { %2745 = vmatpush1.bf16.msra.mxu0 %v11859_v23 }
 0x62a   :  { %2746 = vmatprep.subr.bf16.mxu0 %v11867_v25 }
 0x62b   :  { %2714 = vmatpush2.bf16.msra.mxu1 %v11892_v50 }
 0x62c   :  { %2715 = vmatprep.subr.bf16.mxu1 %v11900_v52 }
 0x62d   :  { %2747 = vmatpush2.bf16.msra.mxu0 %v11865_v27 }
 0x62e   :  { %2748 = vmatprep.subr.bf16.mxu0 %v11873_v30 }
 0x62f   :  { %2716 = vmatpush2.bf16.msra.mxu1 %v11898_v54 }
 0x630   :  { %2717 = vmatprep.subr.bf16.mxu1 %v11906_v59 }
 0x631   :  { %2749 = vmatpush2.bf16.msra.mxu0 %v11871_v34 }
 0x632   :  { %2750 = vmatprep.subr.bf16.mxu0 %v11879_v36 }
 0x633   :  { %2718 = vmatpush2.bf16.msra.mxu1 %v11904_v58 }
 0x634   :  { %3093 = vmatprep.subr.bf16.mxu1 %v11912_v63 }
 0x635   :  { %2751 = vmatpush2.bf16.msra.mxu0 %v11877_v39 }
 0x636   :  { %2752 = vmatprep.subr.bf16.mxu0 %v11885_v41 }
 0x639   :  { %2753 = vmatpush2.bf16.msra.mxu0 %v11883_v43 }
 0x63a   :  { %2754 = vmatprep.subr.bf16.mxu0 %v11891_v45 }
 0x63d   :  { %2755 = vmatpush2.bf16.msra.mxu0 %v11889_v47 }
 0x63e   :  { %2756 = vmatprep.subr.bf16.mxu0 %v11897_v49 }
 0x641   :  { %2757 = vmatpush2.bf16.msra.mxu0 %v11895_v51 }
 0x642   :  { %2758 = vmatprep.subr.bf16.mxu0 %v11903_v53 }
 0x645   :  { %2759 = vmatpush2.bf16.msra.mxu0 %v11901_v57 }
 0x646   :  { %2760 = vmatprep.subr.bf16.mxu0 %v11909_v61 }
 0x649   :  { %2761 = vmatpush2.bf16.msra.mxu0 %v11907_v60 }
 0x64a   :  { %3136 = vmatprep.subr.bf16.mxu0 %v11915_v1 }
 0x691   :  { %v11373_v62 = vpop.f32.mrf.mxu1 }
 0x693   :  { %v11374_v0 = vpop.f32.mrf.mxu1 }
 0x694   :  { %v11375_v2 = vadd.f32 %v11374_v0, %v11373_v62 }
 0x695   :  { %v11376_v3 = vpop.f32.mrf.mxu1 }
 0x696   :  { %v1755_v4 = vadd.f32 %v11375_v2, %v10315_v38 }
 0x697   :  { %v11377_v5 = vpop.f32.mrf.mxu1 }
 0x698   :  { %v11378_v6 = vadd.f32 %v11377_v5, %v11376_v3  ;;  %1763 = vrot.lane.b32.xlu0 %v1755_v4, %s13527_s12 }
 0x69a   :  { %v1758_v8 = vadd.f32 %v11378_v6, %v10315_v38 }
 0x69c   :  { %1765 = vrot.lane.b32.xlu0 %v1758_v8, %s13527_s12 }
 0x6cc   :  { %v2271_v10 = vpop.f32.mrf.mxu0 }
 0x6cd   :  { %v2272_v15 = vadd.f32 %v2271_v10, %v2070_v12 }
 0x6ce   :  { %v2273_v7 = vpop.f32.mrf.mxu0 }
 0x6cf   :  { %v2274_v19 = vadd.f32 %v2273_v7, %v2074_v13 }
 0x6d0   :  { %v2275_v11 = vpop.f32.mrf.mxu0 }
 0x6d1   :  { %v2276_v14 = vadd.f32 %v2275_v11, %v2070_v12 }
 0x6d2   :  { %v2277_v16 = vpop.f32.mrf.mxu0 }
 0x6d3   :  { %v2280_v17 = vsel %vm670_vm5, %v2276_v14, 0.0  ;;  %v2278_v18 = vadd.f32 %v2277_v16, %v2074_v13 }
 0x6d4   :  { %v2281_v20 = vadd.f32 %v2280_v17, %v2272_v15 }
 0x6d5   :  { %v2288_v21 = vsel %vm670_vm5, %v2278_v18, 0.0 }
 0x6d6   :  { %v2282_v22 = vrot.slane %v2281_v20, 4  ;;  %v2289_v23 = vadd.f32 %v2288_v21, %v2274_v19 }
 0x6d8   :  { %v2283_v24 = vadd.f32 %v2282_v22, %v2281_v20  ;;  %v2290_v25 = vrot.slane %v2289_v23, 4 }
 0x6da   :  { %v2284_v26 = vrot.slane %v2283_v24, 2  ;;  %v2291_v27 = vadd.f32 %v2290_v25, %v2289_v23  ;;  %v11910_v23 = vld [vmem:[#allocation15 + $0xe0] ss:$16 sps:$4 sm:$0xff]  }
 0x6dc   :  { %v2285_v28 = vadd.f32 %v2284_v26, %v2283_v24  ;;  %v2292_v30 = vrot.slane %v2291_v27, 2  ;;  %v11913_v24 = vld [vmem:[#allocation15 + $0xe8] ss:$16 sps:$4 sm:$0xff]   ;;  %v11918_v26 = vld [vmem:[#allocation15 + $0xc4] ss:$16 sps:$4 sm:$0xff]  }
 0x6de   :  { %v2286_v32 = vrot.slane %v2285_v28, 1  ;;  %v2293_v34 = vadd.f32 %v2292_v30, %v2291_v27  ;;  %v11921_v27 = vld [vmem:[#allocation15 + $0xcc] ss:$16 sps:$4 sm:$0xff]   ;;  %v11919_v30 = vld [vmem:[#allocation15 + $0xc8] ss:$16 sps:$4 sm:$0xff]  }
 0x6e0   :  { %v2287_v35 = vadd.f32 %v2286_v32, %v2285_v28  ;;  %v2294_v36 = vrot.slane %v2293_v34, 1  ;;  %v11916_v28 = vld [vmem:[#allocation15 + $0xc0] ss:$16 sps:$4 sm:$0xff]   ;;  %v11924_v32 = vld [vmem:[#allocation15 + $0xa4] ss:$16 sps:$4 sm:$0xff]  }
 0x6e2   :  { %v2296_v37 = vmul.f32 0.1, %v2287_v35  ;;  %v2295_v39 = vadd.f32 %v2294_v36, %v2293_v34  ;;  %v11927_v34 = vld [vmem:[#allocation15 + $0xac] ss:$16 sps:$4 sm:$0xff]   ;;  %v11922_v35 = vld [vmem:[#allocation15 + $0xa0] ss:$16 sps:$4 sm:$0xff]  }
 0x6e3   :  { %v11925_v36 = vld [vmem:[#allocation15 + $0xa8] ss:$16 sps:$4 sm:$0xff]  }
 0x6e4   :  { %v2298_v40 = vsub.f32 %v2272_v15, %v2296_v37  ;;  %v2300_v41 = vsub.f32 %v2276_v14, %v2296_v37  ;;  %v2297_v42 = vmul.f32 0.1, %v2295_v39  ;;  %v11930_v37 = vld [vmem:[#allocation15 + $0x84] ss:$16 sps:$4 sm:$0xff]   ;;  %v11933_v39 = vld [vmem:[#allocation15 + $0x8c] ss:$16 sps:$4 sm:$0xff]  }
 0x6e6   :  { %v2302_v43 = vmul.f32 %v2298_v40, %v2298_v40  ;;  %v2304_v44 = vmul.f32 %v2300_v41, %v2300_v41  ;;  %v2299_v45 = vsub.f32 %v2274_v19, %v2297_v42  ;;  %v2301_v46 = vsub.f32 %v2278_v18, %v2297_v42  ;;  %v11936_v42 = vld [vmem:[#allocation15 + $0x64] ss:$16 sps:$4 sm:$0xff]  }
 0x6e8   :  { %v2306_v47 = vsel %vm670_vm5, %v2304_v44, 0.0  ;;  %v2303_v48 = vmul.f32 %v2299_v45, %v2299_v45  ;;  %v2305_v49 = vmul.f32 %v2301_v46, %v2301_v46  ;;  %v11937_v44 = vld [vmem:[#allocation15 + $0x68] ss:$16 sps:$4 sm:$0xff]  }
 0x6e9   :  { %v2307_v50 = vadd.f32 %v2306_v47, %v2302_v43  ;;  %v11934_v43 = vld [vmem:[#allocation15 + $0x60] ss:$16 sps:$4 sm:$0xff]  }
 0x6ea   :  { %v2314_v51 = vsel %vm670_vm5, %v2305_v49, 0.0  ;;  %v11940_v47 = vld [vmem:[#allocation15 + $0x40] ss:$16 sps:$4 sm:$0xff]   ;;  %v11948_v49 = vld [vmem:[#allocation15 + $0x24] ss:$16 sps:$4 sm:$0xff]  }
 0x6eb   :  { %v2308_v52 = vrot.slane %v2307_v50, 4  ;;  %v2315_v53 = vadd.f32 %v2314_v51, %v2303_v48  ;;  %v11943_v48 = vld [vmem:[#allocation15 + $0x48] ss:$16 sps:$4 sm:$0xff]   ;;  %v11946_v51 = vld [vmem:[#allocation15 + $0x20] ss:$16 sps:$4 sm:$0xff]  }
 0x6ed   :  { %v2309_v54 = vadd.f32 %v2308_v52, %v2307_v50  ;;  %v2316_v57 = vrot.slane %v2315_v53, 4  ;;  %v11951_v50 = vld [vmem:[#allocation15 + $0x2c] ss:$16 sps:$4 sm:$0xff]   ;;  %v11949_v52 = vld [vmem:[#allocation15 + $0x28] ss:$16 sps:$4 sm:$0xff]  }
 0x6ef   :  { %v2310_v58 = vrot.slane %v2309_v54, 2  ;;  %v2317_v59 = vadd.f32 %v2316_v57, %v2315_v53  ;;  %v11954_v53 = vld [vmem:[#allocation15 + $0x4] ss:$16 sps:$4 sm:$0xff]   ;;  %v11952_v57 = vld [vmem:[#allocation15] ss:$16 sps:$4 sm:$0xff]  }
 0x6f1   :  { %v2311_v60 = vadd.f32 %v2310_v58, %v2309_v54  ;;  %v2318_v61 = vrot.slane %v2317_v59, 2  ;;  %v11957_v54 = vld [vmem:[#allocation15 + $0xc] ss:$16 sps:$4 sm:$0xff]   ;;  %v11955_v58 = vld [vmem:[#allocation15 + $0x8] ss:$16 sps:$4 sm:$0xff]  }
 0x6f3   :  { %v2312_v62 = vrot.slane %v2311_v60, 1  ;;  %v2319_v63 = vadd.f32 %v2318_v61, %v2317_v59  ;;  %v11960_v59 = vld [vmem:[#allocation15 + $0x1e4] ss:$16 sps:$4 sm:$0xff]   ;;  %v11958_v61 = vld [vmem:[#allocation15 + $0x1e0] ss:$16 sps:$4 sm:$0xff]  }
 0x6f5   :  { %v2313_v0 = vadd.f32 %v2312_v62, %v2311_v60  ;;  %v2320_v38 = vrot.slane %v2319_v63, 1  ;;  %v11963_v60 = vld [vmem:[#allocation15 + $0x1ec] ss:$16 sps:$4 sm:$0xff]   ;;  %v11961_v62 = vld [vmem:[#allocation15 + $0x1e8] ss:$16 sps:$4 sm:$0xff]  }
 0x6f7   :  { %v2322_v1 = vmul.f32 0.1, %v2313_v0  ;;  %v2321_v2 = vadd.f32 %v2320_v38, %v2319_v63  ;;  %v11966_v63 = vld [vmem:[#allocation15 + $0x1c4] ss:$16 sps:$4 sm:$0xff]   ;;  %v11969_v0 = vld [vmem:[#allocation15 + $0x1cc] ss:$16 sps:$4 sm:$0xff]  }
 0x6f8   :  { %v11964_v38 = vld [vmem:[#allocation15 + $0x1c0] ss:$16 sps:$4 sm:$0xff]  }
 0x6f9   :  { %v2324_v3 = vadd.f32 1e-05, %v2322_v1  ;;  %v2323_v4 = vmul.f32 0.1, %v2321_v2  ;;  %v11967_v1 = vld [vmem:[#allocation15 + $0x1c8] ss:$16 sps:$4 sm:$0xff]  }
 0x6fa   :  { %v11972_v2 = vld [vmem:[#allocation15 + $0x1a4] ss:$16 sps:$4 sm:$0xff]  }
 0x6fb   :  { %13138 = vrsqrt.f32 %v2324_v3  ;;  %v2325_v5 = vadd.f32 1e-05, %v2323_v4  ;;  %v11975_v3 = vld [vmem:[#allocation15 + $0x1ac] ss:$16 sps:$4 sm:$0xff]   ;;  %v11970_v4 = vld [vmem:[#allocation15 + $0x1a0] ss:$16 sps:$4 sm:$0xff]  }
 0x6fd   :  { %13140 = vrsqrt.f32 %v2325_v5  ;;  %v11973_v5 = vld [vmem:[#allocation15 + $0x1a8] ss:$16 sps:$4 sm:$0xff]  }
 0x708   :  { %v13139_v6 = vpop.eup %13138 }
 0x709   :  { %v2328_v8 = vmul.f32 %v13139_v6, %v2298_v40  ;;  %v2330_v9 = vmul.f32 %v13139_v6, %v2300_v41  ;;  %v11928_v40 = vld [vmem:[#allocation15 + $0x80] ss:$16 sps:$4 sm:$0xff]   ;;  %v11931_v41 = vld [vmem:[#allocation15 + $0x88] ss:$16 sps:$4 sm:$0xff]   ;;  %v11978_v6 = vld [vmem:[#allocation15 + $0x184] ss:$16 sps:$4 sm:$0xff]  }
 0x70a   :  { %v13141_v10 = vpop.eup %13140  ;;  %v1764_v12 = vpop.permute.xlu0 %1763 }
 0x70b   :  { %vm2334_vm11 = vcmp.ge.f32.partialorder %v2330_v9, 0.0  ;;  %v2338_v7 = vmul.f32 0.2, %v2330_v9  ;;  %v2329_v13 = vmul.f32 %v13141_v10, %v2299_v45  ;;  %v2331_v11 = vmul.f32 %v13141_v10, %v2301_v46  ;;  %1770 = vst.msk [vmem:[#allocation26] sm:$0xff] %vm1769_vm10, %v1764_v12  ;;  %v11942_v45 = vld [vmem:[#allocation15 + $0x44] ss:$16 sps:$4 sm:$0xff]  }
 0x70c   :  { %vm2332_vm13 = vcmp.ge.f32.partialorder %v2328_v8, 0.0  ;;  %v2336_v14 = vmul.f32 0.2, %v2328_v8  ;;  %v11945_v46 = vld [vmem:[#allocation15 + $0x4c] ss:$16 sps:$4 sm:$0xff]   ;;  %vm3481_vm10 = vcmask 140384  }
 0x70d   :  { %v2339_v15 = vmul.f32 0.2, %v2331_v11  ;;  %vm2333_vm14 = vcmp.ge.f32.partialorder %v2329_v13, 0.0  ;;  %vm2335_vm15 = vcmp.ge.f32.partialorder %v2331_v11, 0.0  ;;  %v2337_v16 = vmul.f32 0.2, %v2329_v13 }
 0x70e   :  { %v1766_v17 = vpop.permute.xlu0 %1765  ;;  %v2340_v18 = vsel %vm2332_vm13, %v2328_v8, %v2336_v14  ;;  %v2342_v19 = vsel %vm2334_vm11, %v2330_v9, %v2338_v7  ;;  %v11981_v8 = vld [vmem:[#allocation15 + $0x18c] ss:$16 sps:$4 sm:$0xff]   ;;  %v11976_v9 = vld [vmem:[#allocation15 + $0x180] ss:$16 sps:$4 sm:$0xff]   ;;  %v11979_v10 = vld [vmem:[#allocation15 + $0x188] ss:$16 sps:$4 sm:$0xff]  }
 0x70f   :  { %1772 = vst.msk [vmem:[#allocation26 + $0x8] sm:$0x3] %vm1771_vm12, %v1766_v17  ;;  %v2341_v20 = vsel %vm2333_vm14, %v2329_v13, %v2337_v16  ;;  %v2343_v21 = vsel %vm2335_vm15, %v2331_v11, %v2339_v15  ;;  %v2344_v25 = vpack.c.bf16 %v2342_v19, %v2340_v18  ;;  %v11984_v12 = vld [vmem:[#allocation15 + $0x164] ss:$16 sps:$4 sm:$0xff]   ;;  %v11987_v7 = vld [vmem:[#allocation15 + $0x16c] ss:$16 sps:$4 sm:$0xff]  }
 0x710   :  { %v2345_v22 = vpack.c.bf16 %v2343_v21, %v2341_v20  ;;  %v11982_v13 = vld [vmem:[#allocation15 + $0x160] ss:$16 sps:$4 sm:$0xff]   ;;  %v11985_v11 = vld [vmem:[#allocation15 + $0x168] ss:$16 sps:$4 sm:$0xff]   ;;  %v11990_v14 = vld [vmem:[#allocation15 + $0x144] ss:$16 sps:$4 sm:$0xff]  }
 0x711   :  { %v11993_v15 = vld [vmem:[#allocation15 + $0x14c] ss:$16 sps:$4 sm:$0xff]   ;;  %v11988_v16 = vld [vmem:[#allocation15 + $0x140] ss:$16 sps:$4 sm:$0xff]   ;;  %v11991_v17 = vld [vmem:[#allocation15 + $0x148] ss:$16 sps:$4 sm:$0xff]  }
 0x712   :  { %2719 = vmatprep.mubr.bf16.mxu1 %v2345_v22  ;;  %2762 = vmatprep.mubr.bf16.mxu0 %v2345_v22  ;;  %v11996_v18 = vld [vmem:[#allocation15 + $0x124] ss:$16 sps:$4 sm:$0xff]   ;;  %v11999_v19 = vld [vmem:[#allocation15 + $0x12c] ss:$16 sps:$4 sm:$0xff]   ;;  %v11994_v20 = vld [vmem:[#allocation15 + $0x120] ss:$16 sps:$4 sm:$0xff]  }
 0x713   :  { %2720 = vmatmul.mubr.bf16.vlgmr.msra.gmra.mxu1 %v2344_v25  ;;  %2763 = vmatmul.mubr.bf16.vlgmr.msra.gmra.mxu0 %v2344_v25  ;;  %v11997_v21 = vld [vmem:[#allocation15 + $0x128] ss:$16 sps:$4 sm:$0xff]   ;;  %v12002_v22 = vld [vmem:[#allocation15 + $0x104] ss:$16 sps:$4 sm:$0xff]  }
 0x714   :  { %3094 = vmatpush1.bf16.msra.mxu1 %v11910_v23  ;;  %3137 = vmatpush1.bf16.msra.mxu0 %v11913_v24  ;;  %v12005_v23 = vld [vmem:[#allocation15 + $0x10c] ss:$16 sps:$4 sm:$0xff]   ;;  %v12000_v24 = vld [vmem:[#allocation15 + $0x100] ss:$16 sps:$4 sm:$0xff]   ;;  %v12003_v25 = vld [vmem:[#allocation15 + $0x108] ss:$16 sps:$4 sm:$0xff]  }
 0x715   :  { %3125 = vmatprep.mubr.bf16.mxu1 %v14025_v55  ;;  %3168 = vmatprep.mubr.bf16.mxu0 %v14025_v55  ;;  %v11939_v55 = vld [vmem:[#allocation15 + $0x6c] ss:$16 sps:$4 sm:$0xff]  }
 0x716   :  { %3095 = vmatprep.subr.bf16.mxu1 %v11918_v26  ;;  %3138 = vmatprep.subr.bf16.mxu0 %v11921_v27  ;;  %v12006_v26 = vld [vmem:[%s15420_s14 + $0x78] sm:$0xff]  }
 0x717   :  { %v12007_v27 = vld [vmem:[%s15420_s14 + $0x38] sm:$0xff]  }
 0x718   :  { %3096 = vmatpush1.bf16.msra.mxu1 %v11916_v28  ;;  %3139 = vmatpush1.bf16.msra.mxu0 %v11919_v30  ;;  %v12008_v28 = vld [vmem:[%s15420_s14 + $0x70] sm:$0xff]  }
 0x719   :  { %3097 = vmatprep.subr.bf16.mxu1 %v11924_v32  ;;  %3140 = vmatprep.subr.bf16.mxu0 %v11927_v34  ;;  %v12009_v30 = vld [vmem:[%s15420_s14 + $0x30] sm:$0xff]   ;;  %v12011_v32 = vld [vmem:[%s15420_s14 + $0x28] sm:$0xff]   ;;  %v12012_v34 = vld [vmem:[%s15420_s14 + $0x60] sm:$0xff]  }
 0x71c   :  { %3098 = vmatpush1.bf16.msra.mxu1 %v11922_v35  ;;  %3141 = vmatpush1.bf16.msra.mxu0 %v11925_v36  ;;  %v12013_v35 = vld [vmem:[%s15420_s14 + $0x20] sm:$0xff]   ;;  %v12014_v36 = vld [vmem:[%s15420_s14 + $0x58] sm:$0xff]  }
 0x71d   :  { %3099 = vmatprep.subr.bf16.mxu1 %v11930_v37  ;;  %3142 = vmatprep.subr.bf16.mxu0 %v11933_v39  ;;  %v12015_v37 = vld [vmem:[%s15420_s14 + $0x18] sm:$0xff]   ;;  %v12016_v39 = vld [vmem:[%s15420_s14 + $0x50] sm:$0xff]  }
 0x720   :  { %3100 = vmatpush1.bf16.msra.mxu1 %v11928_v40  ;;  %3143 = vmatpush1.bf16.msra.mxu0 %v11931_v41  ;;  %v12017_v40 = vld [vmem:[%s15420_s14 + $0x10] sm:$0xff]   ;;  %v12018_v41 = vld [vmem:[%s15420_s14 + $0x48] sm:$0xff]  }
 0x721   :  { %3101 = vmatprep.subr.bf16.mxu1 %v11936_v42  ;;  %3144 = vmatprep.subr.bf16.mxu0 %v11939_v55  ;;  %v12019_v42 = vld [vmem:[%s15420_s14 + $0x8] sm:$0xff]   ;;  %v12022_v55 = vld [vmem:[%s15421_s15 + $0xe4] ss:$16 sps:$4 sm:$0xff]  }
 0x724   :  { %3102 = vmatpush1.bf16.msra.mxu1 %v11934_v43  ;;  %3145 = vmatpush1.bf16.msra.mxu0 %v11937_v44  ;;  %v12020_v43 = vld [vmem:[%s15421_s15 + $0xe0] ss:$16 sps:$4 sm:$0xff]  }
 0x725   :  { %3103 = vmatprep.subr.bf16.mxu1 %v11942_v45  ;;  %3146 = vmatprep.subr.bf16.mxu0 %v11945_v46  ;;  %v12023_v44 = vld [vmem:[%s15420_s14 + $0x40] sm:$0xff]  }
 0x726   :  { %v12024_v45 = vld [vmem:[%s15420_s14] sm:$0xff]  }
 0x727   :  { %v12027_v46 = vld [vmem:[%s15421_s15 + $0xc4] ss:$16 sps:$4 sm:$0xff]  }
 0x728   :  { %3104 = vmatpush1.bf16.msra.mxu1 %v11940_v47  ;;  %3147 = vmatpush1.bf16.msra.mxu0 %v11943_v48  ;;  %v12025_v47 = vld [vmem:[%s15421_s15 + $0xc0] ss:$16 sps:$4 sm:$0xff]   ;;  %v12028_v48 = vld [vmem:[%s15420_s14 + $0xf8] sm:$0xff]  }
 0x729   :  { %3105 = vmatprep.subr.bf16.mxu1 %v11948_v49  ;;  %3148 = vmatprep.subr.bf16.mxu0 %v11951_v50  ;;  %v12032_v49 = vld [vmem:[%s15421_s15 + $0xa4] ss:$16 sps:$4 sm:$0xff]   ;;  %v12030_v50 = vld [vmem:[%s15421_s15 + $0xa0] ss:$16 sps:$4 sm:$0xff]  }
 0x72c   :  { %3106 = vmatpush1.bf16.msra.mxu1 %v11946_v51  ;;  %3149 = vmatpush1.bf16.msra.mxu0 %v11949_v52  ;;  %v12037_v51 = vld [vmem:[%s15421_s15 + $0x84] ss:$16 sps:$4 sm:$0xff]   ;;  %v12035_v52 = vld [vmem:[%s15421_s15 + $0x80] ss:$16 sps:$4 sm:$0xff]  }
 0x72d   :  { %3107 = vmatprep.subr.bf16.mxu1 %v11954_v53  ;;  %3150 = vmatprep.subr.bf16.mxu0 %v11957_v54  ;;  %v12042_v53 = vld [vmem:[%s15421_s15 + $0x64] ss:$16 sps:$4 sm:$0xff]   ;;  %v12040_v54 = vld [vmem:[%s15421_s15 + $0x60] ss:$16 sps:$4 sm:$0xff]  }
 0x730   :  { %3108 = vmatpush1.bf16.msra.mxu1 %v11952_v57  ;;  %3151 = vmatpush1.bf16.msra.mxu0 %v11955_v58  ;;  %v12047_v57 = vld [vmem:[%s15421_s15 + $0x44] ss:$16 sps:$4 sm:$0xff]   ;;  %v12045_v58 = vld [vmem:[%s15421_s15 + $0x40] ss:$16 sps:$4 sm:$0xff]  }
 0x731   :  { %3109 = vmatprep.subr.bf16.mxu1 %v11960_v59  ;;  %3152 = vmatprep.subr.bf16.mxu0 %v11963_v60  ;;  %v12052_v59 = vld [vmem:[%s15421_s15 + $0x24] ss:$16 sps:$4 sm:$0xff]   ;;  %v12050_v60 = vld [vmem:[%s15421_s15 + $0x20] ss:$16 sps:$4 sm:$0xff]  }
 0x734   :  { %3110 = vmatpush2.bf16.msra.mxu1 %v11958_v61  ;;  %3153 = vmatpush2.bf16.msra.mxu0 %v11961_v62  ;;  %v12057_v61 = vld [vmem:[%s15421_s15 + $0x4] ss:$16 sps:$4 sm:$0xff]   ;;  %v12055_v62 = vld [vmem:[%s15421_s15] ss:$16 sps:$4 sm:$0xff]  }
 0x735   :  { %3111 = vmatprep.subr.bf16.mxu1 %v11966_v63  ;;  %3154 = vmatprep.subr.bf16.mxu0 %v11969_v0  ;;  %v12062_v63 = vld [vmem:[%s15421_s15 + $0x1e4] ss:$16 sps:$4 sm:$0xff]   ;;  %v12060_v0 = vld [vmem:[%s15421_s15 + $0x1e0] ss:$16 sps:$4 sm:$0xff]  }
 0x738   :  { %3112 = vmatpush2.bf16.msra.mxu1 %v11964_v38  ;;  %3155 = vmatpush2.bf16.msra.mxu0 %v11967_v1  ;;  %v12067_v38 = vld [vmem:[%s15421_s15 + $0x1c4] ss:$16 sps:$4 sm:$0xff]   ;;  %v12065_v1 = vld [vmem:[%s15421_s15 + $0x1c0] ss:$16 sps:$4 sm:$0xff]  }
 0x739   :  { %3113 = vmatprep.subr.bf16.mxu1 %v11972_v2  ;;  %3156 = vmatprep.subr.bf16.mxu0 %v11975_v3  ;;  %v12073_v2 = vld [vmem:[%s15421_s15 + $0x1a4] ss:$16 sps:$4 sm:$0xff]   ;;  %v12071_v3 = vld [vmem:[%s15421_s15 + $0x1a0] ss:$16 sps:$4 sm:$0xff]  }
 0x73c   :  { %3114 = vmatpush2.bf16.msra.mxu1 %v11970_v4  ;;  %3157 = vmatpush2.bf16.msra.mxu0 %v11973_v5  ;;  %v12079_v4 = vld [vmem:[%s15421_s15 + $0x184] ss:$16 sps:$4 sm:$0xff]   ;;  %v12077_v5 = vld [vmem:[%s15421_s15 + $0x180] ss:$16 sps:$4 sm:$0xff]  }
 0x73d   :  { %3115 = vmatprep.subr.bf16.mxu1 %v11978_v6  ;;  %3158 = vmatprep.subr.bf16.mxu0 %v11981_v8  ;;  %v12085_v6 = vld [vmem:[%s15421_s15 + $0x164] ss:$16 sps:$4 sm:$0xff]   ;;  %v12083_v8 = vld [vmem:[%s15421_s15 + $0x160] ss:$16 sps:$4 sm:$0xff]  }
 0x740   :  { %3116 = vmatpush2.bf16.msra.mxu1 %v11976_v9  ;;  %3159 = vmatpush2.bf16.msra.mxu0 %v11979_v10  ;;  %v12091_v9 = vld [vmem:[%s15421_s15 + $0x144] ss:$16 sps:$4 sm:$0xff]   ;;  %v12089_v10 = vld [vmem:[%s15421_s15 + $0x140] ss:$16 sps:$4 sm:$0xff]  }
 0x741   :  { %3117 = vmatprep.subr.bf16.mxu1 %v11984_v12  ;;  %3160 = vmatprep.subr.bf16.mxu0 %v11987_v7  ;;  %v12097_v12 = vld [vmem:[%s15421_s15 + $0x124] ss:$16 sps:$4 sm:$0xff]   ;;  %v12095_v7 = vld [vmem:[%s15421_s15 + $0x120] ss:$16 sps:$4 sm:$0xff]  }
 0x744   :  { %3118 = vmatpush2.bf16.msra.mxu1 %v11982_v13  ;;  %3161 = vmatpush2.bf16.msra.mxu0 %v11985_v11  ;;  %v12101_v13 = vld [vmem:[%s15421_s15 + $0x100] ss:$16 sps:$4 sm:$0xff]   ;;  %v12103_v11 = vld [vmem:[%s15421_s15 + $0x104] ss:$16 sps:$4 sm:$0xff]  }
 0x745   :  { %3119 = vmatprep.subr.bf16.mxu1 %v11990_v14  ;;  %3162 = vmatprep.subr.bf16.mxu0 %v11993_v15  ;;  %v12109_v14 = vld [vmem:[%s15421_s15 + $0xec] ss:$16 sps:$4 sm:$0xff]  }
 0x748   :  { %3120 = vmatpush2.bf16.msra.mxu1 %v11988_v16  ;;  %3163 = vmatpush2.bf16.msra.mxu0 %v11991_v17 }
 0x749   :  { %3121 = vmatprep.subr.bf16.mxu1 %v11996_v18  ;;  %3164 = vmatprep.subr.bf16.mxu0 %v11999_v19 }
 0x74c   :  { %3122 = vmatpush2.bf16.msra.mxu1 %v11994_v20  ;;  %3165 = vmatpush2.bf16.msra.mxu0 %v11997_v21  ;;  %v14392_v21 = vsub.s32 2, %v14010_v29 }
 0x74d   :  { %3123 = vmatprep.subr.bf16.mxu1 %v12002_v22  ;;  %3166 = vmatprep.subr.bf16.mxu0 %v12005_v23  ;;  %v1998_v22 = vld [vmem:[%s15460_s28 + $0x9] sm:$0xf]  ;;  %v14398_v23 = vsub.s32 3, %v14010_v29 }
 0x750   :  { %3124 = vmatpush2.bf16.msra.mxu1 %v12000_v24  ;;  %3167 = vmatpush2.bf16.msra.mxu0 %v12003_v25 }
 0x751   :  { %11379 = vmatprep.subr.bf16.mxu1 %v12006_v26  ;;  %4599 = vmatprep.subr.bf16.mxu0 %v12022_v55  ;;  %v2350_v26 = vrot.slane %v1998_v22, %v14013_v31 }
 0x753   :  { %3126 = vmatmul.mubr.bf16.vlgmr.msra.gmra.mxu1 %v14027_v56  ;;  %3169 = vmatmul.mubr.bf16.vlgmr.msra.gmra.mxu0 %v14027_v56  ;;  %v12010_v56 = vld [vmem:[%s15420_s14 + $0x68] sm:$0xff]  }
 0x754   :  { %11380 = vmatpush3.bf16.msra.mxu1 %v12007_v27  ;;  %4600 = vmatpush1.bf16.msra.mxu0 %v12020_v43  ;;  %v2358_v27 = vrot.slane %v1998_v22, %v14392_v21 }
 0x755   :  { %11381 = vmatprep.subr.bf16.mxu1 %v12008_v28  ;;  %4601 = vmatprep.subr.bf16.mxu0 %v12027_v46  ;;  %v2354_v28 = vrot.slane %v1998_v22, %v14019_v33 }
 0x758   :  { %11382 = vmatpush3.bf16.msra.mxu1 %v12009_v30  ;;  %4602 = vmatpush1.bf16.msra.mxu0 %v12025_v47 }
 0x759   :  { %11383 = vmatprep.subr.bf16.mxu1 %v12010_v56  ;;  %4603 = vmatprep.subr.bf16.mxu0 %v12032_v49 }
 0x75c   :  { %11384 = vmatpush3.bf16.msra.mxu1 %v12011_v32  ;;  %4604 = vmatpush1.bf16.msra.mxu0 %v12030_v50  ;;  %v2362_v32 = vrot.slane %v1998_v22, %v14398_v23  ;;  %v12039_v22 = vld [vmem:[%s15420_s14 + $0xa8] sm:$0xff]  }
 0x75d   :  { %11385 = vmatprep.subr.bf16.mxu1 %v12012_v34  ;;  %4605 = vmatprep.subr.bf16.mxu0 %v12037_v51 }
 0x760   :  { %11386 = vmatpush3.bf16.msra.mxu1 %v12013_v35  ;;  %4606 = vmatpush1.bf16.msra.mxu0 %v12035_v52 }
 0x761   :  { %11387 = vmatprep.subr.bf16.mxu1 %v12014_v36  ;;  %4607 = vmatprep.subr.bf16.mxu0 %v12042_v53 }
 0x764   :  { %11388 = vmatpush3.bf16.msra.mxu1 %v12015_v37  ;;  %4608 = vmatpush1.bf16.msra.mxu0 %v12040_v54 }
 0x765   :  { %11389 = vmatprep.subr.bf16.mxu1 %v12016_v39  ;;  %4609 = vmatprep.subr.bf16.mxu0 %v12047_v57 }
 0x768   :  { %11390 = vmatpush3.bf16.msra.mxu1 %v12017_v40  ;;  %4610 = vmatpush1.bf16.msra.mxu0 %v12045_v58 }
 0x769   :  { %11391 = vmatprep.subr.bf16.mxu1 %v12018_v41  ;;  %4611 = vmatprep.subr.bf16.mxu0 %v12052_v59 }
 0x76c   :  { %11392 = vmatpush3.bf16.msra.mxu1 %v12019_v42  ;;  %4612 = vmatpush1.bf16.msra.mxu0 %v12050_v60 }
 0x76d   :  { %11393 = vmatprep.subr.bf16.mxu1 %v12023_v44  ;;  %4613 = vmatprep.subr.bf16.mxu0 %v12057_v61 }
 0x770   :  { %11394 = vmatpush3.bf16.msra.mxu1 %v12024_v45  ;;  %4614 = vmatpush1.bf16.msra.mxu0 %v12055_v62 }
 0x771   :  { %11401 = vmatprep.subr.bf16.mxu1 %v12028_v48  ;;  %4615 = vmatprep.subr.bf16.mxu0 %v12062_v63 }
 0x774   :  { %4616 = vmatpush2.bf16.msra.mxu0 %v12060_v0 }
 0x775   :  { %4617 = vmatprep.subr.bf16.mxu0 %v12067_v38  ;;  %v12029_v38 = vld [vmem:[%s15420_s14 + $0xb8] sm:$0xff]  }
 0x778   :  { %4618 = vmatpush2.bf16.msra.mxu0 %v12065_v1 }
 0x779   :  { %4619 = vmatprep.subr.bf16.mxu0 %v12073_v2 }
 0x77c   :  { %4620 = vmatpush2.bf16.msra.mxu0 %v12071_v3 }
 0x77d   :  { %4621 = vmatprep.subr.bf16.mxu0 %v12079_v4 }
 0x780   :  { %4622 = vmatpush2.bf16.msra.mxu0 %v12077_v5  ;;  %v12033_v5 = vld [vmem:[%s15420_s14 + $0xf0] sm:$0xff]  }
 0x781   :  { %4623 = vmatprep.subr.bf16.mxu0 %v12085_v6 }
 0x784   :  { %4624 = vmatpush2.bf16.msra.mxu0 %v12083_v8 }
 0x785   :  { %4625 = vmatprep.subr.bf16.mxu0 %v12091_v9 }
 0x788   :  { %4626 = vmatpush2.bf16.msra.mxu0 %v12089_v10 }
 0x789   :  { %4627 = vmatprep.subr.bf16.mxu0 %v12097_v12 }
 0x78c   :  { %4628 = vmatpush2.bf16.msra.mxu0 %v12095_v7  ;;  %v12034_v7 = vld [vmem:[%s15420_s14 + $0xb0] sm:$0xff]  }
 0x78d   :  { %4629 = vmatprep.subr.bf16.mxu0 %v12103_v11 }
 0x790   :  { %4630 = vmatpush2.bf16.msra.mxu0 %v12101_v13 }
 0x791   :  { %4685 = vmatprep.subr.bf16.mxu0 %v12109_v14 }
 0x7d3   :  { %v2721_v15 = vpop.f32.mrf.mxu1  ;;  %v2764_v16 = vpop.f32.mrf.mxu0 }
 0x7d4   :  { %v2722_v39 = vadd.f32 %v2721_v15, %v2350_v26  ;;  %v2765_v40 = vadd.f32 %v2764_v16, %v2358_v27  ;;  %v12038_v16 = vld [vmem:[%s15420_s14 + $0xe8] sm:$0xff]  }
 0x7d5   :  { %v2723_v17 = vpop.f32.mrf.mxu1  ;;  %v2766_v18 = vpop.f32.mrf.mxu0 }
 0x7d6   :  { %v2724_v29 = vadd.f32 %v2723_v17, %v2354_v28  ;;  %v2767_v46 = vadd.f32 %v2766_v18, %v2362_v32 }
 0x7d7   :  { %v2725_v19 = vpop.f32.mrf.mxu1  ;;  %v2768_v20 = vpop.f32.mrf.mxu0 }
 0x7d8   :  { %v2726_v36 = vadd.f32 %v2725_v19, %v2350_v26  ;;  %v2769_v37 = vadd.f32 %v2768_v20, %v2358_v27 }
 0x7d9   :  { %v2727_v24 = vpop.f32.mrf.mxu1  ;;  %v2770_v25 = vpop.f32.mrf.mxu0 }
 0x7da   :  { %v2728_v55 = vadd.f32 %v2727_v24, %v2354_v28  ;;  %v2771_v43 = vadd.f32 %v2770_v25, %v2362_v32  ;;  %v12043_v28 = vld [vmem:[%s15420_s14 + $0xe0] sm:$0xff]  }
 0x813   :  { %v3127_v30 = vpop.f32.mrf.mxu1  ;;  %v3170_v56 = vpop.f32.mrf.mxu0 }
 0x814   :  { %v14408_v47 = vadd.f32 %v3127_v30, %v2722_v39  ;;  %v14410_v48 = vadd.f32 %v3170_v56, %v2765_v40  ;;  %v12048_v40 = vld [vmem:[%s15420_s14 + $0xd8] sm:$0xff]  }
 0x815   :  { %v3129_v34 = vpop.f32.mrf.mxu1  ;;  %v3172_v35 = vpop.f32.mrf.mxu0 }
 0x816   :  { %v14412_v49 = vadd.f32 %v3129_v34, %v2724_v29  ;;  %v14422_v58 = vadd.f32 %v3172_v35, %v2767_v46  ;;  %v12044_v35 = vld [vmem:[%s15420_s14 + $0xa0] sm:$0xff]  }
 0x817   :  { %v3131_v41 = vpop.f32.mrf.mxu1  ;;  %v3174_v42 = vpop.f32.mrf.mxu0 }
 0x818   :  { %v14404_v44 = vadd.f32 %v3131_v41, %v2726_v36  ;;  %v14406_v45 = vadd.f32 %v3174_v42, %v2769_v37  ;;  %v12049_v42 = vld [vmem:[%s15420_s14 + $0x98] sm:$0xff]  }
 0x819   :  { %v3133_v50 = vpop.f32.mrf.mxu1  ;;  %v3176_v51 = vpop.f32.mrf.mxu0 }
 0x81a   :  { %v3806_v52 = vsel %vm670_vm5, %v14404_v44, 0.0  ;;  %v3822_v53 = vsel %vm670_vm5, %v14406_v45, 0.0  ;;  %v14418_v54 = vadd.f32 %v3133_v50, %v2728_v55  ;;  %v14420_v57 = vadd.f32 %v3176_v51, %v2771_v43 }
 0x81b   :  { %v3807_v59 = vadd.f32 %v3806_v52, %v14408_v47  ;;  %v3823_v60 = vadd.f32 %v3822_v53, %v14410_v48  ;;  %v3187_v0 = vpack.c.bf16 %v14404_v44, %v14408_v47  ;;  %v12053_v52 = vld [vmem:[%s15420_s14 + $0xd0] sm:$0xff]  }
 0x81c   :  { %v3814_v61 = vsel %vm670_vm5, %v14418_v54, 0.0  ;;  %v3830_v62 = vsel %vm670_vm5, %v14420_v57, 0.0  ;;  %v3188_v63 = vpack.c.bf16 %v14418_v54, %v14412_v49  ;;  %v3190_v6 = vpack.c.bf16 %v14420_v57, %v14422_v58 }
 0x81d   :  { %v3808_v1 = vrot.slane %v3807_v59, 4  ;;  %v3824_v2 = vrot.slane %v3823_v60, 4  ;;  %v3815_v3 = vadd.f32 %v3814_v61, %v14412_v49  ;;  %v3831_v4 = vadd.f32 %v3830_v62, %v14422_v58 }
 0x81e   :  { %3421 = vmatprep.mubr.bf16.mxu1 %v3188_v63 }
 0x81f   :  { %v3809_v8 = vadd.f32 %v3808_v1, %v3807_v59  ;;  %v3825_v9 = vadd.f32 %v3824_v2, %v3823_v60  ;;  %v3816_v10 = vrot.slane %v3815_v3, 4  ;;  %v3832_v12 = vrot.slane %v3831_v4, 4  ;;  %3422 = vmatmul.mubr.bf16.vlgmr.msra.gmra.mxu1 %v3187_v0  ;;  %v12054_v2 = vld [vmem:[%s15420_s14 + $0x90] sm:$0xff]  }
 0x820   :  { %11402 = vmatpush3.bf16.msra.mxu1 %v12029_v38  ;;  %3462 = vmatprep.mubr.bf16.mxu1 %v3190_v6 }
 0x821   :  { %v3810_v13 = vrot.slane %v3809_v8, 2  ;;  %v3826_v11 = vrot.slane %v3825_v9, 2  ;;  %v3817_v14 = vadd.f32 %v3816_v10, %v3815_v3  ;;  %v3833_v15 = vadd.f32 %v3832_v12, %v3831_v4  ;;  %11403 = vmatprep.subr.bf16.mxu1 %v12033_v5  ;;  %v12058_v3 = vld [vmem:[%s15420_s14 + $0xc8] sm:$0xff]  }
 0x823   :  { %v3811_v17 = vadd.f32 %v3810_v13, %v3809_v8  ;;  %v3827_v18 = vadd.f32 %v3826_v11, %v3825_v9  ;;  %v3818_v19 = vrot.slane %v3817_v14, 2  ;;  %v3834_v20 = vrot.slane %v3833_v15, 2 }
 0x824   :  { %11404 = vmatpush3.bf16.msra.mxu1 %v12034_v7 }
 0x825   :  { %v3812_v24 = vrot.slane %v3811_v17, 1  ;;  %v3828_v25 = vrot.slane %v3827_v18, 1  ;;  %v3819_v26 = vadd.f32 %v3818_v19, %v3817_v14  ;;  %v3835_v27 = vadd.f32 %v3834_v20, %v3833_v15  ;;  %11405 = vmatprep.subr.bf16.mxu1 %v12038_v16  ;;  %v12059_v14 = vld [vmem:[%s15420_s14 + $0x88] sm:$0xff]   ;;  %v12063_v15 = vld [vmem:[%s15420_s14 + $0xc0] sm:$0xff]  }
 0x827   :  { %v3813_v30 = vadd.f32 %v3812_v24, %v3811_v17  ;;  %v3820_v56 = vrot.slane %v3819_v26, 1  ;;  %v3836_v32 = vrot.slane %v3835_v27, 1  ;;  %v3829_v34 = vadd.f32 %v3828_v25, %v3827_v18 }
 0x828   :  { %11406 = vmatpush3.bf16.msra.mxu1 %v12039_v22 }
 0x829   :  { %v3838_v36 = vmul.f32 0.1, %v3813_v30  ;;  %v3821_v37 = vadd.f32 %v3820_v56, %v3819_v26  ;;  %v3837_v39 = vadd.f32 %v3836_v32, %v3835_v27  ;;  %11407 = vmatprep.subr.bf16.mxu1 %v12043_v28  ;;  %v3840_v55 = vmul.f32 0.1, %v3829_v34  ;;  %v12064_v26 = vld [vmem:[%s15420_s14 + $0x80] sm:$0xff]  }
 0x82a   :  { %v12070_v27 = vld [vmem:[%s15421_s15 + $0x2e4] ss:$16 sps:$4 sm:$0xff]  }
 0x82b   :  { %v14463_v29 = vsub.f32 %v14408_v47, %v3838_v36  ;;  %v14466_v41 = vsub.f32 %v14404_v44, %v3838_v36  ;;  %v3839_v43 = vmul.f32 0.1, %v3821_v37  ;;  %v3841_v46 = vmul.f32 0.1, %v3837_v39  ;;  %v12068_v37 = vld [vmem:[%s15421_s15 + $0x2e0] ss:$16 sps:$4 sm:$0xff]  }
 0x82c   :  { %11408 = vmatpush3.bf16.msra.mxu1 %v12044_v35  ;;  %v14492_v0 = vsub.f32 %v14406_v45, %v3840_v55  ;;  %v14511_v10 = vsub.f32 %v14410_v48, %v3840_v55  ;;  %v3189_v39 = vpack.c.bf16 %v14406_v45, %v14410_v48 }
 0x82d   :  { %v3850_v50 = vmul.f32 %v14463_v29, %v14463_v29  ;;  %v3854_v51 = vmul.f32 %v14466_v41, %v14466_v41  ;;  %11409 = vmatprep.subr.bf16.mxu1 %v12048_v40  ;;  %v14479_v53 = vsub.f32 %v14418_v54, %v3839_v43  ;;  %v14482_v59 = vsub.f32 %v14420_v57, %v3841_v46  ;;  %v12076_v40 = vld [vmem:[%s15421_s15 + $0x2c4] ss:$16 sps:$4 sm:$0xff]  }
 0x82e   :  { %v14485_v60 = vsub.f32 %v14412_v49, %v3839_v43  ;;  %v14488_v61 = vsub.f32 %v14422_v58, %v3841_v46  ;;  %v3856_v11 = vmul.f32 %v14492_v0, %v14492_v0  ;;  %v3852_v19 = vmul.f32 %v14511_v10, %v14511_v10 }
 0x82f   :  { %v3858_v62 = vsel %vm670_vm5, %v3854_v51, 0.0  ;;  %v3855_v38 = vmul.f32 %v14479_v53, %v14479_v53  ;;  %v3857_v1 = vmul.f32 %v14482_v59, %v14482_v59 }
 0x830   :  { %v3859_v63 = vadd.f32 %v3858_v62, %v3850_v50  ;;  %11410 = vmatpush3.bf16.msra.mxu1 %v12049_v42  ;;  %v3851_v4 = vmul.f32 %v14485_v60, %v14485_v60  ;;  %v3853_v5 = vmul.f32 %v14488_v61, %v14488_v61  ;;  %v3874_v25 = vsel %vm670_vm5, %v3856_v11, 0.0  ;;  %v12074_v62 = vld [vmem:[%s15421_s15 + $0x2c0] ss:$16 sps:$4 sm:$0xff]   ;;  %v12100_v11 = vld [vmem:[%s15421_s15 + $0x244] ss:$16 sps:$4 sm:$0xff]  }
 0x831   :  { %11411 = vmatprep.subr.bf16.mxu1 %v12053_v52  ;;  %v3866_v8 = vsel %vm670_vm5, %v3855_v38, 0.0  ;;  %v3882_v9 = vsel %vm670_vm5, %v3857_v1, 0.0  ;;  %v3875_v32 = vadd.f32 %v3874_v25, %v3852_v19  ;;  %v12106_v19 = vld [vmem:[%s15421_s15 + $0x224] ss:$16 sps:$4 sm:$0xff]  }
 0x832   :  { %v3860_v6 = vrot.slane %v3859_v63, 4  ;;  %v3867_v12 = vadd.f32 %v3866_v8, %v3851_v4  ;;  %v3883_v7 = vadd.f32 %v3882_v9, %v3853_v5  ;;  %v12080_v5 = vld [vmem:[%s15421_s15 + $0x2a0] ss:$16 sps:$4 sm:$0xff]  }
 0x833   :  { %v3876_v46 = vrot.slane %v3875_v32, 4  ;;  %v12086_v9 = vld [vmem:[%s15421_s15 + $0x280] ss:$16 sps:$4 sm:$0xff]  }
 0x834   :  { %v3861_v13 = vadd.f32 %v3860_v6, %v3859_v63  ;;  %11412 = vmatpush3.bf16.msra.mxu1 %v12054_v2  ;;  %v3868_v16 = vrot.slane %v3867_v12, 4  ;;  %v3884_v17 = vrot.slane %v3883_v7, 4  ;;  %v12082_v63 = vld [vmem:[%s15421_s15 + $0x2a4] ss:$16 sps:$4 sm:$0xff]  }
 0x835   :  { %11413 = vmatprep.subr.bf16.mxu1 %v12058_v3  ;;  %v3877_v2 = vadd.f32 %v3876_v46, %v3875_v32  ;;  %v12088_v6 = vld [vmem:[%s15421_s15 + $0x284] ss:$16 sps:$4 sm:$0xff]  }
 0x836   :  { %v3862_v18 = vrot.slane %v3861_v13, 2  ;;  %v3869_v20 = vadd.f32 %v3868_v16, %v3867_v12  ;;  %v3885_v22 = vadd.f32 %v3884_v17, %v3883_v7  ;;  %v12094_v12 = vld [vmem:[%s15421_s15 + $0x264] ss:$16 sps:$4 sm:$0xff]   ;;  %v12098_v17 = vld [vmem:[%s15421_s15 + $0x240] ss:$16 sps:$4 sm:$0xff]  }
 0x837   :  { %v3878_v8 = vrot.slane %v3877_v2, 2 }
 0x838   :  { %v3863_v24 = vadd.f32 %v3862_v18, %v3861_v13  ;;  %11414 = vmatpush3.bf16.msra.mxu1 %v12059_v14  ;;  %v3870_v28 = vrot.slane %v3869_v20, 2  ;;  %v3886_v30 = vrot.slane %v3885_v22, 2  ;;  %v12092_v13 = vld [vmem:[%s15421_s15 + $0x260] ss:$16 sps:$4 sm:$0xff]  }
 0x839   :  { %11415 = vmatprep.subr.bf16.mxu1 %v12063_v15  ;;  %v3879_v7 = vadd.f32 %v3878_v8, %v3877_v2  ;;  %v12125_v8 = vld [vmem:[%s15421_s15 + $0x88] ss:$16 sps:$4 sm:$0xff]  }
 0x83a   :  { %v3864_v56 = vrot.slane %v3863_v24, 1  ;;  %v3871_v34 = vadd.f32 %v3870_v28, %v3869_v20  ;;  %v3887_v35 = vadd.f32 %v3886_v30, %v3885_v22 }
 0x83b   :  { %v3880_v15 = vrot.slane %v3879_v7, 1 }
 0x83c   :  { %v3865_v36 = vadd.f32 %v3864_v56, %v3863_v24  ;;  %11416 = vmatpush3.bf16.msra.mxu1 %v12064_v26  ;;  %v3872_v42 = vrot.slane %v3871_v34, 1  ;;  %v3888_v55 = vrot.slane %v3887_v35, 1 }
 0x83d   :  { %4642 = vmatprep.subr.bf16.mxu1 %v12070_v27  ;;  %v3881_v26 = vadd.f32 %v3880_v15, %v3879_v7  ;;  %v12136_v7 = vld [vmem:[%s15421_s15 + $0x384] ss:$16 sps:$4 sm:$0xff]  }
 0x83e   :  { %v3890_v43 = vmul.f32 0.1, %v3865_v36  ;;  %v3873_v50 = vadd.f32 %v3872_v42, %v3871_v34  ;;  %v3889_v51 = vadd.f32 %v3888_v55, %v3887_v35  ;;  %v12112_v34 = vld [vmem:[%s15421_s15 + $0x204] ss:$16 sps:$4 sm:$0xff]   ;;  %v12107_v42 = vld [vmem:[%s15421_s15 + $0xe8] ss:$16 sps:$4 sm:$0xff]  }
 0x83f   :  { %3463 = vmatmul.mubr.bf16.vlgmr.msra.gmra.mxu1 %v3189_v39  ;;  %v12110_v55 = vld [vmem:[%s15421_s15 + $0x200] ss:$16 sps:$4 sm:$0xff]   ;;  %v12142_v15 = vld [vmem:[%s15421_s15 + $0x364] ss:$16 sps:$4 sm:$0xff]  }
 0x840   :  { %v3894_v52 = vadd.f32 1e-05, %v3890_v43  ;;  %4643 = vmatpush1.bf16.msra.mxu1 %v12068_v37  ;;  %v3891_v38 = vmul.f32 0.1, %v3873_v50  ;;  %v3893_v1 = vmul.f32 0.1, %v3889_v51 }
 0x841   :  { %4644 = vmatprep.subr.bf16.mxu1 %v12076_v40  ;;  %v12115_v50 = vld [vmem:[%s15421_s15 + $0xcc] ss:$16 sps:$4 sm:$0xff]   ;;  %v3892_v51 = vmul.f32 0.1, %v3881_v26  ;;  %v12154_v26 = vld [vmem:[%s15421_s15 + $0x324] ss:$16 sps:$4 sm:$0xff]  }
 0x842   :  { %13142 = vrsqrt.f32 %v3894_v52  ;;  %v3895_v3 = vadd.f32 1e-05, %v3891_v38  ;;  %v3897_v4 = vadd.f32 1e-05, %v3893_v1  ;;  %v12118_v52 = vld [vmem:[%s15421_s15 + $0x3e4] ss:$16 sps:$4 sm:$0xff]  }
 0x843   :  { %v12121_v38 = vld [vmem:[%s15421_s15 + $0xac] ss:$16 sps:$4 sm:$0xff]   ;;  %v12124_v1 = vld [vmem:[%s15421_s15 + $0x3c4] ss:$16 sps:$4 sm:$0xff]   ;;  %v3896_v2 = vadd.f32 1e-05, %v3892_v51 }
 0x844   :  { %4645 = vmatpush1.bf16.msra.mxu1 %v12074_v62  ;;  %13144 = vrsqrt.f32 %v3895_v3  ;;  %v12113_v62 = vld [vmem:[%s15421_s15 + $0xc8] ss:$16 sps:$4 sm:$0xff]   ;;  %v12178_v51 = vld [vmem:[%s15421_s15 + $0x2ac] ss:$16 sps:$4 sm:$0xff]  }
 0x845   :  { %4646 = vmatprep.subr.bf16.mxu1 %v12082_v63  ;;  %13146 = vrsqrt.f32 %v3897_v4  ;;  %v12116_v63 = vld [vmem:[%s15421_s15 + $0x3e0] ss:$16 sps:$4 sm:$0xff]   ;;  %v12119_v3 = vld [vmem:[%s15421_s15 + $0xa8] ss:$16 sps:$4 sm:$0xff]  }
 0x846   :  { %v12122_v4 = vld [vmem:[%s15421_s15 + $0x3c0] ss:$16 sps:$4 sm:$0xff]   ;;  %13148 = vrsqrt.f32 %v3896_v2  ;;  %v12187_v2 = vld [vmem:[%s15421_s15 + $0x14c] ss:$16 sps:$4 sm:$0xff]  }
 0x848   :  { %4647 = vmatpush1.bf16.msra.mxu1 %v12080_v5  ;;  %v12127_v5 = vld [vmem:[%s15421_s15 + $0x8c] ss:$16 sps:$4 sm:$0xff]  }
 0x849   :  { %4648 = vmatprep.subr.bf16.mxu1 %v12088_v6  ;;  %v12130_v6 = vld [vmem:[%s15421_s15 + $0x3a4] ss:$16 sps:$4 sm:$0xff]  }
 0x84c   :  { %4649 = vmatpush1.bf16.msra.mxu1 %v12086_v9  ;;  %v12128_v9 = vld [vmem:[%s15421_s15 + $0x3a0] ss:$16 sps:$4 sm:$0xff]  }
 0x84d   :  { %4650 = vmatprep.subr.bf16.mxu1 %v12094_v12  ;;  %v12133_v12 = vld [vmem:[%s15421_s15 + $0x6c] ss:$16 sps:$4 sm:$0xff]  }
 0x84f   :  { %v13143_v14 = vpop.eup %13142 }
 0x850   :  { %v3906_v16 = vmul.f32 %v13143_v14, %v14466_v41  ;;  %4651 = vmatpush1.bf16.msra.mxu1 %v12092_v13  ;;  %v3902_v18 = vmul.f32 %v13143_v14, %v14463_v29  ;;  %v12104_v29 = vld [vmem:[%s15421_s15 + $0x220] ss:$16 sps:$4 sm:$0xff]   ;;  %v12131_v13 = vld [vmem:[%s15421_s15 + $0x68] ss:$16 sps:$4 sm:$0xff]   ;;  %v12139_v14 = vld [vmem:[%s15421_s15 + $0x4c] ss:$16 sps:$4 sm:$0xff]  }
 0x851   :  { %4652 = vmatprep.subr.bf16.mxu1 %v12100_v11  ;;  %v13145_v20 = vpop.eup %13144  ;;  %v12134_v11 = vld [vmem:[%s15421_s15 + $0x380] ss:$16 sps:$4 sm:$0xff]  }
 0x852   :  { %vm3910_vm0 = vcmp.ge.f32.partialorder %v3902_v18, 0.0  ;;  %vm3914_vm1 = vcmp.ge.f32.partialorder %v3906_v16, 0.0  ;;  %v3918_v22 = vmul.f32 0.2, %v3902_v18  ;;  %v3922_v24 = vmul.f32 0.2, %v3906_v16  ;;  %v13147_v25 = vpop.eup %13146 }
 0x853   :  { %v3903_v41 = vmul.f32 %v13145_v20, %v14485_v60  ;;  %v3907_v27 = vmul.f32 %v13145_v20, %v14479_v53  ;;  %v3905_v28 = vmul.f32 %v13147_v25, %v14488_v61  ;;  %v3909_v30 = vmul.f32 %v13147_v25, %v14482_v59  ;;  %v13149_v20 = vpop.eup %13148  ;;  %v12151_v25 = vld [vmem:[%s15421_s15 + $0xc] ss:$16 sps:$4 sm:$0xff]  }
 0x854   :  { %4653 = vmatpush1.bf16.msra.mxu1 %v12098_v17  ;;  %v3926_v56 = vsel %vm3910_vm0, %v3902_v18, %v3918_v22  ;;  %v3930_v32 = vsel %vm3914_vm1, %v3906_v16, %v3922_v24  ;;  %v12137_v16 = vld [vmem:[%s15421_s15 + $0x48] ss:$16 sps:$4 sm:$0xff]   ;;  %v12140_v17 = vld [vmem:[%s15421_s15 + $0x360] ss:$16 sps:$4 sm:$0xff]   ;;  %v12145_v18 = vld [vmem:[%s15421_s15 + $0x2c] ss:$16 sps:$4 sm:$0xff]  }
 0x855   :  { %4654 = vmatprep.subr.bf16.mxu1 %v12106_v19  ;;  %vm3911_vm2 = vcmp.ge.f32.partialorder %v3903_v41, 0.0  ;;  %vm3915_vm3 = vcmp.ge.f32.partialorder %v3907_v27, 0.0  ;;  %v3919_v60 = vmul.f32 0.2, %v3903_v41  ;;  %v3923_v53 = vmul.f32 0.2, %v3907_v27 }
 0x856   :  { %vm3913_vm4 = vcmp.ge.f32.partialorder %v3905_v28, 0.0  ;;  %vm3917_vm6 = vcmp.ge.f32.partialorder %v3909_v30, 0.0  ;;  %v3921_v35 = vmul.f32 0.2, %v3905_v28  ;;  %v3925_v36 = vmul.f32 0.2, %v3909_v30 }
 0x857   :  { %v3927_v37 = vsel %vm3911_vm2, %v3903_v41, %v3919_v60  ;;  %v3931_v39 = vsel %vm3915_vm3, %v3907_v27, %v3923_v53  ;;  %v14588_v46 = vpack.c.bf16 %v3930_v32, %v3926_v56  ;;  %v12148_v19 = vld [vmem:[%s15421_s15 + $0x344] ss:$16 sps:$4 sm:$0xff]   ;;  %v12143_v22 = vld [vmem:[%s15421_s15 + $0x28] ss:$16 sps:$4 sm:$0xff]   ;;  %v12146_v24 = vld [vmem:[%s15421_s15 + $0x340] ss:$16 sps:$4 sm:$0xff]   ;;  %v3908_v41 = vmul.f32 %v13149_v20, %v14492_v0 }
 0x858   :  { %4655 = vmatpush1.bf16.msra.mxu1 %v12104_v29  ;;  %v3935_v61 = vpack.c.bf16 %v3931_v39, %v3927_v37  ;;  %v3929_v59 = vsel %vm3913_vm4, %v3905_v28, %v3921_v35  ;;  %v3933_v40 = vsel %vm3917_vm6, %v3909_v30, %v3925_v36  ;;  %v3904_v27 = vmul.f32 %v13149_v20, %v14511_v10  ;;  %v12149_v29 = vld [vmem:[%s15421_s15 + $0x8] ss:$16 sps:$4 sm:$0xff]   ;;  %v12152_v28 = vld [vmem:[%s15421_s15 + $0x320] ss:$16 sps:$4 sm:$0xff]   ;;  %v12157_v30 = vld [vmem:[%s15421_s15 + $0x1ec] ss:$16 sps:$4 sm:$0xff]  }
 0x859   :  { %v14586_v43 = vpack.c.bf16 %v3933_v40, %v3929_v59  ;;  %4656 = vmatprep.subr.bf16.mxu1 %v12112_v34  ;;  %v12160_v0 = vld [vmem:[%s15421_s15 + $0x304] ss:$16 sps:$4 sm:$0xff]   ;;  %v3924_v56 = vmul.f32 0.2, %v3908_v41  ;;  %vm3916_vm8 = vcmp.ge.f32.partialorder %v3908_v41, 0.0 }
 0x85a   :  { %4631 = vmatprep.mubr.bf16.mxu0 %v3935_v61  ;;  %v3920_v10 = vmul.f32 0.2, %v3904_v27  ;;  %vm3912_vm7 = vcmp.ge.f32.partialorder %v3904_v27, 0.0  ;;  %v12155_v32 = vld [vmem:[%s15421_s15 + $0x1e8] ss:$16 sps:$4 sm:$0xff]  }
 0x85b   :  { %4674 = vmatprep.mubr.bf16.mxu1 %v14586_v43  ;;  %4632 = vmatmul.mubr.bf16.vlgmr.msra.gmra.mxu0 %v14588_v46  ;;  %v12158_v34 = vld [vmem:[%s15421_s15 + $0x300] ss:$16 sps:$4 sm:$0xff]   ;;  %v12163_v60 = vld [vmem:[%s15421_s15 + $0x1cc] ss:$16 sps:$4 sm:$0xff]   ;;  %v3932_v36 = vsel %vm3916_vm8, %v3908_v41, %v3924_v56  ;;  %v12161_v37 = vld [vmem:[%s15421_s15 + $0x1c8] ss:$16 sps:$4 sm:$0xff]  }
 0x85c   :  { %4686 = vmatpush1.bf16.msra.mxu0 %v12107_v42  ;;  %4657 = vmatpush1.bf16.msra.mxu1 %v12110_v55  ;;  %v12166_v53 = vld [vmem:[%s15421_s15 + $0x2ec] ss:$16 sps:$4 sm:$0xff]   ;;  %v3928_v35 = vsel %vm3912_vm7, %v3904_v27, %v3920_v10  ;;  %v12164_v39 = vld [vmem:[%s15421_s15 + $0x2e8] ss:$16 sps:$4 sm:$0xff]   ;;  %v12232_v56 = vld [vmem:[#allocation17 + $0xe4] ss:$16 sps:$4 sm:$0xff]  }
 0x85d   :  { %4717 = vmatprep.mubr.bf16.mxu0 %v3935_v61  ;;  %4687 = vmatprep.subr.bf16.mxu0 %v12115_v50  ;;  %v14702_v61 = vpack.c.bf16 %v3932_v36, %v3928_v35  ;;  %v12169_v59 = vld [vmem:[%s15421_s15 + $0x1ac] ss:$16 sps:$4 sm:$0xff]   ;;  %v12167_v42 = vld [vmem:[%s15421_s15 + $0x1a8] ss:$16 sps:$4 sm:$0xff]   ;;  %v12236_v35 = vld [vmem:[#allocation17 + $0xa0] ss:$16 sps:$4 sm:$0xff]  }
 0x85e   :  { %4658 = vmatprep.subr.bf16.mxu1 %v12118_v52  ;;  %v12172_v40 = vld [vmem:[%s15421_s15 + $0x2cc] ss:$16 sps:$4 sm:$0xff]   ;;  %v12170_v55 = vld [vmem:[%s15421_s15 + $0x2c8] ss:$16 sps:$4 sm:$0xff]   ;;  %v12241_v36 = vld [vmem:[#allocation17 + $0x84] ss:$16 sps:$4 sm:$0xff]  }
 0x85f   :  { %v12175_v50 = vld [vmem:[%s15421_s15 + $0x18c] ss:$16 sps:$4 sm:$0xff]   ;;  %v12173_v52 = vld [vmem:[%s15421_s15 + $0x188] ss:$16 sps:$4 sm:$0xff]  }
 0x860   :  { %4688 = vmatpush1.bf16.msra.mxu0 %v12113_v62  ;;  %4659 = vmatpush2.bf16.msra.mxu1 %v12116_v63  ;;  %v12181_v62 = vld [vmem:[%s15421_s15 + $0x16c] ss:$16 sps:$4 sm:$0xff]   ;;  %v12209_v20 = vld [vmem:[%s15421_s15 + $0x3c8] ss:$16 sps:$4 sm:$0xff]  }
 0x861   :  { %4689 = vmatprep.subr.bf16.mxu0 %v12121_v38  ;;  %4660 = vmatprep.subr.bf16.mxu1 %v12124_v1  ;;  %v12184_v63 = vld [vmem:[%s15421_s15 + $0x28c] ss:$16 sps:$4 sm:$0xff]   ;;  %v12179_v38 = vld [vmem:[%s15421_s15 + $0x168] ss:$16 sps:$4 sm:$0xff]  }
 0x862   :  { %v12182_v1 = vld [vmem:[%s15421_s15 + $0x288] ss:$16 sps:$4 sm:$0xff]   ;;  %v12223_v27 = vld [vmem:[%s15421_s15 + $0x34c] ss:$16 sps:$4 sm:$0xff]  }
 0x863   :  { %v12218_v41 = vld [vmem:[%s15421_s15 + $0x368] ss:$16 sps:$4 sm:$0xff]  }
 0x864   :  { %4690 = vmatpush1.bf16.msra.mxu0 %v12119_v3  ;;  %4661 = vmatpush2.bf16.msra.mxu1 %v12122_v4  ;;  %v12190_v3 = vld [vmem:[%s15421_s15 + $0x26c] ss:$16 sps:$4 sm:$0xff]   ;;  %v12185_v4 = vld [vmem:[%s15421_s15 + $0x148] ss:$16 sps:$4 sm:$0xff]  }
 0x865   :  { %4691 = vmatprep.subr.bf16.mxu0 %v12127_v5  ;;  %4662 = vmatprep.subr.bf16.mxu1 %v12130_v6  ;;  %v12188_v5 = vld [vmem:[%s15421_s15 + $0x268] ss:$16 sps:$4 sm:$0xff]   ;;  %v12193_v6 = vld [vmem:[%s15421_s15 + $0x12c] ss:$16 sps:$4 sm:$0xff]  }
 0x866   :  { %v12227_v10 = vld [vmem:[%s15421_s15 + $0x308] ss:$16 sps:$4 sm:$0xff]  }
 0x868   :  { %4692 = vmatpush1.bf16.msra.mxu0 %v12125_v8  ;;  %4663 = vmatpush2.bf16.msra.mxu1 %v12128_v9  ;;  %v12196_v8 = vld [vmem:[%s15421_s15 + $0x24c] ss:$16 sps:$4 sm:$0xff]   ;;  %v12191_v9 = vld [vmem:[%s15421_s15 + $0x128] ss:$16 sps:$4 sm:$0xff]  }
 0x869   :  { %4693 = vmatprep.subr.bf16.mxu0 %v12133_v12  ;;  %4664 = vmatprep.subr.bf16.mxu1 %v12136_v7  ;;  %v12194_v12 = vld [vmem:[%s15421_s15 + $0x248] ss:$16 sps:$4 sm:$0xff]   ;;  %v12199_v7 = vld [vmem:[%s15421_s15 + $0x10c] ss:$16 sps:$4 sm:$0xff]  }
 0x86c   :  { %4694 = vmatpush1.bf16.msra.mxu0 %v12131_v13  ;;  %4665 = vmatpush2.bf16.msra.mxu1 %v12134_v11  ;;  %v12202_v13 = vld [vmem:[%s15421_s15 + $0x22c] ss:$16 sps:$4 sm:$0xff]   ;;  %v12197_v11 = vld [vmem:[%s15421_s15 + $0x108] ss:$16 sps:$4 sm:$0xff]  }
 0x86d   :  { %4695 = vmatprep.subr.bf16.mxu0 %v12139_v14  ;;  %4666 = vmatprep.subr.bf16.mxu1 %v12142_v15  ;;  %v12200_v14 = vld [vmem:[%s15421_s15 + $0x228] ss:$16 sps:$4 sm:$0xff]   ;;  %v12205_v15 = vld [vmem:[%s15421_s15 + $0x20c] ss:$16 sps:$4 sm:$0xff]  }
 0x870   :  { %4696 = vmatpush1.bf16.msra.mxu0 %v12137_v16  ;;  %4667 = vmatpush2.bf16.msra.mxu1 %v12140_v17  ;;  %v12203_v16 = vld [vmem:[%s15421_s15 + $0x208] ss:$16 sps:$4 sm:$0xff]   ;;  %v12208_v17 = vld [vmem:[%s15421_s15 + $0x3ec] ss:$16 sps:$4 sm:$0xff]  }
 0x871   :  { %4697 = vmatprep.subr.bf16.mxu0 %v12145_v18  ;;  %4668 = vmatprep.subr.bf16.mxu1 %v12148_v19  ;;  %v12206_v18 = vld [vmem:[%s15421_s15 + $0x3e8] ss:$16 sps:$4 sm:$0xff]   ;;  %v12211_v19 = vld [vmem:[%s15421_s15 + $0x3cc] ss:$16 sps:$4 sm:$0xff]  }
 0x874   :  { %4698 = vmatpush1.bf16.msra.mxu0 %v12143_v22  ;;  %4669 = vmatpush2.bf16.msra.mxu1 %v12146_v24  ;;  %v12212_v22 = vld [vmem:[%s15421_s15 + $0x3a8] ss:$16 sps:$4 sm:$0xff]   ;;  %v12217_v24 = vld [vmem:[%s15421_s15 + $0x38c] ss:$16 sps:$4 sm:$0xff]  }
 0x875   :  { %4699 = vmatprep.subr.bf16.mxu0 %v12151_v25  ;;  %4670 = vmatprep.subr.bf16.mxu1 %v12154_v26  ;;  %v12215_v25 = vld [vmem:[%s15421_s15 + $0x388] ss:$16 sps:$4 sm:$0xff]   ;;  %v12220_v26 = vld [vmem:[%s15421_s15 + $0x36c] ss:$16 sps:$4 sm:$0xff]  }
 0x878   :  { %4700 = vmatpush1.bf16.msra.mxu0 %v12149_v29  ;;  %4671 = vmatpush2.bf16.msra.mxu1 %v12152_v28  ;;  %v12221_v29 = vld [vmem:[%s15421_s15 + $0x348] ss:$16 sps:$4 sm:$0xff]   ;;  %v12226_v28 = vld [vmem:[%s15421_s15 + $0x32c] ss:$16 sps:$4 sm:$0xff]  }
 0x879   :  { %4701 = vmatprep.subr.bf16.mxu0 %v12157_v30  ;;  %4672 = vmatprep.subr.bf16.mxu1 %v12160_v0  ;;  %v12224_v30 = vld [vmem:[%s15421_s15 + $0x328] ss:$16 sps:$4 sm:$0xff]   ;;  %v12229_v0 = vld [vmem:[%s15421_s15 + $0x30c] ss:$16 sps:$4 sm:$0xff]  }
 0x87c   :  { %4702 = vmatpush2.bf16.msra.mxu0 %v12155_v32  ;;  %4673 = vmatpush2.bf16.msra.mxu1 %v12158_v34  ;;  %v12230_v32 = vld [vmem:[#allocation17 + $0xe0] ss:$16 sps:$4 sm:$0xff]   ;;  %v12235_v34 = vld [vmem:[#allocation17 + $0xc4] ss:$16 sps:$4 sm:$0xff]  }
 0x87d   :  { %4703 = vmatprep.subr.bf16.mxu0 %v12163_v60  ;;  %4728 = vmatprep.subr.bf16.mxu1 %v12166_v53  ;;  %v12233_v60 = vld [vmem:[#allocation17 + $0xc0] ss:$16 sps:$4 sm:$0xff]   ;;  %v12238_v53 = vld [vmem:[#allocation17 + $0xa4] ss:$16 sps:$4 sm:$0xff]  }
 0x87f   :  { %4675 = vmatmul.mubr.bf16.vlgmr.msra.gmra.mxu1 %v14702_v61 }
 0x880   :  { %4704 = vmatpush2.bf16.msra.mxu0 %v12161_v37  ;;  %4729 = vmatpush1.bf16.msra.mxu1 %v12164_v39  ;;  %v12239_v37 = vld [vmem:[#allocation17 + $0x80] ss:$16 sps:$4 sm:$0xff]   ;;  %v12244_v39 = vld [vmem:[#allocation17 + $0x64] ss:$16 sps:$4 sm:$0xff]  }
 0x881   :  { %4760 = vmatprep.mubr.bf16.mxu1 %v14586_v43  ;;  %4705 = vmatprep.subr.bf16.mxu0 %v12169_v59  ;;  %v12176_v43 = vld [vmem:[%s15421_s15 + $0x2a8] ss:$16 sps:$4 sm:$0xff]   ;;  %v12242_v59 = vld [vmem:[#allocation17 + $0x60] ss:$16 sps:$4 sm:$0xff]  }
 0x882   :  { %4730 = vmatprep.subr.bf16.mxu1 %v12172_v40  ;;  %v12245_v40 = vld [vmem:[#allocation17 + $0x40] ss:$16 sps:$4 sm:$0xff]  }
 0x884   :  { %4706 = vmatpush2.bf16.msra.mxu0 %v12167_v42  ;;  %4731 = vmatpush1.bf16.msra.mxu1 %v12170_v55  ;;  %v12250_v42 = vld [vmem:[#allocation17 + $0x24] ss:$16 sps:$4 sm:$0xff]   ;;  %v12248_v55 = vld [vmem:[#allocation17 + $0x20] ss:$16 sps:$4 sm:$0xff]  }
 0x885   :  { %4707 = vmatprep.subr.bf16.mxu0 %v12175_v50  ;;  %4732 = vmatprep.subr.bf16.mxu1 %v12178_v51  ;;  %v12253_v50 = vld [vmem:[#allocation17 + $0x4] ss:$16 sps:$4 sm:$0xff]   ;;  %v12251_v51 = vld [vmem:[#allocation17] ss:$16 sps:$4 sm:$0xff]  }
 0x888   :  { %4708 = vmatpush2.bf16.msra.mxu0 %v12173_v52  ;;  %4733 = vmatpush1.bf16.msra.mxu1 %v12176_v43  ;;  %v12256_v52 = vld [vmem:[#allocation17 + $0x1e4] ss:$16 sps:$4 sm:$0xff]   ;;  %v12254_v43 = vld [vmem:[#allocation17 + $0x1e0] ss:$16 sps:$4 sm:$0xff]  }
 0x889   :  { %4709 = vmatprep.subr.bf16.mxu0 %v12181_v62  ;;  %4734 = vmatprep.subr.bf16.mxu1 %v12184_v63  ;;  %v12259_v62 = vld [vmem:[#allocation17 + $0x1c4] ss:$16 sps:$4 sm:$0xff]   ;;  %v12257_v63 = vld [vmem:[#allocation17 + $0x1c0] ss:$16 sps:$4 sm:$0xff]  }
 0x88c   :  { %4710 = vmatpush2.bf16.msra.mxu0 %v12179_v38  ;;  %4735 = vmatpush1.bf16.msra.mxu1 %v12182_v1  ;;  %v12262_v38 = vld [vmem:[#allocation17 + $0x1a4] ss:$16 sps:$4 sm:$0xff]  }
 0x88d   :  { %4711 = vmatprep.subr.bf16.mxu0 %v12187_v2  ;;  %4736 = vmatprep.subr.bf16.mxu1 %v12190_v3  ;;  %v12260_v2 = vld [vmem:[#allocation17 + $0x1a0] ss:$16 sps:$4 sm:$0xff]   ;;  %v12265_v3 = vld [vmem:[#allocation17 + $0x184] ss:$16 sps:$4 sm:$0xff]  }
 0x890   :  { %4712 = vmatpush2.bf16.msra.mxu0 %v12185_v4  ;;  %4737 = vmatpush1.bf16.msra.mxu1 %v12188_v5  ;;  %v12263_v5 = vld [vmem:[#allocation17 + $0x180] ss:$16 sps:$4 sm:$0xff]  }
 0x891   :  { %4713 = vmatprep.subr.bf16.mxu0 %v12193_v6  ;;  %4738 = vmatprep.subr.bf16.mxu1 %v12196_v8  ;;  %v12268_v6 = vld [vmem:[#allocation17 + $0x164] ss:$16 sps:$4 sm:$0xff]  }
 0x894   :  { %4714 = vmatpush2.bf16.msra.mxu0 %v12191_v9  ;;  %4739 = vmatpush1.bf16.msra.mxu1 %v12194_v12  ;;  %v12266_v9 = vld [vmem:[#allocation17 + $0x160] ss:$16 sps:$4 sm:$0xff]   ;;  %v12271_v12 = vld [vmem:[#allocation17 + $0x144] ss:$16 sps:$4 sm:$0xff]  }
 0x895   :  { %4715 = vmatprep.subr.bf16.mxu0 %v12199_v7  ;;  %4740 = vmatprep.subr.bf16.mxu1 %v12202_v13  ;;  %v12269_v13 = vld [vmem:[#allocation17 + $0x140] ss:$16 sps:$4 sm:$0xff]  }
 0x898   :  { %4716 = vmatpush2.bf16.msra.mxu0 %v12197_v11  ;;  %4741 = vmatpush1.bf16.msra.mxu1 %v12200_v14  ;;  %v10492_v14 = vld [vmem:[%s15460_s28 + $0xd] ss:$0 sm:$0xff] }
 0x899   :  { %4742 = vmatprep.subr.bf16.mxu1 %v12205_v15  ;;  %5564 = vmatprep.subr.bf16.mxu0 %v12232_v56  ;;  %v12286_v56 = vld [vmem:[#allocation17 + $0x2c4] ss:$16 sps:$4 sm:$0xff]  }
 0x89b   :  { %4718 = vmatmul.mubr.bf16.vlgmr.msra.gmra.mxu0 %v14588_v46  ;;  %v12214_v46 = vld [vmem:[%s15421_s15 + $0x3ac] ss:$16 sps:$4 sm:$0xff]   ;;  %s13529_s15 = smov 18  }
 0x89c   :  { %4743 = vmatpush1.bf16.msra.mxu1 %v12203_v16  ;;  %5565 = vmatpush1.bf16.msra.mxu0 %v12230_v32  ;;  %v12272_v16 = vld [vmem:[#allocation17 + $0x120] ss:$16 sps:$4 sm:$0xff]  }
 0x89d   :  { %4744 = vmatprep.subr.bf16.mxu1 %v12208_v17  ;;  %5566 = vmatprep.subr.bf16.mxu0 %v12235_v34  ;;  %v12274_v17 = vld [vmem:[#allocation17 + $0x124] ss:$16 sps:$4 sm:$0xff]   ;;  %v12284_v32 = vld [vmem:[#allocation17 + $0x2c0] ss:$16 sps:$4 sm:$0xff]  }
 0x89e   :  { %v12292_v34 = vld [vmem:[#allocation17 + $0x2a4] ss:$16 sps:$4 sm:$0xff]  }
 0x8a0   :  { %4745 = vmatpush2.bf16.msra.mxu1 %v12206_v18  ;;  %5567 = vmatpush1.bf16.msra.mxu0 %v12233_v60  ;;  %v12290_v60 = vld [vmem:[#allocation17 + $0x2a0] ss:$16 sps:$4 sm:$0xff]  }
 0x8a1   :  { %4746 = vmatprep.subr.bf16.mxu1 %v12211_v19  ;;  %5568 = vmatprep.subr.bf16.mxu0 %v12238_v53  ;;  %v12298_v53 = vld [vmem:[#allocation17 + $0x284] ss:$16 sps:$4 sm:$0xff]  }
 0x8a4   :  { %4747 = vmatpush2.bf16.msra.mxu1 %v12209_v20  ;;  %5569 = vmatpush1.bf16.msra.mxu0 %v12236_v35  ;;  %v12296_v35 = vld [vmem:[#allocation17 + $0x280] ss:$16 sps:$4 sm:$0xff]  }
 0x8a5   :  { %4748 = vmatprep.subr.bf16.mxu1 %v12214_v46  ;;  %5570 = vmatprep.subr.bf16.mxu0 %v12241_v36  ;;  %v12304_v36 = vld [vmem:[#allocation17 + $0x264] ss:$16 sps:$4 sm:$0xff]  }
 0x8a8   :  { %4749 = vmatpush2.bf16.msra.mxu1 %v12212_v22  ;;  %5571 = vmatpush1.bf16.msra.mxu0 %v12239_v37  ;;  %v12277_v22 = vld [vmem:[#allocation17 + $0x104] ss:$16 sps:$4 sm:$0xff]   ;;  %v12302_v37 = vld [vmem:[#allocation17 + $0x260] ss:$16 sps:$4 sm:$0xff]  }
 0x8a9   :  { %4750 = vmatprep.subr.bf16.mxu1 %v12217_v24  ;;  %5572 = vmatprep.subr.bf16.mxu0 %v12244_v39  ;;  %v12310_v39 = vld [vmem:[#allocation17 + $0x244] ss:$16 sps:$4 sm:$0xff]  }
 0x8ac   :  { %4751 = vmatpush2.bf16.msra.mxu1 %v12215_v25  ;;  %5573 = vmatpush1.bf16.msra.mxu0 %v12242_v59  ;;  %v12275_v25 = vld [vmem:[#allocation17 + $0x100] ss:$16 sps:$4 sm:$0xff]  }
 0x8ad   :  { %4752 = vmatprep.subr.bf16.mxu1 %v12220_v26  ;;  %v12308_v59 = vld [vmem:[#allocation17 + $0x240] ss:$16 sps:$4 sm:$0xff]  }
 0x8b0   :  { %4753 = vmatpush2.bf16.msra.mxu1 %v12218_v41 }
 0x8b1   :  { %4754 = vmatprep.subr.bf16.mxu1 %v12223_v27 }
 0x8b4   :  { %4755 = vmatpush2.bf16.msra.mxu1 %v12221_v29 }
 0x8b5   :  { %4756 = vmatprep.subr.bf16.mxu1 %v12226_v28 }
 0x8b8   :  { %4757 = vmatpush2.bf16.msra.mxu1 %v12224_v30  ;;  %v12280_v30 = vld [vmem:[#allocation17 + $0x2e4] ss:$16 sps:$4 sm:$0xff]  }
 0x8b9   :  { %4758 = vmatprep.subr.bf16.mxu1 %v12229_v0  ;;  %v12283_v0 = vld [vmem:[#allocation17 + $0xec] ss:$16 sps:$4 sm:$0xff]  }
 0x8bc   :  { %4759 = vmatpush2.bf16.msra.mxu1 %v12227_v10  ;;  %v12278_v10 = vld [vmem:[#allocation17 + $0x2e0] ss:$16 sps:$4 sm:$0xff]  }
 0x8bd   :  { %5607 = vmatprep.subr.bf16.mxu1 %v12280_v30 }
 0x8bf   :  { %4761 = vmatmul.mubr.bf16.vlgmr.msra.gmra.mxu1 %v14702_v61  ;;  %v12247_v61 = vld [vmem:[#allocation17 + $0x44] ss:$16 sps:$4 sm:$0xff]  }
 0x8c0   :  { %5574 = vmatprep.subr.bf16.mxu0 %v12247_v61  ;;  %5608 = vmatpush1.bf16.msra.mxu1 %v12278_v10  ;;  %v12316_v61 = vld [vmem:[#allocation17 + $0x224] ss:$16 sps:$4 sm:$0xff]   ;;  %v12376_v10 = vld [vmem:[#allocation17 + $0x2ec] ss:$16 sps:$4 sm:$0xff]  }
 0x8c1   :  { %5575 = vmatpush1.bf16.msra.mxu0 %v12245_v40  ;;  %5609 = vmatprep.subr.bf16.mxu1 %v12286_v56  ;;  %v12314_v40 = vld [vmem:[#allocation17 + $0x220] ss:$16 sps:$4 sm:$0xff]  }
 0x8c2   :  { %5576 = vmatprep.subr.bf16.mxu0 %v12250_v42  ;;  %v12322_v42 = vld [vmem:[#allocation17 + $0x204] ss:$16 sps:$4 sm:$0xff]  }
 0x8c4   :  { %5610 = vmatpush1.bf16.msra.mxu1 %v12284_v32 }
 0x8c5   :  { %5577 = vmatpush1.bf16.msra.mxu0 %v12248_v55  ;;  %5611 = vmatprep.subr.bf16.mxu1 %v12292_v34  ;;  %v12320_v55 = vld [vmem:[#allocation17 + $0x200] ss:$16 sps:$4 sm:$0xff]  }
 0x8c6   :  { %5578 = vmatprep.subr.bf16.mxu0 %v12253_v50  ;;  %v12328_v50 = vld [vmem:[#allocation17 + $0x3e4] ss:$16 sps:$4 sm:$0xff]  }
 0x8c8   :  { %5612 = vmatpush1.bf16.msra.mxu1 %v12290_v60 }
 0x8c9   :  { %5579 = vmatpush1.bf16.msra.mxu0 %v12251_v51  ;;  %5613 = vmatprep.subr.bf16.mxu1 %v12298_v53  ;;  %v12326_v51 = vld [vmem:[#allocation17 + $0x3e0] ss:$16 sps:$4 sm:$0xff]  }
 0x8ca   :  { %5580 = vmatprep.subr.bf16.mxu0 %v12256_v52  ;;  %v12334_v52 = vld [vmem:[#allocation17 + $0x3c4] ss:$16 sps:$4 sm:$0xff]  }
 0x8cc   :  { %5614 = vmatpush1.bf16.msra.mxu1 %v12296_v35 }
 0x8cd   :  { %5581 = vmatpush2.bf16.msra.mxu0 %v12254_v43  ;;  %5615 = vmatprep.subr.bf16.mxu1 %v12304_v36  ;;  %v12332_v43 = vld [vmem:[#allocation17 + $0x3c0] ss:$16 sps:$4 sm:$0xff]  }
 0x8ce   :  { %5582 = vmatprep.subr.bf16.mxu0 %v12259_v62  ;;  %v12340_v62 = vld [vmem:[#allocation17 + $0x3a4] ss:$16 sps:$4 sm:$0xff]  }
 0x8d0   :  { %5616 = vmatpush1.bf16.msra.mxu1 %v12302_v37 }
 0x8d1   :  { %5583 = vmatpush2.bf16.msra.mxu0 %v12257_v63  ;;  %5617 = vmatprep.subr.bf16.mxu1 %v12310_v39  ;;  %v12338_v63 = vld [vmem:[#allocation17 + $0x3a0] ss:$16 sps:$4 sm:$0xff]  }
 0x8d2   :  { %5584 = vmatprep.subr.bf16.mxu0 %v12262_v38  ;;  %v12346_v38 = vld [vmem:[#allocation17 + $0x384] ss:$16 sps:$4 sm:$0xff]  }
 0x8d4   :  { %5618 = vmatpush1.bf16.msra.mxu1 %v12308_v59 }
 0x8d5   :  { %5585 = vmatpush2.bf16.msra.mxu0 %v12260_v2  ;;  %5619 = vmatprep.subr.bf16.mxu1 %v12316_v61  ;;  %v12344_v2 = vld [vmem:[#allocation17 + $0x380] ss:$16 sps:$4 sm:$0xff]  }
 0x8d6   :  { %5586 = vmatprep.subr.bf16.mxu0 %v12265_v3  ;;  %v12352_v3 = vld [vmem:[#allocation17 + $0x364] ss:$16 sps:$4 sm:$0xff]  }
 0x8d8   :  { %5620 = vmatpush1.bf16.msra.mxu1 %v12314_v40 }
 0x8d9   :  { %5587 = vmatpush2.bf16.msra.mxu0 %v12263_v5  ;;  %5621 = vmatprep.subr.bf16.mxu1 %v12322_v42  ;;  %v12350_v5 = vld [vmem:[#allocation17 + $0x360] ss:$16 sps:$4 sm:$0xff]  }
 0x8da   :  { %5588 = vmatprep.subr.bf16.mxu0 %v12268_v6  ;;  %v14840_v6 = vld [vmem:[%s15460_s28 + $0xe] sm:$0xf] }
 0x8dc   :  { %5622 = vmatpush1.bf16.msra.mxu1 %v12320_v55 }
 0x8dd   :  { %5589 = vmatpush2.bf16.msra.mxu0 %v12266_v9  ;;  %5623 = vmatprep.subr.bf16.mxu1 %v12328_v50 }
 0x8de   :  { %5590 = vmatprep.subr.bf16.mxu0 %v12271_v12  ;;  %v12356_v12 = vld [vmem:[#allocation17 + $0x340] ss:$16 sps:$4 sm:$0xff]  }
 0x8df   :  { %v11395_v1 = vpop.f32.mrf.mxu1 }
 0x8e0   :  { %5624 = vmatpush2.bf16.msra.mxu1 %v12326_v51 }
 0x8e1   :  { %v11396_v4 = vpop.f32.mrf.mxu1  ;;  %5591 = vmatpush2.bf16.msra.mxu0 %v12269_v13  ;;  %5625 = vmatprep.subr.bf16.mxu1 %v12334_v52 }
 0x8e2   :  { %v11397_v11 = vadd.f32 %v11396_v4, %v11395_v1  ;;  %5592 = vmatprep.subr.bf16.mxu0 %v12274_v17 }
 0x8e3   :  { %v11398_v8 = vpop.f32.mrf.mxu1 }
 0x8e4   :  { %v3424_v19 = vadd.f32 %v11397_v11, %v10492_v14  ;;  %5626 = vmatpush2.bf16.msra.mxu1 %v12332_v43  ;;  %v12362_v11 = vld [vmem:[#allocation17 + $0x320] ss:$16 sps:$4 sm:$0xff]  }
 0x8e5   :  { %v11399_v7 = vpop.f32.mrf.mxu1  ;;  %5593 = vmatpush2.bf16.msra.mxu0 %v12272_v16  ;;  %5627 = vmatprep.subr.bf16.mxu1 %v12340_v62 }
 0x8e6   :  { %v11400_v20 = vadd.f32 %v11399_v7, %v11398_v8  ;;  %5594 = vmatprep.subr.bf16.mxu0 %v12277_v22  ;;  %v12358_v8 = vld [vmem:[#allocation17 + $0x344] ss:$16 sps:$4 sm:$0xff]   ;;  %v3942_v7 = vrot.slane %v14840_v6, %v14013_v31  ;;  %v12368_v22 = vld [vmem:[#allocation17 + $0x300] ss:$16 sps:$4 sm:$0xff]  }
 0x8e8   :  { %v3427_v27 = vadd.f32 %v11400_v20, %v10492_v14  ;;  %5628 = vmatpush2.bf16.msra.mxu1 %v12338_v63  ;;  %v12364_v14 = vld [vmem:[#allocation17 + $0x324] ss:$16 sps:$4 sm:$0xff]  }
 0x8e9   :  { %5595 = vmatpush2.bf16.msra.mxu0 %v12275_v25  ;;  %5629 = vmatprep.subr.bf16.mxu1 %v12346_v38 }
 0x8ea   :  { %5650 = vmatprep.subr.bf16.mxu0 %v12283_v0 }
 0x8ec   :  { %5630 = vmatpush2.bf16.msra.mxu1 %v12344_v2 }
 0x8ed   :  { %5631 = vmatprep.subr.bf16.mxu1 %v12352_v3 }
 0x8f0   :  { %5632 = vmatpush2.bf16.msra.mxu1 %v12350_v5 }
 0x8f1   :  { %5633 = vmatprep.subr.bf16.mxu1 %v12358_v8 }
 0x8f4   :  { %5634 = vmatpush2.bf16.msra.mxu1 %v12356_v12 }
 0x8f5   :  { %5635 = vmatprep.subr.bf16.mxu1 %v12364_v14 }
 0x8f8   :  { %5636 = vmatpush2.bf16.msra.mxu1 %v12362_v11 }
 0x8ff   :  { %v11417_v15 = vpop.f32.mrf.mxu1 }
 0x901   :  { %v11418_v18 = vpop.f32.mrf.mxu1 }
 0x902   :  { %v11419_v46 = vadd.f32 %v11418_v18, %v11417_v15  ;;  %v3946_v15 = vrot.slane %v14840_v6, %v14019_v33  ;;  %v12370_v18 = vld [vmem:[#allocation17 + $0x304] ss:$16 sps:$4 sm:$0xff]  }
 0x903   :  { %v11420_v24 = vpop.f32.mrf.mxu1  ;;  %5637 = vmatprep.subr.bf16.mxu1 %v12370_v18 }
 0x904   :  { %v3465_v26 = vadd.f32 %v11419_v46, %v3424_v19  ;;  %5638 = vmatpush2.bf16.msra.mxu1 %v12368_v22 }
 0x905   :  { %v11421_v41 = vpop.f32.mrf.mxu1  ;;  %5693 = vmatprep.subr.bf16.mxu1 %v12376_v10 }
 0x906   :  { %v11422_v29 = vadd.f32 %v11421_v41, %v11420_v24  ;;  %3473 = vrot.lane.b32.xlu1 %v3465_v26, %s13528_s29 }
 0x908   :  { %v3468_v28 = vadd.f32 %v11422_v29, %v3427_v27 }
 0x90a   :  { %3475 = vrot.lane.b32.xlu1 %v3468_v28, %s13528_s29 }
 0x91b   :  { %v4633_v1 = vpop.f32.mrf.mxu0 }
 0x91c   :  { %v4634_v20 = vadd.f32 %v4633_v1, %v3942_v7 }
 0x91d   :  { %v4635_v4 = vpop.f32.mrf.mxu0 }
 0x91e   :  { %v4636_v26 = vadd.f32 %v4635_v4, %v3946_v15 }
 0x91f   :  { %v4637_v9 = vpop.f32.mrf.mxu0 }
 0x920   :  { %v4638_v19 = vadd.f32 %v4637_v9, %v3942_v7 }
 0x921   :  { %v4639_v16 = vpop.f32.mrf.mxu0 }
 0x922   :  { %v4640_v24 = vadd.f32 %v4639_v16, %v3946_v15 }
 0x93f   :  { %v4676_v13 = vpop.f32.mrf.mxu1 }
 0x940   :  { %v4677_v41 = vadd.f32 %v4676_v13, %v4634_v20 }
 0x941   :  { %v4678_v17 = vpop.f32.mrf.mxu1 }
 0x942   :  { %v4679_v30 = vadd.f32 %v4678_v17, %v4636_v26 }
 0x943   :  { %v4680_v46 = vpop.f32.mrf.mxu1 }
 0x944   :  { %v4681_v25 = vadd.f32 %v4680_v46, %v4638_v19 }
 0x945   :  { %v4682_v27 = vpop.f32.mrf.mxu1 }
 0x946   :  { %v4771_v29 = vsel %vm670_vm5, %v4681_v25, 0.0  ;;  %v4683_v28 = vadd.f32 %v4682_v27, %v4640_v24 }
 0x947   :  { %v4772_v0 = vadd.f32 %v4771_v29, %v4677_v41 }
 0x948   :  { %v4779_v56 = vsel %vm670_vm5, %v4683_v28, 0.0 }
 0x949   :  { %v4773_v32 = vrot.slane %v4772_v0, 4  ;;  %v4780_v34 = vadd.f32 %v4779_v56, %v4679_v30 }
 0x94b   :  { %v4774_v60 = vadd.f32 %v4773_v32, %v4772_v0  ;;  %v4781_v53 = vrot.slane %v4780_v34, 4 }
 0x94d   :  { %v4775_v35 = vrot.slane %v4774_v60, 2  ;;  %v4782_v36 = vadd.f32 %v4781_v53, %v4780_v34 }
 0x94f   :  { %v4776_v37 = vadd.f32 %v4775_v35, %v4774_v60  ;;  %v4783_v39 = vrot.slane %v4782_v36, 2  ;;  %v3950_v35 = vrot.slane %v14840_v6, %v14392_v21 }
 0x951   :  { %v4777_v59 = vrot.slane %v4776_v37, 1  ;;  %v4784_v61 = vadd.f32 %v4783_v39, %v4782_v36 }
 0x953   :  { %v4778_v40 = vadd.f32 %v4777_v59, %v4776_v37  ;;  %v4785_v42 = vrot.slane %v4784_v61, 1  ;;  %v3954_v59 = vrot.slane %v14840_v6, %v14398_v23  ;;  %v12289_v6 = vld [vmem:[#allocation17 + $0xcc] ss:$16 sps:$4 sm:$0xff]  }
 0x955   :  { %v4803_v55 = vmul.f32 0.1, %v4778_v40  ;;  %v4786_v50 = vadd.f32 %v4785_v42, %v4784_v61 }
 0x957   :  { %v4807_v51 = vsub.f32 %v4677_v41, %v4803_v55  ;;  %v4811_v52 = vsub.f32 %v4681_v25, %v4803_v55  ;;  %v4804_v43 = vmul.f32 0.1, %v4786_v50 }
 0x959   :  { %v4815_v62 = vmul.f32 %v4807_v51, %v4807_v51  ;;  %v4819_v63 = vmul.f32 %v4811_v52, %v4811_v52  ;;  %v4808_v38 = vsub.f32 %v4679_v30, %v4804_v43  ;;  %v4812_v1 = vsub.f32 %v4683_v28, %v4804_v43 }
 0x95b   :  { %v4823_v2 = vsel %vm670_vm5, %v4819_v63, 0.0  ;;  %v4816_v3 = vmul.f32 %v4808_v38, %v4808_v38  ;;  %v4820_v4 = vmul.f32 %v4812_v1, %v4812_v1  ;;  %v4719_v41 = vpop.f32.mrf.mxu0 }
 0x95c   :  { %v4824_v5 = vadd.f32 %v4823_v2, %v4815_v62  ;;  %v4720_v43 = vadd.f32 %v4719_v41, %v3950_v35 }
 0x95d   :  { %v4831_v8 = vsel %vm670_vm5, %v4820_v4, 0.0  ;;  %v4721_v29 = vpop.f32.mrf.mxu0 }
 0x95e   :  { %v4825_v9 = vrot.slane %v4824_v5, 4  ;;  %v4832_v12 = vadd.f32 %v4831_v8, %v4816_v3  ;;  %v12281_v3 = vld [vmem:[#allocation17 + $0xe8] ss:$16 sps:$4 sm:$0xff]   ;;  %v4722_v4 = vadd.f32 %v4721_v29, %v3954_v59 }
 0x95f   :  { %v4723_v32 = vpop.f32.mrf.mxu0 }
 0x960   :  { %v4826_v7 = vadd.f32 %v4825_v9, %v4824_v5  ;;  %v4833_v13 = vrot.slane %v4832_v12, 4  ;;  %v4724_v55 = vadd.f32 %v4723_v32, %v3950_v35 }
 0x961   :  { %v4725_v61 = vpop.f32.mrf.mxu0 }
 0x962   :  { %v4827_v11 = vrot.slane %v4826_v7, 2  ;;  %v4834_v14 = vadd.f32 %v4833_v13, %v4832_v12 }
 0x964   :  { %v4828_v15 = vadd.f32 %v4827_v11, %v4826_v7  ;;  %v4835_v16 = vrot.slane %v4834_v14, 2 }
 0x966   :  { %v4829_v17 = vrot.slane %v4828_v15, 1  ;;  %v4836_v18 = vadd.f32 %v4835_v16, %v4834_v14 }
 0x968   :  { %v4830_v19 = vadd.f32 %v4829_v17, %v4828_v15  ;;  %v4837_v20 = vrot.slane %v4836_v18, 1  ;;  %v12287_v15 = vld [vmem:[#allocation17 + $0xc8] ss:$16 sps:$4 sm:$0xff]  }
 0x96a   :  { %v4855_v46 = vmul.f32 0.1, %v4830_v19  ;;  %v4838_v22 = vadd.f32 %v4837_v20, %v4836_v18  ;;  %v12295_v18 = vld [vmem:[#allocation17 + $0xac] ss:$16 sps:$4 sm:$0xff]  }
 0x96c   :  { %v4859_v24 = vadd.f32 1e-05, %v4855_v46  ;;  %v4856_v25 = vmul.f32 0.1, %v4838_v22  ;;  %v12293_v46 = vld [vmem:[#allocation17 + $0xa8] ss:$16 sps:$4 sm:$0xff]  }
 0x96e   :  { %13150 = vrsqrt.f32 %v4859_v24  ;;  %v4860_v26 = vadd.f32 1e-05, %v4856_v25  ;;  %v12301_v25 = vld [vmem:[#allocation17 + $0x8c] ss:$16 sps:$4 sm:$0xff]  }
 0x970   :  { %13152 = vrsqrt.f32 %v4860_v26 }
 0x978   :  { %v3474_v27 = vpop.permute.xlu1 %3473 }
 0x979   :  { %3480 = vst.msk [vmem:[#allocation26] sm:$0xff] %vm3479_vm9, %v3474_v27  ;;  %v12299_v27 = vld [vmem:[#allocation17 + $0x88] ss:$16 sps:$4 sm:$0xff]  }
 0x97b   :  { %v13151_v28 = vpop.eup %13150 }
 0x97c   :  { %v4867_v30 = vmul.f32 %v13151_v28, %v4807_v51  ;;  %v4871_v0 = vmul.f32 %v13151_v28, %v4811_v52  ;;  %v3476_v10 = vpop.permute.xlu1 %3475 }
 0x97d   :  { %v13153_v56 = vpop.eup %13152  ;;  %3482 = vst.msk [vmem:[#allocation26 + $0x8] sm:$0x3] %vm3481_vm10, %v3476_v10 }
 0x97e   :  { %v4887_v34 = vmul.f32 0.2, %v4871_v0  ;;  %v4868_v60 = vmul.f32 %v13153_v56, %v4808_v38  ;;  %v4872_v53 = vmul.f32 %v13153_v56, %v4812_v1  ;;  %vm4879_vm11 = vcmp.ge.f32.partialorder %v4871_v0, 0.0  ;;  %v12305_v56 = vld [vmem:[#allocation17 + $0x68] ss:$16 sps:$4 sm:$0xff]  }
 0x97f   :  { %v4762_v36 = vpop.f32.mrf.mxu1  ;;  %vm4875_vm12 = vcmp.ge.f32.partialorder %v4867_v30, 0.0  ;;  %v4883_v37 = vmul.f32 0.2, %v4867_v30  ;;  %v4726_v38 = vadd.f32 %v4725_v61, %v3954_v59 }
 0x980   :  { %v4888_v39 = vmul.f32 0.2, %v4872_v53  ;;  %vm4876_vm13 = vcmp.ge.f32.partialorder %v4868_v60, 0.0  ;;  %vm4880_vm14 = vcmp.ge.f32.partialorder %v4872_v53, 0.0  ;;  %v4884_v42 = vmul.f32 0.2, %v4868_v60 }
 0x981   :  { %v4764_v40 = vpop.f32.mrf.mxu1  ;;  %v4891_v51 = vsel %vm4875_vm12, %v4867_v30, %v4883_v37  ;;  %v4895_v52 = vsel %vm4879_vm11, %v4871_v0, %v4887_v34  ;;  %v4763_v5 = vadd.f32 %v4762_v36, %v4720_v43  ;;  %v12307_v30 = vld [vmem:[#allocation17 + $0x6c] ss:$16 sps:$4 sm:$0xff]   ;;  %v12311_v37 = vld [vmem:[#allocation17 + $0x48] ss:$16 sps:$4 sm:$0xff]   ;;  %vm6036_vm12 = vcmask 195728  }
 0x982   :  { %v4896_v50 = vsel %vm4880_vm14, %v4872_v53, %v4888_v39  ;;  %v4892_v63 = vsel %vm4876_vm13, %v4868_v60, %v4884_v42  ;;  %v14854_v9 = vpack.c.bf16 %v4895_v52, %v4891_v51  ;;  %v4765_v13 = vadd.f32 %v4764_v40, %v4722_v4  ;;  %v12313_v60 = vld [vmem:[#allocation17 + $0x4c] ss:$16 sps:$4 sm:$0xff]   ;;  %v12317_v43 = vld [vmem:[#allocation17 + $0x28] ss:$16 sps:$4 sm:$0xff]  }
 0x983   :  { %v4766_v62 = vpop.f32.mrf.mxu1  ;;  %v4900_v2 = vpack.c.bf16 %v4896_v50, %v4892_v63  ;;  %v12319_v42 = vld [vmem:[#allocation17 + $0x2c] ss:$16 sps:$4 sm:$0xff]   ;;  %v12323_v4 = vld [vmem:[#allocation17 + $0x8] ss:$16 sps:$4 sm:$0xff]   ;;  %vm6038_vm13 = vcmask 189584  }
 0x984   :  { %v4767_v1 = vadd.f32 %v4766_v62, %v4724_v55  ;;  %v12325_v63 = vld [vmem:[#allocation17 + $0xc] ss:$16 sps:$4 sm:$0xff]  }
 0x985   :  { %v4768_v8 = vpop.f32.mrf.mxu1  ;;  %5596 = vmatprep.mubr.bf16.mxu0 %v4900_v2 }
 0x986   :  { %v4787_v12 = vsel %vm670_vm5, %v4767_v1, 0.0  ;;  %v4769_v7 = vadd.f32 %v4768_v8, %v4726_v38  ;;  %5597 = vmatmul.mubr.bf16.vlgmr.msra.gmra.mxu0 %v14854_v9 }
 0x987   :  { %v4788_v11 = vadd.f32 %v4787_v12, %v4763_v5  ;;  %5651 = vmatpush1.bf16.msra.mxu0 %v12281_v3  ;;  %5682 = vmatprep.mubr.bf16.mxu0 %v4900_v2 }
 0x988   :  { %v4795_v14 = vsel %vm670_vm5, %v4769_v7, 0.0  ;;  %5652 = vmatprep.subr.bf16.mxu0 %v12289_v6 }
 0x989   :  { %v4789_v16 = vrot.slane %v4788_v11, 4  ;;  %v4796_v17 = vadd.f32 %v4795_v14, %v4765_v13 }
 0x98b   :  { %v4790_v19 = vadd.f32 %v4789_v16, %v4788_v11  ;;  %v4797_v20 = vrot.slane %v4796_v17, 4  ;;  %5653 = vmatpush1.bf16.msra.mxu0 %v12287_v15  ;;  %v12337_v11 = vld [vmem:[#allocation17 + $0x1cc] ss:$16 sps:$4 sm:$0xff]  }
 0x98c   :  { %5654 = vmatprep.subr.bf16.mxu0 %v12295_v18  ;;  %v12335_v18 = vld [vmem:[#allocation17 + $0x1c8] ss:$16 sps:$4 sm:$0xff]  }
 0x98d   :  { %v4791_v22 = vrot.slane %v4790_v19, 2  ;;  %v4798_v24 = vadd.f32 %v4797_v20, %v4796_v17 }
 0x98f   :  { %v4792_v26 = vadd.f32 %v4791_v22, %v4790_v19  ;;  %v4799_v41 = vrot.slane %v4798_v24, 2  ;;  %5655 = vmatpush1.bf16.msra.mxu0 %v12293_v46  ;;  %v12343_v19 = vld [vmem:[#allocation17 + $0x1ac] ss:$16 sps:$4 sm:$0xff]  }
 0x990   :  { %5656 = vmatprep.subr.bf16.mxu0 %v12301_v25  ;;  %v12341_v25 = vld [vmem:[#allocation17 + $0x1a8] ss:$16 sps:$4 sm:$0xff]  }
 0x991   :  { %v4793_v29 = vrot.slane %v4792_v26, 1  ;;  %v4800_v28 = vadd.f32 %v4799_v41, %v4798_v24 }
 0x993   :  { %v4794_v0 = vadd.f32 %v4793_v29, %v4792_v26  ;;  %v4801_v10 = vrot.slane %v4800_v28, 1  ;;  %5657 = vmatpush1.bf16.msra.mxu0 %v12299_v27  ;;  %v12349_v26 = vld [vmem:[#allocation17 + $0x18c] ss:$16 sps:$4 sm:$0xff]   ;;  %v12347_v27 = vld [vmem:[#allocation17 + $0x188] ss:$16 sps:$4 sm:$0xff]  }
 0x994   :  { %5658 = vmatprep.subr.bf16.mxu0 %v12307_v30  ;;  %v12355_v29 = vld [vmem:[#allocation17 + $0x16c] ss:$16 sps:$4 sm:$0xff]  }
 0x995   :  { %v4805_v32 = vmul.f32 0.1, %v4794_v0  ;;  %v4802_v34 = vadd.f32 %v4801_v10, %v4800_v28  ;;  %v12353_v28 = vld [vmem:[#allocation17 + $0x168] ss:$16 sps:$4 sm:$0xff]   ;;  %v12361_v30 = vld [vmem:[#allocation17 + $0x14c] ss:$16 sps:$4 sm:$0xff]  }
 0x996   :  { %v12359_v0 = vld [vmem:[#allocation17 + $0x148] ss:$16 sps:$4 sm:$0xff]   ;;  %v12367_v10 = vld [vmem:[#allocation17 + $0x12c] ss:$16 sps:$4 sm:$0xff]  }
 0x997   :  { %v14859_v53 = vsub.f32 %v4763_v5, %v4805_v32  ;;  %v14861_v35 = vsub.f32 %v4767_v1, %v4805_v32  ;;  %v4806_v36 = vmul.f32 0.1, %v4802_v34  ;;  %5659 = vmatpush1.bf16.msra.mxu0 %v12305_v56  ;;  %v12331_v5 = vld [vmem:[#allocation17 + $0x1ec] ss:$16 sps:$4 sm:$0xff]  }
 0x998   :  { %5660 = vmatprep.subr.bf16.mxu0 %v12313_v60  ;;  %v12365_v60 = vld [vmem:[#allocation17 + $0x128] ss:$16 sps:$4 sm:$0xff]  }
 0x999   :  { %v4817_v39 = vmul.f32 %v14859_v53, %v14859_v53  ;;  %v4821_v59 = vmul.f32 %v14861_v35, %v14861_v35  ;;  %v14867_v61 = vsub.f32 %v4765_v13, %v4806_v36  ;;  %v14869_v40 = vsub.f32 %v4769_v7, %v4806_v36  ;;  %v12329_v13 = vld [vmem:[#allocation17 + $0x1e8] ss:$16 sps:$4 sm:$0xff]  }
 0x99b   :  { %v4839_v55 = vsel %vm670_vm5, %v4821_v59, 0.0  ;;  %v4818_v50 = vmul.f32 %v14867_v61, %v14867_v61  ;;  %v4822_v51 = vmul.f32 %v14869_v40, %v14869_v40  ;;  %5661 = vmatpush1.bf16.msra.mxu0 %v12311_v37  ;;  %v12373_v37 = vld [vmem:[#allocation17 + $0x10c] ss:$16 sps:$4 sm:$0xff]  }
 0x99c   :  { %v4840_v52 = vadd.f32 %v4839_v55, %v4817_v39  ;;  %5662 = vmatprep.subr.bf16.mxu0 %v12319_v42  ;;  %v12371_v55 = vld [vmem:[#allocation17 + $0x108] ss:$16 sps:$4 sm:$0xff]  }
 0x99d   :  { %v4847_v62 = vsel %vm670_vm5, %v4822_v51, 0.0 }
 0x99e   :  { %v4841_v38 = vrot.slane %v4840_v52, 4  ;;  %v4848_v1 = vadd.f32 %v4847_v62, %v4818_v50 }
 0x99f   :  { %5663 = vmatpush1.bf16.msra.mxu0 %v12317_v43 }
 0x9a0   :  { %v4842_v2 = vadd.f32 %v4841_v38, %v4840_v52  ;;  %v4849_v3 = vrot.slane %v4848_v1, 4  ;;  %5664 = vmatprep.subr.bf16.mxu0 %v12325_v63  ;;  %v12374_v38 = vld [vmem:[#allocation17 + $0x2e8] ss:$16 sps:$4 sm:$0xff]  }
 0x9a2   :  { %v4843_v8 = vrot.slane %v4842_v2, 2  ;;  %v4850_v6 = vadd.f32 %v4849_v3, %v4848_v1  ;;  %v12380_v3 = vld [vmem:[#allocation17 + $0x2a8] ss:$16 sps:$4 sm:$0xff]  }
 0x9a3   :  { %5665 = vmatpush1.bf16.msra.mxu0 %v12323_v4  ;;  %v12385_v4 = vld [vmem:[#allocation17 + $0x28c] ss:$16 sps:$4 sm:$0xff]  }
 0x9a4   :  { %v4844_v12 = vadd.f32 %v4843_v8, %v4842_v2  ;;  %v4851_v7 = vrot.slane %v4850_v6, 2  ;;  %5666 = vmatprep.subr.bf16.mxu0 %v12331_v5  ;;  %v12382_v2 = vld [vmem:[#allocation17 + $0x2ac] ss:$16 sps:$4 sm:$0xff]  }
 0x9a5   :  { %v12422_v5 = vld [vmem:[%s15423_s17 + $0x78] sm:$0xff]  }
 0x9a6   :  { %v4845_v14 = vrot.slane %v4844_v12, 1  ;;  %v4852_v15 = vadd.f32 %v4851_v7, %v4850_v6  ;;  %v12423_v8 = vld [vmem:[%s15423_s17 + $0x38] sm:$0xff]   ;;  %v12425_v7 = vld [vmem:[%s15423_s17 + $0x30] sm:$0xff]  }
 0x9a7   :  { %5667 = vmatpush2.bf16.msra.mxu0 %v12329_v13  ;;  %v12383_v6 = vld [vmem:[#allocation17 + $0x288] ss:$16 sps:$4 sm:$0xff]  }
 0x9a8   :  { %v4846_v16 = vadd.f32 %v4845_v14, %v4844_v12  ;;  %v4853_v17 = vrot.slane %v4852_v15, 1  ;;  %5668 = vmatprep.subr.bf16.mxu0 %v12337_v11  ;;  %v12388_v12 = vld [vmem:[#allocation17 + $0x26c] ss:$16 sps:$4 sm:$0xff]   ;;  %v12386_v11 = vld [vmem:[#allocation17 + $0x268] ss:$16 sps:$4 sm:$0xff]  }
 0x9a9   :  { %v12426_v13 = vld [vmem:[%s15423_s17 + $0x68] sm:$0xff]  }
 0x9aa   :  { %v4857_v20 = vmul.f32 0.1, %v4846_v16  ;;  %v4854_v46 = vadd.f32 %v4853_v17, %v4852_v15  ;;  %v12391_v14 = vld [vmem:[#allocation17 + $0x24c] ss:$16 sps:$4 sm:$0xff]   ;;  %v12428_v16 = vld [vmem:[%s15423_s17 + $0x60] sm:$0xff]  }
 0x9ab   :  { %5669 = vmatpush2.bf16.msra.mxu0 %v12335_v18  ;;  %v12427_v15 = vld [vmem:[%s15423_s17 + $0x28] sm:$0xff]  }
 0x9ac   :  { %v4861_v22 = vadd.f32 1e-05, %v4857_v20  ;;  %v4858_v24 = vmul.f32 0.1, %v4854_v46  ;;  %5670 = vmatprep.subr.bf16.mxu0 %v12343_v19  ;;  %v12389_v17 = vld [vmem:[#allocation17 + $0x248] ss:$16 sps:$4 sm:$0xff]  }
 0x9ad   :  { %v12394_v18 = vld [vmem:[#allocation17 + $0x22c] ss:$16 sps:$4 sm:$0xff]   ;;  %v12429_v19 = vld [vmem:[%s15423_s17 + $0x20] sm:$0xff]   ;;  %v12392_v46 = vld [vmem:[#allocation17 + $0x228] ss:$16 sps:$4 sm:$0xff]  }
 0x9ae   :  { %13154 = vrsqrt.f32 %v4861_v22  ;;  %v4862_v41 = vadd.f32 1e-05, %v4858_v24  ;;  %v12430_v20 = vld [vmem:[%s15423_s17 + $0x58] sm:$0xff]  }
 0x9af   :  { %5671 = vmatpush2.bf16.msra.mxu0 %v12341_v25  ;;  %v12397_v22 = vld [vmem:[#allocation17 + $0x20c] ss:$16 sps:$4 sm:$0xff]   ;;  %v12395_v25 = vld [vmem:[#allocation17 + $0x208] ss:$16 sps:$4 sm:$0xff]  }
 0x9b0   :  { %13156 = vrsqrt.f32 %v4862_v41  ;;  %5672 = vmatprep.subr.bf16.mxu0 %v12349_v26  ;;  %v12431_v24 = vld [vmem:[%s15423_s17 + $0x18] sm:$0xff]  }
 0x9b1   :  { %v12400_v26 = vld [vmem:[#allocation17 + $0x3ec] ss:$16 sps:$4 sm:$0xff]   ;;  %v12398_v41 = vld [vmem:[#allocation17 + $0x3e8] ss:$16 sps:$4 sm:$0xff]  }
 0x9b3   :  { %5673 = vmatpush2.bf16.msra.mxu0 %v12347_v27  ;;  %v12403_v27 = vld [vmem:[#allocation17 + $0x3cc] ss:$16 sps:$4 sm:$0xff]  }
 0x9b4   :  { %5674 = vmatprep.subr.bf16.mxu0 %v12355_v29  ;;  %v12401_v29 = vld [vmem:[#allocation17 + $0x3c8] ss:$16 sps:$4 sm:$0xff]  }
 0x9b7   :  { %5675 = vmatpush2.bf16.msra.mxu0 %v12353_v28  ;;  %v12406_v28 = vld [vmem:[#allocation17 + $0x3ac] ss:$16 sps:$4 sm:$0xff]  }
 0x9b8   :  { %5676 = vmatprep.subr.bf16.mxu0 %v12361_v30  ;;  %v12404_v30 = vld [vmem:[#allocation17 + $0x3a8] ss:$16 sps:$4 sm:$0xff]  }
 0x9bb   :  { %v13155_v56 = vpop.eup %13154  ;;  %5677 = vmatpush2.bf16.msra.mxu0 %v12359_v0  ;;  %v12409_v0 = vld [vmem:[#allocation17 + $0x38c] ss:$16 sps:$4 sm:$0xff]  }
 0x9bc   :  { %v4869_v32 = vmul.f32 %v13155_v56, %v14859_v53  ;;  %v4873_v34 = vmul.f32 %v13155_v56, %v14861_v35  ;;  %5678 = vmatprep.subr.bf16.mxu0 %v12367_v10  ;;  %v12407_v10 = vld [vmem:[#allocation17 + $0x388] ss:$16 sps:$4 sm:$0xff]   ;;  %v12412_v56 = vld [vmem:[#allocation17 + $0x36c] ss:$16 sps:$4 sm:$0xff]  }
 0x9bd   :  { %v13157_v36 = vpop.eup %13156 }
 0x9be   :  { %vm4881_vm15 = vcmp.ge.f32.partialorder %v4873_v34, 0.0  ;;  %v4889_v39 = vmul.f32 0.2, %v4873_v34  ;;  %v4870_v59 = vmul.f32 %v13157_v36, %v14867_v61  ;;  %v4874_v42 = vmul.f32 %v13157_v36, %v14869_v40  ;;  %v12379_v61 = vld [vmem:[#allocation17 + $0x2cc] ss:$16 sps:$4 sm:$0xff]  }
 0x9bf   :  { %vm4877_vm0 = vcmp.ge.f32.partialorder %v4869_v32, 0.0  ;;  %v4885_v50 = vmul.f32 0.2, %v4869_v32  ;;  %5679 = vmatpush2.bf16.msra.mxu0 %v12365_v60  ;;  %v12377_v40 = vld [vmem:[#allocation17 + $0x2c8] ss:$16 sps:$4 sm:$0xff]  }
 0x9c0   :  { %v4890_v51 = vmul.f32 0.2, %v4874_v42  ;;  %vm4878_vm1 = vcmp.ge.f32.partialorder %v4870_v59, 0.0  ;;  %vm4882_vm2 = vcmp.ge.f32.partialorder %v4874_v42, 0.0  ;;  %v4886_v53 = vmul.f32 0.2, %v4870_v59  ;;  %5680 = vmatprep.subr.bf16.mxu0 %v12373_v37 }
 0x9c1   :  { %v4893_v35 = vsel %vm4877_vm0, %v4869_v32, %v4885_v50  ;;  %v4897_v52 = vsel %vm4881_vm15, %v4873_v34, %v4889_v39  ;;  %v12410_v32 = vld [vmem:[#allocation17 + $0x368] ss:$16 sps:$4 sm:$0xff]   ;;  %v12415_v34 = vld [vmem:[#allocation17 + $0x34c] ss:$16 sps:$4 sm:$0xff]  }
 0x9c2   :  { %v4894_v43 = vsel %vm4878_vm1, %v4870_v59, %v4886_v53  ;;  %v4898_v62 = vsel %vm4882_vm2, %v4874_v42, %v4890_v51  ;;  %v14881_v1 = vpack.c.bf16 %v4897_v52, %v4893_v35  ;;  %v12413_v60 = vld [vmem:[#allocation17 + $0x348] ss:$16 sps:$4 sm:$0xff]   ;;  %v12418_v36 = vld [vmem:[#allocation17 + $0x32c] ss:$16 sps:$4 sm:$0xff]   ;;  %v12432_v42 = vld [vmem:[%s15423_s17 + $0x50] sm:$0xff]  }
 0x9c3   :  { %v4902_v63 = vpack.c.bf16 %v4898_v62, %v4894_v43  ;;  %5681 = vmatpush2.bf16.msra.mxu0 %v12371_v55  ;;  %v12416_v37 = vld [vmem:[#allocation17 + $0x328] ss:$16 sps:$4 sm:$0xff]   ;;  %v12421_v39 = vld [vmem:[#allocation17 + $0x30c] ss:$16 sps:$4 sm:$0xff]   ;;  %v12433_v55 = vld [vmem:[%s15423_s17 + $0x10] sm:$0xff]  }
 0x9c4   :  { %11423 = vmatprep.subr.bf16.mxu0 %v12422_v5  ;;  %v12419_v59 = vld [vmem:[#allocation17 + $0x308] ss:$16 sps:$4 sm:$0xff]   ;;  %v12436_v53 = vld [vmem:[%s15423_s17 + $0x40] sm:$0xff]   ;;  %v12487_v5 = vld [vmem:[%s15423_s17 + $0xd0] sm:$0xff]  }
 0x9c5   :  { %5639 = vmatprep.mubr.bf16.mxu1 %v4902_v63  ;;  %v12434_v50 = vld [vmem:[%s15423_s17 + $0x48] sm:$0xff]   ;;  %v12437_v35 = vld [vmem:[%s15423_s17] sm:$0xff]   ;;  %v12462_v43 = vld [vmem:[%s15423_s17 + $0xf8] sm:$0xff]  }
 0x9c6   :  { %5640 = vmatmul.mubr.bf16.vlgmr.msra.gmra.mxu1 %v14881_v1  ;;  %5683 = vmatmul.mubr.bf16.vlgmr.msra.gmra.mxu0 %v14854_v9  ;;  %v12424_v9 = vld [vmem:[%s15423_s17 + $0x70] sm:$0xff]   ;;  %v12435_v51 = vld [vmem:[%s15423_s17 + $0x8] sm:$0xff]   ;;  %v12463_v62 = vld [vmem:[%s15423_s17 + $0xb8] sm:$0xff]  }
 0x9c7   :  { %5694 = vmatpush1.bf16.msra.mxu1 %v12374_v38  ;;  %5725 = vmatprep.mubr.bf16.mxu1 %v4902_v63  ;;  %v12440_v52 = vld [vmem:[#allocation18 + $0xe4] ss:$16 sps:$4 sm:$0xff]  }
 0x9c8   :  { %5695 = vmatprep.subr.bf16.mxu1 %v12379_v61  ;;  %11424 = vmatpush3.bf16.msra.mxu0 %v12423_v8  ;;  %v12467_v63 = vld [vmem:[%s15423_s17 + $0xf0] sm:$0xff]   ;;  %v12473_v61 = vld [vmem:[%s15423_s17 + $0xa8] sm:$0xff]  }
 0x9c9   :  { %11425 = vmatprep.subr.bf16.mxu0 %v12424_v9  ;;  %v12468_v38 = vld [vmem:[%s15423_s17 + $0xb0] sm:$0xff]   ;;  %v12492_v9 = vld [vmem:[%s15423_s17 + $0xc8] sm:$0xff]  }
 0x9ca   :  { %v12488_v8 = vld [vmem:[%s15423_s17 + $0x90] sm:$0xff]  }
 0x9cb   :  { %5696 = vmatpush1.bf16.msra.mxu1 %v12377_v40  ;;  %v12477_v40 = vld [vmem:[%s15423_s17 + $0xe0] sm:$0xff]  }
 0x9cc   :  { %5697 = vmatprep.subr.bf16.mxu1 %v12382_v2  ;;  %11426 = vmatpush3.bf16.msra.mxu0 %v12425_v7  ;;  %v12478_v2 = vld [vmem:[%s15423_s17 + $0xa0] sm:$0xff]  }
 0x9cd   :  { %11427 = vmatprep.subr.bf16.mxu0 %v12426_v13  ;;  %v12498_v7 = vld [vmem:[%s15423_s17 + $0x80] sm:$0xff]  }
 0x9ce   :  { %v12504_v13 = vld [vmem:[#allocation18 + $0x2e4] ss:$16 sps:$4 sm:$0xff]  }
 0x9cf   :  { %5698 = vmatpush1.bf16.msra.mxu1 %v12380_v3  ;;  %v12482_v3 = vld [vmem:[%s15423_s17 + $0xd8] sm:$0xff]  }
 0x9d0   :  { %5699 = vmatprep.subr.bf16.mxu1 %v12385_v4  ;;  %11428 = vmatpush3.bf16.msra.mxu0 %v12427_v15  ;;  %v12483_v4 = vld [vmem:[%s15423_s17 + $0x98] sm:$0xff]   ;;  %v14985_v15 = vld [vmem:[%s15460_s28 + $0x12] sm:$0xf] }
 0x9d1   :  { %11429 = vmatprep.subr.bf16.mxu0 %v12428_v16  ;;  %v4907_v16 = vrot.slane %v14985_v15, %v14013_v31 }
 0x9d3   :  { %5700 = vmatpush1.bf16.msra.mxu1 %v12383_v6  ;;  %v12493_v6 = vld [vmem:[%s15423_s17 + $0x88] sm:$0xff]  }
 0x9d4   :  { %5701 = vmatprep.subr.bf16.mxu1 %v12388_v12  ;;  %11430 = vmatpush3.bf16.msra.mxu0 %v12429_v19  ;;  %v12497_v12 = vld [vmem:[%s15423_s17 + $0xc0] sm:$0xff]  }
 0x9d5   :  { %11431 = vmatprep.subr.bf16.mxu0 %v12430_v20 }
 0x9d7   :  { %5702 = vmatpush1.bf16.msra.mxu1 %v12386_v11 }
 0x9d8   :  { %5703 = vmatprep.subr.bf16.mxu1 %v12391_v14  ;;  %11432 = vmatpush3.bf16.msra.mxu0 %v12431_v24 }
 0x9d9   :  { %11433 = vmatprep.subr.bf16.mxu0 %v12432_v42  ;;  %v12443_v42 = vld [vmem:[#allocation18 + $0xc4] ss:$16 sps:$4 sm:$0xff]  }
 0x9db   :  { %5704 = vmatpush1.bf16.msra.mxu1 %v12389_v17 }
 0x9dc   :  { %5705 = vmatprep.subr.bf16.mxu1 %v12394_v18  ;;  %11434 = vmatpush3.bf16.msra.mxu0 %v12433_v55  ;;  %v4911_v18 = vrot.slane %v14985_v15, %v14019_v33 }
 0x9dd   :  { %11435 = vmatprep.subr.bf16.mxu0 %v12434_v50  ;;  %v12441_v50 = vld [vmem:[#allocation18 + $0xc0] ss:$16 sps:$4 sm:$0xff]  }
 0x9df   :  { %5706 = vmatpush1.bf16.msra.mxu1 %v12392_v46 }
 0x9e0   :  { %5707 = vmatprep.subr.bf16.mxu1 %v12397_v22  ;;  %11436 = vmatpush3.bf16.msra.mxu0 %v12435_v51 }
 0x9e1   :  { %11437 = vmatprep.subr.bf16.mxu0 %v12436_v53 }
 0x9e3   :  { %5708 = vmatpush1.bf16.msra.mxu1 %v12395_v25 }
 0x9e4   :  { %5709 = vmatprep.subr.bf16.mxu1 %v12400_v26  ;;  %11438 = vmatpush3.bf16.msra.mxu0 %v12437_v35  ;;  %v12446_v35 = vld [vmem:[#allocation18 + $0xa4] ss:$16 sps:$4 sm:$0xff]  }
 0x9e5   :  { %7156 = vmatprep.subr.bf16.mxu0 %v12440_v52 }
 0x9e7   :  { %5710 = vmatpush2.bf16.msra.mxu1 %v12398_v41 }
 0x9e8   :  { %5711 = vmatprep.subr.bf16.mxu1 %v12403_v27 }
 0x9eb   :  { %5712 = vmatpush2.bf16.msra.mxu1 %v12401_v29 }
 0x9ec   :  { %5713 = vmatprep.subr.bf16.mxu1 %v12406_v28 }
 0x9ef   :  { %5714 = vmatpush2.bf16.msra.mxu1 %v12404_v30 }
 0x9f0   :  { %5715 = vmatprep.subr.bf16.mxu1 %v12409_v0 }
 0x9f3   :  { %5716 = vmatpush2.bf16.msra.mxu1 %v12407_v10 }
 0x9f4   :  { %5717 = vmatprep.subr.bf16.mxu1 %v12412_v56 }
 0x9f7   :  { %5718 = vmatpush2.bf16.msra.mxu1 %v12410_v32 }
 0x9f8   :  { %5719 = vmatprep.subr.bf16.mxu1 %v12415_v34 }
 0x9fb   :  { %5720 = vmatpush2.bf16.msra.mxu1 %v12413_v60 }
 0x9fc   :  { %5721 = vmatprep.subr.bf16.mxu1 %v12418_v36 }
 0x9ff   :  { %5722 = vmatpush2.bf16.msra.mxu1 %v12416_v37 }
 0xa00   :  { %5723 = vmatprep.subr.bf16.mxu1 %v12421_v39  ;;  %v12438_v39 = vld [vmem:[#allocation18 + $0xe0] ss:$16 sps:$4 sm:$0xff]  }
 0xa03   :  { %5724 = vmatpush2.bf16.msra.mxu1 %v12419_v59 }
 0xa04   :  { %11445 = vmatprep.subr.bf16.mxu1 %v12462_v43 }
 0xa06   :  { %5726 = vmatmul.mubr.bf16.vlgmr.msra.gmra.mxu1 %v14881_v1  ;;  %v12472_v1 = vld [vmem:[%s15423_s17 + $0xe8] sm:$0xff]  }
 0xa07   :  { %11446 = vmatpush3.bf16.msra.mxu1 %v12463_v62  ;;  %v12444_v62 = vld [vmem:[#allocation18 + $0xa0] ss:$16 sps:$4 sm:$0xff]  }
 0xa08   :  { %11447 = vmatprep.subr.bf16.mxu1 %v12467_v63 }
 0xa0b   :  { %11448 = vmatpush3.bf16.msra.mxu1 %v12468_v38 }
 0xa0c   :  { %11449 = vmatprep.subr.bf16.mxu1 %v12472_v1  ;;  %v12449_v1 = vld [vmem:[#allocation18 + $0x84] ss:$16 sps:$4 sm:$0xff]  }
 0xa0f   :  { %11450 = vmatpush3.bf16.msra.mxu1 %v12473_v61 }
 0xa10   :  { %11451 = vmatprep.subr.bf16.mxu1 %v12477_v40 }
 0xa13   :  { %11452 = vmatpush3.bf16.msra.mxu1 %v12478_v2  ;;  %v12447_v2 = vld [vmem:[#allocation18 + $0x80] ss:$16 sps:$4 sm:$0xff]  }
 0xa14   :  { %11453 = vmatprep.subr.bf16.mxu1 %v12482_v3 }
 0xa17   :  { %11454 = vmatpush3.bf16.msra.mxu1 %v12483_v4 }
 0xa18   :  { %11455 = vmatprep.subr.bf16.mxu1 %v12487_v5  ;;  %v12452_v5 = vld [vmem:[#allocation18 + $0x64] ss:$16 sps:$4 sm:$0xff]  }
 0xa1b   :  { %11456 = vmatpush3.bf16.msra.mxu1 %v12488_v8 }
 0xa1c   :  { %11457 = vmatprep.subr.bf16.mxu1 %v12492_v9 }
 0xa1f   :  { %11458 = vmatpush3.bf16.msra.mxu1 %v12493_v6 }
 0xa20   :  { %11459 = vmatprep.subr.bf16.mxu1 %v12497_v12  ;;  %v12450_v12 = vld [vmem:[#allocation18 + $0x60] ss:$16 sps:$4 sm:$0xff]  }
 0xa23   :  { %11460 = vmatpush3.bf16.msra.mxu1 %v12498_v7 }
 0xa24   :  { %7199 = vmatprep.subr.bf16.mxu1 %v12504_v13 }
 0xa46   :  { %v5598_v11 = vpop.f32.mrf.mxu0 }
 0xa47   :  { %v5599_v20 = vadd.f32 %v5598_v11, %v4907_v16 }
 0xa48   :  { %v5600_v14 = vpop.f32.mrf.mxu0 }
 0xa49   :  { %v5601_v24 = vadd.f32 %v5600_v14, %v4911_v18  ;;  %v12455_v14 = vld [vmem:[#allocation18 + $0x44] ss:$16 sps:$4 sm:$0xff]  }
 0xa4a   :  { %v5602_v17 = vpop.f32.mrf.mxu0 }
 0xa4b   :  { %v5603_v25 = vadd.f32 %v5602_v17, %v4907_v16 }
 0xa4c   :  { %v5604_v46 = vpop.f32.mrf.mxu0 }
 0xa4d   :  { %v5605_v27 = vadd.f32 %v5604_v46, %v4911_v18  ;;  %v12453_v46 = vld [vmem:[#allocation18 + $0x40] ss:$16 sps:$4 sm:$0xff]  }
 0xa86   :  { %v5641_v19 = vpop.f32.mrf.mxu1 }
 0xa87   :  { %v5642_v26 = vadd.f32 %v5641_v19, %v5599_v20 }
 0xa88   :  { %v5643_v22 = vpop.f32.mrf.mxu1 }
 0xa89   :  { %v5644_v29 = vadd.f32 %v5643_v22, %v5601_v24  ;;  %v14995_v56 = vadd.f32 %v5642_v26, %v14408_v47  ;;  %v12458_v24 = vld [vmem:[#allocation18 + $0x24] ss:$16 sps:$4 sm:$0xff]  }
 0xa8a   :  { %v5645_v41 = vpop.f32.mrf.mxu1 }
 0xa8b   :  { %v5646_v28 = vadd.f32 %v5645_v41, %v5603_v25  ;;  %v14998_v32 = vadd.f32 %v5644_v29, %v14412_v49 }
 0xa8c   :  { %v5647_v30 = vpop.f32.mrf.mxu1 }
 0xa8d   :  { %v14992_v0 = vadd.f32 %v5646_v28, %v14404_v44  ;;  %v5648_v10 = vadd.f32 %v5647_v30, %v5605_v27  ;;  %v12456_v27 = vld [vmem:[#allocation18 + $0x20] ss:$16 sps:$4 sm:$0xff]   ;;  %v12461_v28 = vld [vmem:[#allocation18 + $0x4] ss:$16 sps:$4 sm:$0xff]  }
 0xa8f   :  { %v6363_v34 = vsel %vm670_vm5, %v14992_v0, 0.0  ;;  %v15003_v60 = vadd.f32 %v5648_v10, %v14418_v54  ;;  %v5744_v49 = vpack.c.bf16 %v14992_v0, %v14995_v56 }
 0xa90   :  { %v6364_v36 = vadd.f32 %v6363_v34, %v14995_v56 }
 0xa91   :  { %v6371_v37 = vsel %vm670_vm5, %v15003_v60, 0.0  ;;  %v5745_v44 = vpack.c.bf16 %v15003_v60, %v14998_v32 }
 0xa92   :  { %v6365_v47 = vrot.slane %v6364_v36, 4  ;;  %v6372_v59 = vadd.f32 %v6371_v37, %v14998_v32 }
 0xa93   :  { %5978 = vmatprep.mubr.bf16.mxu0 %v5745_v44  ;;  %v12466_v44 = vld [vmem:[#allocation18 + $0x1e4] ss:$16 sps:$4 sm:$0xff]  }
 0xa94   :  { %v6366_v55 = vadd.f32 %v6365_v47, %v6364_v36  ;;  %v6373_v54 = vrot.slane %v6372_v59, 4  ;;  %5979 = vmatmul.mubr.bf16.vlgmr.msra.gmra.mxu0 %v5744_v49  ;;  %v12459_v36 = vld [vmem:[#allocation18] ss:$16 sps:$4 sm:$0xff]  }
 0xa95   :  { %7157 = vmatpush1.bf16.msra.mxu0 %v12438_v39  ;;  %v12464_v49 = vld [vmem:[#allocation18 + $0x1e0] ss:$16 sps:$4 sm:$0xff]  }
 0xa96   :  { %v6367_v51 = vrot.slane %v6366_v55, 2  ;;  %v6374_v53 = vadd.f32 %v6373_v54, %v6372_v59  ;;  %7158 = vmatprep.subr.bf16.mxu0 %v12443_v42 }
 0xa98   :  { %v6368_v52 = vadd.f32 %v6367_v51, %v6366_v55  ;;  %v6375_v43 = vrot.slane %v6374_v53, 2  ;;  %v12471_v55 = vld [vmem:[#allocation18 + $0x1c4] ss:$16 sps:$4 sm:$0xff]  }
 0xa99   :  { %7159 = vmatpush1.bf16.msra.mxu0 %v12441_v50 }
 0xa9a   :  { %v6369_v63 = vrot.slane %v6368_v52, 1  ;;  %v6376_v38 = vadd.f32 %v6375_v43, %v6374_v53  ;;  %7160 = vmatprep.subr.bf16.mxu0 %v12446_v35  ;;  %v12469_v53 = vld [vmem:[#allocation18 + $0x1c0] ss:$16 sps:$4 sm:$0xff]  }
 0xa9c   :  { %v6370_v61 = vadd.f32 %v6369_v63, %v6368_v52  ;;  %v6377_v40 = vrot.slane %v6376_v38, 1  ;;  %v12476_v52 = vld [vmem:[#allocation18 + $0x1a4] ss:$16 sps:$4 sm:$0xff]   ;;  %v5684_v63 = vpop.f32.mrf.mxu0 }
 0xa9d   :  { %7161 = vmatpush1.bf16.msra.mxu0 %v12444_v62  ;;  %v12474_v62 = vld [vmem:[#allocation18 + $0x1a0] ss:$16 sps:$4 sm:$0xff]  }
 0xa9e   :  { %v6395_v3 = vmul.f32 0.1, %v6370_v61  ;;  %v6378_v4 = vadd.f32 %v6377_v40, %v6376_v38  ;;  %7162 = vmatprep.subr.bf16.mxu0 %v12449_v1  ;;  %v12481_v38 = vld [vmem:[#allocation18 + $0x184] ss:$16 sps:$4 sm:$0xff]   ;;  %v12479_v1 = vld [vmem:[#allocation18 + $0x180] ss:$16 sps:$4 sm:$0xff]   ;;  %v5686_v61 = vpop.f32.mrf.mxu0 }
 0xa9f   :  { %v12486_v40 = vld [vmem:[#allocation18 + $0x164] ss:$16 sps:$4 sm:$0xff]  }
 0xaa0   :  { %v15014_v8 = vsub.f32 %v14995_v56, %v6395_v3  ;;  %v15017_v9 = vsub.f32 %v14992_v0, %v6395_v3  ;;  %v6396_v6 = vmul.f32 0.1, %v6378_v4  ;;  %v5688_v3 = vpop.f32.mrf.mxu0  ;;  %v12491_v4 = vld [vmem:[#allocation18 + $0x144] ss:$16 sps:$4 sm:$0xff]  }
 0xaa1   :  { %7163 = vmatpush1.bf16.msra.mxu0 %v12447_v2  ;;  %v12484_v2 = vld [vmem:[#allocation18 + $0x160] ss:$16 sps:$4 sm:$0xff]  }
 0xaa2   :  { %v6407_v7 = vmul.f32 %v15014_v8, %v15014_v8  ;;  %v6411_v13 = vmul.f32 %v15017_v9, %v15017_v9  ;;  %v15024_v11 = vsub.f32 %v15003_v60, %v6396_v6  ;;  %7164 = vmatprep.subr.bf16.mxu0 %v12452_v5  ;;  %v15027_v16 = vsub.f32 %v14998_v32, %v6396_v6 }
 0xaa3   :  { %v4915_v6 = vrot.slane %v14985_v15, %v14392_v21 }
 0xaa4   :  { %v6415_v17 = vsel %vm670_vm5, %v6411_v13, 0.0  ;;  %v6412_v18 = vmul.f32 %v15024_v11, %v15024_v11  ;;  %v6408_v19 = vmul.f32 %v15027_v16, %v15027_v16 }
 0xaa5   :  { %v6416_v20 = vadd.f32 %v6415_v17, %v6407_v7  ;;  %7165 = vmatpush1.bf16.msra.mxu0 %v12450_v12  ;;  %v4919_v12 = vrot.slane %v14985_v15, %v14398_v23  ;;  %v12489_v7 = vld [vmem:[#allocation18 + $0x140] ss:$16 sps:$4 sm:$0xff]  }
 0xaa6   :  { %v6423_v22 = vsel %vm670_vm5, %v6412_v18, 0.0  ;;  %7166 = vmatprep.subr.bf16.mxu0 %v12455_v14  ;;  %v5690_v14 = vpop.f32.mrf.mxu0  ;;  %v12496_v18 = vld [vmem:[#allocation18 + $0x124] ss:$16 sps:$4 sm:$0xff]  }
 0xaa7   :  { %v6417_v25 = vrot.slane %v6416_v20, 4  ;;  %v6424_v26 = vadd.f32 %v6423_v22, %v6408_v19  ;;  %v5691_v15 = vadd.f32 %v5690_v14, %v4919_v12 }
 0xaa9   :  { %v6418_v41 = vadd.f32 %v6417_v25, %v6416_v20  ;;  %7167 = vmatpush1.bf16.msra.mxu0 %v12453_v46  ;;  %v6425_v29 = vrot.slane %v6424_v26, 4  ;;  %v5687_v25 = vadd.f32 %v5686_v61, %v4919_v12  ;;  %v12513_v61 = vld [vmem:[#allocation18 + $0xcc] ss:$16 sps:$4 sm:$0xff]   ;;  %v12516_v12 = vld [vmem:[#allocation18 + $0x2a4] ss:$16 sps:$4 sm:$0xff]  }
 0xaaa   :  { %7168 = vmatprep.subr.bf16.mxu0 %v12458_v24  ;;  %v5685_v24 = vadd.f32 %v5684_v63, %v4915_v6 }
 0xaab   :  { %v6419_v30 = vrot.slane %v6418_v41, 2  ;;  %v6426_v10 = vadd.f32 %v6425_v29, %v6424_v26  ;;  %v12501_v29 = vld [vmem:[#allocation18 + $0x104] ss:$16 sps:$4 sm:$0xff]  }
 0xaad   :  { %v6420_v34 = vadd.f32 %v6419_v30, %v6418_v41  ;;  %7169 = vmatpush1.bf16.msra.mxu0 %v12456_v27  ;;  %v6427_v37 = vrot.slane %v6426_v10, 2  ;;  %v5689_v41 = vadd.f32 %v5688_v3, %v4915_v6  ;;  %v12494_v27 = vld [vmem:[#allocation18 + $0x120] ss:$16 sps:$4 sm:$0xff]  }
 0xaae   :  { %7170 = vmatprep.subr.bf16.mxu0 %v12461_v28  ;;  %v12508_v3 = vld [vmem:[#allocation18 + $0x2c0] ss:$16 sps:$4 sm:$0xff]  }
 0xaaf   :  { %v6421_v39 = vrot.slane %v6420_v34, 1  ;;  %v6428_v47 = vadd.f32 %v6427_v37, %v6426_v10 }
 0xab1   :  { %v6422_v59 = vadd.f32 %v6421_v39, %v6420_v34  ;;  %7171 = vmatpush1.bf16.msra.mxu0 %v12459_v36  ;;  %v6429_v42 = vrot.slane %v6428_v47, 1 }
 0xab2   :  { %7172 = vmatprep.subr.bf16.mxu0 %v12466_v44 }
 0xab3   :  { %v6447_v54 = vmul.f32 0.1, %v6422_v59  ;;  %v6430_v50 = vadd.f32 %v6429_v42, %v6428_v47 }
 0xab5   :  { %v6451_v51 = vadd.f32 1e-05, %v6447_v54  ;;  %7173 = vmatpush2.bf16.msra.mxu0 %v12464_v49  ;;  %v6448_v35 = vmul.f32 0.1, %v6430_v50  ;;  %v12499_v49 = vld [vmem:[#allocation18 + $0x100] ss:$16 sps:$4 sm:$0xff]  }
 0xab6   :  { %7174 = vmatprep.subr.bf16.mxu0 %v12471_v55  ;;  %v12507_v54 = vld [vmem:[#allocation18 + $0xec] ss:$16 sps:$4 sm:$0xff]  }
 0xab7   :  { %13158 = vrsqrt.f32 %v6451_v51  ;;  %v6452_v43 = vadd.f32 1e-05, %v6448_v35 }
 0xab9   :  { %7175 = vmatpush2.bf16.msra.mxu0 %v12469_v53  ;;  %13160 = vrsqrt.f32 %v6452_v43  ;;  %v12502_v43 = vld [vmem:[#allocation18 + $0x2e0] ss:$16 sps:$4 sm:$0xff]  }
 0xaba   :  { %7176 = vmatprep.subr.bf16.mxu0 %v12476_v52 }
 0xabd   :  { %7177 = vmatpush2.bf16.msra.mxu0 %v12474_v62 }
 0xabe   :  { %7178 = vmatprep.subr.bf16.mxu0 %v12481_v38 }
 0xac1   :  { %7179 = vmatpush2.bf16.msra.mxu0 %v12479_v1  ;;  %v12510_v1 = vld [vmem:[#allocation18 + $0x2c4] ss:$16 sps:$4 sm:$0xff]  }
 0xac2   :  { %7180 = vmatprep.subr.bf16.mxu0 %v12486_v40 }
 0xac4   :  { %v13159_v5 = vpop.eup %13158 }
 0xac5   :  { %7181 = vmatpush2.bf16.msra.mxu0 %v12484_v2  ;;  %v6459_v19 = vmul.f32 %v13159_v5, %v15014_v8  ;;  %v6463_v20 = vmul.f32 %v13159_v5, %v15017_v9 }
 0xac6   :  { %v13161_v13 = vpop.eup %13160  ;;  %v5727_v17 = vpop.f32.mrf.mxu1  ;;  %7182 = vmatprep.subr.bf16.mxu0 %v12491_v4  ;;  %v12511_v4 = vld [vmem:[#allocation18 + $0xc8] ss:$16 sps:$4 sm:$0xff]  }
 0xac7   :  { %v6460_v46 = vmul.f32 %v13161_v13, %v15027_v16  ;;  %v6464_v22 = vmul.f32 %v13161_v13, %v15024_v11  ;;  %v5728_v28 = vadd.f32 %v5727_v17, %v5685_v24  ;;  %v6475_v9 = vmul.f32 0.2, %v6459_v19  ;;  %v12514_v17 = vld [vmem:[#allocation18 + $0x2a0] ss:$16 sps:$4 sm:$0xff]  }
 0xac8   :  { %v5729_v26 = vpop.f32.mrf.mxu1  ;;  %vm6467_vm6 = vcmp.ge.f32.partialorder %v6459_v19, 0.0  ;;  %v6479_v11 = vmul.f32 0.2, %v6463_v20  ;;  %vm6471_vm7 = vcmp.ge.f32.partialorder %v6463_v20, 0.0 }
 0xac9   :  { %7183 = vmatpush2.bf16.msra.mxu0 %v12489_v7  ;;  %vm6468_vm3 = vcmp.ge.f32.partialorder %v6460_v46, 0.0  ;;  %vm6472_vm4 = vcmp.ge.f32.partialorder %v6464_v22, 0.0  ;;  %v6476_v8 = vmul.f32 0.2, %v6460_v46  ;;  %v6480_v10 = vmul.f32 0.2, %v6464_v22 }
 0xaca   :  { %v5731_v30 = vpop.f32.mrf.mxu1  ;;  %7184 = vmatprep.subr.bf16.mxu0 %v12496_v18  ;;  %v5730_v34 = vadd.f32 %v5729_v26, %v5687_v25  ;;  %v15047_v42 = vadd.f32 %v5728_v28, %v14410_v48  ;;  %v6483_v55 = vsel %vm6467_vm6, %v6459_v19, %v6475_v9  ;;  %v12519_v7 = vld [vmem:[#allocation18 + $0xac] ss:$16 sps:$4 sm:$0xff]   ;;  %v12517_v18 = vld [vmem:[#allocation18 + $0xa8] ss:$16 sps:$4 sm:$0xff]   ;;  %v12520_v26 = vld [vmem:[#allocation18 + $0x280] ss:$16 sps:$4 sm:$0xff]  }
 0xacb   :  { %v5732_v16 = vadd.f32 %v5731_v30, %v5689_v41  ;;  %v6484_v37 = vsel %vm6468_vm3, %v6460_v46, %v6476_v8  ;;  %v6488_v44 = vsel %vm6472_vm4, %v6464_v22, %v6480_v10  ;;  %v12522_v46 = vld [vmem:[#allocation18 + $0x284] ss:$16 sps:$4 sm:$0xff]   ;;  %v12525_v22 = vld [vmem:[#allocation18 + $0x8c] ss:$16 sps:$4 sm:$0xff]   ;;  %v12523_v41 = vld [vmem:[#allocation18 + $0x88] ss:$16 sps:$4 sm:$0xff]  }
 0xacc   :  { %v5733_v36 = vpop.f32.mrf.mxu1  ;;  %v6492_v59 = vpack.c.bf16 %v6488_v44, %v6484_v37  ;;  %v15050_v50 = vadd.f32 %v5730_v34, %v14422_v58  ;;  %v12505_v58 = vld [vmem:[#allocation18 + $0xe8] ss:$16 sps:$4 sm:$0xff]   ;;  %v12531_v28 = vld [vmem:[#allocation18 + $0x6c] ss:$16 sps:$4 sm:$0xff]   ;;  %v12526_v9 = vld [vmem:[#allocation18 + $0x260] ss:$16 sps:$4 sm:$0xff]  }
 0xacd   :  { %v15044_v39 = vadd.f32 %v5732_v16, %v14406_v45  ;;  %v5734_v47 = vadd.f32 %v5733_v36, %v5691_v15  ;;  %7185 = vmatpush2.bf16.msra.mxu0 %v12494_v27  ;;  %v6487_v45 = vsel %vm6471_vm7, %v6463_v20, %v6479_v11  ;;  %v12529_v34 = vld [vmem:[#allocation18 + $0x68] ss:$16 sps:$4 sm:$0xff]   ;;  %v12534_v37 = vld [vmem:[#allocation18 + $0x244] ss:$16 sps:$4 sm:$0xff]   ;;  %v12537_v44 = vld [vmem:[#allocation18 + $0x4c] ss:$16 sps:$4 sm:$0xff]  }
 0xace   :  { %7186 = vmatprep.subr.bf16.mxu0 %v12501_v29  ;;  %7188 = vmatprep.mubr.bf16.mxu0 %v6492_v59  ;;  %v15065_v38 = vpack.c.bf16 %v6487_v45, %v6483_v55  ;;  %v12528_v29 = vld [vmem:[#allocation18 + $0x264] ss:$16 sps:$4 sm:$0xff]  }
 0xacf   :  { %v6379_v51 = vsel %vm670_vm5, %v15044_v39, 0.0  ;;  %v15055_v53 = vadd.f32 %v5734_v47, %v14420_v57  ;;  %v5746_v57 = vpack.c.bf16 %v15044_v39, %v15047_v42 }
 0xad0   :  { %v6380_v35 = vadd.f32 %v6379_v51, %v15047_v42  ;;  %v12535_v51 = vld [vmem:[#allocation18 + $0x48] ss:$16 sps:$4 sm:$0xff]  }
 0xad1   :  { %v6387_v48 = vsel %vm670_vm5, %v15055_v53, 0.0  ;;  %7187 = vmatpush2.bf16.msra.mxu0 %v12499_v49  ;;  %v5747_v52 = vpack.c.bf16 %v15055_v53, %v15050_v50 }
 0xad2   :  { %v6381_v62 = vrot.slane %v6380_v35, 4  ;;  %v6388_v63 = vadd.f32 %v6387_v48, %v15050_v50  ;;  %7242 = vmatprep.subr.bf16.mxu0 %v12507_v54  ;;  %v12532_v54 = vld [vmem:[#allocation18 + $0x240] ss:$16 sps:$4 sm:$0xff]   ;;  %v12540_v48 = vld [vmem:[#allocation18 + $0x224] ss:$16 sps:$4 sm:$0xff]  }
 0xad3   :  { %6019 = vmatprep.mubr.bf16.mxu1 %v5747_v52  ;;  %v12543_v52 = vld [vmem:[#allocation18 + $0x2c] ss:$16 sps:$4 sm:$0xff]  }
 0xad4   :  { %v6382_v40 = vadd.f32 %v6381_v62, %v6380_v35  ;;  %v6389_v2 = vrot.slane %v6388_v63, 4  ;;  %6020 = vmatmul.mubr.bf16.vlgmr.msra.gmra.mxu1 %v5746_v57  ;;  %7189 = vmatmul.mubr.bf16.vlgmr.msra.gmra.mxu0 %v15065_v38  ;;  %v12541_v57 = vld [vmem:[#allocation18 + $0x28] ss:$16 sps:$4 sm:$0xff]  }
 0xad5   :  { %7200 = vmatpush1.bf16.msra.mxu1 %v12502_v43  ;;  %7243 = vmatpush1.bf16.msra.mxu0 %v12505_v58 }
 0xad6   :  { %v6383_v5 = vrot.slane %v6382_v40, 2  ;;  %v6390_v6 = vadd.f32 %v6389_v2, %v6388_v63  ;;  %7274 = vmatprep.mubr.bf16.mxu0 %v6492_v59  ;;  %7201 = vmatprep.subr.bf16.mxu1 %v12510_v1  ;;  %v12538_v63 = vld [vmem:[#allocation18 + $0x220] ss:$16 sps:$4 sm:$0xff]  }
 0xad7   :  { %7244 = vmatprep.subr.bf16.mxu0 %v12513_v61  ;;  %v12546_v61 = vld [vmem:[#allocation18 + $0x204] ss:$16 sps:$4 sm:$0xff]  }
 0xad8   :  { %v6384_v13 = vadd.f32 %v6383_v5, %v6382_v40  ;;  %v6391_v14 = vrot.slane %v6390_v6, 2  ;;  %v12549_v40 = vld [vmem:[#allocation18 + $0xc] ss:$16 sps:$4 sm:$0xff]   ;;  %v12544_v5 = vld [vmem:[#allocation18 + $0x200] ss:$16 sps:$4 sm:$0xff]  }
 0xad9   :  { %7202 = vmatpush1.bf16.msra.mxu1 %v12508_v3  ;;  %7245 = vmatpush1.bf16.msra.mxu0 %v12511_v4 }
 0xada   :  { %v6385_v19 = vrot.slane %v6384_v13, 1  ;;  %v6392_v20 = vadd.f32 %v6391_v14, %v6390_v6  ;;  %7203 = vmatprep.subr.bf16.mxu1 %v12516_v12  ;;  %7246 = vmatprep.subr.bf16.mxu0 %v12519_v7  ;;  %v12547_v6 = vld [vmem:[#allocation18 + $0x8] ss:$16 sps:$4 sm:$0xff]   ;;  %v12552_v7 = vld [vmem:[#allocation18 + $0x3e4] ss:$16 sps:$4 sm:$0xff]  }
 0xadc   :  { %v6386_v24 = vadd.f32 %v6385_v19, %v6384_v13  ;;  %v6393_v25 = vrot.slane %v6392_v20, 1  ;;  %v12555_v13 = vld [vmem:[#allocation18 + $0x1ec] ss:$16 sps:$4 sm:$0xff]   ;;  %v12550_v19 = vld [vmem:[#allocation18 + $0x3e0] ss:$16 sps:$4 sm:$0xff]  }
 0xadd   :  { %7204 = vmatpush1.bf16.msra.mxu1 %v12514_v17  ;;  %7247 = vmatpush1.bf16.msra.mxu0 %v12517_v18 }
 0xade   :  { %v6397_v15 = vmul.f32 0.1, %v6386_v24  ;;  %v6394_v27 = vadd.f32 %v6393_v25, %v6392_v20  ;;  %7205 = vmatprep.subr.bf16.mxu1 %v12522_v46  ;;  %7248 = vmatprep.subr.bf16.mxu0 %v12525_v22  ;;  %v12553_v20 = vld [vmem:[#allocation18 + $0x1e8] ss:$16 sps:$4 sm:$0xff]   ;;  %v12558_v22 = vld [vmem:[#allocation18 + $0x3c4] ss:$16 sps:$4 sm:$0xff]  }
 0xadf   :  { %v12561_v24 = vld [vmem:[#allocation18 + $0x1cc] ss:$16 sps:$4 sm:$0xff]  }
 0xae0   :  { %v15069_v30 = vsub.f32 %v15047_v42, %v6397_v15  ;;  %v15072_v8 = vsub.f32 %v15044_v39, %v6397_v15  ;;  %v6398_v10 = vmul.f32 0.1, %v6394_v27  ;;  %v12559_v27 = vld [vmem:[#allocation18 + $0x1c8] ss:$16 sps:$4 sm:$0xff]  }
 0xae1   :  { %7206 = vmatpush1.bf16.msra.mxu1 %v12520_v26  ;;  %7249 = vmatpush1.bf16.msra.mxu0 %v12523_v41  ;;  %v12556_v41 = vld [vmem:[#allocation18 + $0x3c0] ss:$16 sps:$4 sm:$0xff]  }
 0xae2   :  { %v6409_v16 = vmul.f32 %v15069_v30, %v15069_v30  ;;  %v6413_v11 = vmul.f32 %v15072_v8, %v15072_v8  ;;  %v15079_v36 = vsub.f32 %v15055_v53, %v6398_v10  ;;  %7207 = vmatprep.subr.bf16.mxu1 %v12528_v29  ;;  %7250 = vmatprep.subr.bf16.mxu0 %v12531_v28  ;;  %v12564_v28 = vld [vmem:[#allocation18 + $0x3a4] ss:$16 sps:$4 sm:$0xff]  }
 0xae3   :  { %v15082_v47 = vsub.f32 %v15050_v50, %v6398_v10  ;;  %v12567_v10 = vld [vmem:[#allocation18 + $0x1ac] ss:$16 sps:$4 sm:$0xff]  }
 0xae4   :  { %v6431_v59 = vsel %vm670_vm5, %v6413_v11, 0.0  ;;  %v6414_v49 = vmul.f32 %v15079_v36, %v15079_v36  ;;  %v12570_v11 = vld [vmem:[#allocation18 + $0x384] ss:$16 sps:$4 sm:$0xff]  }
 0xae5   :  { %v6432_v55 = vadd.f32 %v6431_v59, %v6409_v16  ;;  %7208 = vmatpush1.bf16.msra.mxu1 %v12526_v9  ;;  %7251 = vmatpush1.bf16.msra.mxu0 %v12529_v34  ;;  %v6410_v45 = vmul.f32 %v15082_v47, %v15082_v47  ;;  %v12562_v34 = vld [vmem:[#allocation18 + $0x3a0] ss:$16 sps:$4 sm:$0xff]   ;;  %v12565_v16 = vld [vmem:[#allocation18 + $0x1a8] ss:$16 sps:$4 sm:$0xff]  }
 0xae6   :  { %v6439_v35 = vsel %vm670_vm5, %v6414_v49, 0.0  ;;  %7209 = vmatprep.subr.bf16.mxu1 %v12534_v37  ;;  %7252 = vmatprep.subr.bf16.mxu0 %v12537_v44  ;;  %v12573_v37 = vld [vmem:[#allocation18 + $0x18c] ss:$16 sps:$4 sm:$0xff]   ;;  %v12568_v44 = vld [vmem:[#allocation18 + $0x380] ss:$16 sps:$4 sm:$0xff]  }
 0xae7   :  { %v6433_v43 = vrot.slane %v6432_v55, 4  ;;  %v6440_v58 = vadd.f32 %v6439_v35, %v6410_v45  ;;  %v12571_v59 = vld [vmem:[#allocation18 + $0x188] ss:$16 sps:$4 sm:$0xff]   ;;  %v12576_v49 = vld [vmem:[#allocation18 + $0x364] ss:$16 sps:$4 sm:$0xff]  }
 0xae8   :  { %v12582_v45 = vld [vmem:[#allocation18 + $0x344] ss:$16 sps:$4 sm:$0xff]   ;;  %v12585_v35 = vld [vmem:[#allocation18 + $0x14c] ss:$16 sps:$4 sm:$0xff]  }
 0xae9   :  { %v6434_v62 = vadd.f32 %v6433_v43, %v6432_v55  ;;  %7210 = vmatpush1.bf16.msra.mxu1 %v12532_v54  ;;  %7253 = vmatpush1.bf16.msra.mxu0 %v12535_v51  ;;  %v6441_v1 = vrot.slane %v6440_v58, 4  ;;  %v12579_v55 = vld [vmem:[#allocation18 + $0x16c] ss:$16 sps:$4 sm:$0xff]   ;;  %v12574_v54 = vld [vmem:[#allocation18 + $0x360] ss:$16 sps:$4 sm:$0xff]  }
 0xaea   :  { %7211 = vmatprep.subr.bf16.mxu1 %v12540_v48  ;;  %7254 = vmatprep.subr.bf16.mxu0 %v12543_v52  ;;  %v12577_v51 = vld [vmem:[#allocation18 + $0x168] ss:$16 sps:$4 sm:$0xff]   ;;  %v12580_v52 = vld [vmem:[#allocation18 + $0x340] ss:$16 sps:$4 sm:$0xff]  }
 0xaeb   :  { %v6435_v2 = vrot.slane %v6434_v62, 2  ;;  %v6442_v3 = vadd.f32 %v6441_v1, %v6440_v58  ;;  %v12583_v43 = vld [vmem:[#allocation18 + $0x148] ss:$16 sps:$4 sm:$0xff]  }
 0xaed   :  { %v6436_v4 = vadd.f32 %v6435_v2, %v6434_v62  ;;  %7212 = vmatpush1.bf16.msra.mxu1 %v12538_v63  ;;  %7255 = vmatpush1.bf16.msra.mxu0 %v12541_v57  ;;  %v6443_v12 = vrot.slane %v6442_v3, 2  ;;  %v12588_v62 = vld [vmem:[#allocation18 + $0x324] ss:$16 sps:$4 sm:$0xff]   ;;  %v12591_v63 = vld [vmem:[#allocation18 + $0x12c] ss:$16 sps:$4 sm:$0xff]  }
 0xaee   :  { %7213 = vmatprep.subr.bf16.mxu1 %v12546_v61  ;;  %7256 = vmatprep.subr.bf16.mxu0 %v12549_v40  ;;  %v12586_v2 = vld [vmem:[#allocation18 + $0x320] ss:$16 sps:$4 sm:$0xff]  }
 0xaef   :  { %v6437_v14 = vrot.slane %v6436_v4, 1  ;;  %v6444_v17 = vadd.f32 %v6443_v12, %v6442_v3  ;;  %v12589_v3 = vld [vmem:[#allocation18 + $0x128] ss:$16 sps:$4 sm:$0xff]  }
 0xaf1   :  { %v6438_v18 = vadd.f32 %v6437_v14, %v6436_v4  ;;  %7214 = vmatpush1.bf16.msra.mxu1 %v12544_v5  ;;  %7257 = vmatpush1.bf16.msra.mxu0 %v12547_v6  ;;  %v6445_v46 = vrot.slane %v6444_v17, 1  ;;  %v12594_v6 = vld [vmem:[#allocation18 + $0x304] ss:$16 sps:$4 sm:$0xff]  }
 0xaf2   :  { %7215 = vmatprep.subr.bf16.mxu1 %v12552_v7  ;;  %7258 = vmatprep.subr.bf16.mxu0 %v12555_v13 }
 0xaf3   :  { %v6449_v25 = vmul.f32 0.1, %v6438_v18  ;;  %v6446_v26 = vadd.f32 %v6445_v46, %v6444_v17  ;;  %v12600_v17 = vld [vmem:[#allocation18 + $0x2ec] ss:$16 sps:$4 sm:$0xff]  }
 0xaf5   :  { %v6453_v15 = vadd.f32 1e-05, %v6449_v25  ;;  %7216 = vmatpush2.bf16.msra.mxu1 %v12550_v19  ;;  %7259 = vmatpush2.bf16.msra.mxu0 %v12553_v20  ;;  %v6450_v29 = vmul.f32 0.1, %v6446_v26  ;;  %v12598_v20 = vld [vmem:[#allocation18 + $0x2e8] ss:$16 sps:$4 sm:$0xff]  }
 0xaf6   :  { %7217 = vmatprep.subr.bf16.mxu1 %v12558_v22  ;;  %7260 = vmatprep.subr.bf16.mxu0 %v12561_v24  ;;  %v12603_v22 = vld [vmem:[#allocation18 + $0x2cc] ss:$16 sps:$4 sm:$0xff]   ;;  %v12601_v24 = vld [vmem:[#allocation18 + $0x2c8] ss:$16 sps:$4 sm:$0xff]  }
 0xaf7   :  { %13162 = vrsqrt.f32 %v6453_v15  ;;  %v6454_v9 = vadd.f32 1e-05, %v6450_v29  ;;  %v12606_v25 = vld [vmem:[#allocation18 + $0x2ac] ss:$16 sps:$4 sm:$0xff]   ;;  %v12604_v26 = vld [vmem:[#allocation18 + $0x2a8] ss:$16 sps:$4 sm:$0xff]  }
 0xaf8   :  { %v12607_v15 = vld [vmem:[#allocation18 + $0x288] ss:$16 sps:$4 sm:$0xff]  }
 0xaf9   :  { %7218 = vmatpush2.bf16.msra.mxu1 %v12556_v41  ;;  %7261 = vmatpush2.bf16.msra.mxu0 %v12559_v27  ;;  %13164 = vrsqrt.f32 %v6454_v9  ;;  %v12609_v41 = vld [vmem:[#allocation18 + $0x28c] ss:$16 sps:$4 sm:$0xff]   ;;  %v12610_v29 = vld [vmem:[#allocation18 + $0x268] ss:$16 sps:$4 sm:$0xff]  }
 0xafa   :  { %7219 = vmatprep.subr.bf16.mxu1 %v12564_v28  ;;  %7262 = vmatprep.subr.bf16.mxu0 %v12567_v10  ;;  %v12612_v27 = vld [vmem:[#allocation18 + $0x26c] ss:$16 sps:$4 sm:$0xff]   ;;  %v12613_v10 = vld [vmem:[#allocation18 + $0x248] ss:$16 sps:$4 sm:$0xff]  }
 0xafb   :  { %v12615_v28 = vld [vmem:[#allocation18 + $0x24c] ss:$16 sps:$4 sm:$0xff]   ;;  %v12616_v9 = vld [vmem:[#allocation18 + $0x228] ss:$16 sps:$4 sm:$0xff]  }
 0xafd   :  { %7220 = vmatpush2.bf16.msra.mxu1 %v12562_v34  ;;  %7263 = vmatpush2.bf16.msra.mxu0 %v12565_v16  ;;  %v12621_v34 = vld [vmem:[#allocation18 + $0x20c] ss:$16 sps:$4 sm:$0xff]   ;;  %v12619_v16 = vld [vmem:[#allocation18 + $0x208] ss:$16 sps:$4 sm:$0xff]  }
 0xafe   :  { %7221 = vmatprep.subr.bf16.mxu1 %v12570_v11  ;;  %7264 = vmatprep.subr.bf16.mxu0 %v12573_v37  ;;  %v12624_v11 = vld [vmem:[#allocation18 + $0x3ec] ss:$16 sps:$4 sm:$0xff]   ;;  %v12622_v37 = vld [vmem:[#allocation18 + $0x3e8] ss:$16 sps:$4 sm:$0xff]  }
 0xb01   :  { %7222 = vmatpush2.bf16.msra.mxu1 %v12568_v44  ;;  %7265 = vmatpush2.bf16.msra.mxu0 %v12571_v59  ;;  %v12627_v44 = vld [vmem:[#allocation18 + $0x3cc] ss:$16 sps:$4 sm:$0xff]   ;;  %v12625_v59 = vld [vmem:[#allocation18 + $0x3c8] ss:$16 sps:$4 sm:$0xff]  }
 0xb02   :  { %7223 = vmatprep.subr.bf16.mxu1 %v12576_v49  ;;  %7266 = vmatprep.subr.bf16.mxu0 %v12579_v55  ;;  %v12630_v49 = vld [vmem:[#allocation18 + $0x3ac] ss:$16 sps:$4 sm:$0xff]   ;;  %v12628_v55 = vld [vmem:[#allocation18 + $0x3a8] ss:$16 sps:$4 sm:$0xff]  }
 0xb04   :  { %v13163_v48 = vpop.eup %13162 }
 0xb05   :  { %7224 = vmatpush2.bf16.msra.mxu1 %v12574_v54  ;;  %7267 = vmatpush2.bf16.msra.mxu0 %v12577_v51  ;;  %v6465_v57 = vmul.f32 %v13163_v48, %v15072_v8  ;;  %v6461_v40 = vmul.f32 %v13163_v48, %v15069_v30  ;;  %v12597_v8 = vld [vmem:[#allocation18 + $0x10c] ss:$16 sps:$4 sm:$0xff]   ;;  %v12592_v30 = vld [vmem:[#allocation18 + $0x300] ss:$16 sps:$4 sm:$0xff]   ;;  %v12631_v51 = vld [vmem:[#allocation18 + $0x388] ss:$16 sps:$4 sm:$0xff]  }
 0xb06   :  { %v13165_v58 = vpop.eup %13164  ;;  %7225 = vmatprep.subr.bf16.mxu1 %v12582_v45  ;;  %7268 = vmatprep.subr.bf16.mxu0 %v12585_v35  ;;  %v12633_v54 = vld [vmem:[#allocation18 + $0x38c] ss:$16 sps:$4 sm:$0xff]   ;;  %v12634_v35 = vld [vmem:[#allocation18 + $0x368] ss:$16 sps:$4 sm:$0xff]  }
 0xb07   :  { %v6462_v1 = vmul.f32 %v13165_v58, %v15082_v47  ;;  %v6466_v61 = vmul.f32 %v13165_v58, %v15079_v36  ;;  %v6477_v13 = vmul.f32 0.2, %v6461_v40  ;;  %v6481_v47 = vmul.f32 0.2, %v6465_v57  ;;  %v12595_v36 = vld [vmem:[#allocation18 + $0x108] ss:$16 sps:$4 sm:$0xff]  }
 0xb08   :  { %vm6469_vm10 = vcmp.ge.f32.partialorder %v6461_v40, 0.0  ;;  %vm6473_vm11 = vcmp.ge.f32.partialorder %v6465_v57, 0.0  ;;  %v12636_v45 = vld [vmem:[#allocation18 + $0x36c] ss:$16 sps:$4 sm:$0xff]   ;;  %v12640_v58 = vld [vmem:[#allocation18 + $0x328] ss:$16 sps:$4 sm:$0xff]  }
 0xb09   :  { %7226 = vmatpush2.bf16.msra.mxu1 %v12580_v52  ;;  %7269 = vmatpush2.bf16.msra.mxu0 %v12583_v43  ;;  %vm6470_vm8 = vcmp.ge.f32.partialorder %v6462_v1, 0.0  ;;  %vm6474_vm9 = vcmp.ge.f32.partialorder %v6466_v61, 0.0  ;;  %v6478_v4 = vmul.f32 0.2, %v6462_v1  ;;  %v6482_v5 = vmul.f32 0.2, %v6466_v61 }
 0xb0a   :  { %7227 = vmatprep.subr.bf16.mxu1 %v12588_v62  ;;  %7270 = vmatprep.subr.bf16.mxu0 %v12591_v63  ;;  %v6485_v18 = vsel %vm6469_vm10, %v6461_v40, %v6477_v13  ;;  %v6489_v19 = vsel %vm6473_vm11, %v6465_v57, %v6481_v47  ;;  %v12639_v48 = vld [vmem:[#allocation18 + $0x34c] ss:$16 sps:$4 sm:$0xff]   ;;  %v12637_v52 = vld [vmem:[#allocation18 + $0x348] ss:$16 sps:$4 sm:$0xff]   ;;  %v12648_v57 = vld [vmem:[#allocation20 + $0xe4] ss:$16 sps:$4 sm:$0xff]  }
 0xb0b   :  { %v6486_v12 = vsel %vm6470_vm8, %v6462_v1, %v6478_v4  ;;  %v6490_v7 = vsel %vm6474_vm9, %v6466_v61, %v6482_v5  ;;  %v15094_v46 = vpack.c.bf16 %v6489_v19, %v6485_v18  ;;  %v12642_v43 = vld [vmem:[#allocation18 + $0x32c] ss:$16 sps:$4 sm:$0xff]   ;;  %v12643_v63 = vld [vmem:[#allocation18 + $0x308] ss:$16 sps:$4 sm:$0xff]   ;;  %v12646_v1 = vld [vmem:[#allocation20 + $0xe0] ss:$16 sps:$4 sm:$0xff]  }
 0xb0c   :  { %v6494_v14 = vpack.c.bf16 %v6490_v7, %v6486_v12  ;;  %v12645_v62 = vld [vmem:[#allocation18 + $0x30c] ss:$16 sps:$4 sm:$0xff]   ;;  %v12651_v61 = vld [vmem:[#allocation20 + $0xc4] ss:$16 sps:$4 sm:$0xff]   ;;  %v12649_v40 = vld [vmem:[#allocation20 + $0xc0] ss:$16 sps:$4 sm:$0xff]  }
 0xb0d   :  { %7228 = vmatpush2.bf16.msra.mxu1 %v12586_v2  ;;  %7271 = vmatpush2.bf16.msra.mxu0 %v12589_v3  ;;  %v12654_v2 = vld [vmem:[#allocation20 + $0xa4] ss:$16 sps:$4 sm:$0xff]   ;;  %v12652_v3 = vld [vmem:[#allocation20 + $0xa0] ss:$16 sps:$4 sm:$0xff]  }
 0xb0e   :  { %7231 = vmatprep.mubr.bf16.mxu1 %v6494_v14  ;;  %7229 = vmatprep.subr.bf16.mxu1 %v12594_v6  ;;  %v12657_v4 = vld [vmem:[#allocation20 + $0x84] ss:$16 sps:$4 sm:$0xff]   ;;  %v12655_v5 = vld [vmem:[#allocation20 + $0x80] ss:$16 sps:$4 sm:$0xff]  }
 0xb0f   :  { %7272 = vmatprep.subr.bf16.mxu0 %v12597_v8  ;;  %v12660_v6 = vld [vmem:[#allocation20 + $0x64] ss:$16 sps:$4 sm:$0xff]   ;;  %v12658_v12 = vld [vmem:[#allocation20 + $0x60] ss:$16 sps:$4 sm:$0xff]  }
 0xb10   :  { %v12663_v7 = vld [vmem:[#allocation20 + $0x44] ss:$16 sps:$4 sm:$0xff]   ;;  %v12661_v8 = vld [vmem:[#allocation20 + $0x40] ss:$16 sps:$4 sm:$0xff]  }
 0xb11   :  { %7230 = vmatpush2.bf16.msra.mxu1 %v12592_v30  ;;  %7273 = vmatpush2.bf16.msra.mxu0 %v12595_v36  ;;  %v12666_v13 = vld [vmem:[#allocation20 + $0x24] ss:$16 sps:$4 sm:$0xff]   ;;  %v12664_v47 = vld [vmem:[#allocation20 + $0x20] ss:$16 sps:$4 sm:$0xff]  }
 0xb12   :  { %7285 = vmatprep.subr.bf16.mxu1 %v12600_v17  ;;  %8121 = vmatprep.subr.bf16.mxu0 %v12648_v57  ;;  %v12667_v30 = vld [vmem:[#allocation20] ss:$16 sps:$4 sm:$0xff]   ;;  %v12672_v36 = vld [vmem:[#allocation20 + $0x1e4] ss:$16 sps:$4 sm:$0xff]  }
 0xb13   :  { %v12670_v17 = vld [vmem:[#allocation20 + $0x1e0] ss:$16 sps:$4 sm:$0xff]   ;;  %v12675_v18 = vld [vmem:[#allocation20 + $0x1c4] ss:$16 sps:$4 sm:$0xff]  }
 0xb14   :  { %7232 = vmatmul.mubr.bf16.vlgmr.msra.gmra.mxu1 %v15094_v46  ;;  %7275 = vmatmul.mubr.bf16.vlgmr.msra.gmra.mxu0 %v15065_v38  ;;  %v12618_v38 = vld [vmem:[#allocation18 + $0x22c] ss:$16 sps:$4 sm:$0xff]   ;;  %v12673_v19 = vld [vmem:[#allocation20 + $0x1c0] ss:$16 sps:$4 sm:$0xff]   ;;  %v12702_v57 = vld [vmem:[#allocation20 + $0x2c4] ss:$16 sps:$4 sm:$0xff]  }
 0xb15   :  { %7286 = vmatpush1.bf16.msra.mxu1 %v12598_v20  ;;  %7317 = vmatprep.mubr.bf16.mxu1 %v6494_v14  ;;  %v12669_v14 = vld [vmem:[#allocation20 + $0x4] ss:$16 sps:$4 sm:$0xff]  }
 0xb16   :  { %7287 = vmatprep.subr.bf16.mxu1 %v12603_v22  ;;  %8122 = vmatpush1.bf16.msra.mxu0 %v12646_v1  ;;  %v12678_v20 = vld [vmem:[#allocation20 + $0x1a4] ss:$16 sps:$4 sm:$0xff]   ;;  %v12700_v1 = vld [vmem:[#allocation20 + $0x2c0] ss:$16 sps:$4 sm:$0xff]  }
 0xb17   :  { %8123 = vmatprep.subr.bf16.mxu0 %v12651_v61  ;;  %v12681_v22 = vld [vmem:[#allocation20 + $0x184] ss:$16 sps:$4 sm:$0xff]  }
 0xb18   :  { %v12708_v61 = vld [vmem:[#allocation20 + $0x2a4] ss:$16 sps:$4 sm:$0xff]  }
 0xb19   :  { %7288 = vmatpush1.bf16.msra.mxu1 %v12601_v24 }
 0xb1a   :  { %7289 = vmatprep.subr.bf16.mxu1 %v12606_v25  ;;  %8124 = vmatpush1.bf16.msra.mxu0 %v12649_v40  ;;  %v12679_v25 = vld [vmem:[#allocation20 + $0x180] ss:$16 sps:$4 sm:$0xff]  }
 0xb1b   :  { %8125 = vmatprep.subr.bf16.mxu0 %v12654_v2  ;;  %v12706_v40 = vld [vmem:[#allocation20 + $0x2a0] ss:$16 sps:$4 sm:$0xff]   ;;  %v12714_v2 = vld [vmem:[#allocation20 + $0x284] ss:$16 sps:$4 sm:$0xff]  }
 0xb1d   :  { %7290 = vmatpush1.bf16.msra.mxu1 %v12604_v26  ;;  %v12684_v26 = vld [vmem:[#allocation20 + $0x164] ss:$16 sps:$4 sm:$0xff]  }
 0xb1e   :  { %7291 = vmatprep.subr.bf16.mxu1 %v12609_v41  ;;  %8126 = vmatpush1.bf16.msra.mxu0 %v12652_v3  ;;  %v12712_v3 = vld [vmem:[#allocation20 + $0x280] ss:$16 sps:$4 sm:$0xff]  }
 0xb1f   :  { %8127 = vmatprep.subr.bf16.mxu0 %v12657_v4  ;;  %v12720_v4 = vld [vmem:[#allocation20 + $0x264] ss:$16 sps:$4 sm:$0xff]  }
 0xb21   :  { %7292 = vmatpush1.bf16.msra.mxu1 %v12607_v15  ;;  %v12682_v15 = vld [vmem:[#allocation20 + $0x160] ss:$16 sps:$4 sm:$0xff]  }
 0xb22   :  { %7293 = vmatprep.subr.bf16.mxu1 %v12612_v27  ;;  %8128 = vmatpush1.bf16.msra.mxu0 %v12655_v5  ;;  %v12687_v27 = vld [vmem:[#allocation20 + $0x144] ss:$16 sps:$4 sm:$0xff]   ;;  %v12718_v5 = vld [vmem:[#allocation20 + $0x260] ss:$16 sps:$4 sm:$0xff]  }
 0xb23   :  { %8129 = vmatprep.subr.bf16.mxu0 %v12660_v6  ;;  %v12726_v6 = vld [vmem:[#allocation20 + $0x244] ss:$16 sps:$4 sm:$0xff]  }
 0xb25   :  { %7294 = vmatpush1.bf16.msra.mxu1 %v12610_v29 }
 0xb26   :  { %7295 = vmatprep.subr.bf16.mxu1 %v12615_v28  ;;  %8130 = vmatpush1.bf16.msra.mxu0 %v12658_v12  ;;  %v12685_v28 = vld [vmem:[#allocation20 + $0x140] ss:$16 sps:$4 sm:$0xff]  }
 0xb27   :  { %8131 = vmatprep.subr.bf16.mxu0 %v12663_v7  ;;  %v12724_v12 = vld [vmem:[#allocation20 + $0x240] ss:$16 sps:$4 sm:$0xff]   ;;  %v12732_v7 = vld [vmem:[#allocation20 + $0x224] ss:$16 sps:$4 sm:$0xff]  }
 0xb29   :  { %7296 = vmatpush1.bf16.msra.mxu1 %v12613_v10 }
 0xb2a   :  { %7297 = vmatprep.subr.bf16.mxu1 %v12618_v38  ;;  %8132 = vmatpush1.bf16.msra.mxu0 %v12661_v8  ;;  %v12690_v38 = vld [vmem:[#allocation20 + $0x124] ss:$16 sps:$4 sm:$0xff]   ;;  %v12730_v8 = vld [vmem:[#allocation20 + $0x220] ss:$16 sps:$4 sm:$0xff]  }
 0xb2b   :  { %8133 = vmatprep.subr.bf16.mxu0 %v12666_v13  ;;  %v12738_v13 = vld [vmem:[#allocation20 + $0x204] ss:$16 sps:$4 sm:$0xff]  }
 0xb2d   :  { %7298 = vmatpush1.bf16.msra.mxu1 %v12616_v9  ;;  %v10781_v9 = vld [vmem:[%s15460_s28 + $0x16] ss:$0 sm:$0xff] }
 0xb2e   :  { %7299 = vmatprep.subr.bf16.mxu1 %v12621_v34  ;;  %8134 = vmatpush1.bf16.msra.mxu0 %v12664_v47  ;;  %v12736_v47 = vld [vmem:[#allocation20 + $0x200] ss:$16 sps:$4 sm:$0xff]  }
 0xb2f   :  { %8135 = vmatprep.subr.bf16.mxu0 %v12669_v14  ;;  %v12744_v14 = vld [vmem:[#allocation20 + $0x3e4] ss:$16 sps:$4 sm:$0xff]  }
 0xb31   :  { %7300 = vmatpush1.bf16.msra.mxu1 %v12619_v16 }
 0xb32   :  { %7301 = vmatprep.subr.bf16.mxu1 %v12624_v11  ;;  %8136 = vmatpush1.bf16.msra.mxu0 %v12667_v30  ;;  %v12688_v11 = vld [vmem:[#allocation20 + $0x120] ss:$16 sps:$4 sm:$0xff]  }
 0xb33   :  { %8137 = vmatprep.subr.bf16.mxu0 %v12672_v36  ;;  %v12742_v30 = vld [vmem:[#allocation20 + $0x3e0] ss:$16 sps:$4 sm:$0xff]   ;;  %v12750_v36 = vld [vmem:[#allocation20 + $0x3c4] ss:$16 sps:$4 sm:$0xff]  }
 0xb35   :  { %7302 = vmatpush2.bf16.msra.mxu1 %v12622_v37 }
 0xb36   :  { %7303 = vmatprep.subr.bf16.mxu1 %v12627_v44  ;;  %8138 = vmatpush2.bf16.msra.mxu0 %v12670_v17  ;;  %v12748_v17 = vld [vmem:[#allocation20 + $0x3c0] ss:$16 sps:$4 sm:$0xff]  }
 0xb37   :  { %8139 = vmatprep.subr.bf16.mxu0 %v12675_v18  ;;  %v12756_v18 = vld [vmem:[#allocation20 + $0x3a4] ss:$16 sps:$4 sm:$0xff]  }
 0xb39   :  { %7304 = vmatpush2.bf16.msra.mxu1 %v12625_v59 }
 0xb3a   :  { %7305 = vmatprep.subr.bf16.mxu1 %v12630_v49  ;;  %8140 = vmatpush2.bf16.msra.mxu0 %v12673_v19  ;;  %v12754_v19 = vld [vmem:[#allocation20 + $0x3a0] ss:$16 sps:$4 sm:$0xff]  }
 0xb3b   :  { %8141 = vmatprep.subr.bf16.mxu0 %v12678_v20  ;;  %v12762_v20 = vld [vmem:[#allocation20 + $0x384] ss:$16 sps:$4 sm:$0xff]  }
 0xb3d   :  { %7306 = vmatpush2.bf16.msra.mxu1 %v12628_v55  ;;  %v12691_v55 = vld [vmem:[#allocation20 + $0x100] ss:$16 sps:$4 sm:$0xff]  }
 0xb3e   :  { %7307 = vmatprep.subr.bf16.mxu1 %v12633_v54  ;;  %v12693_v54 = vld [vmem:[#allocation20 + $0x104] ss:$16 sps:$4 sm:$0xff]  }
 0xb41   :  { %7308 = vmatpush2.bf16.msra.mxu1 %v12631_v51 }
 0xb42   :  { %7309 = vmatprep.subr.bf16.mxu1 %v12636_v45 }
 0xb45   :  { %7310 = vmatpush2.bf16.msra.mxu1 %v12634_v35 }
 0xb46   :  { %7311 = vmatprep.subr.bf16.mxu1 %v12639_v48 }
 0xb49   :  { %7312 = vmatpush2.bf16.msra.mxu1 %v12637_v52 }
 0xb4a   :  { %7313 = vmatprep.subr.bf16.mxu1 %v12642_v43  ;;  %v12696_v43 = vld [vmem:[#allocation20 + $0x2e4] ss:$16 sps:$4 sm:$0xff]  }
 0xb4d   :  { %7314 = vmatpush2.bf16.msra.mxu1 %v12640_v58  ;;  %v12699_v58 = vld [vmem:[#allocation20 + $0xec] ss:$16 sps:$4 sm:$0xff]  }
 0xb4e   :  { %7315 = vmatprep.subr.bf16.mxu1 %v12645_v62  ;;  %v12694_v62 = vld [vmem:[#allocation20 + $0x2e0] ss:$16 sps:$4 sm:$0xff]  }
 0xb51   :  { %7316 = vmatpush2.bf16.msra.mxu1 %v12643_v63 }
 0xb52   :  { %8164 = vmatprep.subr.bf16.mxu1 %v12696_v43 }
 0xb54   :  { %7318 = vmatmul.mubr.bf16.vlgmr.msra.gmra.mxu1 %v15094_v46  ;;  %v12676_v46 = vld [vmem:[#allocation20 + $0x1a0] ss:$16 sps:$4 sm:$0xff]   ;;  %v11439_v24 = vpop.f32.mrf.mxu0 }
 0xb55   :  { %8142 = vmatpush2.bf16.msra.mxu0 %v12676_v46  ;;  %8165 = vmatpush1.bf16.msra.mxu1 %v12694_v62  ;;  %v12760_v46 = vld [vmem:[#allocation20 + $0x380] ss:$16 sps:$4 sm:$0xff]  }
 0xb56   :  { %8143 = vmatprep.subr.bf16.mxu0 %v12681_v22  ;;  %v11440_v41 = vpop.f32.mrf.mxu0  ;;  %8166 = vmatprep.subr.bf16.mxu1 %v12702_v57 }
 0xb57   :  { %v11441_v10 = vadd.f32 %v11440_v41, %v11439_v24  ;;  %v12768_v24 = vld [vmem:[#allocation20 + $0x364] ss:$16 sps:$4 sm:$0xff]  }
 0xb58   :  { %v11442_v29 = vpop.f32.mrf.mxu0  ;;  %v12774_v41 = vld [vmem:[#allocation20 + $0x344] ss:$16 sps:$4 sm:$0xff]  }
 0xb59   :  { %8144 = vmatpush2.bf16.msra.mxu0 %v12679_v25  ;;  %v5981_v44 = vadd.f32 %v11441_v10, %v10781_v9  ;;  %8167 = vmatpush1.bf16.msra.mxu1 %v12700_v1  ;;  %v12766_v25 = vld [vmem:[#allocation20 + $0x360] ss:$16 sps:$4 sm:$0xff]  }
 0xb5a   :  { %8145 = vmatprep.subr.bf16.mxu0 %v12684_v26  ;;  %v11443_v34 = vpop.f32.mrf.mxu0  ;;  %8168 = vmatprep.subr.bf16.mxu1 %v12708_v61 }
 0xb5b   :  { %v11444_v59 = vadd.f32 %v11443_v34, %v11442_v29  ;;  %v12786_v34 = vld [vmem:[#allocation20 + $0x304] ss:$16 sps:$4 sm:$0xff]  }
 0xb5d   :  { %8146 = vmatpush2.bf16.msra.mxu0 %v12682_v15  ;;  %v5984_v48 = vadd.f32 %v11444_v59, %v10781_v9  ;;  %8169 = vmatpush1.bf16.msra.mxu1 %v12706_v40  ;;  %v12772_v15 = vld [vmem:[#allocation20 + $0x340] ss:$16 sps:$4 sm:$0xff]  }
 0xb5e   :  { %8147 = vmatprep.subr.bf16.mxu0 %v12687_v27  ;;  %8170 = vmatprep.subr.bf16.mxu1 %v12714_v2  ;;  %v15105_v27 = vld [vmem:[%s15460_s28 + $0x17] sm:$0xf]  ;;  %v12778_v9 = vld [vmem:[#allocation20 + $0x320] ss:$16 sps:$4 sm:$0xff]  }
 0xb5f   :  { %v6499_v10 = vrot.slane %v15105_v27, %v14013_v31 }
 0xb61   :  { %8148 = vmatpush2.bf16.msra.mxu0 %v12685_v28  ;;  %8171 = vmatpush1.bf16.msra.mxu1 %v12712_v3  ;;  %v12780_v28 = vld [vmem:[#allocation20 + $0x324] ss:$16 sps:$4 sm:$0xff]  }
 0xb62   :  { %8149 = vmatprep.subr.bf16.mxu0 %v12690_v38  ;;  %8172 = vmatprep.subr.bf16.mxu1 %v12720_v4 }
 0xb65   :  { %8150 = vmatpush2.bf16.msra.mxu0 %v12688_v11  ;;  %8173 = vmatpush1.bf16.msra.mxu1 %v12718_v5 }
 0xb66   :  { %8151 = vmatprep.subr.bf16.mxu0 %v12693_v54  ;;  %8174 = vmatprep.subr.bf16.mxu1 %v12726_v6 }
 0xb69   :  { %8152 = vmatpush2.bf16.msra.mxu0 %v12691_v55  ;;  %8175 = vmatpush1.bf16.msra.mxu1 %v12724_v12 }
 0xb6a   :  { %8207 = vmatprep.subr.bf16.mxu0 %v12699_v58  ;;  %8176 = vmatprep.subr.bf16.mxu1 %v12732_v7  ;;  %v12792_v58 = vld [vmem:[#allocation20 + $0x2ec] ss:$16 sps:$4 sm:$0xff]  }
 0xb6d   :  { %8177 = vmatpush1.bf16.msra.mxu1 %v12730_v8 }
 0xb6e   :  { %8178 = vmatprep.subr.bf16.mxu1 %v12738_v13 }
 0xb71   :  { %8179 = vmatpush1.bf16.msra.mxu1 %v12736_v47 }
 0xb72   :  { %8180 = vmatprep.subr.bf16.mxu1 %v12744_v14 }
 0xb75   :  { %8181 = vmatpush2.bf16.msra.mxu1 %v12742_v30 }
 0xb76   :  { %8182 = vmatprep.subr.bf16.mxu1 %v12750_v36 }
 0xb79   :  { %8183 = vmatpush2.bf16.msra.mxu1 %v12748_v17 }
 0xb7a   :  { %8184 = vmatprep.subr.bf16.mxu1 %v12756_v18 }
 0xb7d   :  { %8185 = vmatpush2.bf16.msra.mxu1 %v12754_v19 }
 0xb7e   :  { %8186 = vmatprep.subr.bf16.mxu1 %v12762_v20 }
 0xb81   :  { %8187 = vmatpush2.bf16.msra.mxu1 %v12760_v46 }
 0xb82   :  { %8188 = vmatprep.subr.bf16.mxu1 %v12768_v24 }
 0xb85   :  { %8189 = vmatpush2.bf16.msra.mxu1 %v12766_v25 }
 0xb86   :  { %8190 = vmatprep.subr.bf16.mxu1 %v12774_v41 }
 0xb89   :  { %8191 = vmatpush2.bf16.msra.mxu1 %v12772_v15 }
 0xb8a   :  { %8192 = vmatprep.subr.bf16.mxu1 %v12780_v28 }
 0xb8d   :  { %8193 = vmatpush2.bf16.msra.mxu1 %v12778_v9 }
 0xb8e   :  { %8194 = vmatprep.subr.bf16.mxu1 %v12786_v34 }
 0xb94   :  { %v11461_v16 = vpop.f32.mrf.mxu1  ;;  %v7190_v22 = vpop.f32.mrf.mxu0 }
 0xb96   :  { %v11462_v37 = vpop.f32.mrf.mxu1  ;;  %v7192_v26 = vpop.f32.mrf.mxu0 }
 0xb97   :  { %v11463_v49 = vadd.f32 %v11462_v37, %v11461_v16  ;;  %v6503_v16 = vrot.slane %v15105_v27, %v14019_v33 }
 0xb98   :  { %v11464_v51 = vpop.f32.mrf.mxu1  ;;  %v7194_v29 = vpop.f32.mrf.mxu0 }
 0xb99   :  { %v6022_v45 = vadd.f32 %v11463_v49, %v5981_v44  ;;  %v12784_v44 = vld [vmem:[#allocation20 + $0x300] ss:$16 sps:$4 sm:$0xff]   ;;  %v7195_v59 = vadd.f32 %v7194_v29, %v6499_v10  ;;  %v7191_v49 = vadd.f32 %v7190_v22, %v6499_v10 }
 0xb9a   :  { %v11465_v35 = vpop.f32.mrf.mxu1  ;;  %v7196_v11 = vpop.f32.mrf.mxu0  ;;  %8195 = vmatpush2.bf16.msra.mxu1 %v12784_v44 }
 0xb9b   :  { %v11466_v52 = vadd.f32 %v11465_v35, %v11464_v51  ;;  %6030 = vrot.lane.b32.xlu0 %v6022_v45, %s13529_s15  ;;  %v7197_v54 = vadd.f32 %v7196_v11, %v6503_v16  ;;  %v7193_v45 = vadd.f32 %v7192_v26, %v6503_v16  ;;  %8250 = vmatprep.subr.bf16.mxu1 %v12792_v58 }
 0xb9d   :  { %v6025_v63 = vadd.f32 %v11466_v52, %v5984_v48 }
 0xb9f   :  { %6032 = vrot.lane.b32.xlu1 %v6025_v63, %s13529_s15 }
 0xbd4   :  { %v7233_v38 = vpop.f32.mrf.mxu1 }
 0xbd5   :  { %v7234_v35 = vadd.f32 %v7233_v38, %v7191_v49 }
 0xbd6   :  { %v7235_v37 = vpop.f32.mrf.mxu1 }
 0xbd7   :  { %v7236_v62 = vadd.f32 %v7235_v37, %v7193_v45 }
 0xbd8   :  { %v7237_v55 = vpop.f32.mrf.mxu1 }
 0xbd9   :  { %v7238_v51 = vadd.f32 %v7237_v55, %v7195_v59 }
 0xbda   :  { %v7239_v48 = vpop.f32.mrf.mxu1 }
 0xbdb   :  { %v7328_v52 = vsel %vm670_vm5, %v7238_v51, 0.0  ;;  %v7240_v43 = vadd.f32 %v7239_v48, %v7197_v54 }
 0xbdc   :  { %v7329_v63 = vadd.f32 %v7328_v52, %v7234_v35 }
 0xbdd   :  { %v7336_v57 = vsel %vm670_vm5, %v7240_v43, 0.0 }
 0xbde   :  { %v7330_v1 = vrot.slane %v7329_v63, 4  ;;  %v7337_v61 = vadd.f32 %v7336_v57, %v7236_v62 }
 0xbe0   :  { %v7331_v40 = vadd.f32 %v7330_v1, %v7329_v63  ;;  %v7338_v2 = vrot.slane %v7337_v61, 4 }
 0xbe2   :  { %v7332_v3 = vrot.slane %v7331_v40, 2  ;;  %v7339_v4 = vadd.f32 %v7338_v2, %v7337_v61 }
 0xbe4   :  { %v7333_v5 = vadd.f32 %v7332_v3, %v7331_v40  ;;  %v7340_v6 = vrot.slane %v7339_v4, 2  ;;  %v6507_v3 = vrot.slane %v15105_v27, %v14392_v21 }
 0xbe6   :  { %v7334_v12 = vrot.slane %v7333_v5, 1  ;;  %v7341_v7 = vadd.f32 %v7340_v6, %v7339_v4 }
 0xbe8   :  { %v7335_v8 = vadd.f32 %v7334_v12, %v7333_v5  ;;  %v7342_v13 = vrot.slane %v7341_v7, 1  ;;  %v6511_v12 = vrot.slane %v15105_v27, %v14398_v23  ;;  %v12705_v27 = vld [vmem:[#allocation20 + $0xcc] ss:$16 sps:$4 sm:$0xff]  }
 0xbea   :  { %v7360_v47 = vmul.f32 0.1, %v7335_v8  ;;  %v7343_v14 = vadd.f32 %v7342_v13, %v7341_v7 }
 0xbec   :  { %v7364_v30 = vsub.f32 %v7234_v35, %v7360_v47  ;;  %v7368_v36 = vsub.f32 %v7238_v51, %v7360_v47  ;;  %v7361_v17 = vmul.f32 0.1, %v7343_v14  ;;  %v7276_v35 = vpop.f32.mrf.mxu0 }
 0xbee   :  { %v7372_v18 = vmul.f32 %v7364_v30, %v7364_v30  ;;  %v7376_v19 = vmul.f32 %v7368_v36, %v7368_v36  ;;  %v7365_v20 = vsub.f32 %v7236_v62, %v7361_v17  ;;  %v7369_v46 = vsub.f32 %v7240_v43, %v7361_v17  ;;  %v7278_v52 = vpop.f32.mrf.mxu0 }
 0xbef   :  { %v7277_v17 = vadd.f32 %v7276_v35, %v6507_v3 }
 0xbf0   :  { %v7380_v22 = vsel %vm670_vm5, %v7376_v19, 0.0  ;;  %v7373_v24 = vmul.f32 %v7365_v20, %v7365_v20  ;;  %v7377_v25 = vmul.f32 %v7369_v46, %v7369_v46  ;;  %v7280_v1 = vpop.f32.mrf.mxu0 }
 0xbf1   :  { %v7381_v26 = vadd.f32 %v7380_v22, %v7372_v18  ;;  %v7281_v47 = vadd.f32 %v7280_v1, %v6507_v3 }
 0xbf2   :  { %v7388_v41 = vsel %vm670_vm5, %v7377_v25, 0.0  ;;  %v7282_v7 = vpop.f32.mrf.mxu0  ;;  %v7279_v25 = vadd.f32 %v7278_v52, %v6511_v12 }
 0xbf3   :  { %v7382_v15 = vrot.slane %v7381_v26, 4  ;;  %v7389_v29 = vadd.f32 %v7388_v41, %v7373_v24  ;;  %v12697_v24 = vld [vmem:[#allocation20 + $0xe8] ss:$16 sps:$4 sm:$0xff]  }
 0xbf5   :  { %v7383_v28 = vadd.f32 %v7382_v15, %v7381_v26  ;;  %v7390_v10 = vrot.slane %v7389_v29, 4 }
 0xbf7   :  { %v7384_v38 = vrot.slane %v7383_v28, 2  ;;  %v7391_v9 = vadd.f32 %v7390_v10, %v7389_v29 }
 0xbf9   :  { %v7385_v34 = vadd.f32 %v7384_v38, %v7383_v28  ;;  %v7392_v16 = vrot.slane %v7391_v9, 2 }
 0xbfb   :  { %v7386_v11 = vrot.slane %v7385_v34, 1  ;;  %v7393_v37 = vadd.f32 %v7392_v16, %v7391_v9 }
 0xbfd   :  { %v7387_v44 = vadd.f32 %v7386_v11, %v7385_v34  ;;  %v7394_v59 = vrot.slane %v7393_v37, 1  ;;  %v12703_v34 = vld [vmem:[#allocation20 + $0xc8] ss:$16 sps:$4 sm:$0xff]  }
 0xbff   :  { %v7412_v49 = vmul.f32 0.1, %v7387_v44  ;;  %v7395_v55 = vadd.f32 %v7394_v59, %v7393_v37  ;;  %v12711_v37 = vld [vmem:[#allocation20 + $0xac] ss:$16 sps:$4 sm:$0xff]  }
 0xc01   :  { %v7416_v54 = vadd.f32 1e-05, %v7412_v49  ;;  %v7413_v51 = vmul.f32 0.1, %v7395_v55  ;;  %v12709_v49 = vld [vmem:[#allocation20 + $0xa8] ss:$16 sps:$4 sm:$0xff]  }
 0xc03   :  { %13166 = vrsqrt.f32 %v7416_v54  ;;  %v7417_v45 = vadd.f32 1e-05, %v7413_v51  ;;  %v12717_v51 = vld [vmem:[#allocation20 + $0x8c] ss:$16 sps:$4 sm:$0xff]  }
 0xc05   :  { %13168 = vrsqrt.f32 %v7417_v45 }
 0xc0d   :  { %v6031_v48 = vpop.permute.xlu0 %6030 }
 0xc0e   :  { %6037 = vst.msk [vmem:[#allocation26] sm:$0xff] %vm6036_vm12, %v6031_v48  ;;  %v12715_v48 = vld [vmem:[#allocation20 + $0x88] ss:$16 sps:$4 sm:$0xff]  }
 0xc10   :  { %v13167_v43 = vpop.eup %13166 }
 0xc11   :  { %v7424_v58 = vmul.f32 %v13167_v43, %v7364_v30  ;;  %v7428_v62 = vmul.f32 %v13167_v43, %v7368_v36  ;;  %v6033_v63 = vpop.permute.xlu1 %6032 }
 0xc12   :  { %v13169_v57 = vpop.eup %13168  ;;  %6039 = vst.msk [vmem:[#allocation26 + $0x8] sm:$0x3] %vm6038_vm13, %v6033_v63 }
 0xc13   :  { %v7444_v61 = vmul.f32 0.2, %v7428_v62  ;;  %v7425_v40 = vmul.f32 %v13169_v57, %v7365_v20  ;;  %v7429_v2 = vmul.f32 %v13169_v57, %v7369_v46  ;;  %vm7436_vm14 = vcmp.ge.f32.partialorder %v7428_v62, 0.0  ;;  %v12721_v57 = vld [vmem:[#allocation20 + $0x68] ss:$16 sps:$4 sm:$0xff]  }
 0xc14   :  { %v7319_v4 = vpop.f32.mrf.mxu1  ;;  %vm7432_vm15 = vcmp.ge.f32.partialorder %v7424_v58, 0.0  ;;  %v7440_v5 = vmul.f32 0.2, %v7424_v58  ;;  %v7283_v20 = vadd.f32 %v7282_v7, %v6511_v12 }
 0xc15   :  { %v7445_v6 = vmul.f32 0.2, %v7429_v2  ;;  %vm7433_vm0 = vcmp.ge.f32.partialorder %v7425_v40, 0.0  ;;  %vm7437_vm1 = vcmp.ge.f32.partialorder %v7429_v2, 0.0  ;;  %v7441_v13 = vmul.f32 0.2, %v7425_v40 }
 0xc16   :  { %v7321_v8 = vpop.f32.mrf.mxu1  ;;  %v7448_v30 = vsel %vm7432_vm15, %v7424_v58, %v7440_v5  ;;  %v7452_v36 = vsel %vm7436_vm14, %v7428_v62, %v7444_v61  ;;  %v7320_v26 = vadd.f32 %v7319_v4, %v7277_v17  ;;  %v12723_v58 = vld [vmem:[#allocation20 + $0x6c] ss:$16 sps:$4 sm:$0xff]   ;;  %v12727_v5 = vld [vmem:[#allocation20 + $0x48] ss:$16 sps:$4 sm:$0xff]   ;;  %vm8595_vm15 = vcmask 238784  }
 0xc17   :  { %v7453_v14 = vsel %vm7437_vm1, %v7429_v2, %v7445_v6  ;;  %v7449_v19 = vsel %vm7433_vm0, %v7425_v40, %v7441_v13  ;;  %v15119_v15 = vpack.c.bf16 %v7452_v36, %v7448_v30  ;;  %v7322_v10 = vadd.f32 %v7321_v8, %v7279_v25  ;;  %v12729_v40 = vld [vmem:[#allocation20 + $0x4c] ss:$16 sps:$4 sm:$0xff]   ;;  %v12733_v17 = vld [vmem:[#allocation20 + $0x28] ss:$16 sps:$4 sm:$0xff]  }
 0xc18   :  { %v7323_v18 = vpop.f32.mrf.mxu1  ;;  %v7457_v22 = vpack.c.bf16 %v7453_v14, %v7449_v19  ;;  %v12735_v13 = vld [vmem:[#allocation20 + $0x2c] ss:$16 sps:$4 sm:$0xff]   ;;  %v12739_v25 = vld [vmem:[#allocation20 + $0x8] ss:$16 sps:$4 sm:$0xff]  }
 0xc19   :  { %v7324_v46 = vadd.f32 %v7323_v18, %v7281_v47  ;;  %v12741_v19 = vld [vmem:[#allocation20 + $0xc] ss:$16 sps:$4 sm:$0xff]  }
 0xc1a   :  { %v7325_v41 = vpop.f32.mrf.mxu1  ;;  %8153 = vmatprep.mubr.bf16.mxu0 %v7457_v22 }
 0xc1b   :  { %v7344_v29 = vsel %vm670_vm5, %v7324_v46, 0.0  ;;  %v7326_v28 = vadd.f32 %v7325_v41, %v7283_v20  ;;  %8154 = vmatmul.mubr.bf16.vlgmr.msra.gmra.mxu0 %v15119_v15 }
 0xc1c   :  { %v7345_v38 = vadd.f32 %v7344_v29, %v7320_v26  ;;  %8208 = vmatpush1.bf16.msra.mxu0 %v12697_v24  ;;  %8239 = vmatprep.mubr.bf16.mxu0 %v7457_v22 }
 0xc1d   :  { %v7352_v9 = vsel %vm670_vm5, %v7326_v28, 0.0  ;;  %8209 = vmatprep.subr.bf16.mxu0 %v12705_v27 }
 0xc1e   :  { %v7346_v16 = vrot.slane %v7345_v38, 4  ;;  %v7353_v11 = vadd.f32 %v7352_v9, %v7322_v10 }
 0xc20   :  { %v7347_v44 = vadd.f32 %v7346_v16, %v7345_v38  ;;  %v7354_v59 = vrot.slane %v7353_v11, 4  ;;  %8210 = vmatpush1.bf16.msra.mxu0 %v12703_v34  ;;  %v12753_v38 = vld [vmem:[#allocation20 + $0x1cc] ss:$16 sps:$4 sm:$0xff]  }
 0xc21   :  { %8211 = vmatprep.subr.bf16.mxu0 %v12711_v37  ;;  %v12751_v37 = vld [vmem:[#allocation20 + $0x1c8] ss:$16 sps:$4 sm:$0xff]  }
 0xc22   :  { %v7348_v55 = vrot.slane %v7347_v44, 2  ;;  %v7355_v54 = vadd.f32 %v7354_v59, %v7353_v11 }
 0xc24   :  { %v7349_v45 = vadd.f32 %v7348_v55, %v7347_v44  ;;  %v7356_v35 = vrot.slane %v7355_v54, 2  ;;  %8212 = vmatpush1.bf16.msra.mxu0 %v12709_v49  ;;  %v12759_v44 = vld [vmem:[#allocation20 + $0x1ac] ss:$16 sps:$4 sm:$0xff]  }
 0xc25   :  { %8213 = vmatprep.subr.bf16.mxu0 %v12717_v51  ;;  %v12757_v51 = vld [vmem:[#allocation20 + $0x1a8] ss:$16 sps:$4 sm:$0xff]  }
 0xc26   :  { %v7350_v52 = vrot.slane %v7349_v45, 1  ;;  %v7357_v43 = vadd.f32 %v7356_v35, %v7355_v54 }
 0xc28   :  { %v7351_v62 = vadd.f32 %v7350_v52, %v7349_v45  ;;  %v7358_v63 = vrot.slane %v7357_v43, 1  ;;  %8214 = vmatpush1.bf16.msra.mxu0 %v12715_v48  ;;  %v12765_v45 = vld [vmem:[#allocation20 + $0x18c] ss:$16 sps:$4 sm:$0xff]   ;;  %v12763_v48 = vld [vmem:[#allocation20 + $0x188] ss:$16 sps:$4 sm:$0xff]  }
 0xc29   :  { %8215 = vmatprep.subr.bf16.mxu0 %v12723_v58  ;;  %v12771_v52 = vld [vmem:[#allocation20 + $0x16c] ss:$16 sps:$4 sm:$0xff]  }
 0xc2a   :  { %v7362_v1 = vmul.f32 0.1, %v7351_v62  ;;  %v7359_v61 = vadd.f32 %v7358_v63, %v7357_v43  ;;  %v12769_v43 = vld [vmem:[#allocation20 + $0x168] ss:$16 sps:$4 sm:$0xff]   ;;  %v12777_v58 = vld [vmem:[#allocation20 + $0x14c] ss:$16 sps:$4 sm:$0xff]  }
 0xc2b   :  { %v12775_v62 = vld [vmem:[#allocation20 + $0x148] ss:$16 sps:$4 sm:$0xff]   ;;  %v12783_v63 = vld [vmem:[#allocation20 + $0x12c] ss:$16 sps:$4 sm:$0xff]  }
 0xc2c   :  { %v15124_v2 = vsub.f32 %v7320_v26, %v7362_v1  ;;  %v15126_v3 = vsub.f32 %v7324_v46, %v7362_v1  ;;  %v7363_v4 = vmul.f32 0.1, %v7359_v61  ;;  %8216 = vmatpush1.bf16.msra.mxu0 %v12721_v57  ;;  %v12747_v26 = vld [vmem:[#allocation20 + $0x1ec] ss:$16 sps:$4 sm:$0xff]  }
 0xc2d   :  { %8217 = vmatprep.subr.bf16.mxu0 %v12729_v40  ;;  %v12781_v40 = vld [vmem:[#allocation20 + $0x128] ss:$16 sps:$4 sm:$0xff]  }
 0xc2e   :  { %v7374_v6 = vmul.f32 %v15124_v2, %v15124_v2  ;;  %v7378_v12 = vmul.f32 %v15126_v3, %v15126_v3  ;;  %v15132_v7 = vsub.f32 %v7322_v10, %v7363_v4  ;;  %v15134_v8 = vsub.f32 %v7326_v28, %v7363_v4  ;;  %v12745_v10 = vld [vmem:[#allocation20 + $0x1e8] ss:$16 sps:$4 sm:$0xff]  }
 0xc30   :  { %v7396_v47 = vsel %vm670_vm5, %v7378_v12, 0.0  ;;  %v7375_v14 = vmul.f32 %v15132_v7, %v15132_v7  ;;  %v7379_v30 = vmul.f32 %v15134_v8, %v15134_v8  ;;  %8218 = vmatpush1.bf16.msra.mxu0 %v12727_v5  ;;  %v12789_v5 = vld [vmem:[#allocation20 + $0x10c] ss:$16 sps:$4 sm:$0xff]  }
 0xc31   :  { %v7397_v36 = vadd.f32 %v7396_v47, %v7374_v6  ;;  %8219 = vmatprep.subr.bf16.mxu0 %v12735_v13  ;;  %v12787_v47 = vld [vmem:[#allocation20 + $0x108] ss:$16 sps:$4 sm:$0xff]  }
 0xc32   :  { %v7404_v18 = vsel %vm670_vm5, %v7379_v30, 0.0 }
 0xc33   :  { %v7398_v20 = vrot.slane %v7397_v36, 4  ;;  %v7405_v46 = vadd.f32 %v7404_v18, %v7375_v14 }
 0xc34   :  { %8220 = vmatpush1.bf16.msra.mxu0 %v12733_v17 }
 0xc35   :  { %v7399_v22 = vadd.f32 %v7398_v20, %v7397_v36  ;;  %v7406_v24 = vrot.slane %v7405_v46, 4  ;;  %8221 = vmatprep.subr.bf16.mxu0 %v12741_v19  ;;  %v12790_v20 = vld [vmem:[#allocation20 + $0x2e8] ss:$16 sps:$4 sm:$0xff]  }
 0xc37   :  { %v7400_v41 = vrot.slane %v7399_v22, 2  ;;  %v7407_v27 = vadd.f32 %v7406_v24, %v7405_v46  ;;  %v12796_v24 = vld [vmem:[#allocation20 + $0x2a8] ss:$16 sps:$4 sm:$0xff]  }
 0xc38   :  { %8222 = vmatpush1.bf16.msra.mxu0 %v12739_v25  ;;  %v12801_v25 = vld [vmem:[#allocation20 + $0x28c] ss:$16 sps:$4 sm:$0xff]  }
 0xc39   :  { %v7401_v29 = vadd.f32 %v7400_v41, %v7399_v22  ;;  %v7408_v28 = vrot.slane %v7407_v27, 2  ;;  %8223 = vmatprep.subr.bf16.mxu0 %v12747_v26  ;;  %v12798_v22 = vld [vmem:[#allocation20 + $0x2ac] ss:$16 sps:$4 sm:$0xff]  }
 0xc3a   :  { %v12838_v26 = vld [vmem:[%s15426_s20 + $0x78] sm:$0xff]  }
 0xc3b   :  { %v7402_v9 = vrot.slane %v7401_v29, 1  ;;  %v7409_v34 = vadd.f32 %v7408_v28, %v7407_v27  ;;  %v12839_v41 = vld [vmem:[%s15426_s20 + $0x38] sm:$0xff]   ;;  %v12841_v28 = vld [vmem:[%s15426_s20 + $0x30] sm:$0xff]  }
 0xc3c   :  { %8224 = vmatpush2.bf16.msra.mxu0 %v12745_v10  ;;  %v12799_v27 = vld [vmem:[#allocation20 + $0x288] ss:$16 sps:$4 sm:$0xff]  }
 0xc3d   :  { %v7403_v16 = vadd.f32 %v7402_v9, %v7401_v29  ;;  %v7410_v11 = vrot.slane %v7409_v34, 1  ;;  %8225 = vmatprep.subr.bf16.mxu0 %v12753_v38  ;;  %v12804_v29 = vld [vmem:[#allocation20 + $0x26c] ss:$16 sps:$4 sm:$0xff]   ;;  %v12802_v38 = vld [vmem:[#allocation20 + $0x268] ss:$16 sps:$4 sm:$0xff]  }
 0xc3e   :  { %v12842_v10 = vld [vmem:[%s15426_s20 + $0x68] sm:$0xff]  }
 0xc3f   :  { %v7414_v59 = vmul.f32 0.1, %v7403_v16  ;;  %v7411_v49 = vadd.f32 %v7410_v11, %v7409_v34  ;;  %v12807_v9 = vld [vmem:[#allocation20 + $0x24c] ss:$16 sps:$4 sm:$0xff]   ;;  %v12844_v16 = vld [vmem:[%s15426_s20 + $0x60] sm:$0xff]  }
 0xc40   :  { %8226 = vmatpush2.bf16.msra.mxu0 %v12751_v37  ;;  %v12843_v34 = vld [vmem:[%s15426_s20 + $0x28] sm:$0xff]  }
 0xc41   :  { %v7418_v55 = vadd.f32 1e-05, %v7414_v59  ;;  %v7415_v54 = vmul.f32 0.1, %v7411_v49  ;;  %8227 = vmatprep.subr.bf16.mxu0 %v12759_v44  ;;  %v12805_v11 = vld [vmem:[#allocation20 + $0x248] ss:$16 sps:$4 sm:$0xff]  }
 0xc42   :  { %v12810_v37 = vld [vmem:[#allocation20 + $0x22c] ss:$16 sps:$4 sm:$0xff]   ;;  %v12845_v44 = vld [vmem:[%s15426_s20 + $0x20] sm:$0xff]   ;;  %v12808_v49 = vld [vmem:[#allocation20 + $0x228] ss:$16 sps:$4 sm:$0xff]  }
 0xc43   :  { %13170 = vrsqrt.f32 %v7418_v55  ;;  %v7419_v35 = vadd.f32 1e-05, %v7415_v54  ;;  %v12846_v59 = vld [vmem:[%s15426_s20 + $0x58] sm:$0xff]  }
 0xc44   :  { %8228 = vmatpush2.bf16.msra.mxu0 %v12757_v51  ;;  %v12813_v55 = vld [vmem:[#allocation20 + $0x20c] ss:$16 sps:$4 sm:$0xff]   ;;  %v12811_v51 = vld [vmem:[#allocation20 + $0x208] ss:$16 sps:$4 sm:$0xff]  }
 0xc45   :  { %13172 = vrsqrt.f32 %v7419_v35  ;;  %8229 = vmatprep.subr.bf16.mxu0 %v12765_v45  ;;  %v12847_v54 = vld [vmem:[%s15426_s20 + $0x18] sm:$0xff]  }
 0xc46   :  { %v12816_v45 = vld [vmem:[#allocation20 + $0x3ec] ss:$16 sps:$4 sm:$0xff]   ;;  %v12814_v35 = vld [vmem:[#allocation20 + $0x3e8] ss:$16 sps:$4 sm:$0xff]  }
 0xc48   :  { %8230 = vmatpush2.bf16.msra.mxu0 %v12763_v48  ;;  %v12819_v48 = vld [vmem:[#allocation20 + $0x3cc] ss:$16 sps:$4 sm:$0xff]  }
 0xc49   :  { %8231 = vmatprep.subr.bf16.mxu0 %v12771_v52  ;;  %v12817_v52 = vld [vmem:[#allocation20 + $0x3c8] ss:$16 sps:$4 sm:$0xff]  }
 0xc4c   :  { %8232 = vmatpush2.bf16.msra.mxu0 %v12769_v43  ;;  %v12822_v43 = vld [vmem:[#allocation20 + $0x3ac] ss:$16 sps:$4 sm:$0xff]  }
 0xc4d   :  { %8233 = vmatprep.subr.bf16.mxu0 %v12777_v58  ;;  %v12820_v58 = vld [vmem:[#allocation20 + $0x3a8] ss:$16 sps:$4 sm:$0xff]  }
 0xc50   :  { %v13171_v57 = vpop.eup %13170  ;;  %8234 = vmatpush2.bf16.msra.mxu0 %v12775_v62  ;;  %v12825_v62 = vld [vmem:[#allocation20 + $0x38c] ss:$16 sps:$4 sm:$0xff]  }
 0xc51   :  { %v7426_v1 = vmul.f32 %v13171_v57, %v15124_v2  ;;  %v7430_v61 = vmul.f32 %v13171_v57, %v15126_v3  ;;  %8235 = vmatprep.subr.bf16.mxu0 %v12783_v63  ;;  %v12823_v63 = vld [vmem:[#allocation20 + $0x388] ss:$16 sps:$4 sm:$0xff]   ;;  %v12828_v57 = vld [vmem:[#allocation20 + $0x36c] ss:$16 sps:$4 sm:$0xff]  }
 0xc52   :  { %v13173_v4 = vpop.eup %13172 }
 0xc53   :  { %vm7438_vm2 = vcmp.ge.f32.partialorder %v7430_v61, 0.0  ;;  %v7446_v6 = vmul.f32 0.2, %v7430_v61  ;;  %v7427_v12 = vmul.f32 %v13173_v4, %v15132_v7  ;;  %v7431_v13 = vmul.f32 %v13173_v4, %v15134_v8  ;;  %v12795_v7 = vld [vmem:[#allocation20 + $0x2cc] ss:$16 sps:$4 sm:$0xff]  }
 0xc54   :  { %vm7434_vm3 = vcmp.ge.f32.partialorder %v7426_v1, 0.0  ;;  %v7442_v14 = vmul.f32 0.2, %v7426_v1  ;;  %8236 = vmatpush2.bf16.msra.mxu0 %v12781_v40  ;;  %v12793_v8 = vld [vmem:[#allocation20 + $0x2c8] ss:$16 sps:$4 sm:$0xff]  }
 0xc55   :  { %v7447_v30 = vmul.f32 0.2, %v7431_v13  ;;  %vm7435_vm4 = vcmp.ge.f32.partialorder %v7427_v12, 0.0  ;;  %vm7439_vm6 = vcmp.ge.f32.partialorder %v7431_v13, 0.0  ;;  %v7443_v2 = vmul.f32 0.2, %v7427_v12  ;;  %8237 = vmatprep.subr.bf16.mxu0 %v12789_v5 }
 0xc56   :  { %v7450_v3 = vsel %vm7434_vm3, %v7426_v1, %v7442_v14  ;;  %v7454_v36 = vsel %vm7438_vm2, %v7430_v61, %v7446_v6  ;;  %v12826_v1 = vld [vmem:[#allocation20 + $0x368] ss:$16 sps:$4 sm:$0xff]   ;;  %v12831_v61 = vld [vmem:[#allocation20 + $0x34c] ss:$16 sps:$4 sm:$0xff]  }
 0xc57   :  { %v7451_v17 = vsel %vm7435_vm4, %v7427_v12, %v7443_v2  ;;  %v7455_v18 = vsel %vm7439_vm6, %v7431_v13, %v7447_v30  ;;  %v15146_v46 = vpack.c.bf16 %v7454_v36, %v7450_v3  ;;  %v12829_v40 = vld [vmem:[#allocation20 + $0x348] ss:$16 sps:$4 sm:$0xff]   ;;  %v12834_v4 = vld [vmem:[#allocation20 + $0x32c] ss:$16 sps:$4 sm:$0xff]   ;;  %v12848_v13 = vld [vmem:[%s15426_s20 + $0x50] sm:$0xff]   ;;  %vm10184_vm4 = vcmask 294128  }
 0xc58   :  { %v7459_v19 = vpack.c.bf16 %v7455_v18, %v7451_v17  ;;  %8238 = vmatpush2.bf16.msra.mxu0 %v12787_v47  ;;  %v12832_v5 = vld [vmem:[#allocation20 + $0x328] ss:$16 sps:$4 sm:$0xff]   ;;  %v12837_v6 = vld [vmem:[#allocation20 + $0x30c] ss:$16 sps:$4 sm:$0xff]   ;;  %v12849_v47 = vld [vmem:[%s15426_s20 + $0x10] sm:$0xff]   ;;  %vm10186_vm6 = vcmask 287984  }
 0xc59   :  { %11467 = vmatprep.subr.bf16.mxu0 %v12838_v26  ;;  %v12835_v12 = vld [vmem:[#allocation20 + $0x308] ss:$16 sps:$4 sm:$0xff]   ;;  %v12852_v2 = vld [vmem:[%s15426_s20 + $0x40] sm:$0xff]   ;;  %v12903_v26 = vld [vmem:[%s15426_s20 + $0xd0] sm:$0xff]  }
 0xc5a   :  { %8196 = vmatprep.mubr.bf16.mxu1 %v7459_v19  ;;  %v12850_v14 = vld [vmem:[%s15426_s20 + $0x48] sm:$0xff]   ;;  %v12853_v3 = vld [vmem:[%s15426_s20] sm:$0xff]   ;;  %v12878_v17 = vld [vmem:[%s15426_s20 + $0xf8] sm:$0xff]  }
 0xc5b   :  { %8197 = vmatmul.mubr.bf16.vlgmr.msra.gmra.mxu1 %v15146_v46  ;;  %8240 = vmatmul.mubr.bf16.vlgmr.msra.gmra.mxu0 %v15119_v15  ;;  %v12840_v15 = vld [vmem:[%s15426_s20 + $0x70] sm:$0xff]   ;;  %v12851_v30 = vld [vmem:[%s15426_s20 + $0x8] sm:$0xff]   ;;  %v12879_v18 = vld [vmem:[%s15426_s20 + $0xb8] sm:$0xff]  }
 0xc5c   :  { %8251 = vmatpush1.bf16.msra.mxu1 %v12790_v20  ;;  %8282 = vmatprep.mubr.bf16.mxu1 %v7459_v19  ;;  %v12856_v36 = vld [vmem:[#allocation21 + $0x74] ss:$8 sps:$4 sm:$0xff]   ;;  %v12883_v19 = vld [vmem:[%s15426_s20 + $0xf0] sm:$0xff]  }
 0xc5d   :  { %8252 = vmatprep.subr.bf16.mxu1 %v12795_v7  ;;  %11468 = vmatpush3.bf16.msra.mxu0 %v12839_v41  ;;  %v12884_v20 = vld [vmem:[%s15426_s20 + $0xb0] sm:$0xff]   ;;  %v12889_v7 = vld [vmem:[%s15426_s20 + $0xa8] sm:$0xff]  }
 0xc5e   :  { %11469 = vmatprep.subr.bf16.mxu0 %v12840_v15  ;;  %v12904_v41 = vld [vmem:[%s15426_s20 + $0x90] sm:$0xff]   ;;  %v12908_v15 = vld [vmem:[%s15426_s20 + $0xc8] sm:$0xff]  }
 0xc60   :  { %8253 = vmatpush1.bf16.msra.mxu1 %v12793_v8  ;;  %v12893_v8 = vld [vmem:[%s15426_s20 + $0xe0] sm:$0xff]  }
 0xc61   :  { %8254 = vmatprep.subr.bf16.mxu1 %v12798_v22  ;;  %11470 = vmatpush3.bf16.msra.mxu0 %v12841_v28  ;;  %v12894_v22 = vld [vmem:[%s15426_s20 + $0xa0] sm:$0xff]  }
 0xc62   :  { %11471 = vmatprep.subr.bf16.mxu0 %v12842_v10  ;;  %v12914_v28 = vld [vmem:[%s15426_s20 + $0x80] sm:$0xff]  }
 0xc63   :  { %v12920_v10 = vld [vmem:[#allocation21 + $0x174] ss:$8 sps:$4 sm:$0xff]  }
 0xc64   :  { %8255 = vmatpush1.bf16.msra.mxu1 %v12796_v24  ;;  %v12898_v24 = vld [vmem:[%s15426_s20 + $0xd8] sm:$0xff]  }
 0xc65   :  { %8256 = vmatprep.subr.bf16.mxu1 %v12801_v25  ;;  %11472 = vmatpush3.bf16.msra.mxu0 %v12843_v34  ;;  %v12899_v25 = vld [vmem:[%s15426_s20 + $0x98] sm:$0xff]  }
 0xc66   :  { %11473 = vmatprep.subr.bf16.mxu0 %v12844_v16  ;;  %v15250_v34 = vld [vmem:[%s15460_s28 + $0x1b] sm:$0xf] }
 0xc67   :  { %v7464_v16 = vrot.slane %v15250_v34, %v14013_v31 }
 0xc68   :  { %8257 = vmatpush1.bf16.msra.mxu1 %v12799_v27  ;;  %v12909_v27 = vld [vmem:[%s15426_s20 + $0x88] sm:$0xff]  }
 0xc69   :  { %8258 = vmatprep.subr.bf16.mxu1 %v12804_v29  ;;  %11474 = vmatpush3.bf16.msra.mxu0 %v12845_v44  ;;  %v12913_v29 = vld [vmem:[%s15426_s20 + $0xc0] sm:$0xff]  }
 0xc6a   :  { %11475 = vmatprep.subr.bf16.mxu0 %v12846_v59 }
 0xc6c   :  { %8259 = vmatpush1.bf16.msra.mxu1 %v12802_v38 }
 0xc6d   :  { %8260 = vmatprep.subr.bf16.mxu1 %v12807_v9  ;;  %11476 = vmatpush3.bf16.msra.mxu0 %v12847_v54 }
 0xc6e   :  { %11477 = vmatprep.subr.bf16.mxu0 %v12848_v13 }
 0xc70   :  { %8261 = vmatpush1.bf16.msra.mxu1 %v12805_v11 }
 0xc71   :  { %8262 = vmatprep.subr.bf16.mxu1 %v12810_v37  ;;  %11478 = vmatpush3.bf16.msra.mxu0 %v12849_v47  ;;  %v7468_v37 = vrot.slane %v15250_v34, %v14019_v33 }
 0xc72   :  { %11479 = vmatprep.subr.bf16.mxu0 %v12850_v14 }
 0xc74   :  { %8263 = vmatpush1.bf16.msra.mxu1 %v12808_v49 }
 0xc75   :  { %8264 = vmatprep.subr.bf16.mxu1 %v12813_v55  ;;  %11480 = vmatpush3.bf16.msra.mxu0 %v12851_v30 }
 0xc76   :  { %11481 = vmatprep.subr.bf16.mxu0 %v12852_v2 }
 0xc78   :  { %8265 = vmatpush1.bf16.msra.mxu1 %v12811_v51 }
 0xc79   :  { %8266 = vmatprep.subr.bf16.mxu1 %v12816_v45  ;;  %11482 = vmatpush3.bf16.msra.mxu0 %v12853_v3  ;;  %v12862_v3 = vld [vmem:[#allocation21 + $0x54] ss:$8 sps:$4 sm:$0xff]  }
 0xc7a   :  { %9255 = vmatprep.subr.bf16.mxu0 %v12856_v36 }
 0xc7c   :  { %8267 = vmatpush2.bf16.msra.mxu1 %v12814_v35 }
 0xc7d   :  { %8268 = vmatprep.subr.bf16.mxu1 %v12819_v48 }
 0xc80   :  { %8269 = vmatpush2.bf16.msra.mxu1 %v12817_v52 }
 0xc81   :  { %8270 = vmatprep.subr.bf16.mxu1 %v12822_v43 }
 0xc84   :  { %8271 = vmatpush2.bf16.msra.mxu1 %v12820_v58 }
 0xc85   :  { %8272 = vmatprep.subr.bf16.mxu1 %v12825_v62 }
 0xc88   :  { %8273 = vmatpush2.bf16.msra.mxu1 %v12823_v63 }
 0xc89   :  { %8274 = vmatprep.subr.bf16.mxu1 %v12828_v57 }
 0xc8c   :  { %8275 = vmatpush2.bf16.msra.mxu1 %v12826_v1 }
 0xc8d   :  { %8276 = vmatprep.subr.bf16.mxu1 %v12831_v61 }
 0xc90   :  { %8277 = vmatpush2.bf16.msra.mxu1 %v12829_v40 }
 0xc91   :  { %8278 = vmatprep.subr.bf16.mxu1 %v12834_v4 }
 0xc94   :  { %8279 = vmatpush2.bf16.msra.mxu1 %v12832_v5 }
 0xc95   :  { %8280 = vmatprep.subr.bf16.mxu1 %v12837_v6 }
 0xc98   :  { %8281 = vmatpush2.bf16.msra.mxu1 %v12835_v12  ;;  %v12854_v12 = vld [vmem:[#allocation21 + $0x70] ss:$8 sps:$4 sm:$0xff]  }
 0xc99   :  { %11489 = vmatprep.subr.bf16.mxu1 %v12878_v17 }
 0xc9b   :  { %8283 = vmatmul.mubr.bf16.vlgmr.msra.gmra.mxu1 %v15146_v46  ;;  %v12888_v46 = vld [vmem:[%s15426_s20 + $0xe8] sm:$0xff]  }
 0xc9c   :  { %11490 = vmatpush3.bf16.msra.mxu1 %v12879_v18  ;;  %v12860_v18 = vld [vmem:[#allocation21 + $0x50] ss:$8 sps:$4 sm:$0xff]  }
 0xc9d   :  { %11491 = vmatprep.subr.bf16.mxu1 %v12883_v19 }
 0xca0   :  { %11492 = vmatpush3.bf16.msra.mxu1 %v12884_v20 }
 0xca1   :  { %11493 = vmatprep.subr.bf16.mxu1 %v12888_v46  ;;  %v12865_v46 = vld [vmem:[#allocation21 + $0x44] ss:$8 sps:$4 sm:$0xff]  }
 0xca4   :  { %11494 = vmatpush3.bf16.msra.mxu1 %v12889_v7 }
 0xca5   :  { %11495 = vmatprep.subr.bf16.mxu1 %v12893_v8 }
 0xca8   :  { %11496 = vmatpush3.bf16.msra.mxu1 %v12894_v22  ;;  %v12863_v22 = vld [vmem:[#allocation21 + $0x40] ss:$8 sps:$4 sm:$0xff]  }
 0xca9   :  { %11497 = vmatprep.subr.bf16.mxu1 %v12898_v24 }
 0xcac   :  { %11498 = vmatpush3.bf16.msra.mxu1 %v12899_v25 }
 0xcad   :  { %11499 = vmatprep.subr.bf16.mxu1 %v12903_v26  ;;  %v12868_v26 = vld [vmem:[#allocation21 + $0x34] ss:$8 sps:$4 sm:$0xff]  }
 0xcb0   :  { %11500 = vmatpush3.bf16.msra.mxu1 %v12904_v41 }
 0xcb1   :  { %11501 = vmatprep.subr.bf16.mxu1 %v12908_v15 }
 0xcb4   :  { %11502 = vmatpush3.bf16.msra.mxu1 %v12909_v27 }
 0xcb5   :  { %11503 = vmatprep.subr.bf16.mxu1 %v12913_v29  ;;  %v12866_v29 = vld [vmem:[#allocation21 + $0x30] ss:$8 sps:$4 sm:$0xff]  }
 0xcb8   :  { %11504 = vmatpush3.bf16.msra.mxu1 %v12914_v28 }
 0xcb9   :  { %9298 = vmatprep.subr.bf16.mxu1 %v12920_v10 }
 0xcdb   :  { %v8155_v38 = vpop.f32.mrf.mxu0 }
 0xcdc   :  { %v8156_v59 = vadd.f32 %v8155_v38, %v7464_v16 }
 0xcdd   :  { %v8157_v9 = vpop.f32.mrf.mxu0 }
 0xcde   :  { %v8158_v54 = vadd.f32 %v8157_v9, %v7468_v37 }
 0xcdf   :  { %v8159_v11 = vpop.f32.mrf.mxu0 }
 0xce0   :  { %v8160_v51 = vadd.f32 %v8159_v11, %v7464_v16  ;;  %v12871_v16 = vld [vmem:[#allocation21 + $0x24] ss:$8 sps:$4 sm:$0xff]  }
 0xce1   :  { %v8161_v49 = vpop.f32.mrf.mxu0 }
 0xce2   :  { %v8162_v48 = vadd.f32 %v8161_v49, %v7468_v37  ;;  %v12869_v49 = vld [vmem:[#allocation21 + $0x20] ss:$8 sps:$4 sm:$0xff]  }
 0xd1b   :  { %v8198_v44 = vpop.f32.mrf.mxu1 }
 0xd1c   :  { %v8199_v45 = vadd.f32 %v8198_v44, %v8156_v59 }
 0xd1d   :  { %v8200_v55 = vpop.f32.mrf.mxu1 }
 0xd1e   :  { %v8201_v52 = vadd.f32 %v8200_v55, %v8158_v54  ;;  %v8293_v57 = vadd.f32 %v8199_v45, %v14995_v56  ;;  %v12874_v54 = vld [vmem:[#allocation21 + $0x14] ss:$8 sps:$4 sm:$0xff]  }
 0xd1f   :  { %v8202_v35 = vpop.f32.mrf.mxu1 }
 0xd20   :  { %v8203_v43 = vadd.f32 %v8202_v35, %v8160_v51  ;;  %v8294_v1 = vadd.f32 %v8201_v52, %v14998_v32  ;;  %v12857_v32 = vld [vmem:[#allocation21 + $0x60] ss:$8 sps:$4 sm:$0xff]   ;;  %v12872_v52 = vld [vmem:[#allocation21 + $0x10] ss:$8 sps:$4 sm:$0xff]  }
 0xd21   :  { %v8204_v58 = vpop.f32.mrf.mxu1 }
 0xd22   :  { %v8297_v62 = vadd.f32 %v8203_v43, %v14992_v0  ;;  %v8205_v63 = vadd.f32 %v8204_v58, %v8162_v48  ;;  %v12859_v0 = vld [vmem:[#allocation21 + $0x64] ss:$8 sps:$4 sm:$0xff]  }
 0xd23   :  { %v12877_v43 = vld [vmem:[#allocation21 + $0x4] ss:$8 sps:$4 sm:$0xff]  }
 0xd24   :  { %v8792_v61 = vsel %vm670_vm5, %v8297_v62, 0.0  ;;  %v8298_v40 = vadd.f32 %v8205_v63, %v15003_v60  ;;  %v15264_v13 = vpack.c.bf16 %v8297_v62, %v8293_v57 }
 0xd25   :  { %v8793_v4 = vadd.f32 %v8792_v61, %v8293_v57  ;;  %v12882_v61 = vld [vmem:[#allocation21 + $0xf4] ss:$8 sps:$4 sm:$0xff]  }
 0xd26   :  { %v8800_v5 = vsel %vm670_vm5, %v8298_v40, 0.0  ;;  %v15262_v6 = vpack.c.bf16 %v8298_v40, %v8294_v1 }
 0xd27   :  { %v8794_v47 = vrot.slane %v8793_v4, 4  ;;  %v8801_v14 = vadd.f32 %v8800_v5, %v8294_v1 }
 0xd28   :  { %8535 = vmatprep.mubr.bf16.mxu0 %v15262_v6 }
 0xd29   :  { %v8795_v56 = vadd.f32 %v8794_v47, %v8793_v4  ;;  %v8802_v30 = vrot.slane %v8801_v14, 4  ;;  %8536 = vmatmul.mubr.bf16.vlgmr.msra.gmra.mxu0 %v15264_v13  ;;  %v12880_v47 = vld [vmem:[#allocation21 + $0xf0] ss:$8 sps:$4 sm:$0xff]  }
 0xd2a   :  { %9256 = vmatpush1.bf16.msra.mxu0 %v12854_v12 }
 0xd2b   :  { %v8796_v60 = vrot.slane %v8795_v56, 2  ;;  %v8803_v2 = vadd.f32 %v8802_v30, %v8801_v14  ;;  %9257 = vmatprep.subr.bf16.mxu0 %v12859_v0  ;;  %v12887_v14 = vld [vmem:[#allocation21 + $0xe4] ss:$8 sps:$4 sm:$0xff]  }
 0xd2d   :  { %v8797_v36 = vadd.f32 %v8796_v60, %v8795_v56  ;;  %v8804_v17 = vrot.slane %v8803_v2, 2  ;;  %v12885_v60 = vld [vmem:[#allocation21 + $0xe0] ss:$8 sps:$4 sm:$0xff]  }
 0xd2e   :  { %9258 = vmatpush1.bf16.msra.mxu0 %v12857_v32 }
 0xd2f   :  { %v8798_v19 = vrot.slane %v8797_v36, 1  ;;  %v8805_v20 = vadd.f32 %v8804_v17, %v8803_v2  ;;  %9259 = vmatprep.subr.bf16.mxu0 %v12862_v3  ;;  %v12892_v2 = vld [vmem:[#allocation21 + $0xd4] ss:$8 sps:$4 sm:$0xff]   ;;  %v8241_v17 = vpop.f32.mrf.mxu0 }
 0xd31   :  { %v8799_v7 = vadd.f32 %v8798_v19, %v8797_v36  ;;  %v8806_v8 = vrot.slane %v8805_v20, 1  ;;  %v12890_v36 = vld [vmem:[#allocation21 + $0xd0] ss:$8 sps:$4 sm:$0xff]   ;;  %v12895_v19 = vld [vmem:[#allocation21 + $0xc0] ss:$8 sps:$4 sm:$0xff]  }
 0xd32   :  { %9260 = vmatpush1.bf16.msra.mxu0 %v12860_v18  ;;  %v12897_v18 = vld [vmem:[#allocation21 + $0xc4] ss:$8 sps:$4 sm:$0xff]  }
 0xd33   :  { %v8824_v24 = vmul.f32 0.1, %v8799_v7  ;;  %v8807_v25 = vadd.f32 %v8806_v8, %v8805_v20  ;;  %9261 = vmatprep.subr.bf16.mxu0 %v12865_v46  ;;  %v8243_v20 = vpop.f32.mrf.mxu0  ;;  %v12902_v46 = vld [vmem:[#allocation21 + $0xb4] ss:$8 sps:$4 sm:$0xff]   ;;  %v12900_v7 = vld [vmem:[#allocation21 + $0xb0] ss:$8 sps:$4 sm:$0xff]  }
 0xd35   :  { %v15268_v41 = vsub.f32 %v8293_v57, %v8824_v24  ;;  %v15270_v15 = vsub.f32 %v8297_v62, %v8824_v24  ;;  %v8825_v27 = vmul.f32 0.1, %v8807_v25  ;;  %v8245_v8 = vpop.f32.mrf.mxu0  ;;  %v7472_v25 = vrot.slane %v15250_v34, %v14392_v21 }
 0xd36   :  { %9262 = vmatpush1.bf16.msra.mxu0 %v12863_v22  ;;  %v12907_v22 = vld [vmem:[#allocation21 + $0xa4] ss:$8 sps:$4 sm:$0xff]  }
 0xd37   :  { %v8836_v28 = vmul.f32 %v15268_v41, %v15268_v41  ;;  %v8840_v10 = vmul.f32 %v15270_v15, %v15270_v15  ;;  %v15276_v38 = vsub.f32 %v8294_v1, %v8825_v27  ;;  %v15278_v9 = vsub.f32 %v8298_v40, %v8825_v27  ;;  %9263 = vmatprep.subr.bf16.mxu0 %v12868_v26  ;;  %v12875_v1 = vld [vmem:[#allocation21] ss:$8 sps:$4 sm:$0xff]  }
 0xd38   :  { %v7476_v26 = vrot.slane %v15250_v34, %v14398_v23  ;;  %v12905_v27 = vld [vmem:[#allocation21 + $0xa0] ss:$8 sps:$4 sm:$0xff]   ;;  %v12910_v34 = vld [vmem:[#allocation21 + $0x90] ss:$8 sps:$4 sm:$0xff]  }
 0xd39   :  { %v8844_v11 = vsel %vm670_vm5, %v8840_v10, 0.0  ;;  %v8837_v37 = vmul.f32 %v15276_v38, %v15276_v38  ;;  %v8841_v44 = vmul.f32 %v15278_v9, %v15278_v9 }
 0xd3a   :  { %v8845_v59 = vadd.f32 %v8844_v11, %v8836_v28  ;;  %9264 = vmatpush1.bf16.msra.mxu0 %v12866_v29  ;;  %v8247_v28 = vpop.f32.mrf.mxu0  ;;  %v8244_v21 = vadd.f32 %v8243_v20, %v7476_v26 }
 0xd3b   :  { %v8852_v55 = vsel %vm670_vm5, %v8841_v44, 0.0  ;;  %9265 = vmatprep.subr.bf16.mxu0 %v12871_v16  ;;  %v12912_v16 = vld [vmem:[#allocation21 + $0x94] ss:$8 sps:$4 sm:$0xff]   ;;  %v8248_v23 = vadd.f32 %v8247_v28, %v7476_v26 }
 0xd3c   :  { %v8846_v51 = vrot.slane %v8845_v59, 4  ;;  %v8853_v45 = vadd.f32 %v8852_v55, %v8837_v37 }
 0xd3e   :  { %v8847_v35 = vadd.f32 %v8846_v51, %v8845_v59  ;;  %v8854_v48 = vrot.slane %v8853_v45, 4  ;;  %9266 = vmatpush1.bf16.msra.mxu0 %v12869_v49  ;;  %v8242_v49 = vadd.f32 %v8241_v17, %v7472_v25  ;;  %v12917_v51 = vld [vmem:[#allocation21 + $0x84] ss:$8 sps:$4 sm:$0xff]  }
 0xd3f   :  { %9267 = vmatprep.subr.bf16.mxu0 %v12874_v54  ;;  %v8246_v54 = vadd.f32 %v8245_v8, %v7472_v25 }
 0xd40   :  { %v8848_v58 = vrot.slane %v8847_v35, 2  ;;  %v8855_v62 = vadd.f32 %v8854_v48, %v8853_v45 }
 0xd42   :  { %v8849_v63 = vadd.f32 %v8848_v58, %v8847_v35  ;;  %v8856_v57 = vrot.slane %v8855_v62, 2  ;;  %9268 = vmatpush1.bf16.msra.mxu0 %v12872_v52 }
 0xd43   :  { %9269 = vmatprep.subr.bf16.mxu0 %v12877_v43 }
 0xd44   :  { %v8850_v40 = vrot.slane %v8849_v63, 1  ;;  %v8857_v4 = vadd.f32 %v8856_v57, %v8855_v62 }
 0xd46   :  { %v8851_v5 = vadd.f32 %v8850_v40, %v8849_v63  ;;  %v8858_v12 = vrot.slane %v8857_v4, 1  ;;  %9270 = vmatpush1.bf16.msra.mxu0 %v12875_v1 }
 0xd47   :  { %9271 = vmatprep.subr.bf16.mxu0 %v12882_v61  ;;  %v12915_v61 = vld [vmem:[#allocation21 + $0x80] ss:$8 sps:$4 sm:$0xff]  }
 0xd48   :  { %v8876_v0 = vmul.f32 0.1, %v8851_v5  ;;  %v8859_v56 = vadd.f32 %v8858_v12, %v8857_v4 }
 0xd4a   :  { %v8880_v30 = vadd.f32 1e-05, %v8876_v0  ;;  %v8877_v32 = vmul.f32 0.1, %v8859_v56  ;;  %9272 = vmatpush2.bf16.msra.mxu0 %v12880_v47 }
 0xd4b   :  { %9273 = vmatprep.subr.bf16.mxu0 %v12887_v14 }
 0xd4c   :  { %13174 = vrsqrt.f32 %v8880_v30  ;;  %v8881_v3 = vadd.f32 1e-05, %v8877_v32  ;;  %v12918_v30 = vld [vmem:[#allocation21 + $0x170] ss:$8 sps:$4 sm:$0xff]  }
 0xd4e   :  { %13176 = vrsqrt.f32 %v8881_v3  ;;  %9274 = vmatpush2.bf16.msra.mxu0 %v12885_v60  ;;  %v12923_v3 = vld [vmem:[#allocation21 + $0x164] ss:$8 sps:$4 sm:$0xff]  }
 0xd4f   :  { %9275 = vmatprep.subr.bf16.mxu0 %v12892_v2 }
 0xd52   :  { %9276 = vmatpush2.bf16.msra.mxu0 %v12890_v36 }
 0xd53   :  { %9277 = vmatprep.subr.bf16.mxu0 %v12897_v18 }
 0xd56   :  { %9278 = vmatpush2.bf16.msra.mxu0 %v12895_v19  ;;  %v12926_v19 = vld [vmem:[#allocation21 + $0x154] ss:$8 sps:$4 sm:$0xff]  }
 0xd57   :  { %9279 = vmatprep.subr.bf16.mxu0 %v12902_v46 }
 0xd59   :  { %v13175_v24 = vpop.eup %13174 }
 0xd5a   :  { %9280 = vmatpush2.bf16.msra.mxu0 %v12900_v7  ;;  %v8888_v11 = vmul.f32 %v13175_v24, %v15268_v41  ;;  %v8892_v37 = vmul.f32 %v13175_v24, %v15270_v15  ;;  %v12924_v7 = vld [vmem:[#allocation21 + $0x150] ss:$8 sps:$4 sm:$0xff]   ;;  %v12929_v24 = vld [vmem:[#allocation21 + $0x144] ss:$8 sps:$4 sm:$0xff]  }
 0xd5b   :  { %v13177_v29 = vpop.eup %13176  ;;  %v8284_v10 = vpop.f32.mrf.mxu1  ;;  %9281 = vmatprep.subr.bf16.mxu0 %v12907_v22 }
 0xd5c   :  { %v8893_v44 = vmul.f32 %v13177_v29, %v15278_v9  ;;  %v8889_v59 = vmul.f32 %v13177_v29, %v15276_v38  ;;  %v8285_v45 = vadd.f32 %v8284_v10, %v8242_v49  ;;  %v8904_v15 = vmul.f32 0.2, %v8888_v11  ;;  %v12932_v10 = vld [vmem:[#allocation21 + $0x134] ss:$8 sps:$4 sm:$0xff]  }
 0xd5d   :  { %v8286_v55 = vpop.f32.mrf.mxu1  ;;  %vm8896_vm9 = vcmp.ge.f32.partialorder %v8888_v11, 0.0  ;;  %v8908_v38 = vmul.f32 0.2, %v8892_v37  ;;  %vm8900_vm10 = vcmp.ge.f32.partialorder %v8892_v37, 0.0 }
 0xd5e   :  { %9282 = vmatpush2.bf16.msra.mxu0 %v12905_v27  ;;  %vm8897_vm7 = vcmp.ge.f32.partialorder %v8889_v59, 0.0  ;;  %vm8901_vm8 = vcmp.ge.f32.partialorder %v8893_v44, 0.0  ;;  %v8905_v41 = vmul.f32 0.2, %v8889_v59  ;;  %v8909_v48 = vmul.f32 0.2, %v8893_v44 }
 0xd5f   :  { %v8288_v35 = vpop.f32.mrf.mxu1  ;;  %9283 = vmatprep.subr.bf16.mxu0 %v12912_v16  ;;  %v8287_v52 = vadd.f32 %v8286_v55, %v8244_v21  ;;  %v8295_v40 = vadd.f32 %v8285_v45, %v15047_v42  ;;  %v8912_v4 = vsel %vm8896_vm9, %v8888_v11, %v8904_v15  ;;  %v8916_v14 = vsel %vm8900_vm10, %v8892_v37, %v8908_v38  ;;  %v12927_v27 = vld [vmem:[#allocation21 + $0x140] ss:$8 sps:$4 sm:$0xff]  }
 0xd60   :  { %v8289_v9 = vadd.f32 %v8288_v35, %v8246_v54  ;;  %v8913_v58 = vsel %vm8897_vm7, %v8889_v59, %v8905_v41  ;;  %v8917_v62 = vsel %vm8901_vm8, %v8893_v44, %v8909_v48  ;;  %v8920_v2 = vpack.c.bf16 %v8916_v14, %v8912_v4  ;;  %v12930_v44 = vld [vmem:[#allocation21 + $0x130] ss:$8 sps:$4 sm:$0xff]   ;;  %v12935_v54 = vld [vmem:[#allocation21 + $0x124] ss:$8 sps:$4 sm:$0xff]   ;;  %v12933_v35 = vld [vmem:[#allocation21 + $0x120] ss:$8 sps:$4 sm:$0xff]  }
 0xd61   :  { %v8290_v43 = vpop.f32.mrf.mxu1  ;;  %v8921_v1 = vpack.c.bf16 %v8917_v62, %v8913_v58  ;;  %v8296_v5 = vadd.f32 %v8287_v52, %v15050_v50  ;;  %v12938_v48 = vld [vmem:[#allocation21 + $0x114] ss:$8 sps:$4 sm:$0xff]   ;;  %v12941_v58 = vld [vmem:[#allocation21 + $0x104] ss:$8 sps:$4 sm:$0xff]   ;;  %v12942_v14 = vld [vmem:[#allocation21 + $0x1f0] ss:$8 sps:$4 sm:$0xff]  }
 0xd62   :  { %v8299_v63 = vadd.f32 %v8289_v9, %v15044_v39  ;;  %v8291_v57 = vadd.f32 %v8290_v43, %v8248_v23  ;;  %9284 = vmatpush2.bf16.msra.mxu0 %v12910_v34  ;;  %v12936_v43 = vld [vmem:[#allocation21 + $0x110] ss:$8 sps:$4 sm:$0xff]  }
 0xd63   :  { %9285 = vmatprep.subr.bf16.mxu0 %v12917_v51  ;;  %9287 = vmatprep.mubr.bf16.mxu0 %v8921_v1 }
 0xd64   :  { %v8808_v12 = vsel %vm670_vm5, %v8299_v63, 0.0  ;;  %v8300_v47 = vadd.f32 %v8291_v57, %v15055_v53  ;;  %v15302_v32 = vpack.c.bf16 %v8299_v63, %v8295_v40  ;;  %v12921_v53 = vld [vmem:[#allocation21 + $0x160] ss:$8 sps:$4 sm:$0xff]  }
 0xd65   :  { %v8809_v0 = vadd.f32 %v8808_v12, %v8295_v40 }
 0xd66   :  { %v8816_v56 = vsel %vm670_vm5, %v8300_v47, 0.0  ;;  %9286 = vmatpush2.bf16.msra.mxu0 %v12915_v61  ;;  %v15300_v39 = vpack.c.bf16 %v8300_v47, %v8296_v5  ;;  %v12939_v61 = vld [vmem:[#allocation21 + $0x100] ss:$8 sps:$4 sm:$0xff]  }
 0xd67   :  { %v8810_v42 = vrot.slane %v8809_v0, 4  ;;  %v8817_v60 = vadd.f32 %v8816_v56, %v8296_v5 }
 0xd68   :  { %8576 = vmatprep.mubr.bf16.mxu1 %v15300_v39 }
 0xd69   :  { %v8811_v50 = vadd.f32 %v8810_v42, %v8809_v0  ;;  %v8818_v36 = vrot.slane %v8817_v60, 4  ;;  %8577 = vmatmul.mubr.bf16.vlgmr.msra.gmra.mxu1 %v15302_v32  ;;  %9288 = vmatmul.mubr.bf16.vlgmr.msra.gmra.mxu0 %v8920_v2  ;;  %v12947_v0 = vld [vmem:[#allocation21 + $0x1e4] ss:$8 sps:$4 sm:$0xff]   ;;  %v12945_v2 = vld [vmem:[#allocation21 + $0x1e0] ss:$8 sps:$4 sm:$0xff]  }
 0xd6a   :  { %9299 = vmatpush1.bf16.msra.mxu1 %v12918_v30 }
 0xd6b   :  { %v8812_v17 = vrot.slane %v8811_v50, 2  ;;  %v8819_v18 = vadd.f32 %v8818_v36, %v8817_v60  ;;  %9300 = vmatprep.subr.bf16.mxu1 %v12923_v3  ;;  %v12950_v3 = vld [vmem:[#allocation21 + $0x1d4] ss:$8 sps:$4 sm:$0xff]   ;;  %v12948_v36 = vld [vmem:[#allocation21 + $0x1d0] ss:$8 sps:$4 sm:$0xff]  }
 0xd6d   :  { %v8813_v20 = vadd.f32 %v8812_v17, %v8811_v50  ;;  %v8820_v46 = vrot.slane %v8819_v18, 2  ;;  %v12951_v17 = vld [vmem:[#allocation21 + $0x1c0] ss:$8 sps:$4 sm:$0xff]  }
 0xd6e   :  { %9301 = vmatpush1.bf16.msra.mxu1 %v12921_v53  ;;  %v12953_v53 = vld [vmem:[#allocation21 + $0x1c4] ss:$8 sps:$4 sm:$0xff]  }
 0xd6f   :  { %v8814_v8 = vrot.slane %v8813_v20, 1  ;;  %v8821_v22 = vadd.f32 %v8820_v46, %v8819_v18  ;;  %9302 = vmatprep.subr.bf16.mxu1 %v12926_v19  ;;  %v12956_v18 = vld [vmem:[#allocation21 + $0x1b4] ss:$8 sps:$4 sm:$0xff]   ;;  %v12954_v19 = vld [vmem:[#allocation21 + $0x1b0] ss:$8 sps:$4 sm:$0xff]  }
 0xd71   :  { %v8815_v25 = vadd.f32 %v8814_v8, %v8813_v20  ;;  %v8822_v26 = vrot.slane %v8821_v22, 1  ;;  %v12959_v20 = vld [vmem:[#allocation21 + $0x1a4] ss:$8 sps:$4 sm:$0xff]  }
 0xd72   :  { %9303 = vmatpush1.bf16.msra.mxu1 %v12924_v7  ;;  %v12957_v7 = vld [vmem:[#allocation21 + $0x1a0] ss:$8 sps:$4 sm:$0xff]  }
 0xd73   :  { %v8826_v29 = vmul.f32 0.1, %v8815_v25  ;;  %v8823_v28 = vadd.f32 %v8822_v26, %v8821_v22  ;;  %9304 = vmatprep.subr.bf16.mxu1 %v12929_v24  ;;  %v12962_v22 = vld [vmem:[#allocation21 + $0x194] ss:$8 sps:$4 sm:$0xff]  }
 0xd75   :  { %v15306_v16 = vsub.f32 %v8295_v40, %v8826_v29  ;;  %v15308_v11 = vsub.f32 %v8299_v63, %v8826_v29  ;;  %v8827_v37 = vmul.f32 0.1, %v8823_v28  ;;  %v12944_v40 = vld [vmem:[#allocation21 + $0x1f4] ss:$8 sps:$4 sm:$0xff]   ;;  %v12960_v29 = vld [vmem:[#allocation21 + $0x190] ss:$8 sps:$4 sm:$0xff]  }
 0xd76   :  { %9305 = vmatpush1.bf16.msra.mxu1 %v12927_v27 }
 0xd77   :  { %v8838_v59 = vmul.f32 %v15306_v16, %v15306_v16  ;;  %v8842_v49 = vmul.f32 %v15308_v11, %v15308_v11  ;;  %v15314_v21 = vsub.f32 %v8296_v5, %v8827_v37  ;;  %v15316_v55 = vsub.f32 %v8300_v47, %v8827_v37  ;;  %9306 = vmatprep.subr.bf16.mxu1 %v12932_v10  ;;  %v12965_v37 = vld [vmem:[#allocation21 + $0x184] ss:$8 sps:$4 sm:$0xff]  }
 0xd79   :  { %v8860_v23 = vsel %vm670_vm5, %v8842_v49, 0.0  ;;  %v8839_v34 = vmul.f32 %v15314_v21, %v15314_v21  ;;  %v8843_v51 = vmul.f32 %v15316_v55, %v15316_v55 }
 0xd7a   :  { %v8861_v45 = vadd.f32 %v8860_v23, %v8838_v59  ;;  %9307 = vmatpush1.bf16.msra.mxu1 %v12930_v44 }
 0xd7b   :  { %v8868_v41 = vsel %vm670_vm5, %v8843_v51, 0.0  ;;  %9308 = vmatprep.subr.bf16.mxu1 %v12935_v54 }
 0xd7c   :  { %v8862_v15 = vrot.slane %v8861_v45, 4  ;;  %v8869_v52 = vadd.f32 %v8868_v41, %v8839_v34  ;;  %v12966_v34 = vld [vmem:[#allocation24 + $0x70] ss:$8 sps:$4 sm:$0xff]   ;;  %v12974_v41 = vld [vmem:[#allocation24 + $0x54] ss:$8 sps:$4 sm:$0xff]  }
 0xd7e   :  { %v8863_v9 = vadd.f32 %v8862_v15, %v8861_v45  ;;  %v8870_v38 = vrot.slane %v8869_v52, 4  ;;  %9309 = vmatpush1.bf16.msra.mxu1 %v12933_v35  ;;  %v12971_v45 = vld [vmem:[#allocation24 + $0x64] ss:$8 sps:$4 sm:$0xff]   ;;  %v12969_v35 = vld [vmem:[#allocation24 + $0x60] ss:$8 sps:$4 sm:$0xff]  }
 0xd7f   :  { %9310 = vmatprep.subr.bf16.mxu1 %v12938_v48  ;;  %v12972_v48 = vld [vmem:[#allocation24 + $0x50] ss:$8 sps:$4 sm:$0xff]   ;;  %v12977_v15 = vld [vmem:[#allocation24 + $0x44] ss:$8 sps:$4 sm:$0xff]  }
 0xd80   :  { %v8864_v62 = vrot.slane %v8863_v9, 2  ;;  %v8871_v63 = vadd.f32 %v8870_v38, %v8869_v52  ;;  %v12975_v52 = vld [vmem:[#allocation24 + $0x40] ss:$8 sps:$4 sm:$0xff]   ;;  %v12978_v38 = vld [vmem:[#allocation24 + $0x30] ss:$8 sps:$4 sm:$0xff]  }
 0xd82   :  { %v8865_v57 = vadd.f32 %v8864_v62, %v8863_v9  ;;  %v8872_v1 = vrot.slane %v8871_v63, 2  ;;  %9311 = vmatpush1.bf16.msra.mxu1 %v12936_v43  ;;  %v12980_v9 = vld [vmem:[#allocation24 + $0x34] ss:$8 sps:$4 sm:$0xff]   ;;  %v12983_v43 = vld [vmem:[#allocation24 + $0x24] ss:$8 sps:$4 sm:$0xff]  }
 0xd83   :  { %9312 = vmatprep.subr.bf16.mxu1 %v12941_v58  ;;  %v12981_v58 = vld [vmem:[#allocation24 + $0x20] ss:$8 sps:$4 sm:$0xff]   ;;  %v12986_v62 = vld [vmem:[#allocation24 + $0x14] ss:$8 sps:$4 sm:$0xff]  }
 0xd84   :  { %v8866_v4 = vrot.slane %v8865_v57, 1  ;;  %v8873_v5 = vadd.f32 %v8872_v1, %v8871_v63  ;;  %v12989_v63 = vld [vmem:[#allocation24 + $0x4] ss:$8 sps:$4 sm:$0xff]   ;;  %v12992_v1 = vld [vmem:[#allocation24 + $0xf4] ss:$8 sps:$4 sm:$0xff]  }
 0xd86   :  { %v8867_v12 = vadd.f32 %v8866_v4, %v8865_v57  ;;  %v8874_v47 = vrot.slane %v8873_v5, 1  ;;  %9313 = vmatpush1.bf16.msra.mxu1 %v12939_v61  ;;  %v12987_v57 = vld [vmem:[#allocation24] ss:$8 sps:$4 sm:$0xff]   ;;  %v12990_v61 = vld [vmem:[#allocation24 + $0xf0] ss:$8 sps:$4 sm:$0xff]  }
 0xd87   :  { %9314 = vmatprep.subr.bf16.mxu1 %v12944_v40  ;;  %v12995_v40 = vld [vmem:[#allocation24 + $0xe4] ss:$8 sps:$4 sm:$0xff]   ;;  %v12993_v4 = vld [vmem:[#allocation24 + $0xe0] ss:$8 sps:$4 sm:$0xff]  }
 0xd88   :  { %v8878_v56 = vmul.f32 0.1, %v8867_v12  ;;  %v8875_v30 = vadd.f32 %v8874_v47, %v8873_v5  ;;  %v12998_v5 = vld [vmem:[#allocation24 + $0xd4] ss:$8 sps:$4 sm:$0xff]   ;;  %v12996_v12 = vld [vmem:[#allocation24 + $0xd0] ss:$8 sps:$4 sm:$0xff]  }
 0xd89   :  { %v13001_v47 = vld [vmem:[#allocation24 + $0xc4] ss:$8 sps:$4 sm:$0xff]  }
 0xd8a   :  { %v8882_v42 = vadd.f32 1e-05, %v8878_v56  ;;  %v8879_v60 = vmul.f32 0.1, %v8875_v30  ;;  %9315 = vmatpush2.bf16.msra.mxu1 %v12942_v14  ;;  %v12999_v14 = vld [vmem:[#allocation24 + $0xc0] ss:$8 sps:$4 sm:$0xff]  }
 0xd8b   :  { %9316 = vmatprep.subr.bf16.mxu1 %v12947_v0  ;;  %v13004_v0 = vld [vmem:[#allocation24 + $0xb4] ss:$8 sps:$4 sm:$0xff]   ;;  %v13002_v56 = vld [vmem:[#allocation24 + $0xb0] ss:$8 sps:$4 sm:$0xff]   ;;  %v13007_v30 = vld [vmem:[#allocation24 + $0xa4] ss:$8 sps:$4 sm:$0xff]  }
 0xd8c   :  { %13178 = vrsqrt.f32 %v8882_v42  ;;  %v8883_v50 = vadd.f32 1e-05, %v8879_v60  ;;  %v13005_v42 = vld [vmem:[#allocation24 + $0xa0] ss:$8 sps:$4 sm:$0xff]   ;;  %v13010_v60 = vld [vmem:[#allocation24 + $0x94] ss:$8 sps:$4 sm:$0xff]  }
 0xd8e   :  { %13180 = vrsqrt.f32 %v8883_v50  ;;  %9317 = vmatpush2.bf16.msra.mxu1 %v12945_v2  ;;  %v13008_v2 = vld [vmem:[#allocation24 + $0x90] ss:$8 sps:$4 sm:$0xff]   ;;  %v13011_v50 = vld [vmem:[#allocation24 + $0x80] ss:$8 sps:$4 sm:$0xff]  }
 0xd8f   :  { %9318 = vmatprep.subr.bf16.mxu1 %v12950_v3  ;;  %v13013_v3 = vld [vmem:[#allocation24 + $0x84] ss:$8 sps:$4 sm:$0xff]  }
 0xd92   :  { %9319 = vmatpush2.bf16.msra.mxu1 %v12948_v36  ;;  %v13016_v36 = vld [vmem:[#allocation23 + $0x74] ss:$8 sps:$4 sm:$0xff]  }
 0xd93   :  { %9320 = vmatprep.subr.bf16.mxu1 %v12953_v53  ;;  %v13014_v53 = vld [vmem:[#allocation23 + $0x70] ss:$8 sps:$4 sm:$0xff]   ;;  %9578 = vmatprep.subr.bf16.mxu0 %v13016_v36 }
 0xd94   :  { %9579 = vmatpush1.bf16.msra.mxu0 %v13014_v53 }
 0xd96   :  { %9321 = vmatpush2.bf16.msra.mxu1 %v12951_v17  ;;  %v13019_v17 = vld [vmem:[#allocation23 + $0x64] ss:$8 sps:$4 sm:$0xff]  }
 0xd97   :  { %9322 = vmatprep.subr.bf16.mxu1 %v12956_v18  ;;  %v13017_v18 = vld [vmem:[#allocation23 + $0x60] ss:$8 sps:$4 sm:$0xff]   ;;  %9580 = vmatprep.subr.bf16.mxu0 %v13019_v17 }
 0xd98   :  { %9581 = vmatpush1.bf16.msra.mxu0 %v13017_v18 }
 0xd99   :  { %v13179_v46 = vpop.eup %13178 }
 0xd9a   :  { %9323 = vmatpush2.bf16.msra.mxu1 %v12954_v19  ;;  %v8894_v24 = vmul.f32 %v13179_v46, %v15308_v11  ;;  %v8890_v27 = vmul.f32 %v13179_v46, %v15306_v16  ;;  %v12963_v11 = vld [vmem:[#allocation21 + $0x180] ss:$8 sps:$4 sm:$0xff]   ;;  %v12968_v16 = vld [vmem:[#allocation24 + $0x74] ss:$8 sps:$4 sm:$0xff]   ;;  %v13025_v46 = vld [vmem:[#allocation23 + $0x44] ss:$8 sps:$4 sm:$0xff]  }
 0xd9b   :  { %v13181_v8 = vpop.eup %13180  ;;  %9324 = vmatprep.subr.bf16.mxu1 %v12959_v20  ;;  %v13022_v19 = vld [vmem:[#allocation23 + $0x54] ss:$8 sps:$4 sm:$0xff]   ;;  %v13020_v20 = vld [vmem:[#allocation23 + $0x50] ss:$8 sps:$4 sm:$0xff]  }
 0xd9c   :  { %v8895_v25 = vmul.f32 %v13181_v8, %v15316_v55  ;;  %v8891_v26 = vmul.f32 %v13181_v8, %v15314_v21  ;;  %v8906_v49 = vmul.f32 0.2, %v8890_v27  ;;  %v8910_v54 = vmul.f32 0.2, %v8894_v24  ;;  %9582 = vmatprep.subr.bf16.mxu0 %v13022_v19  ;;  %v13028_v8 = vld [vmem:[#allocation23 + $0x34] ss:$8 sps:$4 sm:$0xff]  }
 0xd9d   :  { %vm8898_vm13 = vcmp.ge.f32.partialorder %v8890_v27, 0.0  ;;  %vm8902_vm14 = vcmp.ge.f32.partialorder %v8894_v24, 0.0  ;;  %9583 = vmatpush1.bf16.msra.mxu0 %v13020_v20 }
 0xd9e   :  { %9325 = vmatpush2.bf16.msra.mxu1 %v12957_v7  ;;  %vm8899_vm11 = vcmp.ge.f32.partialorder %v8891_v26, 0.0  ;;  %vm8903_vm12 = vcmp.ge.f32.partialorder %v8895_v25, 0.0  ;;  %v8907_v28 = vmul.f32 0.2, %v8891_v26  ;;  %v8911_v10 = vmul.f32 0.2, %v8895_v25  ;;  %9584 = vmatprep.subr.bf16.mxu0 %v13025_v46 }
 0xd9f   :  { %9326 = vmatprep.subr.bf16.mxu1 %v12962_v22  ;;  %v8914_v21 = vsel %vm8898_vm13, %v8890_v27, %v8906_v49  ;;  %v8918_v55 = vsel %vm8902_vm14, %v8894_v24, %v8910_v54  ;;  %v13023_v7 = vld [vmem:[#allocation23 + $0x40] ss:$8 sps:$4 sm:$0xff]   ;;  %v13026_v22 = vld [vmem:[#allocation23 + $0x30] ss:$8 sps:$4 sm:$0xff]   ;;  %v13037_v27 = vld [vmem:[#allocation23 + $0x4] ss:$8 sps:$4 sm:$0xff]  }
 0xda0   :  { %v8915_v44 = vsel %vm8899_vm11, %v8891_v26, %v8907_v28  ;;  %v8919_v59 = vsel %vm8903_vm12, %v8895_v25, %v8911_v10  ;;  %v8922_v51 = vpack.c.bf16 %v8918_v55, %v8914_v21  ;;  %v13029_v24 = vld [vmem:[#allocation23 + $0x20] ss:$8 sps:$4 sm:$0xff]   ;;  %v13034_v25 = vld [vmem:[#allocation23 + $0x14] ss:$8 sps:$4 sm:$0xff]   ;;  %v13032_v26 = vld [vmem:[#allocation23 + $0x10] ss:$8 sps:$4 sm:$0xff]  }
 0xda1   :  { %v8923_v23 = vpack.c.bf16 %v8919_v59, %v8915_v44  ;;  %9585 = vmatpush1.bf16.msra.mxu0 %v13023_v7  ;;  %v13040_v28 = vld [vmem:[#allocation23 + $0xf4] ss:$8 sps:$4 sm:$0xff]   ;;  %v13038_v10 = vld [vmem:[#allocation23 + $0xf0] ss:$8 sps:$4 sm:$0xff]   ;;  %v13041_v44 = vld [vmem:[#allocation23 + $0xe0] ss:$8 sps:$4 sm:$0xff]  }
 0xda2   :  { %9327 = vmatpush2.bf16.msra.mxu1 %v12960_v29  ;;  %9586 = vmatprep.subr.bf16.mxu0 %v13028_v8  ;;  %v13035_v29 = vld [vmem:[#allocation23] ss:$8 sps:$4 sm:$0xff]   ;;  %v13046_v59 = vld [vmem:[#allocation23 + $0xd4] ss:$8 sps:$4 sm:$0xff]   ;;  %v13044_v49 = vld [vmem:[#allocation23 + $0xd0] ss:$8 sps:$4 sm:$0xff]  }
 0xda3   :  { %9330 = vmatprep.mubr.bf16.mxu1 %v8923_v23  ;;  %9328 = vmatprep.subr.bf16.mxu1 %v12965_v37  ;;  %v13043_v37 = vld [vmem:[#allocation23 + $0xe4] ss:$8 sps:$4 sm:$0xff]   ;;  %v13047_v23 = vld [vmem:[#allocation23 + $0xc0] ss:$8 sps:$4 sm:$0xff]   ;;  %v13050_v21 = vld [vmem:[#allocation23 + $0xb0] ss:$8 sps:$4 sm:$0xff]  }
 0xda4   :  { %v13049_v54 = vld [vmem:[#allocation23 + $0xc4] ss:$8 sps:$4 sm:$0xff]  }
 0xda5   :  { %9587 = vmatpush1.bf16.msra.mxu0 %v13026_v22 }
 0xda6   :  { %9329 = vmatpush2.bf16.msra.mxu1 %v12963_v11 }
 0xda7   :  { %9941 = vmatprep.subr.bf16.mxu1 %v12968_v16  ;;  %v13052_v16 = vld [vmem:[#allocation23 + $0xb4] ss:$8 sps:$4 sm:$0xff]  }
 0xda9   :  { %9331 = vmatmul.mubr.bf16.vlgmr.msra.gmra.mxu1 %v8922_v51  ;;  %v13053_v51 = vld [vmem:[#allocation23 + $0xa0] ss:$8 sps:$4 sm:$0xff]  }
 0xdaa   :  { %9942 = vmatpush1.bf16.msra.mxu1 %v12966_v34  ;;  %9973 = vmatprep.mubr.bf16.mxu1 %v15262_v6  ;;  %v12984_v6 = vld [vmem:[#allocation24 + $0x10] ss:$8 sps:$4 sm:$0xff]   ;;  %v13055_v34 = vld [vmem:[#allocation23 + $0xa4] ss:$8 sps:$4 sm:$0xff]  }
 0xdab   :  { %9943 = vmatprep.subr.bf16.mxu1 %v12971_v45 }
 0xdae   :  { %9944 = vmatpush1.bf16.msra.mxu1 %v12969_v35  ;;  %v13058_v35 = vld [vmem:[#allocation23 + $0x94] ss:$8 sps:$4 sm:$0xff]  }
 0xdaf   :  { %9945 = vmatprep.subr.bf16.mxu1 %v12974_v41  ;;  %v13056_v41 = vld [vmem:[#allocation23 + $0x90] ss:$8 sps:$4 sm:$0xff]  }
 0xdb2   :  { %9946 = vmatpush1.bf16.msra.mxu1 %v12972_v48 }
 0xdb3   :  { %9947 = vmatprep.subr.bf16.mxu1 %v12977_v15  ;;  %v11070_v15 = vld [vmem:[%s15460_s28 + $0x1f] ss:$0 sm:$0xff] }
 0xdb6   :  { %9948 = vmatpush1.bf16.msra.mxu1 %v12975_v52 }
 0xdb7   :  { %9949 = vmatprep.subr.bf16.mxu1 %v12980_v9 }
 0xdba   :  { %9950 = vmatpush1.bf16.msra.mxu1 %v12978_v38  ;;  %v13059_v38 = vld [vmem:[#allocation23 + $0x80] ss:$8 sps:$4 sm:$0xff]  }
 0xdbb   :  { %9951 = vmatprep.subr.bf16.mxu1 %v12983_v43  ;;  %v13061_v43 = vld [vmem:[#allocation23 + $0x84] ss:$8 sps:$4 sm:$0xff]  }
 0xdbe   :  { %9952 = vmatpush1.bf16.msra.mxu1 %v12981_v58 }
 0xdbf   :  { %9953 = vmatprep.subr.bf16.mxu1 %v12986_v62 }
 0xdc2   :  { %9954 = vmatpush1.bf16.msra.mxu1 %v12984_v6 }
 0xdc3   :  { %9955 = vmatprep.subr.bf16.mxu1 %v12989_v63 }
 0xdc6   :  { %9956 = vmatpush1.bf16.msra.mxu1 %v12987_v57 }
 0xdc7   :  { %9957 = vmatprep.subr.bf16.mxu1 %v12992_v1 }
 0xdca   :  { %9958 = vmatpush2.bf16.msra.mxu1 %v12990_v61  ;;  %v13064_v61 = vld [vmem:[#allocation24 + $0x174] ss:$8 sps:$4 sm:$0xff]  }
 0xdcb   :  { %9959 = vmatprep.subr.bf16.mxu1 %v12995_v40 }
 0xdce   :  { %9960 = vmatpush2.bf16.msra.mxu1 %v12993_v4 }
 0xdcf   :  { %9961 = vmatprep.subr.bf16.mxu1 %v12998_v5 }
 0xdd2   :  { %9962 = vmatpush2.bf16.msra.mxu1 %v12996_v12 }
 0xdd3   :  { %9963 = vmatprep.subr.bf16.mxu1 %v13001_v47 }
 0xdd6   :  { %9964 = vmatpush2.bf16.msra.mxu1 %v12999_v14 }
 0xdd7   :  { %9965 = vmatprep.subr.bf16.mxu1 %v13004_v0  ;;  %v8789_v0 = vld [vmem:[%s15460_s28 + $0x20] sm:$0x3] }
 0xdda   :  { %9966 = vmatpush2.bf16.msra.mxu1 %v13002_v56 }
 0xddb   :  { %9967 = vmatprep.subr.bf16.mxu1 %v13007_v30  ;;  %v8928_v30 = vrot.slane %v8789_v0, %v14013_v31 }
 0xdde   :  { %9968 = vmatpush2.bf16.msra.mxu1 %v13005_v42 }
 0xddf   :  { %9969 = vmatprep.subr.bf16.mxu1 %v13010_v60  ;;  %v8932_v60 = vrot.slane %v8789_v0, %v14019_v33 }
 0xde2   :  { %9970 = vmatpush2.bf16.msra.mxu1 %v13008_v2 }
 0xde3   :  { %9971 = vmatprep.subr.bf16.mxu1 %v13013_v3 }
 0xde6   :  { %9972 = vmatpush2.bf16.msra.mxu1 %v13011_v50 }
 0xde9   :  { %9974 = vmatmul.mubr.bf16.vlgmr.msra.gmra.mxu1 %v15264_v13  ;;  %v13031_v13 = vld [vmem:[#allocation23 + $0x24] ss:$8 sps:$4 sm:$0xff]   ;;  %v11483_v11 = vpop.f32.mrf.mxu0 }
 0xdea   :  { %9588 = vmatprep.subr.bf16.mxu0 %v13031_v13 }
 0xdeb   :  { %9589 = vmatpush1.bf16.msra.mxu0 %v13029_v24  ;;  %v11484_v55 = vpop.f32.mrf.mxu0 }
 0xdec   :  { %9590 = vmatprep.subr.bf16.mxu0 %v13034_v25  ;;  %v11485_v48 = vadd.f32 %v11484_v55, %v11483_v11 }
 0xded   :  { %v11486_v45 = vpop.f32.mrf.mxu0 }
 0xdee   :  { %v8538_v62 = vadd.f32 %v11485_v48, %v11070_v15 }
 0xdef   :  { %9591 = vmatpush1.bf16.msra.mxu0 %v13032_v26  ;;  %v11487_v52 = vpop.f32.mrf.mxu0 }
 0xdf0   :  { %9592 = vmatprep.subr.bf16.mxu0 %v13037_v27  ;;  %v11488_v6 = vadd.f32 %v11487_v52, %v11486_v45 }
 0xdf2   :  { %v8541_v4 = vadd.f32 %v11488_v6, %v11070_v15 }
 0xdf3   :  { %9593 = vmatpush1.bf16.msra.mxu0 %v13035_v29 }
 0xdf4   :  { %9594 = vmatprep.subr.bf16.mxu0 %v13040_v28 }
 0xdf7   :  { %9595 = vmatpush2.bf16.msra.mxu0 %v13038_v10 }
 0xdf8   :  { %9596 = vmatprep.subr.bf16.mxu0 %v13043_v37 }
 0xdfb   :  { %9597 = vmatpush2.bf16.msra.mxu0 %v13041_v44 }
 0xdfc   :  { %9598 = vmatprep.subr.bf16.mxu0 %v13046_v59 }
 0xdff   :  { %9599 = vmatpush2.bf16.msra.mxu0 %v13044_v49 }
 0xe00   :  { %9600 = vmatprep.subr.bf16.mxu0 %v13049_v54 }
 0xe03   :  { %9601 = vmatpush2.bf16.msra.mxu0 %v13047_v23 }
 0xe04   :  { %9602 = vmatprep.subr.bf16.mxu0 %v13052_v16 }
 0xe07   :  { %9603 = vmatpush2.bf16.msra.mxu0 %v13050_v21 }
 0xe08   :  { %9604 = vmatprep.subr.bf16.mxu0 %v13055_v34 }
 0xe0b   :  { %9605 = vmatpush2.bf16.msra.mxu0 %v13053_v51 }
 0xe0c   :  { %9606 = vmatprep.subr.bf16.mxu0 %v13058_v35 }
 0xe0f   :  { %9607 = vmatpush2.bf16.msra.mxu0 %v13056_v41 }
 0xe10   :  { %9608 = vmatprep.subr.bf16.mxu0 %v13061_v43 }
 0xe13   :  { %9609 = vmatpush2.bf16.msra.mxu0 %v13059_v38 }
 0xe14   :  { %9984 = vmatprep.subr.bf16.mxu0 %v13064_v61 }
 0xe29   :  { %v11505_v9 = vpop.f32.mrf.mxu1  ;;  %v9289_v47 = vpop.f32.mrf.mxu0 }
 0xe2a   :  { %v9290_v36 = vadd.f32 %v9289_v47, %v8928_v30 }
 0xe2b   :  { %v11506_v58 = vpop.f32.mrf.mxu1  ;;  %v9291_v14 = vpop.f32.mrf.mxu0 }
 0xe2c   :  { %v11507_v63 = vadd.f32 %v11506_v58, %v11505_v9  ;;  %v9292_v19 = vadd.f32 %v9291_v14, %v8932_v60 }
 0xe2d   :  { %v11508_v57 = vpop.f32.mrf.mxu1  ;;  %v9293_v56 = vpop.f32.mrf.mxu0 }
 0xe2e   :  { %v8579_v1 = vadd.f32 %v11507_v63, %v8538_v62  ;;  %v9294_v50 = vadd.f32 %v9293_v56, %v8928_v30 }
 0xe2f   :  { %v11509_v40 = vpop.f32.mrf.mxu1  ;;  %v9295_v2 = vpop.f32.mrf.mxu0 }
 0xe30   :  { %v11510_v5 = vadd.f32 %v11509_v40, %v11508_v57  ;;  %8587 = vrot.lane.b32.xlu0 %v8579_v1, %s13530_s3  ;;  %v9296_v17 = vadd.f32 %v9295_v2, %v8932_v60 }
 0xe32   :  { %v8582_v12 = vadd.f32 %v11510_v5, %v8541_v4 }
 0xe34   :  { %8589 = vrot.lane.b32.xlu1 %v8582_v12, %s13530_s3 }
 0xe69   :  { %v9332_v42 = vpop.f32.mrf.mxu1 }
 0xe6a   :  { %v9333_v20 = vadd.f32 %v9332_v42, %v9290_v36 }
 0xe6b   :  { %v9334_v3 = vpop.f32.mrf.mxu1 }
 0xe6c   :  { %v9335_v22 = vadd.f32 %v9334_v3, %v9292_v19 }
 0xe6d   :  { %v9336_v53 = vpop.f32.mrf.mxu1 }
 0xe6e   :  { %v9337_v18 = vadd.f32 %v9336_v53, %v9294_v50 }
 0xe6f   :  { %v9338_v46 = vpop.f32.mrf.mxu1 }
 0xe70   :  { %v9341_v7 = vsel %vm670_vm5, %v9337_v18, 0.0  ;;  %v9339_v8 = vadd.f32 %v9338_v46, %v9296_v17 }
 0xe71   :  { %v9342_v13 = vadd.f32 %v9341_v7, %v9333_v20 }
 0xe72   :  { %v9349_v24 = vsel %vm670_vm5, %v9339_v8, 0.0 }
 0xe73   :  { %v9343_v25 = vrot.slane %v9342_v13, 4  ;;  %v9350_v26 = vadd.f32 %v9349_v24, %v9335_v22 }
 0xe75   :  { %v9344_v27 = vadd.f32 %v9343_v25, %v9342_v13  ;;  %v9351_v29 = vrot.slane %v9350_v26, 4  ;;  %v13062_v25 = vld [vmem:[#allocation24 + $0x170] ss:$8 sps:$4 sm:$0xff]  }
 0xe77   :  { %v9345_v28 = vrot.slane %v9344_v27, 2  ;;  %v9352_v10 = vadd.f32 %v9351_v29, %v9350_v26  ;;  %v13065_v29 = vld [vmem:[#allocation24 + $0x160] ss:$8 sps:$4 sm:$0xff]  }
 0xe79   :  { %v9346_v37 = vadd.f32 %v9345_v28, %v9344_v27  ;;  %v9353_v44 = vrot.slane %v9352_v10, 2  ;;  %v13067_v27 = vld [vmem:[#allocation24 + $0x164] ss:$8 sps:$4 sm:$0xff]   ;;  %v13070_v28 = vld [vmem:[#allocation24 + $0x154] ss:$8 sps:$4 sm:$0xff]  }
 0xe7b   :  { %v9347_v59 = vrot.slane %v9346_v37, 1  ;;  %v9354_v49 = vadd.f32 %v9353_v44, %v9352_v10  ;;  %v13068_v10 = vld [vmem:[#allocation24 + $0x150] ss:$8 sps:$4 sm:$0xff]   ;;  %v13071_v44 = vld [vmem:[#allocation24 + $0x140] ss:$8 sps:$4 sm:$0xff]  }
 0xe7d   :  { %v9348_v54 = vadd.f32 %v9347_v59, %v9346_v37  ;;  %v9355_v23 = vrot.slane %v9354_v49, 1  ;;  %v13073_v37 = vld [vmem:[#allocation24 + $0x144] ss:$8 sps:$4 sm:$0xff]   ;;  %v13076_v59 = vld [vmem:[#allocation24 + $0x134] ss:$8 sps:$4 sm:$0xff]  }
 0xe7f   :  { %v9357_v11 = vmul.f32 0.1, %v9348_v54  ;;  %v9356_v16 = vadd.f32 %v9355_v23, %v9354_v49  ;;  %v13074_v49 = vld [vmem:[#allocation24 + $0x130] ss:$8 sps:$4 sm:$0xff]   ;;  %v13079_v54 = vld [vmem:[#allocation24 + $0x124] ss:$8 sps:$4 sm:$0xff]  }
 0xe80   :  { %v13077_v23 = vld [vmem:[#allocation24 + $0x120] ss:$8 sps:$4 sm:$0xff]  }
 0xe81   :  { %v9359_v21 = vsub.f32 %v9333_v20, %v9357_v11  ;;  %v9361_v55 = vsub.f32 %v9337_v18, %v9357_v11  ;;  %v9358_v34 = vmul.f32 0.1, %v9356_v16  ;;  %v13082_v11 = vld [vmem:[#allocation24 + $0x114] ss:$8 sps:$4 sm:$0xff]   ;;  %v13085_v16 = vld [vmem:[#allocation24 + $0x104] ss:$8 sps:$4 sm:$0xff]  }
 0xe83   :  { %v9363_v51 = vmul.f32 %v9359_v21, %v9359_v21  ;;  %v9365_v45 = vmul.f32 %v9361_v55, %v9361_v55  ;;  %v9360_v35 = vsub.f32 %v9335_v22, %v9358_v34  ;;  %v9362_v41 = vsub.f32 %v9339_v8, %v9358_v34  ;;  %v13086_v34 = vld [vmem:[#allocation24 + $0x1f0] ss:$8 sps:$4 sm:$0xff]  }
 0xe85   :  { %v9367_v48 = vsel %vm670_vm5, %v9365_v45, 0.0  ;;  %v9364_v15 = vmul.f32 %v9360_v35, %v9360_v35  ;;  %v9366_v52 = vmul.f32 %v9362_v41, %v9362_v41  ;;  %v13089_v45 = vld [vmem:[#allocation24 + $0x1e0] ss:$8 sps:$4 sm:$0xff]  }
 0xe86   :  { %v9368_v9 = vadd.f32 %v9367_v48, %v9363_v51  ;;  %v13091_v51 = vld [vmem:[#allocation24 + $0x1e4] ss:$8 sps:$4 sm:$0xff]  }
 0xe87   :  { %v9375_v38 = vsel %vm670_vm5, %v9366_v52, 0.0  ;;  %vm8593_vm5 = vcmask 244928   ;;  %v13097_v48 = vld [vmem:[#allocation24 + $0x1c4] ss:$8 sps:$4 sm:$0xff]   ;;  %v13100_v52 = vld [vmem:[#allocation24 + $0x1b4] ss:$8 sps:$4 sm:$0xff]  }
 0xe88   :  { %v9369_v43 = vrot.slane %v9368_v9, 4  ;;  %v9376_v58 = vadd.f32 %v9375_v38, %v9364_v15  ;;  %v13095_v15 = vld [vmem:[#allocation24 + $0x1c0] ss:$8 sps:$4 sm:$0xff]   ;;  %v13103_v38 = vld [vmem:[#allocation24 + $0x1a4] ss:$8 sps:$4 sm:$0xff]  }
 0xe8a   :  { %v9370_v62 = vadd.f32 %v9369_v43, %v9368_v9  ;;  %v9377_v6 = vrot.slane %v9376_v58, 4  ;;  %v13098_v9 = vld [vmem:[#allocation24 + $0x1b0] ss:$8 sps:$4 sm:$0xff]   ;;  %v13101_v43 = vld [vmem:[#allocation24 + $0x1a0] ss:$8 sps:$4 sm:$0xff]  }
 0xe8c   :  { %v9371_v63 = vrot.slane %v9370_v62, 2  ;;  %v9378_v57 = vadd.f32 %v9377_v6, %v9376_v58  ;;  %v13106_v58 = vld [vmem:[#allocation24 + $0x194] ss:$8 sps:$4 sm:$0xff]   ;;  %v13109_v6 = vld [vmem:[#allocation24 + $0x184] ss:$8 sps:$4 sm:$0xff]  }
 0xe8e   :  { %v9372_v1 = vadd.f32 %v9371_v63, %v9370_v62  ;;  %v9379_v61 = vrot.slane %v9378_v57, 2  ;;  %v13104_v62 = vld [vmem:[#allocation24 + $0x190] ss:$8 sps:$4 sm:$0xff]   ;;  %v13107_v63 = vld [vmem:[#allocation24 + $0x180] ss:$8 sps:$4 sm:$0xff]  }
 0xe90   :  { %v9373_v40 = vrot.slane %v9372_v1, 1  ;;  %v9380_v4 = vadd.f32 %v9379_v61, %v9378_v57  ;;  %v13110_v57 = vld [vmem:[%s15430_s24 + $0x78] sm:$0xff]   ;;  %v13112_v61 = vld [vmem:[%s15430_s24 + $0x70] sm:$0xff]  }
 0xe91   :  { %11511 = vmatprep.subr.bf16.mxu1 %v13110_v57 }
 0xe92   :  { %v9374_v5 = vadd.f32 %v9373_v40, %v9372_v1  ;;  %v9381_v12 = vrot.slane %v9380_v4, 1  ;;  %v13111_v1 = vld [vmem:[%s15430_s24 + $0x38] sm:$0xff]   ;;  %v13113_v40 = vld [vmem:[%s15430_s24 + $0x30] sm:$0xff]  }
 0xe93   :  { %11512 = vmatpush3.bf16.msra.mxu1 %v13111_v1 }
 0xe94   :  { %v9383_v47 = vmul.f32 0.1, %v9374_v5  ;;  %v9382_v14 = vadd.f32 %v9381_v12, %v9380_v4  ;;  %11513 = vmatprep.subr.bf16.mxu1 %v13112_v61  ;;  %v13115_v4 = vld [vmem:[%s15430_s24 + $0x28] sm:$0xff]   ;;  %v13116_v5 = vld [vmem:[%s15430_s24 + $0x60] sm:$0xff]  }
 0xe95   :  { %v13117_v12 = vld [vmem:[%s15430_s24 + $0x20] sm:$0xff]  }
 0xe96   :  { %v9385_v0 = vadd.f32 1e-05, %v9383_v47  ;;  %v9384_v56 = vmul.f32 0.1, %v9382_v14  ;;  %v13118_v47 = vld [vmem:[%s15430_s24 + $0x58] sm:$0xff]  }
 0xe97   :  { %11514 = vmatpush3.bf16.msra.mxu1 %v13113_v40  ;;  %v13119_v14 = vld [vmem:[%s15430_s24 + $0x18] sm:$0xff]  }
 0xe98   :  { %13182 = vrsqrt.f32 %v9385_v0  ;;  %v9386_v30 = vadd.f32 1e-05, %v9384_v56  ;;  %v13120_v0 = vld [vmem:[%s15430_s24 + $0x50] sm:$0xff]  }
 0xe99   :  { %v13121_v56 = vld [vmem:[%s15430_s24 + $0x10] sm:$0xff]  }
 0xe9a   :  { %13184 = vrsqrt.f32 %v9386_v30  ;;  %v13122_v30 = vld [vmem:[%s15430_s24 + $0x48] sm:$0xff]  }
 0xea2   :  { %v8588_v42 = vpop.permute.xlu0 %8587 }
 0xea3   :  { %8594 = vst.msk [vmem:[#allocation26] sm:$0xff] %vm8593_vm5, %v8588_v42  ;;  %v13123_v42 = vld [vmem:[%s15430_s24 + $0x8] sm:$0xff]  }
 0xea5   :  { %v13183_v60 = vpop.eup %13182 }
 0xea6   :  { %v9389_v2 = vmul.f32 %v13183_v60, %v9359_v21  ;;  %v9391_v3 = vmul.f32 %v13183_v60, %v9361_v55  ;;  %v8590_v50 = vpop.permute.xlu1 %8589  ;;  %v13083_v21 = vld [vmem:[#allocation24 + $0x100] ss:$8 sps:$4 sm:$0xff]   ;;  %v13088_v55 = vld [vmem:[#allocation24 + $0x1f4] ss:$8 sps:$4 sm:$0xff]  }
 0xea7   :  { %v13185_v36 = vpop.eup %13184  ;;  %8596 = vst.msk [vmem:[#allocation26 + $0x8] sm:$0x3] %vm8595_vm15, %v8590_v50  ;;  %v13124_v60 = vld [vmem:[%s15430_s24 + $0x40] sm:$0xff]  }
 0xea8   :  { %vm9395_vm0 = vcmp.ge.f32.partialorder %v9391_v3, 0.0  ;;  %v9399_v53 = vmul.f32 0.2, %v9391_v3  ;;  %v9390_v17 = vmul.f32 %v13185_v36, %v9360_v35  ;;  %v9392_v18 = vmul.f32 %v13185_v36, %v9362_v41  ;;  %v13094_v35 = vld [vmem:[#allocation24 + $0x1d4] ss:$8 sps:$4 sm:$0xff]  }
 0xea9   :  { %vm9393_vm1 = vcmp.ge.f32.partialorder %v9389_v2, 0.0  ;;  %v9397_v19 = vmul.f32 0.2, %v9389_v2  ;;  %v13092_v41 = vld [vmem:[#allocation24 + $0x1d0] ss:$8 sps:$4 sm:$0xff]   ;;  %v9975_v36 = vpop.f32.mrf.mxu1 }
 0xeaa   :  { %v9400_v20 = vmul.f32 0.2, %v9392_v18  ;;  %vm9394_vm2 = vcmp.ge.f32.partialorder %v9390_v17, 0.0  ;;  %vm9396_vm3 = vcmp.ge.f32.partialorder %v9392_v18, 0.0  ;;  %v9398_v46 = vmul.f32 0.2, %v9390_v17 }
 0xeab   :  { %v9401_v7 = vsel %vm9393_vm1, %v9389_v2, %v9397_v19  ;;  %v9403_v8 = vsel %vm9395_vm0, %v9391_v3, %v9399_v53  ;;  %v13125_v2 = vld [vmem:[%s15430_s24] sm:$0xff]  }
 0xeac   :  { %v9402_v22 = vsel %vm9394_vm2, %v9390_v17, %v9398_v46  ;;  %v9404_v13 = vsel %vm9396_vm3, %v9392_v18, %v9400_v20  ;;  %v9405_v26 = vpack.c.bf16 %v9403_v8, %v9401_v7  ;;  %v9977_v17 = vpop.f32.mrf.mxu1  ;;  %v8790_v20 = vld [vmem:[%s15460_s28 + $0x22] sm:$0x3] }
 0xead   :  { %v9406_v24 = vpack.c.bf16 %v9404_v13, %v9402_v22  ;;  %v9415_v8 = vrot.slane %v8790_v20, %v14019_v33  ;;  %v9411_v22 = vrot.slane %v8790_v20, %v14013_v31  ;;  %v11263_v33 = vld [vmem:[%s15460_s28 + $0x24] ss:$0 sm:$0xff]  ;;  %s13466_s28 = scalar_lea.vmem %s10194_s10, 256 }
 0xeae   :  { %v9979_v46 = vpop.f32.mrf.mxu1  ;;  %p13467_p0 = scmp.ne.s32.totalorder %s10194_s10, %s13466_s28  ;;  %p13472_p2 = scmp.lt.s32.totalorder %s13466_s28, %s13466_s28 }
 0xeaf   :  { %9610 = vmatprep.mubr.bf16.mxu0 %v9406_v24 }
 0xeb0   :  { %9611 = vmatmul.mubr.bf16.vlgmr.msra.gmra.mxu0 %v9405_v26  ;;  %v9981_v26 = vpop.f32.mrf.mxu1  ;;  %p13473_p3 = por %p13472_p2, %p13471_p1 }
 0xeb1   :  { %9985 = vmatpush1.bf16.msra.mxu0 %v13062_v25  ;;  %10016 = vmatprep.mubr.bf16.mxu0 %v15300_v39  ;;  %v13080_v39 = vld [vmem:[#allocation24 + $0x110] ss:$8 sps:$4 sm:$0xff]  }
 0xeb2   :  { %9986 = vmatprep.subr.bf16.mxu0 %v13067_v27  ;;  %p13474_p4 = pnand %p13473_p3, %p13467_p0 }
 0xeb5   :  { %9987 = vmatpush1.bf16.msra.mxu0 %v13065_v29 }
 0xeb6   :  { %9988 = vmatprep.subr.bf16.mxu0 %v13070_v28 }
 0xeb9   :  { %9989 = vmatpush1.bf16.msra.mxu0 %v13068_v10 }
 0xeba   :  { %9990 = vmatprep.subr.bf16.mxu0 %v13073_v37 }
 0xebd   :  { %9991 = vmatpush1.bf16.msra.mxu0 %v13071_v44 }
 0xebe   :  { %9992 = vmatprep.subr.bf16.mxu0 %v13076_v59 }
 0xec1   :  { %9993 = vmatpush1.bf16.msra.mxu0 %v13074_v49 }
 0xec2   :  { %9994 = vmatprep.subr.bf16.mxu0 %v13079_v54 }
 0xec5   :  { %9995 = vmatpush1.bf16.msra.mxu0 %v13077_v23 }
 0xec6   :  { %9996 = vmatprep.subr.bf16.mxu0 %v13082_v11 }
 0xec9   :  { %9997 = vmatpush1.bf16.msra.mxu0 %v13080_v39 }
 0xeca   :  { %9998 = vmatprep.subr.bf16.mxu0 %v13085_v16 }
 0xecd   :  { %9999 = vmatpush1.bf16.msra.mxu0 %v13083_v21 }
 0xece   :  { %10000 = vmatprep.subr.bf16.mxu0 %v13088_v55 }
 0xed1   :  { %10001 = vmatpush2.bf16.msra.mxu0 %v13086_v34 }
 0xed2   :  { %10002 = vmatprep.subr.bf16.mxu0 %v13091_v51 }
 0xed5   :  { %10003 = vmatpush2.bf16.msra.mxu0 %v13089_v45 }
 0xed6   :  { %10004 = vmatprep.subr.bf16.mxu0 %v13094_v35 }
 0xed9   :  { %10005 = vmatpush2.bf16.msra.mxu0 %v13092_v41 }
 0xeda   :  { %10006 = vmatprep.subr.bf16.mxu0 %v13097_v48 }
 0xedd   :  { %10007 = vmatpush2.bf16.msra.mxu0 %v13095_v15 }
 0xede   :  { %10008 = vmatprep.subr.bf16.mxu0 %v13100_v52 }
 0xee1   :  { %10009 = vmatpush2.bf16.msra.mxu0 %v13098_v9 }
 0xee2   :  { %10010 = vmatprep.subr.bf16.mxu0 %v13103_v38 }
 0xee5   :  { %10011 = vmatpush2.bf16.msra.mxu0 %v13101_v43 }
 0xee6   :  { %10012 = vmatprep.subr.bf16.mxu0 %v13106_v58 }
 0xee9   :  { %10013 = vmatpush2.bf16.msra.mxu0 %v13104_v62 }
 0xeea   :  { %10014 = vmatprep.subr.bf16.mxu0 %v13109_v6 }
 0xeed   :  { %10015 = vmatpush2.bf16.msra.mxu0 %v13107_v63 }
 0xef0   :  { %10017 = vmatmul.mubr.bf16.vlgmr.msra.gmra.mxu0 %v15302_v32  ;;  %v13114_v32 = vld [vmem:[%s15430_s24 + $0x68] sm:$0xff]  }
 0xef1   :  { %11515 = vmatprep.subr.bf16.mxu1 %v13114_v32 }
 0xef2   :  { %11516 = vmatpush3.bf16.msra.mxu1 %v13115_v4 }
 0xef3   :  { %11517 = vmatprep.subr.bf16.mxu1 %v13116_v5 }
 0xef6   :  { %11518 = vmatpush3.bf16.msra.mxu1 %v13117_v12 }
 0xef7   :  { %11519 = vmatprep.subr.bf16.mxu1 %v13118_v47 }
 0xefa   :  { %11520 = vmatpush3.bf16.msra.mxu1 %v13119_v14 }
 0xefb   :  { %11521 = vmatprep.subr.bf16.mxu1 %v13120_v0 }
 0xefe   :  { %11522 = vmatpush3.bf16.msra.mxu1 %v13121_v56 }
 0xeff   :  { %11523 = vmatprep.subr.bf16.mxu1 %v13122_v30 }
 0xf02   :  { %11524 = vmatpush3.bf16.msra.mxu1 %v13123_v42 }
 0xf03   :  { %11525 = vmatprep.subr.bf16.mxu1 %v13124_v60 }
 0xf06   :  { %11526 = vmatpush3.bf16.msra.mxu1 %v13125_v2 }
 0xf70   :  { %v9612_v3 = vpop.f32.mrf.mxu0 }
 0xf71   :  { %v9613_v59 = vadd.f32 %v9612_v3, %v9411_v22 }
 0xf72   :  { %v9614_v50 = vpop.f32.mrf.mxu0 }
 0xf73   :  { %v9615_v10 = vadd.f32 %v9614_v50, %v9415_v8 }
 0xf74   :  { %v9616_v53 = vpop.f32.mrf.mxu0 }
 0xf75   :  { %v9617_v27 = vadd.f32 %v9616_v53, %v9411_v22 }
 0xf76   :  { %v9618_v18 = vpop.f32.mrf.mxu0 }
 0xf77   :  { %v9619_v37 = vadd.f32 %v9618_v18, %v9415_v8 }
 0xfb0   :  { %v10018_v19 = vpop.f32.mrf.mxu0 }
 0xfb1   :  { %v10019_v29 = vadd.f32 %v10018_v19, %v9975_v36 }
 0xfb2   :  { %v10020_v7 = vpop.f32.mrf.mxu0 }
 0xfb3   :  { %v10021_v24 = vadd.f32 %v10020_v7, %v9977_v17  ;;  %v10027_v11 = vadd.f32 %v10019_v29, %v9613_v59 }
 0xfb4   :  { %v10022_v13 = vpop.f32.mrf.mxu0 }
 0xfb5   :  { %v10023_v25 = vadd.f32 %v10022_v13, %v9979_v46  ;;  %v10028_v54 = vadd.f32 %v10021_v24, %v9615_v10 }
 0xfb6   :  { %v10024_v28 = vpop.f32.mrf.mxu0 }
 0xfb7   :  { %v10025_v44 = vadd.f32 %v10024_v28, %v9981_v26  ;;  %v10029_v49 = vadd.f32 %v10023_v25, %v9617_v27 }
 0xfb9   :  { %v10030_v23 = vadd.f32 %v10025_v44, %v9619_v37  ;;  %v10031_v16 = vpack.c.bf16 %v10029_v49, %v10027_v11 }
 0xfbb   :  { %v10032_v39 = vpack.c.bf16 %v10030_v23, %v10028_v54 }
 0xfbd   :  { %10167 = vmatprep.mubr.bf16.mxu1 %v10032_v39 }
 0xfbe   :  { %10168 = vmatmul.mubr.bf16.vlgmr.msra.gmra.mxu1 %v10031_v16 }
0x107e   :  { %v11527_v31 = vpop.f32.mrf.mxu1 }
0x1080   :  { %v11528_v21 = vpop.f32.mrf.mxu1 }
0x1081   :  { %v11529_v55 = vadd.f32 %v11528_v21, %v11527_v31 }
0x1082   :  { %v11530_v34 = vpop.f32.mrf.mxu1 }
0x1083   :  { %v10170_v51 = vadd.f32 %v11529_v55, %v11263_v33 }
0x1084   :  { %v11531_v45 = vpop.f32.mrf.mxu1 }
0x1085   :  { %v11532_v35 = vadd.f32 %v11531_v45, %v11530_v34  ;;  %10178 = vrot.lane.b32.xlu0 %v10170_v51, %s13531_s27 }
0x1087   :  { %v10173_v41 = vadd.f32 %v11532_v35, %v11263_v33 }
0x1089   :  { %10180 = vrot.lane.b32.xlu1 %v10173_v41, %s13531_s27 }
0x10f7   :  { %v10179_v48 = vpop.permute.xlu0 %10178 }
0x10f8   :  { %10185 = vst.msk [vmem:[#allocation26] sm:$0xff] %vm10184_vm4, %v10179_v48 }
0x10fb   :  { %v10181_v15 = vpop.permute.xlu1 %10180 }
0x10fc   :  { %10187 = vst.msk [vmem:[#allocation26 + $0x8] sm:$0x3] %vm10186_vm6, %v10181_v15 }
0x10fd   :  { %13477 = shalt.err (!%p13474_p4)
}
0x10fe   :  { %10199 = dma.vmem_to_hbm [thread:$0]  %s10194_s10, 256, %s15431_s25, [#allocation5], %s13510_s1, %s13510_s1, %s13511_s8  }
0x10ff   :  { %13502 = dma.done.wait [#allocation5], 256  }
0x1100   :  { %13503 = vsyncadd [#allocation5], 4294967040 }
0x1101   :  { %10203 = vsyncpa [#allocation4], 1 }
0x1102   :  { %10204 = vsyncpa [#allocation7], 1 }
0x1103   :  { %10205 = vsyncpa [#allocation10], 1 }
0x1104   :  { %10206 = vsyncpa [#allocation13], 1 }
0x1105   :  { %10207 = vsyncpa [#allocation16], 1 }
0x1106   :  { %10208 = vsyncpa [#allocation19], 1 }
0x1107   :  { %10209 = vsyncpa [#allocation22], 1 }
0x1108   :  { %10210 = vsyncpa [#allocation25], 1 }
0x1109   :  { %10211 = vsyncpa [#allocation5], 1 }

</bundles_post_ra>
